<compile_context>
chip_gen: v7x
topology: tpu7x:2x2x1
jax: 0.10.0
libtpu: 0.0.40
codegen_flags: <defaults>
</compile_context>

<pallas_src>
import numpy as np

import jax
import jax.numpy as jnp
from jax.experimental import pallas as pl
from jax.experimental.pallas import tpu as pltpu

NUM_CLASSES = 10
VOCAB_SIZE = 1000          # small synthetic vocab (module default is 10000)
EMBED_DIM = 64
TEXT_DIM = 128
IMAGE_DIM = 48 * 7 * 7     # 2352, as declared in the module
FUSION_DIM = 256

_VMEM = pltpu.MemorySpace.VMEM
_SMEM = pltpu.MemorySpace.SMEM

PARAM_ORDER = (
    "m0", "m1", "m2", "shd28", "shu28", "t1a", "t1b", "b1p",
    "r0", "r1", "r2", "shd14", "shu14", "t2a", "t2b", "b2p",
    "wimg", "wtxt", "bfus", "embed", "wtext", "btext",
    "w1q", "b1q", "w1f", "b1f", "w2s", "b2c",
)


# --------------------------------------------------------------------------
# Single fused Pallas kernel
# --------------------------------------------------------------------------
def _fused_forward_kernel(
    image_ref, text_ref,
    m0_ref, m1_ref, m2_ref, shd28_ref, shu28_ref, t1a_ref, t1b_ref, b1p_ref,
    r0_ref, r1_ref, r2_ref, shd14_ref, shu14_ref, t2a_ref, t2b_ref, b2p_ref,
    wimg_ref, wtxt_ref, bfus_ref, embed_ref, wtext_ref, btext_ref,
    w1q_ref, b1q_ref, w1f_ref, b1f_ref, w2s_ref, b2c_ref,
    out_ref,
):
    f32 = jnp.float32
    bf16 = jnp.bfloat16
    B = image_ref.shape[0]
    seq = text_ref.shape[1]
    vocab = embed_ref.shape[0]

    def mm(a, b):
        return jnp.dot(a, b, preferred_element_type=f32)

    ximg = image_ref[...]                                        # (B, 28, 28) f32
    tok_iota = jax.lax.broadcasted_iota(jnp.int32, (1, vocab), 1)

    for b in range(B):
        # ------------- image encoder: conv1 (1->16, 3x3, pad 1) -------------
        xb = ximg[b].astype(bf16)                                # (28, 28)
        p0 = mm(xb, m0_ref[...])                                 # horizontal-banded taps
        p1 = mm(xb, m1_ref[...])
        p2 = mm(xb, m2_ref[...])
        conv1 = (p1 + mm(shd28_ref[...], p0) + mm(shu28_ref[...], p2)
                 + b1p_ref[...])                                 # (28, 448), lane = w*16 + c
        h1 = jnp.maximum(conv1, 0.0)

        # fused 2x2 max-pool -> (14, 224)
        hrow = jnp.maximum(mm(t1a_ref[...], h1), mm(t1b_ref[...], h1))   # (14, 448)
        blocks = []
        for w in range(14):
            lo = hrow[:, (2 * w) * 16:(2 * w) * 16 + 16]
            hi = hrow[:, (2 * w + 1) * 16:(2 * w + 1) * 16 + 16]
            blocks.append(jnp.maximum(lo, hi))
        pool1 = jnp.concatenate(blocks, axis=1)                  # (14, 224)

        # ------------- conv2 (16->48, 3x3, pad 1) + 2x2 max-pool -------------
        pb = pool1.astype(bf16)
        q0 = mm(pb, r0_ref[...])
        q1 = mm(pb, r1_ref[...])
        q2 = mm(pb, r2_ref[...])
        conv2 = (q1 + mm(shd14_ref[...], q0) + mm(shu14_ref[...], q2)
                 + b2p_ref[...])                                 # (14, 672), lane = w*48 + c
        h2 = jnp.maximum(conv2, 0.0)

        hrow2 = jnp.maximum(mm(t2a_ref[...], h2), mm(t2b_ref[...], h2))  # (7, 672)
        blocks2 = []
        for w in range(7):
            lo = hrow2[:, (2 * w) * 48:(2 * w) * 48 + 48]
            hi = hrow2[:, (2 * w + 1) * 48:(2 * w + 1) * 48 + 48]
            blocks2.append(jnp.maximum(lo, hi))
        pool2 = jnp.concatenate(blocks2, axis=1).astype(bf16)    # (7, 336) image features

        # ------------- text encoder: embed mean-pool + proj + ReLU -----------
        # TODO(synk): ATQTextEncoder internals unavailable; synthesized as
        # embedding + mean-pool over sequence + Linear(E,128)+ReLU (no pad mask).
        onehot = jnp.zeros((1, vocab), f32)
        for s in range(seq):
            tok = text_ref[b, s]                                 # scalar from SMEM
            onehot = onehot + jnp.where(tok_iota == tok, 1.0 / seq, 0.0)
        pooled_t = mm(onehot.astype(bf16), embed_ref[...])       # (1, 64)
        txt = jnp.maximum(mm(pooled_t.astype(bf16), wtext_ref[...])
                          + btext_ref[...], 0.0)                 # (1, 128)

        # ------------- multimodal fusion (split-weight, no concat) -----------
        # TODO(synk): MultimodalFusion synthesized as concat + Linear + ReLU.
        acc = bfus_ref[...] + mm(txt.astype(bf16), wtxt_ref[...])        # (1, 256)
        for hh in range(7):
            wchunk = wimg_ref[pl.ds(hh * 336, 336), :]           # (336, 256) bf16
            acc = acc + mm(pool2[hh:hh + 1, :], wchunk)
        fused = jnp.maximum(acc, 0.0)                            # (1, 256)
        # dropout(p=0.2): identity at inference time.

        # ------------- classifier head (routing + quant/full + folded mix) ---
        # apply_selective_routing(x, threshold=0.05): zero small-magnitude entries
        routed = jnp.where(jnp.abs(fused) > 0.05, fused, 0.0)
        hq = jnp.maximum(mm(routed.astype(bf16), w1q_ref[...]) + b1q_ref[...], 0.0)
        hf = jnp.maximum(mm(fused.astype(bf16), w1f_ref[...]) + b1f_ref[...], 0.0)
        hcat = jnp.concatenate([hq, hf], axis=1)                 # (1, 256)
        # mix = sigmoid(mix_ratio) pre-folded into w2s / b2c at init time.
        out_b = mm(hcat, w2s_ref[...]) + b2c_ref[...]            # (1, num_classes)
        out_ref[pl.ds(b, 1), :] = out_b


def forward(params, image, text):
    B = image.shape[0]
    img = image.reshape(B, 28, 28).astype(jnp.float32)           # NCHW, C == 1

    operands = [img, text.astype(jnp.int32)] + [params[k] for k in PARAM_ORDER]
    in_specs = ([pl.BlockSpec(memory_space=_VMEM),
                 pl.BlockSpec(memory_space=_SMEM)]
                + [pl.BlockSpec(memory_space=_VMEM)] * len(PARAM_ORDER))

    return pl.pallas_call(
        _fused_forward_kernel,
        out_shape=jax.ShapeDtypeStruct((B, NUM_CLASSES), jnp.float32),
        in_specs=in_specs,
        out_specs=pl.BlockSpec(memory_space=_VMEM),
        cost_estimate=pl.CostEstimate(
            flops=50_000_000, transcendentals=0, bytes_accessed=4_000_000),
    )(*operands)


# --------------------------------------------------------------------------
# ATQ weight quantization (host-side parameter setup)
# --------------------------------------------------------------------------
# TODO(synk): exact TernaryLinear / ResidualPrecisionBoostLinear formulas were
# not provided; standard ternary quantization + top-|residual| boost is used.
def _ternary_quantize(w):
    delta = 0.7 * np.mean(np.abs(w))
    mask = (np.abs(w) > delta).astype(w.dtype)
    scale = (np.abs(w) * mask).sum() / max(mask.sum(), 1.0)
    return scale * np.sign(w) * mask


def _rpb_quantize(w, precision_ratio):
    wq = _ternary_quantize(w)
    resid = w - wq
    thresh = np.quantile(np.abs(resid), 1.0 - precision_ratio)
    return (wq + np.where(np.abs(resid) >= thresh, resid, 0.0)).astype(np.float32)


# --------------------------------------------------------------------------
# Host-side packing helpers (one-time, weights only)
# --------------------------------------------------------------------------
def _shift_matrices(n):
    shd = np.zeros((n, n), np.float32)        # row h takes row h-1
    shu = np.zeros((n, n), np.float32)        # row h takes row h+1
    for h in range(n):
        if h - 1 >= 0:
            shd[h, h - 1] = 1.0
        if h + 1 < n:
            shu[h, h + 1] = 1.0
    return shd, shu


def _pool_row_select(n):
    ta = np.zeros((n // 2, n), np.float32)
    tb = np.zeros((n // 2, n), np.float32)
    for h in range(n // 2):
        ta[h, 2 * h] = 1.0
        tb[h, 2 * h + 1] = 1.0
    return ta, tb


def _conv1_banded(w):
    # w: (Cout=16, 1, 3, 3) -> 3 matrices (28, 28*16); M_i[k, w*C+c] = w[c,0,i,k-w+1]
    cout, hdim = w.shape[0], 28
    mats = []
    for i in range(3):
        m = np.zeros((hdim, hdim * cout), np.float32)
        for wc in range(hdim):
            for j in range(3):
                k = wc + j - 1
                if 0 <= k < hdim:
                    m[k, wc * cout:(wc + 1) * cout] = w[:, 0, i, j]
        mats.append(m)
    return mats


def _conv2_banded(w):
    # w: (48, 16, 3, 3) -> 3 matrices (14*16, 14*48); blocks = w[:,:,i,j].T
    cout, cin, wd = w.shape[0], w.shape[1], 14
    mats = []
    for i in range(3):
        m = np.zeros((wd * cin, wd * cout), np.float32)
        for wc in range(wd):
            for j in range(3):
                k = wc + j - 1
                if 0 <= k < wd:
                    m[k * cin:(k + 1) * cin, wc * cout:(wc + 1) * cout] = w[:, :, i, j].T
        mats.append(m)
    return mats


# --------------------------------------------------------------------------
# Parameters
# --------------------------------------------------------------------------
def init_params(key):
    ks = jax.random.split(key, 10)

    def nrm(k, shape, fan_in):
        return np.asarray(jax.random.normal(k, shape, jnp.float32)) / np.sqrt(float(fan_in))

    # TODO(synk): ATQImageClassifier internals unavailable; synthesized as
    # conv(1->16,3x3)+ReLU+pool -> conv(16->48,3x3)+ReLU+pool -> flatten(48*7*7).
    conv1_w = _rpb_quantize(nrm(ks[0], (16, 1, 3, 3), 9), 0.1)
    conv1_b = np.zeros((16,), np.float32)
    conv2_w = _rpb_quantize(nrm(ks[1], (48, 16, 3, 3), 16 * 9), 0.1)
    conv2_b = np.zeros((48,), np.float32)

    embed = nrm(ks[2], (VOCAB_SIZE, EMBED_DIM), EMBED_DIM)
    text_w = nrm(ks[3], (EMBED_DIM, TEXT_DIM), EMBED_DIM)
    text_b = np.zeros((TEXT_DIM,), np.float32)

    fusion_w = nrm(ks[4], (IMAGE_DIM + TEXT_DIM, FUSION_DIM), IMAGE_DIM + TEXT_DIM)
    fusion_b = np.zeros((FUSION_DIM,), np.float32)

    w1q = _rpb_quantize(nrm(ks[5], (256, 128), 256), 0.1)
    b1q = np.zeros((128,), np.float32)
    w2q = _rpb_quantize(nrm(ks[6], (128, NUM_CLASSES), 128), 0.2)
    b2q = np.zeros((NUM_CLASSES,), np.float32)
    w1f = nrm(ks[7], (256, 128), 256)
    b1f = np.zeros((128,), np.float32)
    w2f = nrm(ks[8], (128, NUM_CLASSES), 128)
    b2f = np.zeros((NUM_CLASSES,), np.float32)
    mix = 1.0 / (1.0 + np.exp(-0.75))               # sigmoid(mix_ratio), inference constant

    # ---- pack / pre-transform for the fused kernel (free one-time host glue) ----
    m0, m1, m2 = _conv1_banded(conv1_w)
    r0, r1, r2 = _conv2_banded(conv2_w)
    shd28, shu28 = _shift_matrices(28)
    shd14, shu14 = _shift_matrices(14)
    t1a, t1b = _pool_row_select(28)
    t2a, t2b = _pool_row_select(14)
    b1p = np.tile(conv1_b, 28)[None, :]             # (1, 448)
    b2p = np.tile(conv2_b, 14)[None, :]             # (1, 672)

    # fusion weight: split image/text halves and permute image rows from the
    # PyTorch NCHW-flatten order (c*49 + h*7 + w) to the kernel's packed
    # (h, w, c) order -- removes the transpose + concat entirely.
    w_img = fusion_w[:IMAGE_DIM]
    w_txt = fusion_w[IMAGE_DIM:]
    perm = np.empty(IMAGE_DIM, np.int64)
    for hh in range(7):
        for ww in range(7):
            for cd in range(48):
                perm[hh * 336 + ww * 48 + cd] = cd * 49 + hh * 7 + ww
    wimg_packed = w_img[perm]

    # fold mix into the classifier second layer: one matmul instead of two + mix.
    w2s = np.concatenate([mix * w2q, (1.0 - mix) * w2f], axis=0)       # (256, C)
    b2c = (mix * b2q + (1.0 - mix) * b2f)[None, :]                     # (1, C)

    bf, f32 = jnp.bfloat16, jnp.float32
    return dict(
        m0=jnp.asarray(m0, bf), m1=jnp.asarray(m1, bf), m2=jnp.asarray(m2, bf),
        shd28=jnp.asarray(shd28, f32), shu28=jnp.asarray(shu28, f32),
        t1a=jnp.asarray(t1a, f32), t1b=jnp.asarray(t1b, f32),
        b1p=jnp.asarray(b1p, f32),
        r0=jnp.asarray(r0, bf), r1=jnp.asarray(r1, bf), r2=jnp.asarray(r2, bf),
        shd14=jnp.asarray(shd14, f32), shu14=jnp.asarray(shu14, f32),
        t2a=jnp.asarray(t2a, f32), t2b=jnp.asarray(t2b, f32),
        b2p=jnp.asarray(b2p, f32),
        wimg=jnp.asarray(wimg_packed, bf), wtxt=jnp.asarray(w_txt, bf),
        bfus=jnp.asarray(fusion_b[None, :], f32),
        embed=jnp.asarray(embed, bf),
        wtext=jnp.asarray(text_w, bf), btext=jnp.asarray(text_b[None, :], f32),
        w1q=jnp.asarray(w1q, bf), b1q=jnp.asarray(b1q[None, :], f32),
        w1f=jnp.asarray(w1f, bf), b1f=jnp.asarray(b1f[None, :], f32),
        w2s=jnp.asarray(w2s, f32), b2c=jnp.asarray(b2c, f32),
    )


# --------------------------------------------------------------------------
if __name__ == "__main__":
    key = jax.random.PRNGKey(0)
    pkey, ikey, tkey = jax.random.split(key, 3)

    params = init_params(pkey)
    image = jax.random.normal(ikey, (2, 1, 28, 28), jnp.float32)   # NCHW
    text = jax.random.randint(tkey, (2, 8), 0, VOCAB_SIZE, jnp.int32)

    out = jax.jit(forward)(params, image, text)
    jax.block_until_ready(out)
    assert out.shape == (2, NUM_CLASSES) and out.dtype == jnp.float32
    assert bool(jnp.all(jnp.isfinite(out)))
    print("KERNEL_OK")
</pallas_src>

<mosaic_0001>
module attributes {stable_mosaic.version = 11 : i64} {
  func.func @_fused_forward_kernel(%arg0: memref<2x28x28xf32, #tpu.memory_space<vmem>>, %arg1: memref<2x8xi32, #tpu.memory_space<smem>>, %arg2: memref<28x448xbf16, #tpu.memory_space<vmem>>, %arg3: memref<28x448xbf16, #tpu.memory_space<vmem>>, %arg4: memref<28x448xbf16, #tpu.memory_space<vmem>>, %arg5: memref<28x28xf32, #tpu.memory_space<vmem>>, %arg6: memref<28x28xf32, #tpu.memory_space<vmem>>, %arg7: memref<14x28xf32, #tpu.memory_space<vmem>>, %arg8: memref<14x28xf32, #tpu.memory_space<vmem>>, %arg9: memref<1x448xf32, #tpu.memory_space<vmem>>, %arg10: memref<224x672xbf16, #tpu.memory_space<vmem>>, %arg11: memref<224x672xbf16, #tpu.memory_space<vmem>>, %arg12: memref<224x672xbf16, #tpu.memory_space<vmem>>, %arg13: memref<14x14xf32, #tpu.memory_space<vmem>>, %arg14: memref<14x14xf32, #tpu.memory_space<vmem>>, %arg15: memref<7x14xf32, #tpu.memory_space<vmem>>, %arg16: memref<7x14xf32, #tpu.memory_space<vmem>>, %arg17: memref<1x672xf32, #tpu.memory_space<vmem>>, %arg18: memref<2352x256xbf16, #tpu.memory_space<vmem>>, %arg19: memref<128x256xbf16, #tpu.memory_space<vmem>>, %arg20: memref<1x256xf32, #tpu.memory_space<vmem>>, %arg21: memref<1000x64xbf16, #tpu.memory_space<vmem>>, %arg22: memref<64x128xbf16, #tpu.memory_space<vmem>>, %arg23: memref<1x128xf32, #tpu.memory_space<vmem>>, %arg24: memref<256x128xbf16, #tpu.memory_space<vmem>>, %arg25: memref<1x128xf32, #tpu.memory_space<vmem>>, %arg26: memref<256x128xbf16, #tpu.memory_space<vmem>>, %arg27: memref<1x128xf32, #tpu.memory_space<vmem>>, %arg28: memref<256x10xf32, #tpu.memory_space<vmem>>, %arg29: memref<1x10xf32, #tpu.memory_space<vmem>>, %arg30: memref<2x10xf32, #tpu.memory_space<vmem>>) attributes {dimension_semantics = [], scalar_prefetch = 0 : i64, scratch_operands = 0 : i64, tpu.core_type = #tpu.core_type<tc>} {
    %c0 = arith.constant 0 : index
    %c0_0 = arith.constant 0 : index
    %c0_1 = arith.constant 0 : index
    %0 = vector.load %arg0[%c0, %c0_0, %c0_1] : memref<2x28x28xf32, #tpu.memory_space<vmem>>, vector<2x28x28xf32>
    %1 = tpu.iota {dimensions = array<i32: 1>} : vector<1x1000xi32>
    %2 = vector.extract_strided_slice %0 {offsets = [0, 0, 0], sizes = [1, 28, 28], strides = [1, 1, 1]} : vector<2x28x28xf32> to vector<1x28x28xf32>
    %3 = vector.shape_cast %2 : vector<1x28x28xf32> to vector<28x28xf32>
    %4 = arith.truncf %3 : vector<28x28xf32> to vector<28x28xbf16>
    %c0_2 = arith.constant 0 : index
    %c0_3 = arith.constant 0 : index
    %5 = vector.load %arg2[%c0_2, %c0_3] : memref<28x448xbf16, #tpu.memory_space<vmem>>, vector<28x448xbf16>
    %cst = arith.constant dense<0.000000e+00> : vector<28x448xf32>
    %6 = tpu.matmul %4, %5, %cst {dimension_numbers = #tpu.dot_dimension_numbers<[1], [0], [0], [1], [0, 0, 1, 1], [], []>} : vector<28x28xbf16>, vector<28x448xbf16>, vector<28x448xf32> -> vector<28x448xf32>
    %c0_4 = arith.constant 0 : index
    %c0_5 = arith.constant 0 : index
    %7 = vector.load %arg3[%c0_4, %c0_5] : memref<28x448xbf16, #tpu.memory_space<vmem>>, vector<28x448xbf16>
    %cst_6 = arith.constant dense<0.000000e+00> : vector<28x448xf32>
    %8 = tpu.matmul %4, %7, %cst_6 {dimension_numbers = #tpu.dot_dimension_numbers<[1], [0], [0], [1], [0, 0, 1, 1], [], []>} : vector<28x28xbf16>, vector<28x448xbf16>, vector<28x448xf32> -> vector<28x448xf32>
    %c0_7 = arith.constant 0 : index
    %c0_8 = arith.constant 0 : index
    %9 = vector.load %arg4[%c0_7, %c0_8] : memref<28x448xbf16, #tpu.memory_space<vmem>>, vector<28x448xbf16>
    %cst_9 = arith.constant dense<0.000000e+00> : vector<28x448xf32>
    %10 = tpu.matmul %4, %9, %cst_9 {dimension_numbers = #tpu.dot_dimension_numbers<[1], [0], [0], [1], [0, 0, 1, 1], [], []>} : vector<28x28xbf16>, vector<28x448xbf16>, vector<28x448xf32> -> vector<28x448xf32>
    %c0_10 = arith.constant 0 : index
    %c0_11 = arith.constant 0 : index
    %11 = vector.load %arg5[%c0_10, %c0_11] : memref<28x28xf32, #tpu.memory_space<vmem>>, vector<28x28xf32>
    %cst_12 = arith.constant dense<0.000000e+00> : vector<28x448xf32>
    %12 = tpu.matmul %11, %6, %cst_12 {dimension_numbers = #tpu.dot_dimension_numbers<[1], [0], [0], [1], [0, 0, 1, 1], [], []>} : vector<28x28xf32>, vector<28x448xf32>, vector<28x448xf32> -> vector<28x448xf32>
    %13 = arith.addf %8, %12 : vector<28x448xf32>
    %c0_13 = arith.constant 0 : index
    %c0_14 = arith.constant 0 : index
    %14 = vector.load %arg6[%c0_13, %c0_14] : memref<28x28xf32, #tpu.memory_space<vmem>>, vector<28x28xf32>
    %cst_15 = arith.constant dense<0.000000e+00> : vector<28x448xf32>
    %15 = tpu.matmul %14, %10, %cst_15 {dimension_numbers = #tpu.dot_dimension_numbers<[1], [0], [0], [1], [0, 0, 1, 1], [], []>} : vector<28x28xf32>, vector<28x448xf32>, vector<28x448xf32> -> vector<28x448xf32>
    %16 = arith.addf %13, %15 : vector<28x448xf32>
    %c0_16 = arith.constant 0 : index
    %c0_17 = arith.constant 0 : index
    %17 = vector.load %arg9[%c0_16, %c0_17] : memref<1x448xf32, #tpu.memory_space<vmem>>, vector<1x448xf32>
    %18 = vector.broadcast %17 : vector<1x448xf32> to vector<28x448xf32>
    %19 = arith.addf %16, %18 : vector<28x448xf32>
    %cst_18 = arith.constant 0.000000e+00 : f32
    %20 = vector.broadcast %cst_18 : f32 to vector<28x448xf32>
    %21 = arith.maximumf %19, %20 : vector<28x448xf32>
    %c0_19 = arith.constant 0 : index
    %c0_20 = arith.constant 0 : index
    %22 = vector.load %arg7[%c0_19, %c0_20] : memref<14x28xf32, #tpu.memory_space<vmem>>, vector<14x28xf32>
    %cst_21 = arith.constant dense<0.000000e+00> : vector<14x448xf32>
    %23 = tpu.matmul %22, %21, %cst_21 {dimension_numbers = #tpu.dot_dimension_numbers<[1], [0], [0], [1], [0, 0, 1, 1], [], []>} : vector<14x28xf32>, vector<28x448xf32>, vector<14x448xf32> -> vector<14x448xf32>
    %c0_22 = arith.constant 0 : index
    %c0_23 = arith.constant 0 : index
    %24 = vector.load %arg8[%c0_22, %c0_23] : memref<14x28xf32, #tpu.memory_space<vmem>>, vector<14x28xf32>
    %cst_24 = arith.constant dense<0.000000e+00> : vector<14x448xf32>
    %25 = tpu.matmul %24, %21, %cst_24 {dimension_numbers = #tpu.dot_dimension_numbers<[1], [0], [0], [1], [0, 0, 1, 1], [], []>} : vector<14x28xf32>, vector<28x448xf32>, vector<14x448xf32> -> vector<14x448xf32>
    %26 = arith.maximumf %23, %25 : vector<14x448xf32>
    %27 = vector.extract_strided_slice %26 {offsets = [0, 0], sizes = [14, 16], strides = [1, 1]} : vector<14x448xf32> to vector<14x16xf32>
    %28 = vector.extract_strided_slice %26 {offsets = [0, 16], sizes = [14, 16], strides = [1, 1]} : vector<14x448xf32> to vector<14x16xf32>
    %29 = arith.maximumf %27, %28 : vector<14x16xf32>
    %30 = vector.extract_strided_slice %26 {offsets = [0, 32], sizes = [14, 16], strides = [1, 1]} : vector<14x448xf32> to vector<14x16xf32>
    %31 = vector.extract_strided_slice %26 {offsets = [0, 48], sizes = [14, 16], strides = [1, 1]} : vector<14x448xf32> to vector<14x16xf32>
    %32 = arith.maximumf %30, %31 : vector<14x16xf32>
    %33 = vector.extract_strided_slice %26 {offsets = [0, 64], sizes = [14, 16], strides = [1, 1]} : vector<14x448xf32> to vector<14x16xf32>
    %34 = vector.extract_strided_slice %26 {offsets = [0, 80], sizes = [14, 16], strides = [1, 1]} : vector<14x448xf32> to vector<14x16xf32>
    %35 = arith.maximumf %33, %34 : vector<14x16xf32>
    %36 = vector.extract_strided_slice %26 {offsets = [0, 96], sizes = [14, 16], strides = [1, 1]} : vector<14x448xf32> to vector<14x16xf32>
    %37 = vector.extract_strided_slice %26 {offsets = [0, 112], sizes = [14, 16], strides = [1, 1]} : vector<14x448xf32> to vector<14x16xf32>
    %38 = arith.maximumf %36, %37 : vector<14x16xf32>
    %39 = vector.extract_strided_slice %26 {offsets = [0, 128], sizes = [14, 16], strides = [1, 1]} : vector<14x448xf32> to vector<14x16xf32>
    %40 = vector.extract_strided_slice %26 {offsets = [0, 144], sizes = [14, 16], strides = [1, 1]} : vector<14x448xf32> to vector<14x16xf32>
    %41 = arith.maximumf %39, %40 : vector<14x16xf32>
    %42 = vector.extract_strided_slice %26 {offsets = [0, 160], sizes = [14, 16], strides = [1, 1]} : vector<14x448xf32> to vector<14x16xf32>
    %43 = vector.extract_strided_slice %26 {offsets = [0, 176], sizes = [14, 16], strides = [1, 1]} : vector<14x448xf32> to vector<14x16xf32>
    %44 = arith.maximumf %42, %43 : vector<14x16xf32>
    %45 = vector.extract_strided_slice %26 {offsets = [0, 192], sizes = [14, 16], strides = [1, 1]} : vector<14x448xf32> to vector<14x16xf32>
    %46 = vector.extract_strided_slice %26 {offsets = [0, 208], sizes = [14, 16], strides = [1, 1]} : vector<14x448xf32> to vector<14x16xf32>
    %47 = arith.maximumf %45, %46 : vector<14x16xf32>
    %48 = vector.extract_strided_slice %26 {offsets = [0, 224], sizes = [14, 16], strides = [1, 1]} : vector<14x448xf32> to vector<14x16xf32>
    %49 = vector.extract_strided_slice %26 {offsets = [0, 240], sizes = [14, 16], strides = [1, 1]} : vector<14x448xf32> to vector<14x16xf32>
    %50 = arith.maximumf %48, %49 : vector<14x16xf32>
    %51 = vector.extract_strided_slice %26 {offsets = [0, 256], sizes = [14, 16], strides = [1, 1]} : vector<14x448xf32> to vector<14x16xf32>
    %52 = vector.extract_strided_slice %26 {offsets = [0, 272], sizes = [14, 16], strides = [1, 1]} : vector<14x448xf32> to vector<14x16xf32>
    %53 = arith.maximumf %51, %52 : vector<14x16xf32>
    %54 = vector.extract_strided_slice %26 {offsets = [0, 288], sizes = [14, 16], strides = [1, 1]} : vector<14x448xf32> to vector<14x16xf32>
    %55 = vector.extract_strided_slice %26 {offsets = [0, 304], sizes = [14, 16], strides = [1, 1]} : vector<14x448xf32> to vector<14x16xf32>
    %56 = arith.maximumf %54, %55 : vector<14x16xf32>
    %57 = vector.extract_strided_slice %26 {offsets = [0, 320], sizes = [14, 16], strides = [1, 1]} : vector<14x448xf32> to vector<14x16xf32>
    %58 = vector.extract_strided_slice %26 {offsets = [0, 336], sizes = [14, 16], strides = [1, 1]} : vector<14x448xf32> to vector<14x16xf32>
    %59 = arith.maximumf %57, %58 : vector<14x16xf32>
    %60 = vector.extract_strided_slice %26 {offsets = [0, 352], sizes = [14, 16], strides = [1, 1]} : vector<14x448xf32> to vector<14x16xf32>
    %61 = vector.extract_strided_slice %26 {offsets = [0, 368], sizes = [14, 16], strides = [1, 1]} : vector<14x448xf32> to vector<14x16xf32>
    %62 = arith.maximumf %60, %61 : vector<14x16xf32>
    %63 = vector.extract_strided_slice %26 {offsets = [0, 384], sizes = [14, 16], strides = [1, 1]} : vector<14x448xf32> to vector<14x16xf32>
    %64 = vector.extract_strided_slice %26 {offsets = [0, 400], sizes = [14, 16], strides = [1, 1]} : vector<14x448xf32> to vector<14x16xf32>
    %65 = arith.maximumf %63, %64 : vector<14x16xf32>
    %66 = vector.extract_strided_slice %26 {offsets = [0, 416], sizes = [14, 16], strides = [1, 1]} : vector<14x448xf32> to vector<14x16xf32>
    %67 = vector.extract_strided_slice %26 {offsets = [0, 432], sizes = [14, 16], strides = [1, 1]} : vector<14x448xf32> to vector<14x16xf32>
    %68 = arith.maximumf %66, %67 : vector<14x16xf32>
    %69 = tpu.concatenate %29, %32, %35, %38, %41, %44, %47, %50, %53, %56, %59, %62, %65, %68 in 1 : vector<14x16xf32>, vector<14x16xf32>, vector<14x16xf32>, vector<14x16xf32>, vector<14x16xf32>, vector<14x16xf32>, vector<14x16xf32>, vector<14x16xf32>, vector<14x16xf32>, vector<14x16xf32>, vector<14x16xf32>, vector<14x16xf32>, vector<14x16xf32>, vector<14x16xf32> -> vector<14x224xf32>
    %70 = arith.truncf %69 : vector<14x224xf32> to vector<14x224xbf16>
    %c0_25 = arith.constant 0 : index
    %c0_26 = arith.constant 0 : index
    %71 = vector.load %arg10[%c0_25, %c0_26] : memref<224x672xbf16, #tpu.memory_space<vmem>>, vector<224x672xbf16>
    %cst_27 = arith.constant dense<0.000000e+00> : vector<14x672xf32>
    %72 = tpu.matmul %70, %71, %cst_27 {dimension_numbers = #tpu.dot_dimension_numbers<[1], [0], [0], [1], [0, 0, 1, 1], [], []>} : vector<14x224xbf16>, vector<224x672xbf16>, vector<14x672xf32> -> vector<14x672xf32>
    %c0_28 = arith.constant 0 : index
    %c0_29 = arith.constant 0 : index
    %73 = vector.load %arg11[%c0_28, %c0_29] : memref<224x672xbf16, #tpu.memory_space<vmem>>, vector<224x672xbf16>
    %cst_30 = arith.constant dense<0.000000e+00> : vector<14x672xf32>
    %74 = tpu.matmul %70, %73, %cst_30 {dimension_numbers = #tpu.dot_dimension_numbers<[1], [0], [0], [1], [0, 0, 1, 1], [], []>} : vector<14x224xbf16>, vector<224x672xbf16>, vector<14x672xf32> -> vector<14x672xf32>
    %c0_31 = arith.constant 0 : index
    %c0_32 = arith.constant 0 : index
    %75 = vector.load %arg12[%c0_31, %c0_32] : memref<224x672xbf16, #tpu.memory_space<vmem>>, vector<224x672xbf16>
    %cst_33 = arith.constant dense<0.000000e+00> : vector<14x672xf32>
    %76 = tpu.matmul %70, %75, %cst_33 {dimension_numbers = #tpu.dot_dimension_numbers<[1], [0], [0], [1], [0, 0, 1, 1], [], []>} : vector<14x224xbf16>, vector<224x672xbf16>, vector<14x672xf32> -> vector<14x672xf32>
    %c0_34 = arith.constant 0 : index
    %c0_35 = arith.constant 0 : index
    %77 = vector.load %arg13[%c0_34, %c0_35] : memref<14x14xf32, #tpu.memory_space<vmem>>, vector<14x14xf32>
    %cst_36 = arith.constant dense<0.000000e+00> : vector<14x672xf32>
    %78 = tpu.matmul %77, %72, %cst_36 {dimension_numbers = #tpu.dot_dimension_numbers<[1], [0], [0], [1], [0, 0, 1, 1], [], []>} : vector<14x14xf32>, vector<14x672xf32>, vector<14x672xf32> -> vector<14x672xf32>
    %79 = arith.addf %74, %78 : vector<14x672xf32>
    %c0_37 = arith.constant 0 : index
    %c0_38 = arith.constant 0 : index
    %80 = vector.load %arg14[%c0_37, %c0_38] : memref<14x14xf32, #tpu.memory_space<vmem>>, vector<14x14xf32>
    %cst_39 = arith.constant dense<0.000000e+00> : vector<14x672xf32>
    %81 = tpu.matmul %80, %76, %cst_39 {dimension_numbers = #tpu.dot_dimension_numbers<[1], [0], [0], [1], [0, 0, 1, 1], [], []>} : vector<14x14xf32>, vector<14x672xf32>, vector<14x672xf32> -> vector<14x672xf32>
    %82 = arith.addf %79, %81 : vector<14x672xf32>
    %c0_40 = arith.constant 0 : index
    %c0_41 = arith.constant 0 : index
    %83 = vector.load %arg17[%c0_40, %c0_41] : memref<1x672xf32, #tpu.memory_space<vmem>>, vector<1x672xf32>
    %84 = vector.broadcast %83 : vector<1x672xf32> to vector<14x672xf32>
    %85 = arith.addf %82, %84 : vector<14x672xf32>
    %cst_42 = arith.constant 0.000000e+00 : f32
    %86 = vector.broadcast %cst_42 : f32 to vector<14x672xf32>
    %87 = arith.maximumf %85, %86 : vector<14x672xf32>
    %c0_43 = arith.constant 0 : index
    %c0_44 = arith.constant 0 : index
    %88 = vector.load %arg15[%c0_43, %c0_44] : memref<7x14xf32, #tpu.memory_space<vmem>>, vector<7x14xf32>
    %cst_45 = arith.constant dense<0.000000e+00> : vector<7x672xf32>
    %89 = tpu.matmul %88, %87, %cst_45 {dimension_numbers = #tpu.dot_dimension_numbers<[1], [0], [0], [1], [0, 0, 1, 1], [], []>} : vector<7x14xf32>, vector<14x672xf32>, vector<7x672xf32> -> vector<7x672xf32>
    %c0_46 = arith.constant 0 : index
    %c0_47 = arith.constant 0 : index
    %90 = vector.load %arg16[%c0_46, %c0_47] : memref<7x14xf32, #tpu.memory_space<vmem>>, vector<7x14xf32>
    %cst_48 = arith.constant dense<0.000000e+00> : vector<7x672xf32>
    %91 = tpu.matmul %90, %87, %cst_48 {dimension_numbers = #tpu.dot_dimension_numbers<[1], [0], [0], [1], [0, 0, 1, 1], [], []>} : vector<7x14xf32>, vector<14x672xf32>, vector<7x672xf32> -> vector<7x672xf32>
    %92 = arith.maximumf %89, %91 : vector<7x672xf32>
    %93 = vector.extract_strided_slice %92 {offsets = [0, 0], sizes = [7, 48], strides = [1, 1]} : vector<7x672xf32> to vector<7x48xf32>
    %94 = vector.extract_strided_slice %92 {offsets = [0, 48], sizes = [7, 48], strides = [1, 1]} : vector<7x672xf32> to vector<7x48xf32>
    %95 = arith.maximumf %93, %94 : vector<7x48xf32>
    %96 = vector.extract_strided_slice %92 {offsets = [0, 96], sizes = [7, 48], strides = [1, 1]} : vector<7x672xf32> to vector<7x48xf32>
    %97 = vector.extract_strided_slice %92 {offsets = [0, 144], sizes = [7, 48], strides = [1, 1]} : vector<7x672xf32> to vector<7x48xf32>
    %98 = arith.maximumf %96, %97 : vector<7x48xf32>
    %99 = vector.extract_strided_slice %92 {offsets = [0, 192], sizes = [7, 48], strides = [1, 1]} : vector<7x672xf32> to vector<7x48xf32>
    %100 = vector.extract_strided_slice %92 {offsets = [0, 240], sizes = [7, 48], strides = [1, 1]} : vector<7x672xf32> to vector<7x48xf32>
    %101 = arith.maximumf %99, %100 : vector<7x48xf32>
    %102 = vector.extract_strided_slice %92 {offsets = [0, 288], sizes = [7, 48], strides = [1, 1]} : vector<7x672xf32> to vector<7x48xf32>
    %103 = vector.extract_strided_slice %92 {offsets = [0, 336], sizes = [7, 48], strides = [1, 1]} : vector<7x672xf32> to vector<7x48xf32>
    %104 = arith.maximumf %102, %103 : vector<7x48xf32>
    %105 = vector.extract_strided_slice %92 {offsets = [0, 384], sizes = [7, 48], strides = [1, 1]} : vector<7x672xf32> to vector<7x48xf32>
    %106 = vector.extract_strided_slice %92 {offsets = [0, 432], sizes = [7, 48], strides = [1, 1]} : vector<7x672xf32> to vector<7x48xf32>
    %107 = arith.maximumf %105, %106 : vector<7x48xf32>
    %108 = vector.extract_strided_slice %92 {offsets = [0, 480], sizes = [7, 48], strides = [1, 1]} : vector<7x672xf32> to vector<7x48xf32>
    %109 = vector.extract_strided_slice %92 {offsets = [0, 528], sizes = [7, 48], strides = [1, 1]} : vector<7x672xf32> to vector<7x48xf32>
    %110 = arith.maximumf %108, %109 : vector<7x48xf32>
    %111 = vector.extract_strided_slice %92 {offsets = [0, 576], sizes = [7, 48], strides = [1, 1]} : vector<7x672xf32> to vector<7x48xf32>
    %112 = vector.extract_strided_slice %92 {offsets = [0, 624], sizes = [7, 48], strides = [1, 1]} : vector<7x672xf32> to vector<7x48xf32>
    %113 = arith.maximumf %111, %112 : vector<7x48xf32>
    %114 = tpu.concatenate %95, %98, %101, %104, %107, %110, %113 in 1 : vector<7x48xf32>, vector<7x48xf32>, vector<7x48xf32>, vector<7x48xf32>, vector<7x48xf32>, vector<7x48xf32>, vector<7x48xf32> -> vector<7x336xf32>
    %115 = arith.truncf %114 : vector<7x336xf32> to vector<7x336xbf16>
    %cst_49 = arith.constant 0.000000e+00 : f32
    %116 = vector.broadcast %cst_49 : f32 to vector<1x1000xf32>
    %c0_50 = arith.constant 0 : index
    %c0_51 = arith.constant 0 : index
    %117 = memref.load %arg1[%c0_50, %c0_51] : memref<2x8xi32, #tpu.memory_space<smem>>
    %118 = vector.broadcast %117 : i32 to vector<1x1000xi32>
    %119 = arith.cmpi eq, %1, %118 : vector<1x1000xi32>
    %cst_52 = arith.constant 1.250000e-01 : f32
    %cst_53 = arith.constant 0.000000e+00 : f32
    %120 = vector.broadcast %cst_52 : f32 to vector<1x1000xf32>
    %121 = vector.broadcast %cst_53 : f32 to vector<1x1000xf32>
    %122 = arith.select %119, %120, %121 : vector<1x1000xi1>, vector<1x1000xf32>
    %123 = arith.addf %116, %122 : vector<1x1000xf32>
    %c0_54 = arith.constant 0 : index
    %c1 = arith.constant 1 : index
    %124 = memref.load %arg1[%c0_54, %c1] : memref<2x8xi32, #tpu.memory_space<smem>>
    %125 = vector.broadcast %124 : i32 to vector<1x1000xi32>
    %126 = arith.cmpi eq, %1, %125 : vector<1x1000xi32>
    %cst_55 = arith.constant 1.250000e-01 : f32
    %cst_56 = arith.constant 0.000000e+00 : f32
    %127 = vector.broadcast %cst_55 : f32 to vector<1x1000xf32>
    %128 = vector.broadcast %cst_56 : f32 to vector<1x1000xf32>
    %129 = arith.select %126, %127, %128 : vector<1x1000xi1>, vector<1x1000xf32>
    %130 = arith.addf %123, %129 : vector<1x1000xf32>
    %c0_57 = arith.constant 0 : index
    %c2 = arith.constant 2 : index
    %131 = memref.load %arg1[%c0_57, %c2] : memref<2x8xi32, #tpu.memory_space<smem>>
    %132 = vector.broadcast %131 : i32 to vector<1x1000xi32>
    %133 = arith.cmpi eq, %1, %132 : vector<1x1000xi32>
    %cst_58 = arith.constant 1.250000e-01 : f32
    %cst_59 = arith.constant 0.000000e+00 : f32
    %134 = vector.broadcast %cst_58 : f32 to vector<1x1000xf32>
    %135 = vector.broadcast %cst_59 : f32 to vector<1x1000xf32>
    %136 = arith.select %133, %134, %135 : vector<1x1000xi1>, vector<1x1000xf32>
    %137 = arith.addf %130, %136 : vector<1x1000xf32>
    %c0_60 = arith.constant 0 : index
    %c3 = arith.constant 3 : index
    %138 = memref.load %arg1[%c0_60, %c3] : memref<2x8xi32, #tpu.memory_space<smem>>
    %139 = vector.broadcast %138 : i32 to vector<1x1000xi32>
    %140 = arith.cmpi eq, %1, %139 : vector<1x1000xi32>
    %cst_61 = arith.constant 1.250000e-01 : f32
    %cst_62 = arith.constant 0.000000e+00 : f32
    %141 = vector.broadcast %cst_61 : f32 to vector<1x1000xf32>
    %142 = vector.broadcast %cst_62 : f32 to vector<1x1000xf32>
    %143 = arith.select %140, %141, %142 : vector<1x1000xi1>, vector<1x1000xf32>
    %144 = arith.addf %137, %143 : vector<1x1000xf32>
    %c0_63 = arith.constant 0 : index
    %c4 = arith.constant 4 : index
    %145 = memref.load %arg1[%c0_63, %c4] : memref<2x8xi32, #tpu.memory_space<smem>>
    %146 = vector.broadcast %145 : i32 to vector<1x1000xi32>
    %147 = arith.cmpi eq, %1, %146 : vector<1x1000xi32>
    %cst_64 = arith.constant 1.250000e-01 : f32
    %cst_65 = arith.constant 0.000000e+00 : f32
    %148 = vector.broadcast %cst_64 : f32 to vector<1x1000xf32>
    %149 = vector.broadcast %cst_65 : f32 to vector<1x1000xf32>
    %150 = arith.select %147, %148, %149 : vector<1x1000xi1>, vector<1x1000xf32>
    %151 = arith.addf %144, %150 : vector<1x1000xf32>
    %c0_66 = arith.constant 0 : index
    %c5 = arith.constant 5 : index
    %152 = memref.load %arg1[%c0_66, %c5] : memref<2x8xi32, #tpu.memory_space<smem>>
    %153 = vector.broadcast %152 : i32 to vector<1x1000xi32>
    %154 = arith.cmpi eq, %1, %153 : vector<1x1000xi32>
    %cst_67 = arith.constant 1.250000e-01 : f32
    %cst_68 = arith.constant 0.000000e+00 : f32
    %155 = vector.broadcast %cst_67 : f32 to vector<1x1000xf32>
    %156 = vector.broadcast %cst_68 : f32 to vector<1x1000xf32>
    %157 = arith.select %154, %155, %156 : vector<1x1000xi1>, vector<1x1000xf32>
    %158 = arith.addf %151, %157 : vector<1x1000xf32>
    %c0_69 = arith.constant 0 : index
    %c6 = arith.constant 6 : index
    %159 = memref.load %arg1[%c0_69, %c6] : memref<2x8xi32, #tpu.memory_space<smem>>
    %160 = vector.broadcast %159 : i32 to vector<1x1000xi32>
    %161 = arith.cmpi eq, %1, %160 : vector<1x1000xi32>
    %cst_70 = arith.constant 1.250000e-01 : f32
    %cst_71 = arith.constant 0.000000e+00 : f32
    %162 = vector.broadcast %cst_70 : f32 to vector<1x1000xf32>
    %163 = vector.broadcast %cst_71 : f32 to vector<1x1000xf32>
    %164 = arith.select %161, %162, %163 : vector<1x1000xi1>, vector<1x1000xf32>
    %165 = arith.addf %158, %164 : vector<1x1000xf32>
    %c0_72 = arith.constant 0 : index
    %c7 = arith.constant 7 : index
    %166 = memref.load %arg1[%c0_72, %c7] : memref<2x8xi32, #tpu.memory_space<smem>>
    %167 = vector.broadcast %166 : i32 to vector<1x1000xi32>
    %168 = arith.cmpi eq, %1, %167 : vector<1x1000xi32>
    %cst_73 = arith.constant 1.250000e-01 : f32
    %cst_74 = arith.constant 0.000000e+00 : f32
    %169 = vector.broadcast %cst_73 : f32 to vector<1x1000xf32>
    %170 = vector.broadcast %cst_74 : f32 to vector<1x1000xf32>
    %171 = arith.select %168, %169, %170 : vector<1x1000xi1>, vector<1x1000xf32>
    %172 = arith.addf %165, %171 : vector<1x1000xf32>
    %173 = arith.truncf %172 : vector<1x1000xf32> to vector<1x1000xbf16>
    %c0_75 = arith.constant 0 : index
    %c0_76 = arith.constant 0 : index
    %174 = vector.load %arg21[%c0_75, %c0_76] : memref<1000x64xbf16, #tpu.memory_space<vmem>>, vector<1000x64xbf16>
    %cst_77 = arith.constant dense<0.000000e+00> : vector<1x64xf32>
    %175 = tpu.matmul %173, %174, %cst_77 {dimension_numbers = #tpu.dot_dimension_numbers<[1], [0], [0], [1], [0, 0, 1, 1], [], []>} : vector<1x1000xbf16>, vector<1000x64xbf16>, vector<1x64xf32> -> vector<1x64xf32>
    %176 = arith.truncf %175 : vector<1x64xf32> to vector<1x64xbf16>
    %c0_78 = arith.constant 0 : index
    %c0_79 = arith.constant 0 : index
    %177 = vector.load %arg22[%c0_78, %c0_79] : memref<64x128xbf16, #tpu.memory_space<vmem>>, vector<64x128xbf16>
    %cst_80 = arith.constant dense<0.000000e+00> : vector<1x128xf32>
    %178 = tpu.matmul %176, %177, %cst_80 {dimension_numbers = #tpu.dot_dimension_numbers<[1], [0], [0], [1], [0, 0, 1, 1], [], []>} : vector<1x64xbf16>, vector<64x128xbf16>, vector<1x128xf32> -> vector<1x128xf32>
    %c0_81 = arith.constant 0 : index
    %c0_82 = arith.constant 0 : index
    %179 = vector.load %arg23[%c0_81, %c0_82] : memref<1x128xf32, #tpu.memory_space<vmem>>, vector<1x128xf32>
    %180 = arith.addf %178, %179 : vector<1x128xf32>
    %cst_83 = arith.constant 0.000000e+00 : f32
    %181 = vector.broadcast %cst_83 : f32 to vector<1x128xf32>
    %182 = arith.maximumf %180, %181 : vector<1x128xf32>
    %c0_84 = arith.constant 0 : index
    %c0_85 = arith.constant 0 : index
    %183 = vector.load %arg20[%c0_84, %c0_85] : memref<1x256xf32, #tpu.memory_space<vmem>>, vector<1x256xf32>
    %184 = arith.truncf %182 : vector<1x128xf32> to vector<1x128xbf16>
    %c0_86 = arith.constant 0 : index
    %c0_87 = arith.constant 0 : index
    %185 = vector.load %arg19[%c0_86, %c0_87] : memref<128x256xbf16, #tpu.memory_space<vmem>>, vector<128x256xbf16>
    %cst_88 = arith.constant dense<0.000000e+00> : vector<1x256xf32>
    %186 = tpu.matmul %184, %185, %cst_88 {dimension_numbers = #tpu.dot_dimension_numbers<[1], [0], [0], [1], [0, 0, 1, 1], [], []>} : vector<1x128xbf16>, vector<128x256xbf16>, vector<1x256xf32> -> vector<1x256xf32>
    %187 = arith.addf %183, %186 : vector<1x256xf32>
    %c0_89 = arith.constant 0 : index
    %c0_90 = arith.constant 0 : index
    %188 = vector.load %arg18[%c0_89, %c0_90] : memref<2352x256xbf16, #tpu.memory_space<vmem>>, vector<336x256xbf16>
    %189 = vector.extract_strided_slice %115 {offsets = [0, 0], sizes = [1, 336], strides = [1, 1]} : vector<7x336xbf16> to vector<1x336xbf16>
    %cst_91 = arith.constant dense<0.000000e+00> : vector<1x256xf32>
    %190 = tpu.matmul %189, %188, %cst_91 {dimension_numbers = #tpu.dot_dimension_numbers<[1], [0], [0], [1], [0, 0, 1, 1], [], []>} : vector<1x336xbf16>, vector<336x256xbf16>, vector<1x256xf32> -> vector<1x256xf32>
    %191 = arith.addf %187, %190 : vector<1x256xf32>
    %c336 = arith.constant 336 : index
    %c0_92 = arith.constant 0 : index
    %192 = vector.load %arg18[%c336, %c0_92] : memref<2352x256xbf16, #tpu.memory_space<vmem>>, vector<336x256xbf16>
    %193 = vector.extract_strided_slice %115 {offsets = [1, 0], sizes = [1, 336], strides = [1, 1]} : vector<7x336xbf16> to vector<1x336xbf16>
    %cst_93 = arith.constant dense<0.000000e+00> : vector<1x256xf32>
    %194 = tpu.matmul %193, %192, %cst_93 {dimension_numbers = #tpu.dot_dimension_numbers<[1], [0], [0], [1], [0, 0, 1, 1], [], []>} : vector<1x336xbf16>, vector<336x256xbf16>, vector<1x256xf32> -> vector<1x256xf32>
    %195 = arith.addf %191, %194 : vector<1x256xf32>
    %c672 = arith.constant 672 : index
    %c0_94 = arith.constant 0 : index
    %196 = vector.load %arg18[%c672, %c0_94] : memref<2352x256xbf16, #tpu.memory_space<vmem>>, vector<336x256xbf16>
    %197 = vector.extract_strided_slice %115 {offsets = [2, 0], sizes = [1, 336], strides = [1, 1]} : vector<7x336xbf16> to vector<1x336xbf16>
    %cst_95 = arith.constant dense<0.000000e+00> : vector<1x256xf32>
    %198 = tpu.matmul %197, %196, %cst_95 {dimension_numbers = #tpu.dot_dimension_numbers<[1], [0], [0], [1], [0, 0, 1, 1], [], []>} : vector<1x336xbf16>, vector<336x256xbf16>, vector<1x256xf32> -> vector<1x256xf32>
    %199 = arith.addf %195, %198 : vector<1x256xf32>
    %c1008 = arith.constant 1008 : index
    %c0_96 = arith.constant 0 : index
    %200 = vector.load %arg18[%c1008, %c0_96] : memref<2352x256xbf16, #tpu.memory_space<vmem>>, vector<336x256xbf16>
    %201 = vector.extract_strided_slice %115 {offsets = [3, 0], sizes = [1, 336], strides = [1, 1]} : vector<7x336xbf16> to vector<1x336xbf16>
    %cst_97 = arith.constant dense<0.000000e+00> : vector<1x256xf32>
    %202 = tpu.matmul %201, %200, %cst_97 {dimension_numbers = #tpu.dot_dimension_numbers<[1], [0], [0], [1], [0, 0, 1, 1], [], []>} : vector<1x336xbf16>, vector<336x256xbf16>, vector<1x256xf32> -> vector<1x256xf32>
    %203 = arith.addf %199, %202 : vector<1x256xf32>
    %c1344 = arith.constant 1344 : index
    %c0_98 = arith.constant 0 : index
    %204 = vector.load %arg18[%c1344, %c0_98] : memref<2352x256xbf16, #tpu.memory_space<vmem>>, vector<336x256xbf16>
    %205 = vector.extract_strided_slice %115 {offsets = [4, 0], sizes = [1, 336], strides = [1, 1]} : vector<7x336xbf16> to vector<1x336xbf16>
    %cst_99 = arith.constant dense<0.000000e+00> : vector<1x256xf32>
    %206 = tpu.matmul %205, %204, %cst_99 {dimension_numbers = #tpu.dot_dimension_numbers<[1], [0], [0], [1], [0, 0, 1, 1], [], []>} : vector<1x336xbf16>, vector<336x256xbf16>, vector<1x256xf32> -> vector<1x256xf32>
    %207 = arith.addf %203, %206 : vector<1x256xf32>
    %c1680 = arith.constant 1680 : index
    %c0_100 = arith.constant 0 : index
    %208 = vector.load %arg18[%c1680, %c0_100] : memref<2352x256xbf16, #tpu.memory_space<vmem>>, vector<336x256xbf16>
    %209 = vector.extract_strided_slice %115 {offsets = [5, 0], sizes = [1, 336], strides = [1, 1]} : vector<7x336xbf16> to vector<1x336xbf16>
    %cst_101 = arith.constant dense<0.000000e+00> : vector<1x256xf32>
    %210 = tpu.matmul %209, %208, %cst_101 {dimension_numbers = #tpu.dot_dimension_numbers<[1], [0], [0], [1], [0, 0, 1, 1], [], []>} : vector<1x336xbf16>, vector<336x256xbf16>, vector<1x256xf32> -> vector<1x256xf32>
    %211 = arith.addf %207, %210 : vector<1x256xf32>
    %c2016 = arith.constant 2016 : index
    %c0_102 = arith.constant 0 : index
    %212 = vector.load %arg18[%c2016, %c0_102] : memref<2352x256xbf16, #tpu.memory_space<vmem>>, vector<336x256xbf16>
    %213 = vector.extract_strided_slice %115 {offsets = [6, 0], sizes = [1, 336], strides = [1, 1]} : vector<7x336xbf16> to vector<1x336xbf16>
    %cst_103 = arith.constant dense<0.000000e+00> : vector<1x256xf32>
    %214 = tpu.matmul %213, %212, %cst_103 {dimension_numbers = #tpu.dot_dimension_numbers<[1], [0], [0], [1], [0, 0, 1, 1], [], []>} : vector<1x336xbf16>, vector<336x256xbf16>, vector<1x256xf32> -> vector<1x256xf32>
    %215 = arith.addf %211, %214 : vector<1x256xf32>
    %cst_104 = arith.constant 0.000000e+00 : f32
    %216 = vector.broadcast %cst_104 : f32 to vector<1x256xf32>
    %217 = arith.maximumf %215, %216 : vector<1x256xf32>
    %218 = math.absf %217 : vector<1x256xf32>
    %cst_105 = arith.constant 5.000000e-02 : f32
    %219 = vector.broadcast %cst_105 : f32 to vector<1x256xf32>
    %220 = arith.cmpf ogt, %218, %219 : vector<1x256xf32>
    %cst_106 = arith.constant 0.000000e+00 : f32
    %221 = vector.broadcast %cst_106 : f32 to vector<1x256xf32>
    %222 = arith.select %220, %217, %221 : vector<1x256xi1>, vector<1x256xf32>
    %223 = arith.truncf %222 : vector<1x256xf32> to vector<1x256xbf16>
    %c0_107 = arith.constant 0 : index
    %c0_108 = arith.constant 0 : index
    %224 = vector.load %arg24[%c0_107, %c0_108] : memref<256x128xbf16, #tpu.memory_space<vmem>>, vector<256x128xbf16>
    %cst_109 = arith.constant dense<0.000000e+00> : vector<1x128xf32>
    %225 = tpu.matmul %223, %224, %cst_109 {dimension_numbers = #tpu.dot_dimension_numbers<[1], [0], [0], [1], [0, 0, 1, 1], [], []>} : vector<1x256xbf16>, vector<256x128xbf16>, vector<1x128xf32> -> vector<1x128xf32>
    %c0_110 = arith.constant 0 : index
    %c0_111 = arith.constant 0 : index
    %226 = vector.load %arg25[%c0_110, %c0_111] : memref<1x128xf32, #tpu.memory_space<vmem>>, vector<1x128xf32>
    %227 = arith.addf %225, %226 : vector<1x128xf32>
    %cst_112 = arith.constant 0.000000e+00 : f32
    %228 = vector.broadcast %cst_112 : f32 to vector<1x128xf32>
    %229 = arith.maximumf %227, %228 : vector<1x128xf32>
    %230 = arith.truncf %217 : vector<1x256xf32> to vector<1x256xbf16>
    %c0_113 = arith.constant 0 : index
    %c0_114 = arith.constant 0 : index
    %231 = vector.load %arg26[%c0_113, %c0_114] : memref<256x128xbf16, #tpu.memory_space<vmem>>, vector<256x128xbf16>
    %cst_115 = arith.constant dense<0.000000e+00> : vector<1x128xf32>
    %232 = tpu.matmul %230, %231, %cst_115 {dimension_numbers = #tpu.dot_dimension_numbers<[1], [0], [0], [1], [0, 0, 1, 1], [], []>} : vector<1x256xbf16>, vector<256x128xbf16>, vector<1x128xf32> -> vector<1x128xf32>
    %c0_116 = arith.constant 0 : index
    %c0_117 = arith.constant 0 : index
    %233 = vector.load %arg27[%c0_116, %c0_117] : memref<1x128xf32, #tpu.memory_space<vmem>>, vector<1x128xf32>
    %234 = arith.addf %232, %233 : vector<1x128xf32>
    %cst_118 = arith.constant 0.000000e+00 : f32
    %235 = vector.broadcast %cst_118 : f32 to vector<1x128xf32>
    %236 = arith.maximumf %234, %235 : vector<1x128xf32>
    %237 = tpu.concatenate %229, %236 in 1 : vector<1x128xf32>, vector<1x128xf32> -> vector<1x256xf32>
    %c0_119 = arith.constant 0 : index
    %c0_120 = arith.constant 0 : index
    %238 = vector.load %arg28[%c0_119, %c0_120] : memref<256x10xf32, #tpu.memory_space<vmem>>, vector<256x10xf32>
    %cst_121 = arith.constant dense<0.000000e+00> : vector<1x10xf32>
    %239 = tpu.matmul %237, %238, %cst_121 {dimension_numbers = #tpu.dot_dimension_numbers<[1], [0], [0], [1], [0, 0, 1, 1], [], []>} : vector<1x256xf32>, vector<256x10xf32>, vector<1x10xf32> -> vector<1x10xf32>
    %c0_122 = arith.constant 0 : index
    %c0_123 = arith.constant 0 : index
    %240 = vector.load %arg29[%c0_122, %c0_123] : memref<1x10xf32, #tpu.memory_space<vmem>>, vector<1x10xf32>
    %241 = arith.addf %239, %240 : vector<1x10xf32>
    %c0_124 = arith.constant 0 : index
    %c0_125 = arith.constant 0 : index
    %242 = vector.load %arg30[%c0_124, %c0_125] : memref<2x10xf32, #tpu.memory_space<vmem>>, vector<1x10xf32>
    tpu.vector_store %arg30[%c0_124, %c0_125], %241 {strides = array<i32>} : memref<2x10xf32, #tpu.memory_space<vmem>>, vector<1x10xf32>,
    %243 = vector.extract_strided_slice %0 {offsets = [1, 0, 0], sizes = [1, 28, 28], strides = [1, 1, 1]} : vector<2x28x28xf32> to vector<1x28x28xf32>
    %244 = vector.shape_cast %243 : vector<1x28x28xf32> to vector<28x28xf32>
    %245 = arith.truncf %244 : vector<28x28xf32> to vector<28x28xbf16>
    %c0_126 = arith.constant 0 : index
    %c0_127 = arith.constant 0 : index
    %246 = vector.load %arg2[%c0_126, %c0_127] : memref<28x448xbf16, #tpu.memory_space<vmem>>, vector<28x448xbf16>
    %cst_128 = arith.constant dense<0.000000e+00> : vector<28x448xf32>
    %247 = tpu.matmul %245, %246, %cst_128 {dimension_numbers = #tpu.dot_dimension_numbers<[1], [0], [0], [1], [0, 0, 1, 1], [], []>} : vector<28x28xbf16>, vector<28x448xbf16>, vector<28x448xf32> -> vector<28x448xf32>
    %c0_129 = arith.constant 0 : index
    %c0_130 = arith.constant 0 : index
    %248 = vector.load %arg3[%c0_129, %c0_130] : memref<28x448xbf16, #tpu.memory_space<vmem>>, vector<28x448xbf16>
    %cst_131 = arith.constant dense<0.000000e+00> : vector<28x448xf32>
    %249 = tpu.matmul %245, %248, %cst_131 {dimension_numbers = #tpu.dot_dimension_numbers<[1], [0], [0], [1], [0, 0, 1, 1], [], []>} : vector<28x28xbf16>, vector<28x448xbf16>, vector<28x448xf32> -> vector<28x448xf32>
    %c0_132 = arith.constant 0 : index
    %c0_133 = arith.constant 0 : index
    %250 = vector.load %arg4[%c0_132, %c0_133] : memref<28x448xbf16, #tpu.memory_space<vmem>>, vector<28x448xbf16>
    %cst_134 = arith.constant dense<0.000000e+00> : vector<28x448xf32>
    %251 = tpu.matmul %245, %250, %cst_134 {dimension_numbers = #tpu.dot_dimension_numbers<[1], [0], [0], [1], [0, 0, 1, 1], [], []>} : vector<28x28xbf16>, vector<28x448xbf16>, vector<28x448xf32> -> vector<28x448xf32>
    %c0_135 = arith.constant 0 : index
    %c0_136 = arith.constant 0 : index
    %252 = vector.load %arg5[%c0_135, %c0_136] : memref<28x28xf32, #tpu.memory_space<vmem>>, vector<28x28xf32>
    %cst_137 = arith.constant dense<0.000000e+00> : vector<28x448xf32>
    %253 = tpu.matmul %252, %247, %cst_137 {dimension_numbers = #tpu.dot_dimension_numbers<[1], [0], [0], [1], [0, 0, 1, 1], [], []>} : vector<28x28xf32>, vector<28x448xf32>, vector<28x448xf32> -> vector<28x448xf32>
    %254 = arith.addf %249, %253 : vector<28x448xf32>
    %c0_138 = arith.constant 0 : index
    %c0_139 = arith.constant 0 : index
    %255 = vector.load %arg6[%c0_138, %c0_139] : memref<28x28xf32, #tpu.memory_space<vmem>>, vector<28x28xf32>
    %cst_140 = arith.constant dense<0.000000e+00> : vector<28x448xf32>
    %256 = tpu.matmul %255, %251, %cst_140 {dimension_numbers = #tpu.dot_dimension_numbers<[1], [0], [0], [1], [0, 0, 1, 1], [], []>} : vector<28x28xf32>, vector<28x448xf32>, vector<28x448xf32> -> vector<28x448xf32>
    %257 = arith.addf %254, %256 : vector<28x448xf32>
    %c0_141 = arith.constant 0 : index
    %c0_142 = arith.constant 0 : index
    %258 = vector.load %arg9[%c0_141, %c0_142] : memref<1x448xf32, #tpu.memory_space<vmem>>, vector<1x448xf32>
    %259 = vector.broadcast %258 : vector<1x448xf32> to vector<28x448xf32>
    %260 = arith.addf %257, %259 : vector<28x448xf32>
    %cst_143 = arith.constant 0.000000e+00 : f32
    %261 = vector.broadcast %cst_143 : f32 to vector<28x448xf32>
    %262 = arith.maximumf %260, %261 : vector<28x448xf32>
    %c0_144 = arith.constant 0 : index
    %c0_145 = arith.constant 0 : index
    %263 = vector.load %arg7[%c0_144, %c0_145] : memref<14x28xf32, #tpu.memory_space<vmem>>, vector<14x28xf32>
    %cst_146 = arith.constant dense<0.000000e+00> : vector<14x448xf32>
    %264 = tpu.matmul %263, %262, %cst_146 {dimension_numbers = #tpu.dot_dimension_numbers<[1], [0], [0], [1], [0, 0, 1, 1], [], []>} : vector<14x28xf32>, vector<28x448xf32>, vector<14x448xf32> -> vector<14x448xf32>
    %c0_147 = arith.constant 0 : index
    %c0_148 = arith.constant 0 : index
    %265 = vector.load %arg8[%c0_147, %c0_148] : memref<14x28xf32, #tpu.memory_space<vmem>>, vector<14x28xf32>
    %cst_149 = arith.constant dense<0.000000e+00> : vector<14x448xf32>
    %266 = tpu.matmul %265, %262, %cst_149 {dimension_numbers = #tpu.dot_dimension_numbers<[1], [0], [0], [1], [0, 0, 1, 1], [], []>} : vector<14x28xf32>, vector<28x448xf32>, vector<14x448xf32> -> vector<14x448xf32>
    %267 = arith.maximumf %264, %266 : vector<14x448xf32>
    %268 = vector.extract_strided_slice %267 {offsets = [0, 0], sizes = [14, 16], strides = [1, 1]} : vector<14x448xf32> to vector<14x16xf32>
    %269 = vector.extract_strided_slice %267 {offsets = [0, 16], sizes = [14, 16], strides = [1, 1]} : vector<14x448xf32> to vector<14x16xf32>
    %270 = arith.maximumf %268, %269 : vector<14x16xf32>
    %271 = vector.extract_strided_slice %267 {offsets = [0, 32], sizes = [14, 16], strides = [1, 1]} : vector<14x448xf32> to vector<14x16xf32>
    %272 = vector.extract_strided_slice %267 {offsets = [0, 48], sizes = [14, 16], strides = [1, 1]} : vector<14x448xf32> to vector<14x16xf32>
    %273 = arith.maximumf %271, %272 : vector<14x16xf32>
    %274 = vector.extract_strided_slice %267 {offsets = [0, 64], sizes = [14, 16], strides = [1, 1]} : vector<14x448xf32> to vector<14x16xf32>
    %275 = vector.extract_strided_slice %267 {offsets = [0, 80], sizes = [14, 16], strides = [1, 1]} : vector<14x448xf32> to vector<14x16xf32>
    %276 = arith.maximumf %274, %275 : vector<14x16xf32>
    %277 = vector.extract_strided_slice %267 {offsets = [0, 96], sizes = [14, 16], strides = [1, 1]} : vector<14x448xf32> to vector<14x16xf32>
    %278 = vector.extract_strided_slice %267 {offsets = [0, 112], sizes = [14, 16], strides = [1, 1]} : vector<14x448xf32> to vector<14x16xf32>
    %279 = arith.maximumf %277, %278 : vector<14x16xf32>
    %280 = vector.extract_strided_slice %267 {offsets = [0, 128], sizes = [14, 16], strides = [1, 1]} : vector<14x448xf32> to vector<14x16xf32>
    %281 = vector.extract_strided_slice %267 {offsets = [0, 144], sizes = [14, 16], strides = [1, 1]} : vector<14x448xf32> to vector<14x16xf32>
    %282 = arith.maximumf %280, %281 : vector<14x16xf32>
    %283 = vector.extract_strided_slice %267 {offsets = [0, 160], sizes = [14, 16], strides = [1, 1]} : vector<14x448xf32> to vector<14x16xf32>
    %284 = vector.extract_strided_slice %267 {offsets = [0, 176], sizes = [14, 16], strides = [1, 1]} : vector<14x448xf32> to vector<14x16xf32>
    %285 = arith.maximumf %283, %284 : vector<14x16xf32>
    %286 = vector.extract_strided_slice %267 {offsets = [0, 192], sizes = [14, 16], strides = [1, 1]} : vector<14x448xf32> to vector<14x16xf32>
    %287 = vector.extract_strided_slice %267 {offsets = [0, 208], sizes = [14, 16], strides = [1, 1]} : vector<14x448xf32> to vector<14x16xf32>
    %288 = arith.maximumf %286, %287 : vector<14x16xf32>
    %289 = vector.extract_strided_slice %267 {offsets = [0, 224], sizes = [14, 16], strides = [1, 1]} : vector<14x448xf32> to vector<14x16xf32>
    %290 = vector.extract_strided_slice %267 {offsets = [0, 240], sizes = [14, 16], strides = [1, 1]} : vector<14x448xf32> to vector<14x16xf32>
    %291 = arith.maximumf %289, %290 : vector<14x16xf32>
    %292 = vector.extract_strided_slice %267 {offsets = [0, 256], sizes = [14, 16], strides = [1, 1]} : vector<14x448xf32> to vector<14x16xf32>
    %293 = vector.extract_strided_slice %267 {offsets = [0, 272], sizes = [14, 16], strides = [1, 1]} : vector<14x448xf32> to vector<14x16xf32>
    %294 = arith.maximumf %292, %293 : vector<14x16xf32>
    %295 = vector.extract_strided_slice %267 {offsets = [0, 288], sizes = [14, 16], strides = [1, 1]} : vector<14x448xf32> to vector<14x16xf32>
    %296 = vector.extract_strided_slice %267 {offsets = [0, 304], sizes = [14, 16], strides = [1, 1]} : vector<14x448xf32> to vector<14x16xf32>
    %297 = arith.maximumf %295, %296 : vector<14x16xf32>
    %298 = vector.extract_strided_slice %267 {offsets = [0, 320], sizes = [14, 16], strides = [1, 1]} : vector<14x448xf32> to vector<14x16xf32>
    %299 = vector.extract_strided_slice %267 {offsets = [0, 336], sizes = [14, 16], strides = [1, 1]} : vector<14x448xf32> to vector<14x16xf32>
    %300 = arith.maximumf %298, %299 : vector<14x16xf32>
    %301 = vector.extract_strided_slice %267 {offsets = [0, 352], sizes = [14, 16], strides = [1, 1]} : vector<14x448xf32> to vector<14x16xf32>
    %302 = vector.extract_strided_slice %267 {offsets = [0, 368], sizes = [14, 16], strides = [1, 1]} : vector<14x448xf32> to vector<14x16xf32>
    %303 = arith.maximumf %301, %302 : vector<14x16xf32>
    %304 = vector.extract_strided_slice %267 {offsets = [0, 384], sizes = [14, 16], strides = [1, 1]} : vector<14x448xf32> to vector<14x16xf32>
    %305 = vector.extract_strided_slice %267 {offsets = [0, 400], sizes = [14, 16], strides = [1, 1]} : vector<14x448xf32> to vector<14x16xf32>
    %306 = arith.maximumf %304, %305 : vector<14x16xf32>
    %307 = vector.extract_strided_slice %267 {offsets = [0, 416], sizes = [14, 16], strides = [1, 1]} : vector<14x448xf32> to vector<14x16xf32>
    %308 = vector.extract_strided_slice %267 {offsets = [0, 432], sizes = [14, 16], strides = [1, 1]} : vector<14x448xf32> to vector<14x16xf32>
    %309 = arith.maximumf %307, %308 : vector<14x16xf32>
    %310 = tpu.concatenate %270, %273, %276, %279, %282, %285, %288, %291, %294, %297, %300, %303, %306, %309 in 1 : vector<14x16xf32>, vector<14x16xf32>, vector<14x16xf32>, vector<14x16xf32>, vector<14x16xf32>, vector<14x16xf32>, vector<14x16xf32>, vector<14x16xf32>, vector<14x16xf32>, vector<14x16xf32>, vector<14x16xf32>, vector<14x16xf32>, vector<14x16xf32>, vector<14x16xf32> -> vector<14x224xf32>
    %311 = arith.truncf %310 : vector<14x224xf32> to vector<14x224xbf16>
    %c0_150 = arith.constant 0 : index
    %c0_151 = arith.constant 0 : index
    %312 = vector.load %arg10[%c0_150, %c0_151] : memref<224x672xbf16, #tpu.memory_space<vmem>>, vector<224x672xbf16>
    %cst_152 = arith.constant dense<0.000000e+00> : vector<14x672xf32>
    %313 = tpu.matmul %311, %312, %cst_152 {dimension_numbers = #tpu.dot_dimension_numbers<[1], [0], [0], [1], [0, 0, 1, 1], [], []>} : vector<14x224xbf16>, vector<224x672xbf16>, vector<14x672xf32> -> vector<14x672xf32>
    %c0_153 = arith.constant 0 : index
    %c0_154 = arith.constant 0 : index
    %314 = vector.load %arg11[%c0_153, %c0_154] : memref<224x672xbf16, #tpu.memory_space<vmem>>, vector<224x672xbf16>
    %cst_155 = arith.constant dense<0.000000e+00> : vector<14x672xf32>
    %315 = tpu.matmul %311, %314, %cst_155 {dimension_numbers = #tpu.dot_dimension_numbers<[1], [0], [0], [1], [0, 0, 1, 1], [], []>} : vector<14x224xbf16>, vector<224x672xbf16>, vector<14x672xf32> -> vector<14x672xf32>
    %c0_156 = arith.constant 0 : index
    %c0_157 = arith.constant 0 : index
    %316 = vector.load %arg12[%c0_156, %c0_157] : memref<224x672xbf16, #tpu.memory_space<vmem>>, vector<224x672xbf16>
    %cst_158 = arith.constant dense<0.000000e+00> : vector<14x672xf32>
    %317 = tpu.matmul %311, %316, %cst_158 {dimension_numbers = #tpu.dot_dimension_numbers<[1], [0], [0], [1], [0, 0, 1, 1], [], []>} : vector<14x224xbf16>, vector<224x672xbf16>, vector<14x672xf32> -> vector<14x672xf32>
    %c0_159 = arith.constant 0 : index
    %c0_160 = arith.constant 0 : index
    %318 = vector.load %arg13[%c0_159, %c0_160] : memref<14x14xf32, #tpu.memory_space<vmem>>, vector<14x14xf32>
    %cst_161 = arith.constant dense<0.000000e+00> : vector<14x672xf32>
    %319 = tpu.matmul %318, %313, %cst_161 {dimension_numbers = #tpu.dot_dimension_numbers<[1], [0], [0], [1], [0, 0, 1, 1], [], []>} : vector<14x14xf32>, vector<14x672xf32>, vector<14x672xf32> -> vector<14x672xf32>
    %320 = arith.addf %315, %319 : vector<14x672xf32>
    %c0_162 = arith.constant 0 : index
    %c0_163 = arith.constant 0 : index
    %321 = vector.load %arg14[%c0_162, %c0_163] : memref<14x14xf32, #tpu.memory_space<vmem>>, vector<14x14xf32>
    %cst_164 = arith.constant dense<0.000000e+00> : vector<14x672xf32>
    %322 = tpu.matmul %321, %317, %cst_164 {dimension_numbers = #tpu.dot_dimension_numbers<[1], [0], [0], [1], [0, 0, 1, 1], [], []>} : vector<14x14xf32>, vector<14x672xf32>, vector<14x672xf32> -> vector<14x672xf32>
    %323 = arith.addf %320, %322 : vector<14x672xf32>
    %c0_165 = arith.constant 0 : index
    %c0_166 = arith.constant 0 : index
    %324 = vector.load %arg17[%c0_165, %c0_166] : memref<1x672xf32, #tpu.memory_space<vmem>>, vector<1x672xf32>
    %325 = vector.broadcast %324 : vector<1x672xf32> to vector<14x672xf32>
    %326 = arith.addf %323, %325 : vector<14x672xf32>
    %cst_167 = arith.constant 0.000000e+00 : f32
    %327 = vector.broadcast %cst_167 : f32 to vector<14x672xf32>
    %328 = arith.maximumf %326, %327 : vector<14x672xf32>
    %c0_168 = arith.constant 0 : index
    %c0_169 = arith.constant 0 : index
    %329 = vector.load %arg15[%c0_168, %c0_169] : memref<7x14xf32, #tpu.memory_space<vmem>>, vector<7x14xf32>
    %cst_170 = arith.constant dense<0.000000e+00> : vector<7x672xf32>
    %330 = tpu.matmul %329, %328, %cst_170 {dimension_numbers = #tpu.dot_dimension_numbers<[1], [0], [0], [1], [0, 0, 1, 1], [], []>} : vector<7x14xf32>, vector<14x672xf32>, vector<7x672xf32> -> vector<7x672xf32>
    %c0_171 = arith.constant 0 : index
    %c0_172 = arith.constant 0 : index
    %331 = vector.load %arg16[%c0_171, %c0_172] : memref<7x14xf32, #tpu.memory_space<vmem>>, vector<7x14xf32>
    %cst_173 = arith.constant dense<0.000000e+00> : vector<7x672xf32>
    %332 = tpu.matmul %331, %328, %cst_173 {dimension_numbers = #tpu.dot_dimension_numbers<[1], [0], [0], [1], [0, 0, 1, 1], [], []>} : vector<7x14xf32>, vector<14x672xf32>, vector<7x672xf32> -> vector<7x672xf32>
    %333 = arith.maximumf %330, %332 : vector<7x672xf32>
    %334 = vector.extract_strided_slice %333 {offsets = [0, 0], sizes = [7, 48], strides = [1, 1]} : vector<7x672xf32> to vector<7x48xf32>
    %335 = vector.extract_strided_slice %333 {offsets = [0, 48], sizes = [7, 48], strides = [1, 1]} : vector<7x672xf32> to vector<7x48xf32>
    %336 = arith.maximumf %334, %335 : vector<7x48xf32>
    %337 = vector.extract_strided_slice %333 {offsets = [0, 96], sizes = [7, 48], strides = [1, 1]} : vector<7x672xf32> to vector<7x48xf32>
    %338 = vector.extract_strided_slice %333 {offsets = [0, 144], sizes = [7, 48], strides = [1, 1]} : vector<7x672xf32> to vector<7x48xf32>
    %339 = arith.maximumf %337, %338 : vector<7x48xf32>
    %340 = vector.extract_strided_slice %333 {offsets = [0, 192], sizes = [7, 48], strides = [1, 1]} : vector<7x672xf32> to vector<7x48xf32>
    %341 = vector.extract_strided_slice %333 {offsets = [0, 240], sizes = [7, 48], strides = [1, 1]} : vector<7x672xf32> to vector<7x48xf32>
    %342 = arith.maximumf %340, %341 : vector<7x48xf32>
    %343 = vector.extract_strided_slice %333 {offsets = [0, 288], sizes = [7, 48], strides = [1, 1]} : vector<7x672xf32> to vector<7x48xf32>
    %344 = vector.extract_strided_slice %333 {offsets = [0, 336], sizes = [7, 48], strides = [1, 1]} : vector<7x672xf32> to vector<7x48xf32>
    %345 = arith.maximumf %343, %344 : vector<7x48xf32>
    %346 = vector.extract_strided_slice %333 {offsets = [0, 384], sizes = [7, 48], strides = [1, 1]} : vector<7x672xf32> to vector<7x48xf32>
    %347 = vector.extract_strided_slice %333 {offsets = [0, 432], sizes = [7, 48], strides = [1, 1]} : vector<7x672xf32> to vector<7x48xf32>
    %348 = arith.maximumf %346, %347 : vector<7x48xf32>
    %349 = vector.extract_strided_slice %333 {offsets = [0, 480], sizes = [7, 48], strides = [1, 1]} : vector<7x672xf32> to vector<7x48xf32>
    %350 = vector.extract_strided_slice %333 {offsets = [0, 528], sizes = [7, 48], strides = [1, 1]} : vector<7x672xf32> to vector<7x48xf32>
    %351 = arith.maximumf %349, %350 : vector<7x48xf32>
    %352 = vector.extract_strided_slice %333 {offsets = [0, 576], sizes = [7, 48], strides = [1, 1]} : vector<7x672xf32> to vector<7x48xf32>
    %353 = vector.extract_strided_slice %333 {offsets = [0, 624], sizes = [7, 48], strides = [1, 1]} : vector<7x672xf32> to vector<7x48xf32>
    %354 = arith.maximumf %352, %353 : vector<7x48xf32>
    %355 = tpu.concatenate %336, %339, %342, %345, %348, %351, %354 in 1 : vector<7x48xf32>, vector<7x48xf32>, vector<7x48xf32>, vector<7x48xf32>, vector<7x48xf32>, vector<7x48xf32>, vector<7x48xf32> -> vector<7x336xf32>
    %356 = arith.truncf %355 : vector<7x336xf32> to vector<7x336xbf16>
    %cst_174 = arith.constant 0.000000e+00 : f32
    %357 = vector.broadcast %cst_174 : f32 to vector<1x1000xf32>
    %c1_175 = arith.constant 1 : index
    %c0_176 = arith.constant 0 : index
    %358 = memref.load %arg1[%c1_175, %c0_176] : memref<2x8xi32, #tpu.memory_space<smem>>
    %359 = vector.broadcast %358 : i32 to vector<1x1000xi32>
    %360 = arith.cmpi eq, %1, %359 : vector<1x1000xi32>
    %cst_177 = arith.constant 1.250000e-01 : f32
    %cst_178 = arith.constant 0.000000e+00 : f32
    %361 = vector.broadcast %cst_177 : f32 to vector<1x1000xf32>
    %362 = vector.broadcast %cst_178 : f32 to vector<1x1000xf32>
    %363 = arith.select %360, %361, %362 : vector<1x1000xi1>, vector<1x1000xf32>
    %364 = arith.addf %357, %363 : vector<1x1000xf32>
    %c1_179 = arith.constant 1 : index
    %c1_180 = arith.constant 1 : index
    %365 = memref.load %arg1[%c1_179, %c1_180] : memref<2x8xi32, #tpu.memory_space<smem>>
    %366 = vector.broadcast %365 : i32 to vector<1x1000xi32>
    %367 = arith.cmpi eq, %1, %366 : vector<1x1000xi32>
    %cst_181 = arith.constant 1.250000e-01 : f32
    %cst_182 = arith.constant 0.000000e+00 : f32
    %368 = vector.broadcast %cst_181 : f32 to vector<1x1000xf32>
    %369 = vector.broadcast %cst_182 : f32 to vector<1x1000xf32>
    %370 = arith.select %367, %368, %369 : vector<1x1000xi1>, vector<1x1000xf32>
    %371 = arith.addf %364, %370 : vector<1x1000xf32>
    %c1_183 = arith.constant 1 : index
    %c2_184 = arith.constant 2 : index
    %372 = memref.load %arg1[%c1_183, %c2_184] : memref<2x8xi32, #tpu.memory_space<smem>>
    %373 = vector.broadcast %372 : i32 to vector<1x1000xi32>
    %374 = arith.cmpi eq, %1, %373 : vector<1x1000xi32>
    %cst_185 = arith.constant 1.250000e-01 : f32
    %cst_186 = arith.constant 0.000000e+00 : f32
    %375 = vector.broadcast %cst_185 : f32 to vector<1x1000xf32>
    %376 = vector.broadcast %cst_186 : f32 to vector<1x1000xf32>
    %377 = arith.select %374, %375, %376 : vector<1x1000xi1>, vector<1x1000xf32>
    %378 = arith.addf %371, %377 : vector<1x1000xf32>
    %c1_187 = arith.constant 1 : index
    %c3_188 = arith.constant 3 : index
    %379 = memref.load %arg1[%c1_187, %c3_188] : memref<2x8xi32, #tpu.memory_space<smem>>
    %380 = vector.broadcast %379 : i32 to vector<1x1000xi32>
    %381 = arith.cmpi eq, %1, %380 : vector<1x1000xi32>
    %cst_189 = arith.constant 1.250000e-01 : f32
    %cst_190 = arith.constant 0.000000e+00 : f32
    %382 = vector.broadcast %cst_189 : f32 to vector<1x1000xf32>
    %383 = vector.broadcast %cst_190 : f32 to vector<1x1000xf32>
    %384 = arith.select %381, %382, %383 : vector<1x1000xi1>, vector<1x1000xf32>
    %385 = arith.addf %378, %384 : vector<1x1000xf32>
    %c1_191 = arith.constant 1 : index
    %c4_192 = arith.constant 4 : index
    %386 = memref.load %arg1[%c1_191, %c4_192] : memref<2x8xi32, #tpu.memory_space<smem>>
    %387 = vector.broadcast %386 : i32 to vector<1x1000xi32>
    %388 = arith.cmpi eq, %1, %387 : vector<1x1000xi32>
    %cst_193 = arith.constant 1.250000e-01 : f32
    %cst_194 = arith.constant 0.000000e+00 : f32
    %389 = vector.broadcast %cst_193 : f32 to vector<1x1000xf32>
    %390 = vector.broadcast %cst_194 : f32 to vector<1x1000xf32>
    %391 = arith.select %388, %389, %390 : vector<1x1000xi1>, vector<1x1000xf32>
    %392 = arith.addf %385, %391 : vector<1x1000xf32>
    %c1_195 = arith.constant 1 : index
    %c5_196 = arith.constant 5 : index
    %393 = memref.load %arg1[%c1_195, %c5_196] : memref<2x8xi32, #tpu.memory_space<smem>>
    %394 = vector.broadcast %393 : i32 to vector<1x1000xi32>
    %395 = arith.cmpi eq, %1, %394 : vector<1x1000xi32>
    %cst_197 = arith.constant 1.250000e-01 : f32
    %cst_198 = arith.constant 0.000000e+00 : f32
    %396 = vector.broadcast %cst_197 : f32 to vector<1x1000xf32>
    %397 = vector.broadcast %cst_198 : f32 to vector<1x1000xf32>
    %398 = arith.select %395, %396, %397 : vector<1x1000xi1>, vector<1x1000xf32>
    %399 = arith.addf %392, %398 : vector<1x1000xf32>
    %c1_199 = arith.constant 1 : index
    %c6_200 = arith.constant 6 : index
    %400 = memref.load %arg1[%c1_199, %c6_200] : memref<2x8xi32, #tpu.memory_space<smem>>
    %401 = vector.broadcast %400 : i32 to vector<1x1000xi32>
    %402 = arith.cmpi eq, %1, %401 : vector<1x1000xi32>
    %cst_201 = arith.constant 1.250000e-01 : f32
    %cst_202 = arith.constant 0.000000e+00 : f32
    %403 = vector.broadcast %cst_201 : f32 to vector<1x1000xf32>
    %404 = vector.broadcast %cst_202 : f32 to vector<1x1000xf32>
    %405 = arith.select %402, %403, %404 : vector<1x1000xi1>, vector<1x1000xf32>
    %406 = arith.addf %399, %405 : vector<1x1000xf32>
    %c1_203 = arith.constant 1 : index
    %c7_204 = arith.constant 7 : index
    %407 = memref.load %arg1[%c1_203, %c7_204] : memref<2x8xi32, #tpu.memory_space<smem>>
    %408 = vector.broadcast %407 : i32 to vector<1x1000xi32>
    %409 = arith.cmpi eq, %1, %408 : vector<1x1000xi32>
    %cst_205 = arith.constant 1.250000e-01 : f32
    %cst_206 = arith.constant 0.000000e+00 : f32
    %410 = vector.broadcast %cst_205 : f32 to vector<1x1000xf32>
    %411 = vector.broadcast %cst_206 : f32 to vector<1x1000xf32>
    %412 = arith.select %409, %410, %411 : vector<1x1000xi1>, vector<1x1000xf32>
    %413 = arith.addf %406, %412 : vector<1x1000xf32>
    %414 = arith.truncf %413 : vector<1x1000xf32> to vector<1x1000xbf16>
    %c0_207 = arith.constant 0 : index
    %c0_208 = arith.constant 0 : index
    %415 = vector.load %arg21[%c0_207, %c0_208] : memref<1000x64xbf16, #tpu.memory_space<vmem>>, vector<1000x64xbf16>
    %cst_209 = arith.constant dense<0.000000e+00> : vector<1x64xf32>
    %416 = tpu.matmul %414, %415, %cst_209 {dimension_numbers = #tpu.dot_dimension_numbers<[1], [0], [0], [1], [0, 0, 1, 1], [], []>} : vector<1x1000xbf16>, vector<1000x64xbf16>, vector<1x64xf32> -> vector<1x64xf32>
    %417 = arith.truncf %416 : vector<1x64xf32> to vector<1x64xbf16>
    %c0_210 = arith.constant 0 : index
    %c0_211 = arith.constant 0 : index
    %418 = vector.load %arg22[%c0_210, %c0_211] : memref<64x128xbf16, #tpu.memory_space<vmem>>, vector<64x128xbf16>
    %cst_212 = arith.constant dense<0.000000e+00> : vector<1x128xf32>
    %419 = tpu.matmul %417, %418, %cst_212 {dimension_numbers = #tpu.dot_dimension_numbers<[1], [0], [0], [1], [0, 0, 1, 1], [], []>} : vector<1x64xbf16>, vector<64x128xbf16>, vector<1x128xf32> -> vector<1x128xf32>
    %c0_213 = arith.constant 0 : index
    %c0_214 = arith.constant 0 : index
    %420 = vector.load %arg23[%c0_213, %c0_214] : memref<1x128xf32, #tpu.memory_space<vmem>>, vector<1x128xf32>
    %421 = arith.addf %419, %420 : vector<1x128xf32>
    %cst_215 = arith.constant 0.000000e+00 : f32
    %422 = vector.broadcast %cst_215 : f32 to vector<1x128xf32>
    %423 = arith.maximumf %421, %422 : vector<1x128xf32>
    %c0_216 = arith.constant 0 : index
    %c0_217 = arith.constant 0 : index
    %424 = vector.load %arg20[%c0_216, %c0_217] : memref<1x256xf32, #tpu.memory_space<vmem>>, vector<1x256xf32>
    %425 = arith.truncf %423 : vector<1x128xf32> to vector<1x128xbf16>
    %c0_218 = arith.constant 0 : index
    %c0_219 = arith.constant 0 : index
    %426 = vector.load %arg19[%c0_218, %c0_219] : memref<128x256xbf16, #tpu.memory_space<vmem>>, vector<128x256xbf16>
    %cst_220 = arith.constant dense<0.000000e+00> : vector<1x256xf32>
    %427 = tpu.matmul %425, %426, %cst_220 {dimension_numbers = #tpu.dot_dimension_numbers<[1], [0], [0], [1], [0, 0, 1, 1], [], []>} : vector<1x128xbf16>, vector<128x256xbf16>, vector<1x256xf32> -> vector<1x256xf32>
    %428 = arith.addf %424, %427 : vector<1x256xf32>
    %c0_221 = arith.constant 0 : index
    %c0_222 = arith.constant 0 : index
    %429 = vector.load %arg18[%c0_221, %c0_222] : memref<2352x256xbf16, #tpu.memory_space<vmem>>, vector<336x256xbf16>
    %430 = vector.extract_strided_slice %356 {offsets = [0, 0], sizes = [1, 336], strides = [1, 1]} : vector<7x336xbf16> to vector<1x336xbf16>
    %cst_223 = arith.constant dense<0.000000e+00> : vector<1x256xf32>
    %431 = tpu.matmul %430, %429, %cst_223 {dimension_numbers = #tpu.dot_dimension_numbers<[1], [0], [0], [1], [0, 0, 1, 1], [], []>} : vector<1x336xbf16>, vector<336x256xbf16>, vector<1x256xf32> -> vector<1x256xf32>
    %432 = arith.addf %428, %431 : vector<1x256xf32>
    %c336_224 = arith.constant 336 : index
    %c0_225 = arith.constant 0 : index
    %433 = vector.load %arg18[%c336_224, %c0_225] : memref<2352x256xbf16, #tpu.memory_space<vmem>>, vector<336x256xbf16>
    %434 = vector.extract_strided_slice %356 {offsets = [1, 0], sizes = [1, 336], strides = [1, 1]} : vector<7x336xbf16> to vector<1x336xbf16>
    %cst_226 = arith.constant dense<0.000000e+00> : vector<1x256xf32>
    %435 = tpu.matmul %434, %433, %cst_226 {dimension_numbers = #tpu.dot_dimension_numbers<[1], [0], [0], [1], [0, 0, 1, 1], [], []>} : vector<1x336xbf16>, vector<336x256xbf16>, vector<1x256xf32> -> vector<1x256xf32>
    %436 = arith.addf %432, %435 : vector<1x256xf32>
    %c672_227 = arith.constant 672 : index
    %c0_228 = arith.constant 0 : index
    %437 = vector.load %arg18[%c672_227, %c0_228] : memref<2352x256xbf16, #tpu.memory_space<vmem>>, vector<336x256xbf16>
    %438 = vector.extract_strided_slice %356 {offsets = [2, 0], sizes = [1, 336], strides = [1, 1]} : vector<7x336xbf16> to vector<1x336xbf16>
    %cst_229 = arith.constant dense<0.000000e+00> : vector<1x256xf32>
    %439 = tpu.matmul %438, %437, %cst_229 {dimension_numbers = #tpu.dot_dimension_numbers<[1], [0], [0], [1], [0, 0, 1, 1], [], []>} : vector<1x336xbf16>, vector<336x256xbf16>, vector<1x256xf32> -> vector<1x256xf32>
    %440 = arith.addf %436, %439 : vector<1x256xf32>
    %c1008_230 = arith.constant 1008 : index
    %c0_231 = arith.constant 0 : index
    %441 = vector.load %arg18[%c1008_230, %c0_231] : memref<2352x256xbf16, #tpu.memory_space<vmem>>, vector<336x256xbf16>
    %442 = vector.extract_strided_slice %356 {offsets = [3, 0], sizes = [1, 336], strides = [1, 1]} : vector<7x336xbf16> to vector<1x336xbf16>
    %cst_232 = arith.constant dense<0.000000e+00> : vector<1x256xf32>
    %443 = tpu.matmul %442, %441, %cst_232 {dimension_numbers = #tpu.dot_dimension_numbers<[1], [0], [0], [1], [0, 0, 1, 1], [], []>} : vector<1x336xbf16>, vector<336x256xbf16>, vector<1x256xf32> -> vector<1x256xf32>
    %444 = arith.addf %440, %443 : vector<1x256xf32>
    %c1344_233 = arith.constant 1344 : index
    %c0_234 = arith.constant 0 : index
    %445 = vector.load %arg18[%c1344_233, %c0_234] : memref<2352x256xbf16, #tpu.memory_space<vmem>>, vector<336x256xbf16>
    %446 = vector.extract_strided_slice %356 {offsets = [4, 0], sizes = [1, 336], strides = [1, 1]} : vector<7x336xbf16> to vector<1x336xbf16>
    %cst_235 = arith.constant dense<0.000000e+00> : vector<1x256xf32>
    %447 = tpu.matmul %446, %445, %cst_235 {dimension_numbers = #tpu.dot_dimension_numbers<[1], [0], [0], [1], [0, 0, 1, 1], [], []>} : vector<1x336xbf16>, vector<336x256xbf16>, vector<1x256xf32> -> vector<1x256xf32>
    %448 = arith.addf %444, %447 : vector<1x256xf32>
    %c1680_236 = arith.constant 1680 : index
    %c0_237 = arith.constant 0 : index
    %449 = vector.load %arg18[%c1680_236, %c0_237] : memref<2352x256xbf16, #tpu.memory_space<vmem>>, vector<336x256xbf16>
    %450 = vector.extract_strided_slice %356 {offsets = [5, 0], sizes = [1, 336], strides = [1, 1]} : vector<7x336xbf16> to vector<1x336xbf16>
    %cst_238 = arith.constant dense<0.000000e+00> : vector<1x256xf32>
    %451 = tpu.matmul %450, %449, %cst_238 {dimension_numbers = #tpu.dot_dimension_numbers<[1], [0], [0], [1], [0, 0, 1, 1], [], []>} : vector<1x336xbf16>, vector<336x256xbf16>, vector<1x256xf32> -> vector<1x256xf32>
    %452 = arith.addf %448, %451 : vector<1x256xf32>
    %c2016_239 = arith.constant 2016 : index
    %c0_240 = arith.constant 0 : index
    %453 = vector.load %arg18[%c2016_239, %c0_240] : memref<2352x256xbf16, #tpu.memory_space<vmem>>, vector<336x256xbf16>
    %454 = vector.extract_strided_slice %356 {offsets = [6, 0], sizes = [1, 336], strides = [1, 1]} : vector<7x336xbf16> to vector<1x336xbf16>
    %cst_241 = arith.constant dense<0.000000e+00> : vector<1x256xf32>
    %455 = tpu.matmul %454, %453, %cst_241 {dimension_numbers = #tpu.dot_dimension_numbers<[1], [0], [0], [1], [0, 0, 1, 1], [], []>} : vector<1x336xbf16>, vector<336x256xbf16>, vector<1x256xf32> -> vector<1x256xf32>
    %456 = arith.addf %452, %455 : vector<1x256xf32>
    %cst_242 = arith.constant 0.000000e+00 : f32
    %457 = vector.broadcast %cst_242 : f32 to vector<1x256xf32>
    %458 = arith.maximumf %456, %457 : vector<1x256xf32>
    %459 = math.absf %458 : vector<1x256xf32>
    %cst_243 = arith.constant 5.000000e-02 : f32
    %460 = vector.broadcast %cst_243 : f32 to vector<1x256xf32>
    %461 = arith.cmpf ogt, %459, %460 : vector<1x256xf32>
    %cst_244 = arith.constant 0.000000e+00 : f32
    %462 = vector.broadcast %cst_244 : f32 to vector<1x256xf32>
    %463 = arith.select %461, %458, %462 : vector<1x256xi1>, vector<1x256xf32>
    %464 = arith.truncf %463 : vector<1x256xf32> to vector<1x256xbf16>
    %c0_245 = arith.constant 0 : index
    %c0_246 = arith.constant 0 : index
    %465 = vector.load %arg24[%c0_245, %c0_246] : memref<256x128xbf16, #tpu.memory_space<vmem>>, vector<256x128xbf16>
    %cst_247 = arith.constant dense<0.000000e+00> : vector<1x128xf32>
    %466 = tpu.matmul %464, %465, %cst_247 {dimension_numbers = #tpu.dot_dimension_numbers<[1], [0], [0], [1], [0, 0, 1, 1], [], []>} : vector<1x256xbf16>, vector<256x128xbf16>, vector<1x128xf32> -> vector<1x128xf32>
    %c0_248 = arith.constant 0 : index
    %c0_249 = arith.constant 0 : index
    %467 = vector.load %arg25[%c0_248, %c0_249] : memref<1x128xf32, #tpu.memory_space<vmem>>, vector<1x128xf32>
    %468 = arith.addf %466, %467 : vector<1x128xf32>
    %cst_250 = arith.constant 0.000000e+00 : f32
    %469 = vector.broadcast %cst_250 : f32 to vector<1x128xf32>
    %470 = arith.maximumf %468, %469 : vector<1x128xf32>
    %471 = arith.truncf %458 : vector<1x256xf32> to vector<1x256xbf16>
    %c0_251 = arith.constant 0 : index
    %c0_252 = arith.constant 0 : index
    %472 = vector.load %arg26[%c0_251, %c0_252] : memref<256x128xbf16, #tpu.memory_space<vmem>>, vector<256x128xbf16>
    %cst_253 = arith.constant dense<0.000000e+00> : vector<1x128xf32>
    %473 = tpu.matmul %471, %472, %cst_253 {dimension_numbers = #tpu.dot_dimension_numbers<[1], [0], [0], [1], [0, 0, 1, 1], [], []>} : vector<1x256xbf16>, vector<256x128xbf16>, vector<1x128xf32> -> vector<1x128xf32>
    %c0_254 = arith.constant 0 : index
    %c0_255 = arith.constant 0 : index
    %474 = vector.load %arg27[%c0_254, %c0_255] : memref<1x128xf32, #tpu.memory_space<vmem>>, vector<1x128xf32>
    %475 = arith.addf %473, %474 : vector<1x128xf32>
    %cst_256 = arith.constant 0.000000e+00 : f32
    %476 = vector.broadcast %cst_256 : f32 to vector<1x128xf32>
    %477 = arith.maximumf %475, %476 : vector<1x128xf32>
    %478 = tpu.concatenate %470, %477 in 1 : vector<1x128xf32>, vector<1x128xf32> -> vector<1x256xf32>
    %c0_257 = arith.constant 0 : index
    %c0_258 = arith.constant 0 : index
    %479 = vector.load %arg28[%c0_257, %c0_258] : memref<256x10xf32, #tpu.memory_space<vmem>>, vector<256x10xf32>
    %cst_259 = arith.constant dense<0.000000e+00> : vector<1x10xf32>
    %480 = tpu.matmul %478, %479, %cst_259 {dimension_numbers = #tpu.dot_dimension_numbers<[1], [0], [0], [1], [0, 0, 1, 1], [], []>} : vector<1x256xf32>, vector<256x10xf32>, vector<1x10xf32> -> vector<1x10xf32>
    %c0_260 = arith.constant 0 : index
    %c0_261 = arith.constant 0 : index
    %481 = vector.load %arg29[%c0_260, %c0_261] : memref<1x10xf32, #tpu.memory_space<vmem>>, vector<1x10xf32>
    %482 = arith.addf %480, %481 : vector<1x10xf32>
    %c1_262 = arith.constant 1 : index
    %c0_263 = arith.constant 0 : index
    %483 = vector.load %arg30[%c1_262, %c0_263] : memref<2x10xf32, #tpu.memory_space<vmem>>, vector<1x10xf32>
    tpu.vector_store %arg30[%c1_262, %c0_263], %482 {strides = array<i32>} : memref<2x10xf32, #tpu.memory_space<vmem>>, vector<1x10xf32>,
    return
  }
}

</mosaic_0001>

<bundles_post_ra>
// kernel: forward.1
= control target key start
LH: loop header
LB: loop body
LE: loop exit
PB: predicated region body
PF: predicated region fallthrough
CT: control target
= control target key end

     0   :  { %s23005_s6 = smov 1   ;;  %s23006_s10 = smov 2   ;;  %s25398_s0 = inlined_call_operand.smem [shape: u32[31], index: -1, kind: input, shape index: {}] }
   0x1   :  { %s23089_s5 = sld [smem:[%s25398_s0]]   ;;  %s23007_s14 = smov 3  }
   0x2   :  { %s23094_s9 = sld [smem:[%s25398_s0 + %s23005_s6]]   ;;  %s23008_s18 = smov 4  }
   0x3   :  { %s23099_s13 = sld [smem:[%s25398_s0 + %s23006_s10]]   ;;  %s23009_s22 = smov 5  }
   0x4   :  { %s23104_s17 = sld [smem:[%s25398_s0 + %s23007_s14]]   ;;  %s23010_s26 = smov 6  }
   0x5   :  { %s23109_s21 = sld [smem:[%s25398_s0 + %s23008_s18]]   ;;  %s23011_s30 = smov 7  }
   0x6   :  { %s23114_s25 = sld [smem:[%s25398_s0 + %s23009_s22]]   ;;  %s23012_s4 = smov 8  }
   0x7   :  { %25417 = sst [smem:[#allocation62_spill]] %s23089_s5  ;;  %s23013_s10 = smov 9  }
   0x8   :  { %s23119_s29 = sld [smem:[%s25398_s0 + %s23010_s26]]   ;;  %s23014_s15 = smov 10  }
   0x9   :  { %s23124_s3 = sld [smem:[%s25398_s0 + %s23011_s30]]   ;;  %s23015_s20 = smov 11  }
   0xa   :  { %s23129_s8 = sld [smem:[%s25398_s0 + %s23012_s4]]   ;;  %s23016_s26 = smov 12  }
   0xb   :  { %25418 = sst [smem:[#allocation63_spill]] %s23109_s21  ;;  %s23017_s1 = smov 13  }
   0xc   :  { %s23134_s14 = sld [smem:[%s25398_s0 + %s23013_s10]]   ;;  %s23018_s7 = smov 14  }
   0xd   :  { %s23139_s19 = sld [smem:[%s25398_s0 + %s23014_s15]]   ;;  %s23019_s15 = smov 15  }
   0xe   :  { %25419 = sst [smem:[#allocation64_spill]] %s23119_s29  ;;  %s23020_s22 = smov 16  }
   0xf   :  { %s23144_s24 = sld [smem:[%s25398_s0 + %s23015_s20]]   ;;  %s23021_s28 = smov 17  }
  0x10   :  { %25420 = sst [smem:[#allocation65_spill]] %s23129_s8 }
  0x11   :  { %s23149_s30 = sld [smem:[%s25398_s0 + %s23016_s26]]  }
  0x12   :  { %s23154_s6 = sld [smem:[%s25398_s0 + %s23017_s1]]  }
  0x13   :  { %25421 = sst [smem:[#allocation66_spill]] %s23139_s19 }
  0x14   :  { %s23159_s12 = sld [smem:[%s25398_s0 + %s23018_s7]]   ;;  %s23022_s7 = smov 18  }
  0x15   :  { %s23164_s20 = sld [smem:[%s25398_s0 + %s23019_s15]]   ;;  %s23023_s15 = smov 19  }
  0x16   :  { %s23169_s27 = sld [smem:[%s25398_s0 + %s23020_s22]]   ;;  %s23024_s22 = smov 20  }
  0x17   :  { %25422 = sst [smem:[#allocation67_spill]] %s23149_s30 }
  0x18   :  { %s23174_s4 = sld [smem:[%s25398_s0 + %s23021_s28]]   ;;  %s23025_s28 = smov 21  }
  0x19   :  { %s23179_s5 = sld [smem:[%s25398_s0 + %s23022_s7]]   ;;  %s23026_s7 = smov 22  }
  0x1a   :  { %25423 = sst [smem:[#allocation68_spill]] %s23159_s12 }
  0x1b   :  { %s23184_s12 = sld [smem:[%s25398_s0 + %s23023_s15]]   ;;  %s23027_s15 = smov 23  }
  0x1c   :  { %25424 = sst [smem:[#allocation69_spill]] %s23169_s27 }
  0x1d   :  { %s23189_s27 = sld [smem:[%s25398_s0 + %s23024_s22]]   ;;  %s23028_s22 = smov 24  }
  0x1e   :  { %s23194_s30 = sld [smem:[%s25398_s0 + %s23025_s28]]   ;;  %s23029_s28 = smov 25  }
  0x1f   :  { %25425 = sst [smem:[#allocation70_spill]] %s23179_s5 }
  0x20   :  { %s23199_s5 = sld [smem:[%s25398_s0 + %s23026_s7]]   ;;  %s23030_s7 = smov 26  }
  0x21   :  { %s23204_s19 = sld [smem:[%s25398_s0 + %s23027_s15]]   ;;  %s23031_s15 = smov 27  }
  0x22   :  { %s23219_s8 = sld [smem:[%s25398_s0 + %s23030_s7]]   ;;  %s23034_s7 = smov 30  }
  0x23   :  { %25426 = sst [smem:[#allocation71_spill]] %s23189_s27 }
  0x24   :  { %25427 = sst [smem:[#allocation72_spill]] %s23194_s30 }
  0x25   :  { %s23209_s27 = sld [smem:[%s25398_s0 + %s23028_s22]]   ;;  %s23032_s22 = smov 28  }
  0x26   :  { %s23214_s30 = sld [smem:[%s25398_s0 + %s23029_s28]]   ;;  %s23033_s28 = smov 29  }
  0x27   :  { %25428 = sst [smem:[#allocation73_spill]] %s23204_s19 }
  0x28   :  { %s23224_s19 = sld [smem:[%s25398_s0 + %s23031_s15]]  }
  0x29   :  { %s23229_s29 = sld [smem:[%s25398_s0 + %s23032_s22]]  }
  0x2a   :  { %s23239_s21 = sld [smem:[%s25398_s0 + %s23034_s7]]  }
  0x2c   :  { %25429 = sst [smem:[#allocation74_spill]] %s23214_s30 }
  0x2d   :  { %s23234_s30 = sld [smem:[%s25398_s0 + %s23033_s28]]  }
  0x2e   :  { %66 = vsyncpa [#allocation5], 0 }
  0x2f   :  { %67 = vsyncpa [#allocation3], 0 }
  0x30   :  { %68 = vsyncpa [#allocation8], 0 }
  0x31   :  { %69 = vsyncpa [#allocation11], 0 }
  0x32   :  { %70 = vsyncpa [#allocation14], 0 }
  0x33   :  { %71 = vsyncpa [#allocation17], 0 }
  0x34   :  { %72 = vsyncpa [#allocation20], 0 }
  0x35   :  { %73 = vsyncpa [#allocation23], 0 }
  0x36   :  { %74 = vsyncpa [#allocation26], 0 }
  0x37   :  { %75 = vsyncpa [#allocation29], 0 }
  0x38   :  { %76 = vsyncpa [#allocation32], 0 }
  0x39   :  { %77 = vsyncpa [#allocation35], 0 }
  0x3a   :  { %78 = vsyncpa [#allocation38], 0 }
  0x3b   :  { %79 = vsyncpa [#allocation41], 0 }
  0x3c   :  { %80 = vsyncpa [#allocation44], 0 }
  0x3d   :  { %81 = vsyncpa [#allocation4], 0  ;;  %s23035_s0 = smov [#allocation7]   ;;  %s23036_s16 = smov [#allocation10]  }
  0x3e   :  { %s109_s15 = sshll.u32 %s23035_s0, 4  ;;  %s133_s18 = sshll.u32 %s23036_s16, 4  ;;  %s110_s15 = int_to_ptr.vmem [resolvable:$true] %s109_s15  ;;  %s23241_s18 = int_to_ptr.vmem [resolvable:$true] %s133_s18 }
  0x3f   :  { %s22369_s22 = scalar_lea.hbm %s23104_s17, 1024 }
  0x40   :  { %p22370_p0 = scmp.ne.s32.totalorder %s23104_s17, %s22369_s22  ;;  %p22373_p1 = scmp.lt.u32.totalorder %s22369_s22, %s23104_s17 }
  0x42   :  { %p22375_p2 = pnand %p22373_p1, %p22370_p0 }
  0x44   :  { %22378 = shalt.err (!%p22375_p2)
}
  0x45   :  { %s22379_s23 = scalar_lea.vmem %s110_s15, 1024  ;;  %p22384_p4 = scmp.lt.s32.totalorder %s110_s15, %s110_s15 }
  0x46   :  { %p22380_p3 = scmp.ne.s32.totalorder %s110_s15, %s22379_s23  ;;  %p22385_p5 = scmp.lt.s32.totalorder %s22379_s23, %s22379_s23 }
  0x48   :  { %p22386_p6 = por %p22385_p5, %p22384_p4 }
  0x4a   :  { %p22387_p7 = pnand %p22386_p6, %p22380_p3 }
  0x4c   :  { %22390 = shalt.err (!%p22387_p7)
}
  0x4d   :  { %s23037_s26 = smov 256   ;;  %s23038_s28 = smov 16  }
  0x4e   :  { %115 = dma.hbm_to_vmem [thread:$0]  %s23104_s17, 1024, %s110_s15, [#allocation8], %s23037_s26, %s23037_s26, %s23038_s28  }
  0x4f   :  { %s22391_s1 = scalar_lea.hbm %s23114_s25, 512 }
  0x50   :  { %p22392_p8 = scmp.ne.s32.totalorder %s23114_s25, %s22391_s1  ;;  %p22395_p9 = scmp.lt.u32.totalorder %s22391_s1, %s23114_s25 }
  0x52   :  { %p22397_p10 = pnand %p22395_p9, %p22392_p8 }
  0x54   :  { %22400 = shalt.err (!%p22397_p10)
}
  0x55   :  { %s22401_s2 = scalar_lea.vmem %s23241_s18, 512  ;;  %p22406_p12 = scmp.lt.s32.totalorder %s23241_s18, %s23241_s18 }
  0x56   :  { %p22402_p11 = scmp.ne.s32.totalorder %s23241_s18, %s22401_s2  ;;  %p22407_p13 = scmp.lt.s32.totalorder %s22401_s2, %s22401_s2 }
  0x58   :  { %p22408_p0 = por %p22407_p13, %p22406_p12 }
  0x5a   :  { %p22409_p1 = pnand %p22408_p0, %p22402_p11 }
  0x5c   :  { %22412 = shalt.err (!%p22409_p1)
}
  0x5d   :  { %s23039_s7 = smov 128   ;;  %s23040_s17 = smov 8  }
  0x5e   :  { %139 = dma.hbm_to_vmem [thread:$0]  %s23114_s25, 512, %s23241_s18, [#allocation11], %s23039_s7, %s23039_s7, %s23040_s17  }
  0x5f   :  { %s23041_s10 = smov [#allocation13]   ;;  %s23042_s0 = smov [#allocation16]  }
  0x60   :  { %s157_s11 = sshll.u32 %s23041_s10, 4  ;;  %s182_s15 = sshll.u32 %s23042_s0, 4  ;;  %s158_s11 = int_to_ptr.vmem [resolvable:$true] %s157_s11  ;;  %s183_s15 = int_to_ptr.vmem [resolvable:$true] %s182_s15 }
  0x61   :  { %s22413_s16 = scalar_lea.hbm %s23124_s3, 256 }
  0x62   :  { %p22414_p2 = scmp.ne.s32.totalorder %s23124_s3, %s22413_s16  ;;  %p22417_p3 = scmp.lt.u32.totalorder %s22413_s16, %s23124_s3 }
  0x64   :  { %p22419_p4 = pnand %p22417_p3, %p22414_p2 }
  0x66   :  { %22422 = shalt.err (!%p22419_p4)
}
  0x67   :  { %s22423_s22 = scalar_lea.vmem %s158_s11, 256  ;;  %p22428_p6 = scmp.lt.s32.totalorder %s158_s11, %s158_s11 }
  0x68   :  { %p22424_p5 = scmp.ne.s32.totalorder %s158_s11, %s22423_s22  ;;  %p22429_p7 = scmp.lt.s32.totalorder %s22423_s22, %s22423_s22 }
  0x6a   :  { %p22430_p8 = por %p22429_p7, %p22428_p6 }
  0x6c   :  { %p22431_p9 = pnand %p22430_p8, %p22424_p5 }
  0x6e   :  { %22434 = shalt.err (!%p22431_p9)
}
  0x6f   :  { %163 = dma.hbm_to_vmem [thread:$0]  %s23124_s3, 256, %s158_s11, [#allocation14], %s23039_s7, %s23039_s7, %s23040_s17  }
  0x70   :  { %s22435_s25 = scalar_lea.hbm %s23134_s14, 64 }
  0x71   :  { %p22436_p10 = scmp.ne.s32.totalorder %s23134_s14, %s22435_s25  ;;  %p22439_p11 = scmp.lt.u32.totalorder %s22435_s25, %s23134_s14 }
  0x73   :  { %p22441_p12 = pnand %p22439_p11, %p22436_p10 }
  0x75   :  { %22444 = shalt.err (!%p22441_p12)
}
  0x76   :  { %s22445_s18 = scalar_lea.vmem %s183_s15, 64  ;;  %p22450_p0 = scmp.lt.s32.totalorder %s183_s15, %s183_s15 }
  0x77   :  { %p22446_p13 = scmp.ne.s32.totalorder %s183_s15, %s22445_s18  ;;  %p22451_p1 = scmp.lt.s32.totalorder %s22445_s18, %s22445_s18 }
  0x79   :  { %p22452_p2 = por %p22451_p1, %p22450_p0 }
  0x7b   :  { %p22453_p3 = pnand %p22452_p2, %p22446_p13 }
  0x7d   :  { %22456 = shalt.err (!%p22453_p3)
}
  0x7e   :  { %185 = dma.hbm_to_vmem [thread:$0]  %s23134_s14, 64, %s183_s15, [#allocation17]  }
  0x7f   :  { %s23043_s23 = smov [#allocation19]   ;;  %s23044_s3 = smov [#allocation22]  }
  0x80   :  { %s203_s1 = sshll.u32 %s23043_s23, 4  ;;  %s227_s2 = sshll.u32 %s23044_s3, 4  ;;  %s204_s1 = int_to_ptr.vmem [resolvable:$true] %s203_s1  ;;  %s23273_s2 = int_to_ptr.vmem [resolvable:$true] %s227_s2 }
  0x81   :  { %s22457_s10 = scalar_lea.hbm %s23144_s24, 10752 }
  0x82   :  { %p22458_p4 = scmp.ne.s32.totalorder %s23144_s24, %s22457_s10  ;;  %p22461_p5 = scmp.lt.u32.totalorder %s22457_s10, %s23144_s24 }
  0x84   :  { %p22463_p6 = pnand %p22461_p5, %p22458_p4 }
  0x86   :  { %22466 = shalt.err (!%p22463_p6)
}
  0x87   :  { %s22467_s11 = scalar_lea.vmem %s204_s1, 10752  ;;  %p22472_p8 = scmp.lt.s32.totalorder %s204_s1, %s204_s1 }
  0x88   :  { %p22468_p7 = scmp.ne.s32.totalorder %s204_s1, %s22467_s11  ;;  %p22473_p9 = scmp.lt.s32.totalorder %s22467_s11, %s22467_s11 }
  0x8a   :  { %p22474_p10 = por %p22473_p9, %p22472_p8 }
  0x8c   :  { %p22475_p11 = pnand %p22474_p10, %p22468_p7 }
  0x8e   :  { %22478 = shalt.err (!%p22475_p11)
}
  0x8f   :  { %s23045_s14 = smov 384   ;;  %s23046_s0 = smov 24  }
  0x90   :  { %209 = dma.hbm_to_vmem [thread:$0]  %s23144_s24, 10752, %s204_s1, [#allocation20], %s23045_s14, %s23045_s14, %s23046_s0  }
  0x91   :  { %s22479_s15 = scalar_lea.hbm %s23154_s6, 256 }
  0x92   :  { %p22480_p12 = scmp.ne.s32.totalorder %s23154_s6, %s22479_s15  ;;  %p22483_p13 = scmp.lt.u32.totalorder %s22479_s15, %s23154_s6 }
  0x94   :  { %p22485_p0 = pnand %p22483_p13, %p22480_p12 }
  0x96   :  { %22488 = shalt.err (!%p22485_p0)
}
  0x97   :  { %s22489_s16 = scalar_lea.vmem %s23273_s2, 256  ;;  %p22494_p2 = scmp.lt.s32.totalorder %s23273_s2, %s23273_s2 }
  0x98   :  { %p22490_p1 = scmp.ne.s32.totalorder %s23273_s2, %s22489_s16  ;;  %p22495_p3 = scmp.lt.s32.totalorder %s22489_s16, %s22489_s16 }
  0x9a   :  { %p22496_p4 = por %p22495_p3, %p22494_p2 }
  0x9c   :  { %p22497_p5 = pnand %p22496_p4, %p22490_p1 }
  0x9e   :  { %22500 = shalt.err (!%p22497_p5)
}
  0x9f   :  { %233 = dma.hbm_to_vmem [thread:$0]  %s23154_s6, 256, %s23273_s2, [#allocation23], %s23039_s7, %s23039_s7, %s23040_s17  }
  0xa0   :  { %s23047_s24 = smov [#allocation25]   ;;  %s23048_s25 = smov [#allocation28]  }
  0xa1   :  { %s252_s22 = sshll.u32 %s23047_s24, 4  ;;  %s272_s18 = sshll.u32 %s23048_s25, 4  ;;  %s253_s22 = int_to_ptr.vmem [resolvable:$true] %s252_s22  ;;  %s273_s18 = int_to_ptr.vmem [resolvable:$true] %s272_s18 }
  0xa2   :  { %s22501_s23 = scalar_lea.hbm %s23164_s20, 128 }
  0xa3   :  { %p22502_p6 = scmp.ne.s32.totalorder %s23164_s20, %s22501_s23  ;;  %p22505_p7 = scmp.lt.u32.totalorder %s22501_s23, %s23164_s20 }
  0xa5   :  { %p22507_p8 = pnand %p22505_p7, %p22502_p6 }
  0xa7   :  { %22510 = shalt.err (!%p22507_p8)
}
  0xa8   :  { %s22511_s1 = scalar_lea.vmem %s253_s22, 128  ;;  %p22516_p10 = scmp.lt.s32.totalorder %s253_s22, %s253_s22 }
  0xa9   :  { %p22512_p9 = scmp.ne.s32.totalorder %s253_s22, %s22511_s1  ;;  %p22517_p11 = scmp.lt.s32.totalorder %s22511_s1, %s22511_s1 }
  0xab   :  { %p22518_p12 = por %p22517_p11, %p22516_p10 }
  0xad   :  { %p22519_p13 = pnand %p22518_p12, %p22512_p9 }
  0xaf   :  { %22522 = shalt.err (!%p22519_p13)
}
  0xb0   :  { %255 = dma.hbm_to_vmem [thread:$0]  %s23164_s20, 128, %s253_s22, [#allocation26]  }
  0xb1   :  { %s22523_s6 = scalar_lea.hbm %s23174_s4, 96 }
  0xb2   :  { %p22524_p0 = scmp.ne.s32.totalorder %s23174_s4, %s22523_s6  ;;  %p22527_p1 = scmp.lt.u32.totalorder %s22523_s6, %s23174_s4 }
  0xb4   :  { %p22529_p2 = pnand %p22527_p1, %p22524_p0 }
  0xb6   :  { %22532 = shalt.err (!%p22529_p2)
}
  0xb7   :  { %s22533_s3 = scalar_lea.vmem %s273_s18, 96  ;;  %p22538_p4 = scmp.lt.s32.totalorder %s273_s18, %s273_s18 }
  0xb8   :  { %p22534_p3 = scmp.ne.s32.totalorder %s273_s18, %s22533_s3  ;;  %p22539_p5 = scmp.lt.s32.totalorder %s22533_s3, %s22533_s3 }
  0xba   :  { %p22540_p6 = por %p22539_p5, %p22538_p4 }
  0xbc   :  { %p22541_p7 = pnand %p22540_p6, %p22534_p3 }
  0xbe   :  { %22544 = shalt.err (!%p22541_p7)
}
  0xbf   :  { %275 = dma.hbm_to_vmem [thread:$0]  %s23174_s4, 96, %s273_s18, [#allocation29]  }
  0xc0   :  { %s23049_s2 = smov [#allocation31]   ;;  %s23050_s20 = smov [#allocation34]  }
  0xc1   :  { %s293_s10 = sshll.u32 %s23049_s2, 4  ;;  %s317_s11 = sshll.u32 %s23050_s20, 4  ;;  %s294_s10 = int_to_ptr.vmem [resolvable:$true] %s293_s10  ;;  %s23302_s11 = int_to_ptr.vmem [resolvable:$true] %s317_s11 }
  0xc2   :  { %s22545_s15 = scalar_lea.hbm %s23184_s12, 2048 }
  0xc3   :  { %p22546_p8 = scmp.ne.s32.totalorder %s23184_s12, %s22545_s15  ;;  %p22549_p9 = scmp.lt.u32.totalorder %s22545_s15, %s23184_s12 }
  0xc5   :  { %p22551_p10 = pnand %p22549_p9, %p22546_p8 }
  0xc7   :  { %22554 = shalt.err (!%p22551_p10)
}
  0xc8   :  { %s22555_s16 = scalar_lea.vmem %s294_s10, 2048  ;;  %p22560_p12 = scmp.lt.s32.totalorder %s294_s10, %s294_s10 }
  0xc9   :  { %p22556_p11 = scmp.ne.s32.totalorder %s294_s10, %s22555_s16  ;;  %p22561_p13 = scmp.lt.s32.totalorder %s22555_s16, %s22555_s16 }
  0xcb   :  { %p22562_p0 = por %p22561_p13, %p22560_p12 }
  0xcd   :  { %p22563_p1 = pnand %p22562_p0, %p22556_p11 }
  0xcf   :  { %22566 = shalt.err (!%p22563_p1)
}
  0xd0   :  { %299 = dma.hbm_to_vmem [thread:$0]  %s23184_s12, 2048, %s294_s10, [#allocation32], %s23039_s7, %s23039_s7, %s23040_s17  }
  0xd1   :  { %s22567_s4 = scalar_lea.hbm %s23199_s5, 512 }
  0xd2   :  { %p22568_p2 = scmp.ne.s32.totalorder %s23199_s5, %s22567_s4  ;;  %p22571_p3 = scmp.lt.u32.totalorder %s22567_s4, %s23199_s5 }
  0xd4   :  { %p22573_p4 = pnand %p22571_p3, %p22568_p2 }
  0xd6   :  { %22576 = shalt.err (!%p22573_p4)
}
  0xd7   :  { %s22577_s24 = scalar_lea.vmem %s23302_s11, 512  ;;  %p22582_p6 = scmp.lt.s32.totalorder %s23302_s11, %s23302_s11 }
  0xd8   :  { %p22578_p5 = scmp.ne.s32.totalorder %s23302_s11, %s22577_s24  ;;  %p22583_p7 = scmp.lt.s32.totalorder %s22577_s24, %s22577_s24 }
  0xda   :  { %p22584_p8 = por %p22583_p7, %p22582_p6 }
  0xdc   :  { %p22585_p9 = pnand %p22584_p8, %p22578_p5 }
  0xde   :  { %22588 = shalt.err (!%p22585_p9)
}
  0xdf   :  { %s23051_s22 = smov 64   ;;  %s23052_s12 = smov 4  }
  0xe0   :  { %323 = dma.hbm_to_vmem [thread:$0]  %s23199_s5, 512, %s23302_s11, [#allocation35], %s23051_s22, %s23051_s22, %s23052_s12  }
  0xe1   :  { %s23053_s25 = smov [#allocation37]   ;;  %s23054_s23 = smov [#allocation40]  }
  0xe2   :  { %s339_s18 = sshll.u32 %s23053_s25, 4  ;;  %s361_s1 = sshll.u32 %s23054_s23, 4  ;;  %s340_s18 = int_to_ptr.vmem [resolvable:$true] %s339_s18  ;;  %s23323_s1 = int_to_ptr.vmem [resolvable:$true] %s361_s1 }
  0xe3   :  { %s22589_s6 = scalar_lea.hbm %s23209_s27, 2048 }
  0xe4   :  { %p22590_p10 = scmp.ne.s32.totalorder %s23209_s27, %s22589_s6  ;;  %p22593_p11 = scmp.lt.u32.totalorder %s22589_s6, %s23209_s27 }
  0xe6   :  { %p22595_p12 = pnand %p22593_p11, %p22590_p10 }
  0xe8   :  { %22598 = shalt.err (!%p22595_p12)
}
  0xe9   :  { %s22599_s3 = scalar_lea.vmem %s340_s18, 2048  ;;  %p22604_p0 = scmp.lt.s32.totalorder %s340_s18, %s340_s18 }
  0xea   :  { %p22600_p13 = scmp.ne.s32.totalorder %s340_s18, %s22599_s3  ;;  %p22605_p1 = scmp.lt.s32.totalorder %s22599_s3, %s22599_s3 }
  0xec   :  { %p22606_p2 = por %p22605_p1, %p22604_p0 }
  0xee   :  { %p22607_p3 = pnand %p22606_p2, %p22600_p13 }
  0xf0   :  { %22610 = shalt.err (!%p22607_p3)
}
  0xf1   :  { %345 = dma.hbm_to_vmem [thread:$0]  %s23209_s27, 2048, %s340_s18, [#allocation38], %s23051_s22, %s23051_s22, %s23052_s12  }
  0xf2   :  { %s22611_s5 = scalar_lea.hbm %s23219_s8, 2048 }
  0xf3   :  { %p22612_p4 = scmp.ne.s32.totalorder %s23219_s8, %s22611_s5  ;;  %p22615_p5 = scmp.lt.u32.totalorder %s22611_s5, %s23219_s8 }
  0xf5   :  { %p22617_p6 = pnand %p22615_p5, %p22612_p4 }
  0xf7   :  { %22620 = shalt.err (!%p22617_p6)
}
  0xf8   :  { %s22621_s2 = scalar_lea.vmem %s23323_s1, 2048  ;;  %p22626_p8 = scmp.lt.s32.totalorder %s23323_s1, %s23323_s1 }
  0xf9   :  { %p22622_p7 = scmp.ne.s32.totalorder %s23323_s1, %s22621_s2  ;;  %p22627_p9 = scmp.lt.s32.totalorder %s22621_s2, %s22621_s2 }
  0xfb   :  { %p22628_p10 = por %p22627_p9, %p22626_p8 }
  0xfd   :  { %p22629_p11 = pnand %p22628_p10, %p22622_p7 }
  0xff   :  { %22632 = shalt.err (!%p22629_p11)
}
 0x100   :  { %367 = dma.hbm_to_vmem [thread:$0]  %s23219_s8, 2048, %s23323_s1, [#allocation41], %s23051_s22, %s23051_s22, %s23052_s12  }
 0x101   :  { %s22633_s27 = scalar_lea.hbm %s23094_s9, 32 }
 0x102   :  { %p22634_p12 = scmp.ne.s32.totalorder %s23094_s9, %s22633_s27  ;;  %p22637_p13 = scmp.lt.u32.totalorder %s22633_s27, %s23094_s9 }
 0x104   :  { %p22639_p0 = pnand %p22637_p13, %p22634_p12 }
 0x106   :  { %22642 = shalt.err (!%p22639_p0)
}
 0x107   :  { %s23055_s10 = smov [#allocation2]   ;;  %s23056_s20 = smov [#allocation6]  }
 0x108   :  { %91 = dma.hbm_to_smem %s23094_s9, 32, %s23055_s10, [#allocation5]  }
 0x109   :  { %s97_s11 = sshll.u32 %s23056_s20, 4  ;;  %s23057_s15 = smov [#allocation9]   ;;  %s98_s11 = int_to_ptr.vmem [resolvable:$true] %s97_s11 }
 0x10a   :  { %s121_s16 = sshll.u32 %s23057_s15, 4  ;;  %s22643_s4 = scalar_lea.hbm %s23099_s13, 1024  ;;  %s122_s16 = int_to_ptr.vmem [resolvable:$true] %s121_s16 }
 0x10b   :  { %p22644_p1 = scmp.ne.s32.totalorder %s23099_s13, %s22643_s4  ;;  %p22647_p2 = scmp.lt.u32.totalorder %s22643_s4, %s23099_s13 }
 0x10d   :  { %p22649_p3 = pnand %p22647_p2, %p22644_p1 }
 0x10f   :  { %22652 = shalt.err (!%p22649_p3)
}
 0x110   :  { %s22653_s8 = scalar_lea.vmem %s98_s11, 1024  ;;  %p22658_p5 = scmp.lt.s32.totalorder %s98_s11, %s98_s11 }
 0x111   :  { %p22654_p4 = scmp.ne.s32.totalorder %s98_s11, %s22653_s8  ;;  %p22659_p6 = scmp.lt.s32.totalorder %s22653_s8, %s22653_s8 }
 0x113   :  { %p22660_p7 = por %p22659_p6, %p22658_p5 }
 0x115   :  { %p22661_p8 = pnand %p22660_p7, %p22654_p4 }
 0x117   :  { %22664 = shalt.err (!%p22661_p8)
}
 0x118   :  { %s25430_s9 = sld [smem:[#allocation63_spill]] }
 0x119   :  { %103 = dma.hbm_to_vmem [thread:$0]  %s23099_s13, 1024, %s98_s11, [#allocation3], %s23037_s26, %s23037_s26, %s23038_s28  }
 0x11e   :  { %s22665_s24 = scalar_lea.hbm %s25430_s9, 1024 }
 0x11f   :  { %p22666_p9 = scmp.ne.s32.totalorder %s25430_s9, %s22665_s24  ;;  %p22669_p10 = scmp.lt.u32.totalorder %s22665_s24, %s25430_s9 }
 0x121   :  { %p22671_p11 = pnand %p22669_p10, %p22666_p9 }
 0x123   :  { %22674 = shalt.err (!%p22671_p11)
}
 0x124   :  { %s22675_s12 = scalar_lea.vmem %s122_s16, 1024  ;;  %p22680_p13 = scmp.lt.s32.totalorder %s122_s16, %s122_s16 }
 0x125   :  { %p22676_p12 = scmp.ne.s32.totalorder %s122_s16, %s22675_s12  ;;  %p22681_p0 = scmp.lt.s32.totalorder %s22675_s12, %s22675_s12 }
 0x127   :  { %p22682_p1 = por %p22681_p0, %p22680_p13 }
 0x129   :  { %p22683_p2 = pnand %p22682_p1, %p22676_p12 }
 0x12b   :  { %22686 = shalt.err (!%p22683_p2)
}
 0x12c   :  { %s25431_s25 = sld [smem:[#allocation64_spill]]  ;;  %s23058_s13 = smov [#allocation12]  }
 0x12d   :  { %127 = dma.hbm_to_vmem [thread:$0]  %s25430_s9, 1024, %s122_s16, [#allocation8], %s23037_s26, %s23037_s26, %s23038_s28  }
 0x12e   :  { %s145_s18 = sshll.u32 %s23058_s13, 4  ;;  %s23059_s23 = smov [#allocation15]   ;;  %s146_s18 = int_to_ptr.vmem [resolvable:$true] %s145_s18 }
 0x12f   :  { %s169_s1 = sshll.u32 %s23059_s23, 4  ;;  %s170_s1 = int_to_ptr.vmem [resolvable:$true] %s169_s1 }
 0x132   :  { %s22687_s6 = scalar_lea.hbm %s25431_s25, 512 }
 0x133   :  { %p22688_p3 = scmp.ne.s32.totalorder %s25431_s25, %s22687_s6  ;;  %p22691_p4 = scmp.lt.u32.totalorder %s22687_s6, %s25431_s25 }
 0x135   :  { %p22693_p5 = pnand %p22691_p4, %p22688_p3 }
 0x137   :  { %22696 = shalt.err (!%p22693_p5)
}
 0x138   :  { %s22697_s3 = scalar_lea.vmem %s146_s18, 512  ;;  %p22702_p7 = scmp.lt.s32.totalorder %s146_s18, %s146_s18 }
 0x139   :  { %p22698_p6 = scmp.ne.s32.totalorder %s146_s18, %s22697_s3  ;;  %p22703_p8 = scmp.lt.s32.totalorder %s22697_s3, %s22697_s3 }
 0x13b   :  { %p22704_p9 = por %p22703_p8, %p22702_p7 }
 0x13d   :  { %p22705_p10 = pnand %p22704_p9, %p22698_p6 }
 0x13f   :  { %22708 = shalt.err (!%p22705_p10)
}
 0x140   :  { %s25432_s26 = sld [smem:[#allocation65_spill]] }
 0x141   :  { %151 = dma.hbm_to_vmem [thread:$0]  %s25431_s25, 512, %s146_s18, [#allocation11], %s23039_s7, %s23039_s7, %s23040_s17  }
 0x146   :  { %s22709_s5 = scalar_lea.hbm %s25432_s26, 256 }
 0x147   :  { %p22710_p11 = scmp.ne.s32.totalorder %s25432_s26, %s22709_s5  ;;  %p22713_p12 = scmp.lt.u32.totalorder %s22709_s5, %s25432_s26 }
 0x149   :  { %p22715_p13 = pnand %p22713_p12, %p22710_p11 }
 0x14b   :  { %22718 = shalt.err (!%p22715_p13)
}
 0x14c   :  { %s22719_s2 = scalar_lea.vmem %s170_s1, 256  ;;  %p22724_p1 = scmp.lt.s32.totalorder %s170_s1, %s170_s1 }
 0x14d   :  { %p22720_p0 = scmp.ne.s32.totalorder %s170_s1, %s22719_s2  ;;  %p22725_p2 = scmp.lt.s32.totalorder %s22719_s2, %s22719_s2 }
 0x14f   :  { %p22726_p3 = por %p22725_p2, %p22724_p1 }
 0x151   :  { %p22727_p4 = pnand %p22726_p3, %p22720_p0 }
 0x153   :  { %22730 = shalt.err (!%p22727_p4)
}
 0x154   :  { %s25433_s27 = sld [smem:[#allocation66_spill]]  ;;  %s23060_s10 = smov [#allocation18]  }
 0x155   :  { %175 = dma.hbm_to_vmem [thread:$0]  %s25432_s26, 256, %s170_s1, [#allocation14], %s23039_s7, %s23039_s7, %s23040_s17  }
 0x156   :  { %s191_s20 = sshll.u32 %s23060_s10, 4  ;;  %s23061_s11 = smov [#allocation21]   ;;  %s192_s20 = int_to_ptr.vmem [resolvable:$true] %s191_s20 }
 0x157   :  { %s215_s15 = sshll.u32 %s23061_s11, 4  ;;  %s216_s15 = int_to_ptr.vmem [resolvable:$true] %s215_s15 }
 0x15a   :  { %s22731_s16 = scalar_lea.hbm %s25433_s27, 10752 }
 0x15b   :  { %p22732_p5 = scmp.ne.s32.totalorder %s25433_s27, %s22731_s16  ;;  %p22735_p6 = scmp.lt.u32.totalorder %s22731_s16, %s25433_s27 }
 0x15d   :  { %p22737_p7 = pnand %p22735_p6, %p22732_p5 }
 0x15f   :  { %22740 = shalt.err (!%p22737_p7)
}
 0x160   :  { %s22741_s4 = scalar_lea.vmem %s192_s20, 10752  ;;  %p22746_p9 = scmp.lt.s32.totalorder %s192_s20, %s192_s20 }
 0x161   :  { %p22742_p8 = scmp.ne.s32.totalorder %s192_s20, %s22741_s4  ;;  %p22747_p10 = scmp.lt.s32.totalorder %s22741_s4, %s22741_s4 }
 0x163   :  { %p22748_p11 = por %p22747_p10, %p22746_p9 }
 0x165   :  { %p22749_p12 = pnand %p22748_p11, %p22742_p8 }
 0x167   :  { %22752 = shalt.err (!%p22749_p12)
}
 0x168   :  { %s25434_s8 = sld [smem:[#allocation67_spill]] }
 0x169   :  { %197 = dma.hbm_to_vmem [thread:$0]  %s25433_s27, 10752, %s192_s20, [#allocation17], %s23045_s14, %s23045_s14, %s23046_s0  }
 0x16e   :  { %s22753_s9 = scalar_lea.hbm %s25434_s8, 10752 }
 0x16f   :  { %p22754_p13 = scmp.ne.s32.totalorder %s25434_s8, %s22753_s9  ;;  %p22757_p0 = scmp.lt.u32.totalorder %s22753_s9, %s25434_s8 }
 0x171   :  { %p22759_p1 = pnand %p22757_p0, %p22754_p13 }
 0x173   :  { %22762 = shalt.err (!%p22759_p1)
}
 0x174   :  { %s22763_s24 = scalar_lea.vmem %s216_s15, 10752  ;;  %p22768_p3 = scmp.lt.s32.totalorder %s216_s15, %s216_s15 }
 0x175   :  { %p22764_p2 = scmp.ne.s32.totalorder %s216_s15, %s22763_s24  ;;  %p22769_p4 = scmp.lt.s32.totalorder %s22763_s24, %s22763_s24 }
 0x177   :  { %p22770_p5 = por %p22769_p4, %p22768_p3 }
 0x179   :  { %p22771_p6 = pnand %p22770_p5, %p22764_p2 }
 0x17b   :  { %22774 = shalt.err (!%p22771_p6)
}
 0x17c   :  { %s25435_s12 = sld [smem:[#allocation68_spill]]  ;;  %s23062_s25 = smov [#allocation24]  }
 0x17d   :  { %221 = dma.hbm_to_vmem [thread:$0]  %s25434_s8, 10752, %s216_s15, [#allocation20], %s23045_s14, %s23045_s14, %s23046_s0  }
 0x17e   :  { %s239_s13 = sshll.u32 %s23062_s25, 4  ;;  %s23063_s18 = smov [#allocation27]   ;;  %s240_s13 = int_to_ptr.vmem [resolvable:$true] %s239_s13 }
 0x17f   :  { %s262_s23 = sshll.u32 %s23063_s18, 4  ;;  %s263_s23 = int_to_ptr.vmem [resolvable:$true] %s262_s23 }
 0x182   :  { %s22775_s1 = scalar_lea.hbm %s25435_s12, 256 }
 0x183   :  { %p22776_p7 = scmp.ne.s32.totalorder %s25435_s12, %s22775_s1  ;;  %p22779_p8 = scmp.lt.u32.totalorder %s22775_s1, %s25435_s12 }
 0x185   :  { %p22781_p9 = pnand %p22779_p8, %p22776_p7 }
 0x187   :  { %22784 = shalt.err (!%p22781_p9)
}
 0x188   :  { %s22785_s6 = scalar_lea.vmem %s240_s13, 256  ;;  %p22790_p11 = scmp.lt.s32.totalorder %s240_s13, %s240_s13 }
 0x189   :  { %p22786_p10 = scmp.ne.s32.totalorder %s240_s13, %s22785_s6  ;;  %p22791_p12 = scmp.lt.s32.totalorder %s22785_s6, %s22785_s6 }
 0x18b   :  { %p22792_p13 = por %p22791_p12, %p22790_p11 }
 0x18d   :  { %p22793_p0 = pnand %p22792_p13, %p22786_p10 }
 0x18f   :  { %22796 = shalt.err (!%p22793_p0)
}
 0x190   :  { %s25436_s14 = sld [smem:[#allocation69_spill]] }
 0x191   :  { %245 = dma.hbm_to_vmem [thread:$0]  %s25435_s12, 256, %s240_s13, [#allocation23], %s23039_s7, %s23039_s7, %s23040_s17  }
 0x196   :  { %s22797_s0 = scalar_lea.hbm %s25436_s14, 128 }
 0x197   :  { %p22798_p1 = scmp.ne.s32.totalorder %s25436_s14, %s22797_s0  ;;  %p22801_p2 = scmp.lt.u32.totalorder %s22797_s0, %s25436_s14 }
 0x199   :  { %p22803_p3 = pnand %p22801_p2, %p22798_p1 }
 0x19b   :  { %22806 = shalt.err (!%p22803_p3)
}
 0x19c   :  { %s22807_s3 = scalar_lea.vmem %s263_s23, 128  ;;  %p22812_p5 = scmp.lt.s32.totalorder %s263_s23, %s263_s23 }
 0x19d   :  { %p22808_p4 = scmp.ne.s32.totalorder %s263_s23, %s22807_s3  ;;  %p22813_p6 = scmp.lt.s32.totalorder %s22807_s3, %s22807_s3 }
 0x19f   :  { %p22814_p7 = por %p22813_p6, %p22812_p5 }
 0x1a1   :  { %p22815_p8 = pnand %p22814_p7, %p22808_p4 }
 0x1a3   :  { %22818 = shalt.err (!%p22815_p8)
}
 0x1a4   :  { %s25437_s26 = sld [smem:[#allocation70_spill]]  ;;  %s23064_s5 = smov [#allocation30]  }
 0x1a5   :  { %265 = dma.hbm_to_vmem [thread:$0]  %s25436_s14, 128, %s263_s23, [#allocation26]  }
 0x1a6   :  { %s281_s2 = sshll.u32 %s23064_s5, 4  ;;  %s23065_s27 = smov [#allocation33]   ;;  %s282_s2 = int_to_ptr.vmem [resolvable:$true] %s281_s2 }
 0x1a7   :  { %s306_s10 = sshll.u32 %s23065_s27, 4  ;;  %s307_s10 = int_to_ptr.vmem [resolvable:$true] %s306_s10 }
 0x1aa   :  { %s22819_s20 = scalar_lea.hbm %s25437_s26, 37632 }
 0x1ab   :  { %p22820_p9 = scmp.ne.s32.totalorder %s25437_s26, %s22819_s20  ;;  %p22823_p10 = scmp.lt.u32.totalorder %s22819_s20, %s25437_s26 }
 0x1ad   :  { %p22825_p11 = pnand %p22823_p10, %p22820_p9 }
 0x1af   :  { %22828 = shalt.err (!%p22825_p11)
}
 0x1b0   :  { %s22829_s11 = scalar_lea.vmem %s282_s2, 37632  ;;  %p22834_p13 = scmp.lt.s32.totalorder %s282_s2, %s282_s2 }
 0x1b1   :  { %p22830_p12 = scmp.ne.s32.totalorder %s282_s2, %s22829_s11  ;;  %p22835_p0 = scmp.lt.s32.totalorder %s22829_s11, %s22829_s11 }
 0x1b3   :  { %p22836_p1 = por %p22835_p0, %p22834_p13 }
 0x1b5   :  { %p22837_p2 = pnand %p22836_p1, %p22830_p12 }
 0x1b7   :  { %22840 = shalt.err (!%p22837_p2)
}
 0x1b8   :  { %s25438_s15 = sld [smem:[#allocation71_spill]] }
 0x1b9   :  { %287 = dma.hbm_to_vmem [thread:$0]  %s25437_s26, 37632, %s282_s2, [#allocation29], %s23039_s7, %s23039_s7, %s23040_s17  }
 0x1be   :  { %s22841_s16 = scalar_lea.hbm %s25438_s15, 32 }
 0x1bf   :  { %p22842_p3 = scmp.ne.s32.totalorder %s25438_s15, %s22841_s16  ;;  %p22845_p4 = scmp.lt.u32.totalorder %s22841_s16, %s25438_s15 }
 0x1c1   :  { %p22847_p5 = pnand %p22845_p4, %p22842_p3 }
 0x1c3   :  { %22850 = shalt.err (!%p22847_p5)
}
 0x1c4   :  { %s22851_s4 = scalar_lea.vmem %s307_s10, 32  ;;  %p22856_p7 = scmp.lt.s32.totalorder %s307_s10, %s307_s10 }
 0x1c5   :  { %p22852_p6 = scmp.ne.s32.totalorder %s307_s10, %s22851_s4  ;;  %p22857_p8 = scmp.lt.s32.totalorder %s22851_s4, %s22851_s4 }
 0x1c7   :  { %p22858_p9 = por %p22857_p8, %p22856_p7 }
 0x1c9   :  { %p22859_p10 = pnand %p22858_p9, %p22852_p6 }
 0x1cb   :  { %22862 = shalt.err (!%p22859_p10)
}
 0x1cc   :  { %s25439_s8 = sld [smem:[#allocation73_spill]]  ;;  %s23066_s9 = smov [#allocation36]  }
 0x1cd   :  { %309 = dma.hbm_to_vmem [thread:$0]  %s25438_s15, 32, %s307_s10, [#allocation32]  }
 0x1ce   :  { %s330_s7 = sshll.u32 %s23066_s9, 4  ;;  %s23067_s17 = smov [#allocation39]   ;;  %s331_s7 = int_to_ptr.vmem [resolvable:$true] %s330_s7 }
 0x1cf   :  { %s352_s24 = sshll.u32 %s23067_s17, 4  ;;  %s353_s24 = int_to_ptr.vmem [resolvable:$true] %s352_s24 }
 0x1d2   :  { %s22863_s12 = scalar_lea.hbm %s25439_s8, 16 }
 0x1d3   :  { %p22864_p11 = scmp.ne.s32.totalorder %s25439_s8, %s22863_s12  ;;  %p22867_p12 = scmp.lt.u32.totalorder %s22863_s12, %s25439_s8 }
 0x1d5   :  { %p22869_p13 = pnand %p22867_p12, %p22864_p11 }
 0x1d7   :  { %22872 = shalt.err (!%p22869_p13)
}
 0x1d8   :  { %s22873_s25 = scalar_lea.vmem %s331_s7, 16  ;;  %s22877_s13 = scalar_lea.vmem %s331_s7, 32 }
 0x1d9   :  { %p22874_p0 = scmp.ne.s32.totalorder %s331_s7, %s22873_s25  ;;  %p22878_p1 = scmp.lt.s32.totalorder %s331_s7, %s331_s7 }
 0x1da   :  { %p22879_p2 = scmp.lt.s32.totalorder %s22877_s13, %s22873_s25 }
 0x1dc   :  { %p22880_p3 = por %p22879_p2, %p22878_p1 }
 0x1de   :  { %p22881_p4 = pnand %p22880_p3, %p22874_p0 }
 0x1e0   :  { %22884 = shalt.err (!%p22881_p4)
}
 0x1e1   :  { %s25440_s18 = sld [smem:[#allocation74_spill]] }
 0x1e2   :  { %333 = dma.hbm_to_vmem [thread:$0]  %s25439_s8, 16, %s331_s7, [#allocation35]  }
 0x1e7   :  { %s22885_s23 = scalar_lea.hbm %s25440_s18, 16 }
 0x1e8   :  { %p22886_p5 = scmp.ne.s32.totalorder %s25440_s18, %s22885_s23  ;;  %p22889_p6 = scmp.lt.u32.totalorder %s22885_s23, %s25440_s18 }
 0x1ea   :  { %p22891_p7 = pnand %p22889_p6, %p22886_p5 }
 0x1ec   :  { %22894 = shalt.err (!%p22891_p7)
}
 0x1ed   :  { %s22895_s1 = scalar_lea.vmem %s353_s24, 16  ;;  %s22899_s6 = scalar_lea.vmem %s353_s24, 32 }
 0x1ee   :  { %p22896_p8 = scmp.ne.s32.totalorder %s353_s24, %s22895_s1  ;;  %p22900_p9 = scmp.lt.s32.totalorder %s353_s24, %s353_s24 }
 0x1ef   :  { %p22901_p10 = scmp.lt.s32.totalorder %s22899_s6, %s22895_s1 }
 0x1f1   :  { %p22902_p11 = por %p22901_p10, %p22900_p9 }
 0x1f3   :  { %p22903_p12 = pnand %p22902_p11, %p22896_p8 }
 0x1f5   :  { %22906 = shalt.err (!%p22903_p12)
}
 0x1f6   :  { %355 = dma.hbm_to_vmem [thread:$0]  %s25440_s18, 16, %s353_s24, [#allocation38]  }
 0x1f7   :  { %s23068_s14 = smov [#allocation42]   ;;  %s23069_s3 = smov [#allocation43]  }
 0x1f8   :  { %s374_s0 = sshll.u32 %s23068_s14, 4  ;;  %s386_s26 = sshll.u32 %s23069_s3, 4  ;;  %s375_s0 = int_to_ptr.vmem [resolvable:$true] %s374_s0  ;;  %s387_s26 = int_to_ptr.vmem [resolvable:$true] %s386_s26 }
 0x1f9   :  { %s22907_s5 = scalar_lea.hbm %s23224_s19, 16 }
 0x1fa   :  { %p22908_p13 = scmp.ne.s32.totalorder %s23224_s19, %s22907_s5  ;;  %p22911_p0 = scmp.lt.u32.totalorder %s22907_s5, %s23224_s19 }
 0x1fc   :  { %p22913_p1 = pnand %p22911_p0, %p22908_p13 }
 0x1fe   :  { %22916 = shalt.err (!%p22913_p1)
}
 0x1ff   :  { %s22917_s2 = scalar_lea.vmem %s375_s0, 16  ;;  %s22921_s27 = scalar_lea.vmem %s375_s0, 32 }
 0x200   :  { %p22918_p2 = scmp.ne.s32.totalorder %s375_s0, %s22917_s2  ;;  %p22922_p3 = scmp.lt.s32.totalorder %s375_s0, %s375_s0 }
 0x201   :  { %p22923_p4 = scmp.lt.s32.totalorder %s22921_s27, %s22917_s2 }
 0x203   :  { %p22924_p5 = por %p22923_p4, %p22922_p3 }
 0x205   :  { %p22925_p6 = pnand %p22924_p5, %p22918_p2 }
 0x207   :  { %22928 = shalt.err (!%p22925_p6)
}
 0x208   :  { %377 = dma.hbm_to_vmem [thread:$0]  %s23224_s19, 16, %s375_s0, [#allocation41]  }
 0x209   :  { %s22929_s10 = scalar_lea.hbm %s23234_s30, 16 }
 0x20a   :  { %p22930_p7 = scmp.ne.s32.totalorder %s23234_s30, %s22929_s10  ;;  %p22933_p8 = scmp.lt.u32.totalorder %s22929_s10, %s23234_s30 }
 0x20c   :  { %p22935_p9 = pnand %p22933_p8, %p22930_p7 }
 0x20e   :  { %22938 = shalt.err (!%p22935_p9)
}
 0x20f   :  { %s22939_s20 = scalar_lea.vmem %s387_s26, 16  ;;  %s22943_s11 = scalar_lea.vmem %s387_s26, 32 }
 0x210   :  { %p22940_p10 = scmp.ne.s32.totalorder %s387_s26, %s22939_s20  ;;  %p22944_p11 = scmp.lt.s32.totalorder %s387_s26, %s387_s26 }
 0x211   :  { %p22945_p12 = scmp.lt.s32.totalorder %s22943_s11, %s22939_s20 }
 0x213   :  { %p22946_p13 = por %p22945_p12, %p22944_p11 }
 0x215   :  { %p22947_p0 = pnand %p22946_p13, %p22940_p10 }
 0x217   :  { %22950 = shalt.err (!%p22947_p0)
}
 0x218   :  { %389 = dma.hbm_to_vmem [thread:$0]  %s23234_s30, 16, %s387_s26, [#allocation44]  }
 0x219   :  { %22973 = dma.done.wait [#allocation5], 32  }
 0x21a   :  { %22974 = vsyncadd [#allocation5], 4294967264 }
 0x21b   :  { %22975 = dma.done.wait [#allocation3], 1024  }
 0x21c   :  { %22976 = vsyncadd [#allocation3], 4294966272 }
 0x21d   :  { %22977 = dma.done.wait [#allocation8], 2048  }
 0x21e   :  { %22978 = vsyncadd [#allocation8], 4294965248 }
 0x21f   :  { %22979 = dma.done.wait [#allocation11], 1024  }
 0x220   :  { %22980 = vsyncadd [#allocation11], 4294966272 }
 0x221   :  { %22981 = dma.done.wait [#allocation14], 512  }
 0x222   :  { %22982 = vsyncadd [#allocation14], 4294966784 }
 0x223   :  { %22983 = dma.done.wait [#allocation17], 10816  }
 0x224   :  { %22984 = vsyncadd [#allocation17], 4294956480 }
 0x225   :  { %22985 = dma.done.wait [#allocation20], 21504  }
 0x226   :  { %22986 = vsyncadd [#allocation20], 4294945792 }
 0x227   :  { %22987 = dma.done.wait [#allocation23], 512  }
 0x228   :  { %22988 = vsyncadd [#allocation23], 4294966784 }
 0x229   :  { %22989 = dma.done.wait [#allocation26], 256  }
 0x22a   :  { %22990 = vsyncadd [#allocation26], 4294967040 }
 0x22b   :  { %22991 = dma.done.wait [#allocation29], 37728  }
 0x22c   :  { %22992 = vsyncadd [#allocation29], 4294929568 }
 0x22d   :  { %22993 = dma.done.wait [#allocation32], 2080  }
 0x22e   :  { %22994 = vsyncadd [#allocation32], 4294965216 }
 0x22f   :  { %22995 = dma.done.wait [#allocation35], 528  }
 0x230   :  { %22996 = vsyncadd [#allocation35], 4294966768 }
 0x231   :  { %22997 = dma.done.wait [#allocation38], 2064  }
 0x232   :  { %22998 = vsyncadd [#allocation38], 4294965232 }
 0x233   :  { %22999 = dma.done.wait [#allocation41], 2064  }
 0x234   :  { %23000 = vsyncadd [#allocation41], 4294965232 }
 0x235   :  { %23001 = dma.done.wait [#allocation44], 16  }
 0x236   :  { %23002 = vsyncadd [#allocation44], 4294967280 }
 0x237   :  { %471 = sfence }
 0x238   :  { %v20413_v0 = vld [vmem:[#allocation6 + $0x4] ss:$16 sps:$4 sm:$0xff]   ;;  %s25441_s19 = sld [smem:[#allocation62_spill]]  ;;  %v20415_v1 = vld [vmem:[#allocation6] ss:$16 sps:$4 sm:$0xff]   ;;  %vm25413_vm0 = vcmask 1045504  }
 0x239   :  { %v23070_v2 = vmov 0   ;;  %556 = vmatprep.subr.bf16.mxu1 %v20413_v0  ;;  %v20416_v3 = vld [vmem:[#allocation6 + $0x24] ss:$16 sps:$4 sm:$0x3f]   ;;  %v20421_v8 = vld [vmem:[#allocation6 + $0xc] ss:$16 sps:$4 sm:$0xff]  }
 0x23a   :  { %588 = vmatprep.mubr.bf16.mxu1 %v23070_v2  ;;  %758 = vmatprep.mubr.bf16.mxu0 %v23070_v2  ;;  %v20418_v4 = vld [vmem:[#allocation6 + $0x20] ss:$16 sps:$4 sm:$0x3f]   ;;  %vm25412_vm1 = vcmask 228352   ;;  %v20419_v9 = vld [vmem:[#allocation6 + $0x8] ss:$16 sps:$4 sm:$0xff]  }
 0x23b   :  { %557 = vmatpush1.bf16.msra.mxu1 %v20415_v1  ;;  %v545_v7 = vsel %vm25413_vm0, %v20418_v4, 0  ;;  %v20422_v11 = vld [vmem:[#allocation6 + $0x2c] ss:$16 sps:$4 sm:$0x3f]   ;;  %v20425_v13 = vld [vmem:[#allocation9 + $0x4] ss:$16 sps:$4 sm:$0xff]  }
 0x23c   :  { %17786 = vmatprep.subr.msk.bf16.mxu1 %vm25413_vm0, %v20416_v3  ;;  %v20424_v12 = vld [vmem:[#allocation6 + $0x28] ss:$16 sps:$4 sm:$0x3f]   ;;  %v20427_v14 = vld [vmem:[#allocation9] ss:$16 sps:$4 sm:$0xff]   ;;  %726 = vmatprep.subr.bf16.mxu0 %v20425_v13  ;;  %v23071_v27 = vmov 0.0  }
 0x23d   :  { %v20428_v15 = vld [vmem:[#allocation9 + $0x24] ss:$16 sps:$4 sm:$0x3f]   ;;  %727 = vmatpush1.bf16.msra.mxu0 %v20427_v14  ;;  %v20430_v17 = vld [vmem:[#allocation9 + $0x20] ss:$16 sps:$4 sm:$0x3f]  }
 0x23e   :  { %v473_v5 = vld [vmem:[%s25441_s19] sm:$0xff]  ;;  %v474_v6 = vld [vmem:[%s25441_s19 + $0x8] sm:$0xff]  ;;  %v475_v16 = vld [vmem:[%s25441_s19 + $0x10] sm:$0xff]  ;;  %v551_v19 = vsel %vm25413_vm0, %v20424_v12, 0  ;;  %17800 = vmatprep.subr.msk.bf16.mxu0 %vm25413_vm0, %v20428_v15  ;;  %v715_v20 = vsel %vm25413_vm0, %v20430_v17, 0  ;;  %vm848_vm2 = vcmask 1043456  }
 0x23f   :  { %v23434_v10 = vpack.c.bf16 %v474_v6, %v473_v5  ;;  %559 = vmatpush1.bf16.msra.mxu1 %v545_v7  ;;  %v476_v18 = vld [vmem:[%s25441_s19 + $0x18] sm:$0xf]  ;;  %v20433_v21 = vld [vmem:[#allocation9 + $0xc] ss:$16 sps:$4 sm:$0xff]   ;;  %vm23072_vm3 = vmmov 1   ;;  %v832_v48 = vld [vmem:[#allocation10] sm:$0xff] }
 0x240   :  { %609 = vmatprep.subr.bf16.mxu1 %v20421_v8  ;;  %v23445_v22 = vpack.c.bf16 %v476_v18, %v475_v16  ;;  %v20431_v23 = vld [vmem:[#allocation9 + $0x8] ss:$16 sps:$4 sm:$0xff]   ;;  %v20434_v24 = vld [vmem:[#allocation9 + $0x2c] ss:$16 sps:$4 sm:$0x3f]   ;;  %vm23472_vm4 = vmpackc.low %vm848_vm2, %vm23072_vm3  ;;  %s23073_s30 = smov 112  }
 0x241   :  { %729 = vmatpush1.bf16.msra.mxu0 %v715_v20  ;;  %v20436_v25 = vld [vmem:[#allocation9 + $0x28] ss:$16 sps:$4 sm:$0x3f]   ;;  %v20439_v41 = vld [vmem:[#allocation7 + $0x4] ss:$16 sps:$4 sm:$0xff]   ;;  %s23074_s15 = smov 96   ;;  %vm23721_vm12 = vmpackc.low %vm25413_vm0, %vm23072_vm3 }
 0x242   :  { %17787 = vmatmul.mubr.msk.bf16.vlgmr.msra.gmra.mrb[0].mxu1 %vm25412_vm1, %v23434_v10  ;;  %v721_v26 = vsel %vm25413_vm0, %v20436_v25, 0  ;;  %v20437_v49 = vld [vmem:[#allocation7] ss:$16 sps:$4 sm:$0xff]   ;;  %v20440_v50 = vld [vmem:[#allocation7 + $0x24] ss:$16 sps:$4 sm:$0x3f]  }
 0x243   :  { %610 = vmatpush1.bf16.msra.mxu1 %v20419_v9  ;;  %598 = vmatprep.mubr.bf16.mxu1 %v23070_v2  ;;  %v20442_v51 = vld [vmem:[#allocation7 + $0x20] ss:$16 sps:$4 sm:$0x3f]   ;;  %v833_v56 = vld [vmem:[#allocation10 + $0x8] sm:$0xff]  ;;  %v835_v6 = vld [vmem:[#allocation10 + $0x18] sm:$0xf] }
 0x244   :  { %17789 = vmatprep.subr.msk.bf16.mxu1 %vm25413_vm0, %v20422_v11  ;;  %17801 = vmatmul.mubr.msk.bf16.vlgmr.msra.gmra.mrb[0].mxu0 %vm25412_vm1, %v23434_v10  ;;  %v834_v1 = vld [vmem:[#allocation10 + $0x10] sm:$0xff]  ;;  %v1076_v3 = vsel %vm25413_vm0, %v20442_v51, 0  ;;  %v20448_v7 = vld [vmem:[#allocation7 + $0x28] ss:$16 sps:$4 sm:$0x3f]   ;;  %s23075_s16 = smov 80  }
 0x245   :  { %768 = vmatprep.mubr.bf16.mxu0 %v23070_v2  ;;  %v20445_v9 = vld [vmem:[#allocation7 + $0xc] ss:$16 sps:$4 sm:$0xff]   ;;  %v20443_v14 = vld [vmem:[#allocation7 + $0x8] ss:$16 sps:$4 sm:$0xff]   ;;  %v1082_v16 = vsel %vm25413_vm0, %v20448_v7, 0  ;;  %s23076_s4 = smov 48  }
 0x246   :  { %v20446_v15 = vld [vmem:[#allocation7 + $0x2c] ss:$16 sps:$4 sm:$0x3f]   ;;  %s23077_s8 = smov 32   ;;  %vm1933_vm5 = vcmask 130048   ;;  %vm25414_vm6 = vcmask 261120  }
 0x247   :  { %612 = vmatpush1.bf16.msra.mxu1 %v551_v19  ;;  %vm1939_vm7 = vcmask 392192   ;;  %vm1942_vm8 = vcmask 523264   ;;  %vm1945_vm9 = vcmask 654336   ;;  %vm1948_vm10 = vcmask 785408   ;;  %s25446_s9 = sld [smem:[#allocation72_spill]]  ;;  %s4987_s7 = sld [smem:[#allocation2]] }
 0x248   :  { %779 = vmatprep.subr.bf16.mxu1 %v20433_v21  ;;  %vm25415_vm11 = vcmask 916480   ;;  %vm3321_vm13 = vcmask 113664   ;;  %s18163_s17 = sld [smem:[#allocation2 + $0x1]]  ;;  %s18164_s24 = sld [smem:[#allocation2 + $0x2]] }
 0x249   :  { %s18165_s12 = sld [smem:[#allocation2 + $0x3]]  ;;  %s18166_s25 = sld [smem:[#allocation2 + $0x4]] }
 0x24a   :  { %17788 = vmatmul.mubr.msk.bf16.gmra.mrb[4].mxu1 %vm25412_vm1, %v23445_v22  ;;  %s18167_s13 = sld [smem:[#allocation2 + $0x5]]  ;;  %s18168_s18 = sld [smem:[#allocation2 + $0x6]] }
 0x24b   :  { %641 = vmatprep.mubr.bf16.mxu1 %v23070_v2  ;;  %s18169_s23 = sld [smem:[#allocation2 + $0x7]]  ;;  %s18973_s1 = sld [smem:[#allocation2 + $0x80]] }
 0x24c   :  { %17802 = vmatmul.mubr.msk.bf16.gmra.mrb[4].mxu0 %vm25412_vm1, %v23445_v22  ;;  %s18974_s6 = sld [smem:[#allocation2 + $0x81]]  ;;  %s18975_s14 = sld [smem:[#allocation2 + $0x82]] }
 0x24d   :  { %925 = vmatprep.mubr.f32.mxu0 %v23071_v27  ;;  %s18976_s0 = sld [smem:[#allocation2 + $0x83]]  ;;  %s18977_s3 = sld [smem:[#allocation2 + $0x84]] }
 0x24e   :  { %s18978_s26 = sld [smem:[#allocation2 + $0x85]]  ;;  %s18979_s5 = sld [smem:[#allocation2 + $0x86]] }
 0x24f   :  { %s18980_s2 = sld [smem:[#allocation2 + $0x87]] }
 0x252   :  { %17790 = vmatmul.mubr.msk.bf16.vlgmr.msra.gmra.mrb[8].mxu1 %vm25412_vm1, %v23434_v10 }
 0x253   :  { %651 = vmatprep.mubr.bf16.mxu1 %v23070_v2  ;;  %780 = vmatpush1.bf16.msra.mxu1 %v20431_v23 }
 0x254   :  { %17803 = vmatprep.subr.msk.bf16.mxu1 %vm25413_vm0, %v20434_v24 }
 0x257   :  { %782 = vmatpush1.bf16.msra.mxu1 %v721_v26 }
 0x25a   :  { %17791 = vmatmul.mubr.msk.bf16.gmra.mrb[12].mxu1 %vm25412_vm1, %v23445_v22 }
 0x25b   :  { %811 = vmatprep.mubr.bf16.mxu1 %v23070_v2 }
 0x262   :  { %17804 = vmatmul.mubr.msk.bf16.vlgmr.msra.gmra.mrb[16].mxu1 %vm25412_vm1, %v23434_v10 }
 0x263   :  { %821 = vmatprep.mubr.bf16.mxu1 %v23070_v2 }
 0x26a   :  { %17805 = vmatmul.mubr.msk.bf16.gmra.mrb[20].mxu1 %vm25412_vm1, %v23445_v22 }
 0x26b   :  { %1014 = vmatprep.mubr.f32.mxu1 %v23071_v27 }
 0x315   :  { %v590_v28 = vpop.f32.mrb[0].mxu1 }
 0x316   :  { %v592_v29 = vpop.f32.mrb[1].mxu1 }
 0x317   :  { %v594_v30 = vpop.f32.mrb[2].mxu1  ;;  %v23476_v35 = vpop.f32.mrb[0].mxu0 }
 0x318   :  { %v19725_v31 = vpack.c.bf16 %v594_v30, %v590_v28  ;;  %v596_v32 = vpop.f32.mrb[3].mxu1  ;;  %v762_v37 = vpop.f32.mrb[1].mxu0 }
 0x319   :  { %v19723_v34 = vpack.c.bf16 %v596_v32, %v592_v29  ;;  %v23478_v39 = vpop.f32.mrb[2].mxu0  ;;  %v1194_v32 = vld [vmem:[#allocation12 + $0x8] sm:$0xff] }
 0x31a   :  { %v19745_v42 = vpack.c.bf16 %v23478_v39, %v23476_v35  ;;  %v766_v43 = vpop.f32.mrb[3].mxu0  ;;  %v1196_v35 = vld [vmem:[#allocation12 + $0x18] sm:$0xf] }
 0x31b   :  { %19724 = vmatprep.subr.bf16.mxu0 %v19723_v34  ;;  %v19743_v46 = vpack.c.bf16 %v766_v43, %v762_v37  ;;  %v1195_v34 = vld [vmem:[#allocation12 + $0x10] sm:$0xff] }
 0x31c   :  { %19726 = vmatpush1.bf16.msra.mxu0 %v19725_v31  ;;  %v1193_v31 = vld [vmem:[#allocation12] sm:$0xff] }
 0x31d   :  { %v600_v36 = vpop.f32.mrb[4].mxu1 }
 0x31e   :  { %v602_v38 = vpop.f32.mrb[5].mxu1 }
 0x31f   :  { %v604_v40 = vpop.f32.mrb[6].mxu1  ;;  %v23486_v52 = vpop.f32.mrb[4].mxu0 }
 0x320   :  { %v19730_v44 = vpack.c.bf16 %v604_v40, %v600_v36  ;;  %v606_v45 = vpop.f32.mrb[7].mxu1  ;;  %v772_v54 = vpop.f32.mrb[5].mxu0 }
 0x321   :  { %v19727_v47 = vpack.c.bf16 %v606_v45, %v602_v38  ;;  %v774_v57 = vpop.f32.mrb[6].mxu0 }
 0x322   :  { %v19750_v59 = vpack.c.bf16 %v774_v57, %v23486_v52  ;;  %v776_v60 = vpop.f32.mrb[7].mxu0 }
 0x323   :  { %19729 = vmatprep.subr.msk.bf16.mxu0 %vm23472_vm4, %v19727_v47  ;;  %v19747_v63 = vpack.c.bf16 %v776_v60, %v772_v54 }
 0x324   :  { %19732 = vmatpush1.bf16.msk.msra.mxu0 %vm23472_vm4, %v19730_v44 }
 0x325   :  { %v643_v53 = vpop.f32.mrb[8].mxu1  ;;  %1087 = vmatprep.subr.bf16.mxu0 %v20439_v41 }
 0x326   :  { %v645_v55 = vpop.f32.mrb[9].mxu1 }
 0x327   :  { %v647_v58 = vpop.f32.mrb[10].mxu1  ;;  %17808 = vmatmul.mubr.msk.f32.vlgmr.msra.gmra.mrb[8].mxu0 %vm25412_vm1, %v832_v48 }
 0x328   :  { %v19735_v61 = vpack.c.bf16 %v647_v58, %v643_v53  ;;  %v649_v62 = vpop.f32.mrb[11].mxu1  ;;  %931 = vmatprep.mubr.f32.mxu0 %v23071_v27  ;;  %1088 = vmatpush1.bf16.msra.mxu0 %v20437_v49  ;;  %v481_v53 = vlaneseq }
 0x329   :  { %v19733_v0 = vpack.c.bf16 %v649_v62, %v645_v55  ;;  %17826 = vmatprep.subr.msk.bf16.mxu0 %vm25413_vm0, %v20440_v50 }
 0x32a   :  { %v23553_v57 = vshrl.u32 %v481_v53, 7 }
 0x32b   :  { %17809 = vmatmul.mubr.msk.f32.gmra.mrb[10].mxu0 %vm25412_vm1, %v833_v56  ;;  %19734 = vmatprep.subr.bf16.mxu1 %v19733_v0 }
 0x32c   :  { %19736 = vmatpush1.bf16.msra.mxu1 %v19735_v61  ;;  %937 = vmatprep.mubr.f32.mxu0 %v23071_v27  ;;  %v23561_v7 = vsub.s32 1, %v23553_v57 }
 0x32d   :  { %v653_v4 = vpop.f32.mrb[12].mxu1  ;;  %1090 = vmatpush1.bf16.msra.mxu0 %v1076_v3 }
 0x32e   :  { %v655_v5 = vpop.f32.mrb[13].mxu1  ;;  %19744 = vmatprep.subr.bf16.mxu0 %v19743_v46 }
 0x32f   :  { %v657_v8 = vpop.f32.mrb[14].mxu1  ;;  %17810 = vmatmul.mubr.msk.f32.gmra.mrb[12].mxu0 %vm25412_vm1, %v834_v1 }
 0x330   :  { %v19740_v11 = vpack.c.bf16 %v657_v8, %v653_v4  ;;  %v659_v12 = vpop.f32.mrb[15].mxu1  ;;  %943 = vmatprep.mubr.f32.mxu0 %v23071_v27 }
 0x331   :  { %v19737_v13 = vpack.c.bf16 %v659_v12, %v655_v5  ;;  %v23558_v5 = vsub.s32 0, %v23553_v57 }
 0x333   :  { %17811 = vmatmul.mubr.msk.f32.gmra.mrb[14].mxu0 %vm25412_vm1, %v835_v6  ;;  %19739 = vmatprep.subr.msk.bf16.mxu1 %vm23472_vm4, %v19737_v13 }
 0x334   :  { %19742 = vmatpush1.bf16.msk.msra.mxu1 %vm23472_vm4, %v19740_v11  ;;  %1119 = vmatprep.mubr.bf16.mxu0 %v23070_v2 }
 0x335   :  { %1140 = vmatprep.subr.bf16.mxu1 %v20445_v9  ;;  %v813_v17 = vpop.f32.mrb[16].mxu1 }
 0x336   :  { %v815_v18 = vpop.f32.mrb[17].mxu1 }
 0x337   :  { %17814 = vmatmul.mubr.msk.f32.vlgmr.msra.gmra.mrb[24].mxu1 %vm25412_vm1, %v832_v48  ;;  %17827 = vmatmul.mubr.msk.bf16.vlgmr.msra.gmra.mrb[16].mxu0 %vm25412_vm1, %v23434_v10  ;;  %v817_v19 = vpop.f32.mrb[18].mxu1 }
 0x338   :  { %1020 = vmatprep.mubr.f32.mxu1 %v23071_v27  ;;  %1141 = vmatpush1.bf16.msra.mxu1 %v20443_v14  ;;  %v19755_v20 = vpack.c.bf16 %v817_v19, %v813_v17  ;;  %v819_v21 = vpop.f32.mrb[19].mxu1 }
 0x339   :  { %1129 = vmatprep.mubr.bf16.mxu0 %v23070_v2  ;;  %19746 = vmatpush1.bf16.msra.mxu0 %v19745_v42  ;;  %v19753_v23 = vpack.c.bf16 %v819_v21, %v815_v18 }
 0x33a   :  { %17829 = vmatprep.subr.msk.bf16.mxu1 %vm25413_vm0, %v20446_v15  ;;  %19749 = vmatprep.subr.msk.bf16.mxu0 %vm23472_vm4, %v19747_v63 }
 0x33b   :  { %17815 = vmatmul.mubr.msk.f32.gmra.mrb[26].mxu1 %vm25412_vm1, %v833_v56 }
 0x33c   :  { %1026 = vmatprep.mubr.f32.mxu1 %v23071_v27  ;;  %1143 = vmatpush1.bf16.msra.mxu1 %v1082_v16 }
 0x33d   :  { %19752 = vmatpush1.bf16.msk.msra.mxu0 %vm23472_vm4, %v19750_v59  ;;  %19754 = vmatprep.subr.bf16.mxu1 %v19753_v23  ;;  %v823_v24 = vpop.f32.mrb[20].mxu1 }
 0x33e   :  { %v825_v25 = vpop.f32.mrb[21].mxu1 }
 0x33f   :  { %17816 = vmatmul.mubr.msk.f32.gmra.mrb[28].mxu1 %vm25412_vm1, %v834_v1  ;;  %17828 = vmatmul.mubr.msk.bf16.gmra.mrb[20].mxu0 %vm25412_vm1, %v23445_v22  ;;  %v827_v26 = vpop.f32.mrb[22].mxu1  ;;  %v23555_v1 = vld [vmem:[#allocation16] sm:$0xf] }
 0x340   :  { %1032 = vmatprep.mubr.f32.mxu1 %v23071_v27  ;;  %1285 = vmatprep.mubr.f32.mxu0 %v23071_v27  ;;  %v19760_v28 = vpack.c.bf16 %v827_v26, %v823_v24  ;;  %v829_v29 = vpop.f32.mrb[23].mxu1  ;;  %v1420_v11 = vrot.slane %v23555_v1, %v23558_v5  ;;  %v1424_v18 = vrot.slane %v23555_v1, %v23561_v7 }
 0x341   :  { %v19757_v30 = vpack.c.bf16 %v829_v29, %v825_v25 }
 0x343   :  { %17817 = vmatmul.mubr.msk.f32.gmra.mrb[30].mxu1 %vm25412_vm1, %v835_v6 }
 0x344   :  { %1172 = vmatprep.mubr.bf16.mxu1 %v23070_v2 }
 0x347   :  { %17830 = vmatmul.mubr.msk.bf16.vlgmr.msra.gmra.mrb[32].mxu1 %vm25412_vm1, %v23434_v10  ;;  %17834 = vmatmul.mubr.msk.f32.vlgmr.msra.gmra.mrb[24].mxu0 %vm25412_vm1, %v1193_v31 }
 0x348   :  { %19756 = vmatpush1.bf16.msra.mxu1 %v19755_v20  ;;  %1291 = vmatprep.mubr.f32.mxu0 %v23071_v27 }
 0x349   :  { %1182 = vmatprep.mubr.bf16.mxu1 %v23070_v2  ;;  %19759 = vmatprep.subr.msk.bf16.mxu1 %vm23472_vm4, %v19757_v30 }
 0x34b   :  { %17835 = vmatmul.mubr.msk.f32.gmra.mrb[26].mxu0 %vm25412_vm1, %v1194_v32 }
 0x34c   :  { %1297 = vmatprep.mubr.f32.mxu0 %v23071_v27  ;;  %19762 = vmatpush1.bf16.msk.msra.mxu1 %vm23472_vm4, %v19760_v28 }
 0x34f   :  { %17831 = vmatmul.mubr.msk.bf16.gmra.mrb[36].mxu1 %vm25412_vm1, %v23445_v22  ;;  %17836 = vmatmul.mubr.msk.f32.gmra.mrb[28].mxu0 %vm25412_vm1, %v1195_v34 }
 0x350   :  { %1303 = vmatprep.mubr.f32.mxu0 %v23071_v27  ;;  %1374 = vmatprep.mubr.f32.mxu1 %v23071_v27 }
 0x353   :  { %17837 = vmatmul.mubr.msk.f32.gmra.mrb[30].mxu0 %vm25412_vm1, %v1196_v35 }
 0x354   :  { %1553 = vmatprep.mubr.f32.mxu0 %v23071_v27 }
 0x357   :  { %17840 = vmatmul.mubr.msk.f32.vlgmr.msra.gmra.mrb[40].mxu1 %vm25412_vm1, %v1193_v31 }
 0x358   :  { %1380 = vmatprep.mubr.f32.mxu1 %v23071_v27 }
 0x35b   :  { %17841 = vmatmul.mubr.msk.f32.gmra.mrb[42].mxu1 %vm25412_vm1, %v1194_v32 }
 0x35c   :  { %1386 = vmatprep.mubr.f32.mxu1 %v23071_v27 }
 0x35f   :  { %17842 = vmatmul.mubr.msk.f32.gmra.mrb[44].mxu1 %vm25412_vm1, %v1195_v34 }
 0x360   :  { %1392 = vmatprep.mubr.f32.mxu1 %v23071_v27 }
 0x363   :  { %17843 = vmatmul.mubr.msk.f32.gmra.mrb[46].mxu1 %vm25412_vm1, %v1196_v35 }
 0x364   :  { %1630 = vmatprep.mubr.f32.mxu1 %v23071_v27 }
 0x3fa   :  { %v927_v10 = vpop.f32.mrb[8].mxu0 }
 0x3fb   :  { %v929_v22 = vpop.f32.mrb[9].mxu0 }
 0x3fe   :  { %v933_v36 = vpop.f32.mrb[10].mxu0 }
 0x3ff   :  { %v935_v37 = vpop.f32.mrb[11].mxu0 }
 0x402   :  { %v939_v38 = vpop.f32.mrb[12].mxu0 }
 0x403   :  { %v941_v39 = vpop.f32.mrb[13].mxu0 }
 0x406   :  { %v945_v40 = vpop.f32.mrb[14].mxu0 }
 0x407   :  { %v947_v41 = vpop.f32.mrb[15].mxu0 }
 0x40a   :  { %v1016_v42 = vpop.f32.mrb[24].mxu1  ;;  %v1121_v43 = vpop.f32.mrb[16].mxu0 }
 0x40b   :  { %v1122_v44 = vadd.f32 %v1121_v43, %v927_v10  ;;  %v1018_v45 = vpop.f32.mrb[25].mxu1  ;;  %v1123_v46 = vpop.f32.mrb[17].mxu0 }
 0x40c   :  { %v1124_v47 = vadd.f32 %v1123_v46, %v929_v22  ;;  %v1125_v48 = vpop.f32.mrb[18].mxu0 }
 0x40d   :  { %v1126_v49 = vadd.f32 %v1125_v48, %v933_v36  ;;  %v1127_v50 = vpop.f32.mrb[19].mxu0 }
 0x40e   :  { %v1128_v51 = vadd.f32 %v1127_v50, %v935_v37  ;;  %v1022_v52 = vpop.f32.mrb[26].mxu1 }
 0x40f   :  { %v1024_v54 = vpop.f32.mrb[27].mxu1 }
 0x412   :  { %v1028_v55 = vpop.f32.mrb[28].mxu1  ;;  %v1131_v56 = vpop.f32.mrb[20].mxu0 }
 0x413   :  { %v1132_v58 = vadd.f32 %v1131_v56, %v939_v38  ;;  %v1030_v59 = vpop.f32.mrb[29].mxu1  ;;  %v1133_v60 = vpop.f32.mrb[21].mxu0  ;;  %v23568_v56 = vsub.s32 2, %v23553_v57 }
 0x414   :  { %v1134_v61 = vadd.f32 %v1133_v60, %v941_v39  ;;  %v1135_v62 = vpop.f32.mrb[22].mxu0  ;;  %v23571_v60 = vsub.s32 3, %v23553_v57 }
 0x415   :  { %v1136_v63 = vadd.f32 %v1135_v62, %v945_v40  ;;  %v1137_v0 = vpop.f32.mrb[23].mxu0 }
 0x416   :  { %v1138_v3 = vadd.f32 %v1137_v0, %v947_v41  ;;  %v1034_v4 = vpop.f32.mrb[30].mxu1 }
 0x417   :  { %v1036_v6 = vpop.f32.mrb[31].mxu1 }
 0x41a   :  { %v1174_v8 = vpop.f32.mrb[32].mxu1  ;;  %v1287_v9 = vpop.f32.mrb[24].mxu0 }
 0x41b   :  { %v1175_v12 = vadd.f32 %v1174_v8, %v1016_v42  ;;  %v1399_v13 = vadd.f32 %v1287_v9, %v1122_v44  ;;  %v1176_v14 = vpop.f32.mrb[33].mxu1  ;;  %v1289_v15 = vpop.f32.mrb[25].mxu0 }
 0x41c   :  { %v1177_v16 = vadd.f32 %v1176_v14, %v1018_v45  ;;  %v1400_v17 = vadd.f32 %v1289_v15, %v1124_v47  ;;  %v1178_v19 = vpop.f32.mrb[34].mxu1 }
 0x41d   :  { %v1179_v20 = vadd.f32 %v1178_v19, %v1022_v52  ;;  %v1180_v21 = vpop.f32.mrb[35].mxu1  ;;  %v1437_v23 = vadd.f32 %v1420_v11, %v1399_v13 }
 0x41e   :  { %v1181_v24 = vadd.f32 %v1180_v21, %v1024_v54  ;;  %v1293_v25 = vpop.f32.mrb[26].mxu0  ;;  %v1438_v29 = vadd.f32 %v1424_v18, %v1400_v17 }
 0x41f   :  { %v1403_v26 = vadd.f32 %v1293_v25, %v1126_v49  ;;  %v1295_v28 = vpop.f32.mrb[27].mxu0  ;;  %v1453_v32 = vmax.f32 %v1437_v23, 0.0  ;;  %v1469_v23 = vld [vmem:[#allocation13] sm:$0xff] }
 0x420   :  { %v1404_v30 = vadd.f32 %v1295_v28, %v1128_v51  ;;  %v1454_v40 = vmax.f32 %v1438_v29, 0.0 }
 0x421   :  { %v1441_v31 = vadd.f32 %v1420_v11, %v1403_v26 }
 0x422   :  { %v1442_v34 = vadd.f32 %v1424_v18, %v1404_v30  ;;  %v1184_v35 = vpop.f32.mrb[36].mxu1  ;;  %v1299_v10 = vpop.f32.mrb[28].mxu0 }
 0x423   :  { %v1457_v22 = vmax.f32 %v1441_v31, 0.0  ;;  %v1185_v36 = vadd.f32 %v1184_v35, %v1028_v55  ;;  %v1407_v37 = vadd.f32 %v1299_v10, %v1132_v58  ;;  %v1186_v38 = vpop.f32.mrb[37].mxu1  ;;  %v1301_v39 = vpop.f32.mrb[29].mxu0 }
 0x424   :  { %v1458_v41 = vmax.f32 %v1442_v34, 0.0  ;;  %v1187_v42 = vadd.f32 %v1186_v38, %v1030_v59  ;;  %v1408_v43 = vadd.f32 %v1301_v39, %v1134_v61  ;;  %v1188_v44 = vpop.f32.mrb[38].mxu1 }
 0x425   :  { %v19765_v45 = vpack.c.bf16 %v1457_v22, %v1453_v32  ;;  %v1189_v46 = vadd.f32 %v1188_v44, %v1034_v4  ;;  %v1190_v47 = vpop.f32.mrb[39].mxu1  ;;  %v1445_v51 = vadd.f32 %v1420_v11, %v1407_v37  ;;  %v1470_v32 = vld [vmem:[#allocation13 + $0x8] sm:$0x3f] }
 0x426   :  { %v1191_v48 = vadd.f32 %v1190_v47, %v1036_v6  ;;  %v1305_v49 = vpop.f32.mrb[30].mxu0  ;;  %v19763_v50 = vpack.c.bf16 %v1458_v41, %v1454_v40  ;;  %v1446_v55 = vadd.f32 %v1424_v18, %v1408_v43  ;;  %v1644_v47 = vld [vmem:[#allocation15 + $0x8] sm:$0x3f] }
 0x427   :  { %v1411_v52 = vadd.f32 %v1305_v49, %v1136_v63  ;;  %v1307_v54 = vpop.f32.mrb[31].mxu0  ;;  %v1461_v0 = vmax.f32 %v1445_v51, 0.0  ;;  %v1428_v63 = vrot.slane %v23555_v1, %v23568_v56 }
 0x428   :  { %v1412_v58 = vadd.f32 %v1307_v54, %v1138_v3  ;;  %19764 = vmatprep.subr.bf16.mxu0 %v19763_v50  ;;  %v1462_v9 = vmax.f32 %v1446_v55, 0.0  ;;  %v1432_v3 = vrot.slane %v23555_v1, %v23571_v60 }
 0x429   :  { %v1449_v59 = vadd.f32 %v1420_v11, %v1411_v52  ;;  %19766 = vmatpush1.bf16.msra.mxu0 %v19765_v45 }
 0x42a   :  { %v1450_v61 = vadd.f32 %v1424_v18, %v1412_v58  ;;  %v1376_v62 = vpop.f32.mrb[40].mxu1 }
 0x42b   :  { %v1465_v4 = vmax.f32 %v1449_v59, 0.0  ;;  %v1401_v6 = vadd.f32 %v1376_v62, %v1175_v12  ;;  %v1378_v8 = vpop.f32.mrb[41].mxu1 }
 0x42c   :  { %v1466_v13 = vmax.f32 %v1450_v61, 0.0  ;;  %v1402_v14 = vadd.f32 %v1378_v8, %v1177_v16 }
 0x42d   :  { %v19770_v15 = vpack.c.bf16 %v1465_v4, %v1461_v0  ;;  %v1439_v11 = vadd.f32 %v1428_v63, %v1401_v6 }
 0x42e   :  { %v19767_v17 = vpack.c.bf16 %v1466_v13, %v1462_v9  ;;  %v1382_v19 = vpop.f32.mrb[42].mxu1  ;;  %v1440_v25 = vadd.f32 %v1432_v3, %v1402_v14 }
 0x42f   :  { %v1405_v21 = vadd.f32 %v1382_v19, %v1179_v20  ;;  %v1384_v18 = vpop.f32.mrb[43].mxu1  ;;  %v1455_v1 = vmax.f32 %v1439_v11, 0.0 }
 0x430   :  { %v1406_v26 = vadd.f32 %v1384_v18, %v1181_v24  ;;  %19769 = vmatprep.subr.msk.bf16.mxu0 %vm23472_vm4, %v19767_v17  ;;  %v1456_v20 = vmax.f32 %v1440_v25, 0.0 }
 0x431   :  { %v1443_v12 = vadd.f32 %v1428_v63, %v1405_v21  ;;  %19772 = vmatpush1.bf16.msk.msra.mxu0 %vm23472_vm4, %v19770_v15 }
 0x432   :  { %v1444_v16 = vadd.f32 %v1432_v3, %v1406_v26  ;;  %v1388_v28 = vpop.f32.mrb[44].mxu1  ;;  %19784 = vmatprep.subr.bf16.mxu0 %v19763_v50 }
 0x433   :  { %v1459_v29 = vmax.f32 %v1443_v12, 0.0  ;;  %v1409_v30 = vadd.f32 %v1388_v28, %v1185_v36  ;;  %v1390_v31 = vpop.f32.mrb[45].mxu1  ;;  %v1643_v36 = vld [vmem:[#allocation15] sm:$0xff]  ;;  %v20449_v28 = vld [vmem:[#allocation18] ss:$24 sps:$4 sm:$0xff]  }
 0x434   :  { %v1460_v34 = vmax.f32 %v1444_v16, 0.0  ;;  %v1410_v35 = vadd.f32 %v1390_v31, %v1187_v42  ;;  %17846 = vmatmul.mubr.msk.f32.vlgmr.msra.gmra.mrb[32].mxu0 %vm25412_vm1, %v1469_v23  ;;  %v20457_v31 = vld [vmem:[#allocation18 + $0x34] ss:$24 sps:$4 sm:$0xff]  }
 0x435   :  { %v19775_v24 = vpack.c.bf16 %v1459_v29, %v1455_v1  ;;  %19786 = vmatpush1.bf16.msra.mxu0 %v19765_v45  ;;  %1559 = vmatprep.mubr.f32.mxu0 %v23071_v27  ;;  %v1447_v37 = vadd.f32 %v1428_v63, %v1409_v30  ;;  %v20451_v1 = vld [vmem:[#allocation18 + $0x4] ss:$24 sps:$4 sm:$0xff]   ;;  %v20452_v29 = vld [vmem:[#allocation18 + $0x8] ss:$24 sps:$4 sm:$0xff]  }
 0x436   :  { %v1394_v10 = vpop.f32.mrb[46].mxu1  ;;  %19789 = vmatprep.subr.msk.bf16.mxu0 %vm23472_vm4, %v19767_v17  ;;  %v19773_v22 = vpack.c.bf16 %v1460_v34, %v1456_v20  ;;  %v1448_v40 = vadd.f32 %v1432_v3, %v1410_v35  ;;  %v20454_v30 = vld [vmem:[#allocation18 + $0xc] ss:$24 sps:$4 sm:$0xff]   ;;  %v20455_v20 = vld [vmem:[#allocation18 + $0x30] ss:$24 sps:$4 sm:$0xff]  }
 0x437   :  { %v1413_v38 = vadd.f32 %v1394_v10, %v1189_v46  ;;  %v1396_v39 = vpop.f32.mrb[47].mxu1  ;;  %v1463_v44 = vmax.f32 %v1447_v37, 0.0  ;;  %v20458_v34 = vld [vmem:[#allocation18 + $0x38] ss:$24 sps:$4 sm:$0xff]   ;;  %v20463_v35 = vld [vmem:[#allocation18 + $0x64] ss:$24 sps:$4 sm:$0xff]  }
 0x438   :  { %v1414_v41 = vadd.f32 %v1396_v39, %v1191_v48  ;;  %17847 = vmatmul.mubr.msk.f32.gmra.mrb[34].mxu0 %vm25412_vm1, %v1470_v32  ;;  %19774 = vmatprep.subr.bf16.mxu1 %v19773_v22  ;;  %v1464_v49 = vmax.f32 %v1448_v40, 0.0  ;;  %v20461_v10 = vld [vmem:[#allocation18 + $0x60] ss:$24 sps:$4 sm:$0xff]   ;;  %v20469_v37 = vld [vmem:[#allocation18 + $0x94] ss:$24 sps:$4 sm:$0xff]  }
 0x439   :  { %v1451_v42 = vadd.f32 %v1428_v63, %v1413_v38  ;;  %19776 = vmatpush1.bf16.msra.mxu1 %v19775_v24  ;;  %19792 = vmatpush1.bf16.msk.msra.mxu0 %vm23472_vm4, %v19770_v15  ;;  %v20472_v38 = vld [vmem:[#allocation18 + $0x9c] ss:$24 sps:$4 sm:$0xff]   ;;  %v20467_v39 = vld [vmem:[#allocation18 + $0x90] ss:$24 sps:$4 sm:$0xff]  }
 0x43a   :  { %v1452_v43 = vadd.f32 %v1432_v3, %v1414_v41  ;;  %1715 = vmatprep.mubr.f32.mxu0 %v23071_v27  ;;  %2473 = vmatprep.subr.bf16.mxu0 %v20451_v1  ;;  %v20475_v40 = vld [vmem:[#allocation18 + $0xc4] ss:$24 sps:$4 sm:$0xff]   ;;  %v20506_v1 = vld [vmem:[#allocation18 + $0x1b8] ss:$24 sps:$4 sm:$0xff]  }
 0x43b   :  { %v1467_v45 = vmax.f32 %v1451_v42, 0.0  ;;  %v20478_v41 = vld [vmem:[#allocation18 + $0xcc] ss:$24 sps:$4 sm:$0xff]   ;;  %v20473_v42 = vld [vmem:[#allocation18 + $0xc0] ss:$24 sps:$4 sm:$0xff]  }
 0x43c   :  { %v1468_v46 = vmax.f32 %v1452_v43, 0.0  ;;  %17854 = vmatmul.mubr.msk.f32.vlgmr.msra.gmra.mrb[36].mxu0 %vm25412_vm1, %v1643_v36  ;;  %v20476_v43 = vld [vmem:[#allocation18 + $0xc8] ss:$24 sps:$4 sm:$0xff]  }
 0x43d   :  { %v19780_v50 = vpack.c.bf16 %v1467_v45, %v1463_v44  ;;  %1721 = vmatprep.mubr.f32.mxu0 %v23071_v27  ;;  %2474 = vmatpush1.bf16.msra.mxu0 %v20449_v28  ;;  %v20481_v44 = vld [vmem:[#allocation18 + $0xf4] ss:$24 sps:$4 sm:$0xff]   ;;  %v20503_v28 = vld [vmem:[#allocation18 + $0x1b0] ss:$24 sps:$4 sm:$0xff]  }
 0x43e   :  { %v19777_v48 = vpack.c.bf16 %v1468_v46, %v1464_v49  ;;  %2475 = vmatprep.subr.bf16.mxu0 %v20457_v31  ;;  %v20484_v45 = vld [vmem:[#allocation18 + $0xfc] ss:$24 sps:$4 sm:$0xff]   ;;  %v20482_v49 = vld [vmem:[#allocation18 + $0xf8] ss:$24 sps:$4 sm:$0xff]   ;;  %v20514_v31 = vld [vmem:[#allocation18 + $0x1ec] ss:$24 sps:$4 sm:$0xff]  }
 0x43f   :  { %v20487_v46 = vld [vmem:[#allocation18 + $0x124] ss:$24 sps:$4 sm:$0xff]  }
 0x440   :  { %19779 = vmatprep.subr.msk.bf16.mxu1 %vm23472_vm4, %v19777_v48  ;;  %17855 = vmatmul.mubr.msk.f32.gmra.mrb[38].mxu0 %vm25412_vm1, %v1644_v47 }
 0x441   :  { %19782 = vmatpush1.bf16.msk.msra.mxu1 %vm23472_vm4, %v19780_v50  ;;  %2476 = vmatpush1.bf16.msra.mxu0 %v20455_v20 }
 0x442   :  { %19794 = vmatprep.subr.bf16.mxu1 %v19773_v22  ;;  %2477 = vmatprep.subr.bf16.mxu0 %v20463_v35  ;;  %v20464_v22 = vld [vmem:[#allocation18 + $0x68] ss:$24 sps:$4 sm:$0xff]   ;;  %v20517_v35 = vld [vmem:[#allocation18 + $0x214] ss:$24 sps:$4 sm:$0xff]  }
 0x444   :  { %17850 = vmatmul.mubr.msk.f32.vlgmr.msra.gmra.mrb[48].mxu1 %vm25412_vm1, %v1469_v23 }
 0x445   :  { %19796 = vmatpush1.bf16.msra.mxu1 %v19775_v24  ;;  %1636 = vmatprep.mubr.f32.mxu1 %v23071_v27  ;;  %v20466_v24 = vld [vmem:[#allocation18 + $0x6c] ss:$24 sps:$4 sm:$0xff]  }
 0x446   :  { %19799 = vmatprep.subr.msk.bf16.mxu1 %vm23472_vm4, %v19777_v48  ;;  %2478 = vmatpush1.bf16.msra.mxu0 %v20461_v10  ;;  %v20485_v48 = vld [vmem:[#allocation18 + $0x120] ss:$24 sps:$4 sm:$0xff]   ;;  %v20515_v10 = vld [vmem:[#allocation18 + $0x210] ss:$24 sps:$4 sm:$0xff]  }
 0x447   :  { %2479 = vmatprep.subr.bf16.mxu0 %v20469_v37 }
 0x448   :  { %17851 = vmatmul.mubr.msk.f32.gmra.mrb[50].mxu1 %vm25412_vm1, %v1470_v32  ;;  %v20460_v32 = vld [vmem:[#allocation18 + $0x3c] ss:$24 sps:$4 sm:$0xff]  }
 0x449   :  { %19802 = vmatpush1.bf16.msk.msra.mxu1 %vm23472_vm4, %v19780_v50  ;;  %1792 = vmatprep.mubr.f32.mxu1 %v23071_v27  ;;  %v20490_v50 = vld [vmem:[#allocation18 + $0x12c] ss:$24 sps:$4 sm:$0xff]  }
 0x44a   :  { %2516 = vmatprep.subr.bf16.mxu1 %v20454_v30  ;;  %2480 = vmatpush1.bf16.msra.mxu0 %v20467_v39  ;;  %v20511_v30 = vld [vmem:[#allocation18 + $0x1e4] ss:$24 sps:$4 sm:$0xff]  }
 0x44b   :  { %2481 = vmatprep.subr.bf16.mxu0 %v20475_v40  ;;  %v20526_v40 = vld [vmem:[#allocation18 + $0x24c] ss:$24 sps:$4 sm:$0xff]  }
 0x44c   :  { %17858 = vmatmul.mubr.msk.f32.vlgmr.msra.gmra.mrb[52].mxu1 %vm25412_vm1, %v1643_v36  ;;  %v20470_v36 = vld [vmem:[#allocation18 + $0x98] ss:$24 sps:$4 sm:$0xff]  }
 0x44d   :  { %1798 = vmatprep.mubr.f32.mxu1 %v23071_v27  ;;  %2517 = vmatpush1.bf16.msra.mxu1 %v20452_v29 }
 0x44e   :  { %2518 = vmatprep.subr.bf16.mxu1 %v20460_v32  ;;  %2482 = vmatpush1.bf16.msra.mxu0 %v20473_v42  ;;  %v20509_v32 = vld [vmem:[#allocation18 + $0x1e0] ss:$24 sps:$4 sm:$0xff]  }
 0x44f   :  { %2483 = vmatprep.subr.bf16.mxu0 %v20481_v44  ;;  %v20521_v42 = vld [vmem:[#allocation18 + $0x240] ss:$24 sps:$4 sm:$0xff]   ;;  %v20529_v44 = vld [vmem:[#allocation18 + $0x274] ss:$24 sps:$4 sm:$0xff]  }
 0x450   :  { %17859 = vmatmul.mubr.msk.f32.gmra.mrb[54].mxu1 %vm25412_vm1, %v1644_v47  ;;  %v20479_v47 = vld [vmem:[#allocation18 + $0xf0] ss:$24 sps:$4 sm:$0xff]  }
 0x451   :  { %2519 = vmatpush1.bf16.msra.mxu1 %v20458_v34 }
 0x452   :  { %2520 = vmatprep.subr.bf16.mxu1 %v20466_v24  ;;  %2484 = vmatpush1.bf16.msra.mxu0 %v20479_v47  ;;  %v20520_v24 = vld [vmem:[#allocation18 + $0x21c] ss:$24 sps:$4 sm:$0xff]   ;;  %v20527_v47 = vld [vmem:[#allocation18 + $0x270] ss:$24 sps:$4 sm:$0xff]  }
 0x453   :  { %2485 = vmatprep.subr.bf16.mxu0 %v20487_v46 }
 0x455   :  { %2521 = vmatpush1.bf16.msra.mxu1 %v20464_v22  ;;  %v20518_v22 = vld [vmem:[#allocation18 + $0x218] ss:$24 sps:$4 sm:$0xff]  }
 0x456   :  { %2522 = vmatprep.subr.bf16.mxu1 %v20472_v38  ;;  %2486 = vmatpush1.bf16.msra.mxu0 %v20485_v48  ;;  %v20535_v48 = vld [vmem:[#allocation18 + $0x14] ss:$24 sps:$4 sm:$0xff]  }
 0x459   :  { %2523 = vmatpush1.bf16.msra.mxu1 %v20470_v36  ;;  %v20523_v36 = vld [vmem:[#allocation18 + $0x244] ss:$24 sps:$4 sm:$0xff]  }
 0x45a   :  { %2524 = vmatprep.subr.bf16.mxu1 %v20478_v41 }
 0x45d   :  { %2525 = vmatpush1.bf16.msra.mxu1 %v20476_v43  ;;  %v20524_v43 = vld [vmem:[#allocation18 + $0x248] ss:$24 sps:$4 sm:$0xff]  }
 0x45e   :  { %2526 = vmatprep.subr.bf16.mxu1 %v20484_v45  ;;  %v20532_v45 = vld [vmem:[#allocation18 + $0x27c] ss:$24 sps:$4 sm:$0xff]  }
 0x461   :  { %2527 = vmatpush1.bf16.msra.mxu1 %v20482_v49  ;;  %v20530_v49 = vld [vmem:[#allocation18 + $0x278] ss:$24 sps:$4 sm:$0xff]  }
 0x462   :  { %2528 = vmatprep.subr.bf16.mxu1 %v20490_v50 }
 0x507   :  { %v1555_v51 = vpop.f32.mrb[32].mxu0 }
 0x508   :  { %v1557_v52 = vpop.f32.mrb[33].mxu0 }
 0x50b   :  { %v1561_v54 = vpop.f32.mrb[34].mxu0 }
 0x50c   :  { %v1563_v55 = vpop.f32.mrb[35].mxu0 }
 0x50f   :  { %v1717_v58 = vpop.f32.mrb[36].mxu0 }
 0x510   :  { %v23607_v59 = vmax.f32 %v1555_v51, %v1717_v58  ;;  %v1719_v61 = vpop.f32.mrb[37].mxu0  ;;  %v20488_v51 = vld [vmem:[#allocation18 + $0x128] ss:$24 sps:$4 sm:$0xff]   ;;  %v20493_v58 = vld [vmem:[#allocation18 + $0x154] ss:$24 sps:$4 sm:$0xff]  }
 0x511   :  { %v23609_v62 = vmax.f32 %v1557_v52, %v1719_v61  ;;  %2529 = vmatpush1.bf16.msra.mxu1 %v20488_v51  ;;  %v20496_v61 = vld [vmem:[#allocation18 + $0x15c] ss:$24 sps:$4 sm:$0xff]   ;;  %2487 = vmatprep.subr.bf16.mxu0 %v20493_v58 }
 0x512   :  { %2530 = vmatprep.subr.bf16.mxu1 %v20496_v61  ;;  %v20538_v51 = vld [vmem:[#allocation21 + $0x4] ss:$24 sps:$4 sm:$0xff]  }
 0x513   :  { %v1723_v0 = vpop.f32.mrb[38].mxu0 }
 0x514   :  { %v23611_v4 = vmax.f32 %v1561_v54, %v1723_v0  ;;  %v1725_v6 = vpop.f32.mrb[39].mxu0 }
 0x515   :  { %v23613_v63 = vmax.f32 %v1563_v55, %v1725_v6  ;;  %v20491_v6 = vld [vmem:[#allocation18 + $0x150] ss:$24 sps:$4 sm:$0xff]  }
 0x516   :  { %v20223_v8 = vpack.i.bf16 %v23611_v4, %v23607_v59  ;;  %2488 = vmatpush1.bf16.msra.mxu0 %v20491_v6 }
 0x517   :  { %v1632_v9 = vpop.f32.mrb[48].mxu1  ;;  %v20233_v13 = vpack.i.bf16 %v23613_v63, %v23609_v62 }
 0x518   :  { %20224 = vrot.lane.b32.xlu0 %v20223_v8, %s23073_s30  ;;  %v1634_v14 = vpop.f32.mrb[49].mxu1  ;;  %v20494_v8 = vld [vmem:[#allocation18 + $0x158] ss:$24 sps:$4 sm:$0xff]  }
 0x519   :  { %20234 = vrot.lane.b32.xlu1 %v20233_v13, %s23073_s30  ;;  %2531 = vmatpush1.bf16.msra.mxu1 %v20494_v8 }
 0x51b   :  { %v1638_v3 = vpop.f32.mrb[50].mxu1 }
 0x51c   :  { %v1640_v15 = vpop.f32.mrb[51].mxu1 }
 0x51f   :  { %v1794_v17 = vpop.f32.mrb[52].mxu1 }
 0x520   :  { %v23621_v19 = vmax.f32 %v1632_v9, %v1794_v17  ;;  %v1796_v11 = vpop.f32.mrb[53].mxu1  ;;  %v20499_v17 = vld [vmem:[#allocation18 + $0x184] ss:$24 sps:$4 sm:$0xff]  }
 0x521   :  { %v23623_v21 = vmax.f32 %v1634_v14, %v1796_v11  ;;  %v20502_v11 = vld [vmem:[#allocation18 + $0x18c] ss:$24 sps:$4 sm:$0xff]   ;;  %2489 = vmatprep.subr.bf16.mxu0 %v20499_v17 }
 0x522   :  { %2532 = vmatprep.subr.bf16.mxu1 %v20502_v11 }
 0x523   :  { %v1800_v18 = vpop.f32.mrb[54].mxu1 }
 0x524   :  { %v23625_v23 = vmax.f32 %v1638_v3, %v1800_v18  ;;  %v1802_v25 = vpop.f32.mrb[55].mxu1  ;;  %v20497_v18 = vld [vmem:[#allocation18 + $0x180] ss:$24 sps:$4 sm:$0xff]  }
 0x525   :  { %v23627_v26 = vmax.f32 %v1640_v15, %v1802_v25  ;;  %v20500_v25 = vld [vmem:[#allocation18 + $0x188] ss:$24 sps:$4 sm:$0xff]   ;;  %2490 = vmatpush1.bf16.msra.mxu0 %v20497_v18 }
 0x526   :  { %v20228_v12 = vpack.i.bf16 %v23625_v23, %v23621_v19  ;;  %2533 = vmatpush1.bf16.msra.mxu1 %v20500_v25 }
 0x527   :  { %v20238_v16 = vpack.i.bf16 %v23627_v26, %v23623_v21 }
 0x528   :  { %20229 = vrot.lane.b32.xlu0 %v20228_v12, %s23073_s30  ;;  %v20505_v12 = vld [vmem:[#allocation18 + $0x1b4] ss:$24 sps:$4 sm:$0xff]  }
 0x529   :  { %20239 = vrot.lane.b32.xlu1 %v20238_v16, %s23073_s30  ;;  %v20508_v16 = vld [vmem:[#allocation18 + $0x1bc] ss:$24 sps:$4 sm:$0xff]   ;;  %2491 = vmatprep.subr.bf16.mxu0 %v20505_v12 }
 0x52a   :  { %2534 = vmatprep.subr.bf16.mxu1 %v20508_v16  ;;  %2492 = vmatpush1.bf16.msra.mxu0 %v20503_v28 }
 0x52b   :  { %2535 = vmatpush1.bf16.msra.mxu1 %v20506_v1  ;;  %2493 = vmatprep.subr.bf16.mxu0 %v20511_v30 }
 0x52c   :  { %2536 = vmatprep.subr.bf16.mxu1 %v20514_v31 }
 0x52e   :  { %2494 = vmatpush1.bf16.msra.mxu0 %v20509_v32 }
 0x52f   :  { %2495 = vmatprep.subr.bf16.mxu0 %v20517_v35 }
 0x532   :  { %2496 = vmatpush1.bf16.msra.mxu0 %v20515_v10 }
 0x533   :  { %2497 = vmatprep.subr.bf16.mxu0 %v20523_v36 }
 0x536   :  { %2498 = vmatpush1.bf16.msra.mxu0 %v20521_v42 }
 0x537   :  { %2499 = vmatprep.subr.bf16.mxu0 %v20529_v44 }
 0x53a   :  { %2500 = vmatpush1.bf16.msra.mxu0 %v20527_v47 }
 0x53b   :  { %2559 = vmatprep.subr.bf16.mxu0 %v20535_v48 }
 0x58a   :  { %v20225_v52 = vpop.permute.xlu0 %20224 }
 0x58b   :  { %v20227_v54 = vunpack.i.h.bf16 %v20225_v52  ;;  %v20226_v55 = vunpack.i.l.bf16 %v20225_v52  ;;  %v20235_v0 = vpop.permute.xlu1 %20234 }
 0x58c   :  { %v20237_v14 = vunpack.i.h.bf16 %v20235_v0  ;;  %v20236_v3 = vunpack.i.l.bf16 %v20235_v0 }
 0x58d   :  { %v23636_v9 = vmax.f32 %v23611_v4, %v20227_v54  ;;  %v23639_v13 = vmax.f32 %v23607_v59, %v20226_v55 }
 0x58e   :  { %v1832_v59 = vmax.f32 %v23613_v63, %v20237_v14  ;;  %v1831_v4 = vmax.f32 %v23609_v62, %v20236_v3  ;;  %v20512_v63 = vld [vmem:[#allocation18 + $0x1e8] ss:$24 sps:$4 sm:$0xff]  }
 0x58f   :  { %v20243_v15 = vpack.i.bf16 %v23636_v9, %v23639_v13  ;;  %2537 = vmatpush1.bf16.msra.mxu1 %v20512_v63 }
 0x590   :  { %v20258_v29 = vpack.i.bf16 %v1832_v59, %v1831_v4  ;;  %2538 = vmatprep.subr.bf16.mxu1 %v20520_v24 }
 0x591   :  { %20244 = vrot.lane.b32.xlu0 %v20243_v15, %s23073_s30  ;;  %20249 = vrot.lane.b32.xlu1 %v20243_v15, %s23074_s15 }
 0x593   :  { %2539 = vmatpush1.bf16.msra.mxu1 %v20518_v22 }
 0x594   :  { %2540 = vmatprep.subr.bf16.mxu1 %v20526_v40 }
 0x595   :  { %20254 = vrot.lane.b32.xlu1 %v20243_v15, %s23075_s16 }
 0x597   :  { %2541 = vmatpush1.bf16.msra.mxu1 %v20524_v43 }
 0x598   :  { %2542 = vmatprep.subr.bf16.mxu1 %v20532_v45 }
 0x599   :  { %20259 = vrot.lane.b32.xlu1 %v20258_v29, %s23051_s22 }
 0x59a   :  { %v20230_v62 = vpop.permute.xlu0 %20229 }
 0x59b   :  { %v20232_v20 = vunpack.i.h.bf16 %v20230_v62  ;;  %v20231_v34 = vunpack.i.l.bf16 %v20230_v62  ;;  %v20240_v41 = vpop.permute.xlu1 %20239  ;;  %2543 = vmatpush1.bf16.msra.mxu1 %v20530_v49 }
 0x59c   :  { %3190 = vmatprep.subr.bf16.mxu1 %v20538_v51 }
 0x59d   :  { %v23650_v37 = vmax.f32 %v23625_v23, %v20232_v20  ;;  %v23653_v38 = vmax.f32 %v23621_v19, %v20231_v34  ;;  %20264 = vrot.lane.b32.xlu1 %v20258_v29, %s23076_s4  ;;  %v20242_v19 = vunpack.i.h.bf16 %v20240_v41  ;;  %v20241_v23 = vunpack.i.l.bf16 %v20240_v41 }
 0x59f   :  { %v20273_v39 = vpack.i.bf16 %v23650_v37, %v23653_v38  ;;  %v1851_v46 = vmax.f32 %v23623_v21, %v20241_v23  ;;  %v1852_v50 = vmax.f32 %v23627_v26, %v20242_v19 }
 0x5a1   :  { %20274 = vrot.lane.b32.xlu0 %v20273_v39, %s23073_s30  ;;  %20269 = vrot.lane.b32.xlu1 %v20258_v29, %s23077_s8  ;;  %v20288_v52 = vpack.i.bf16 %v1852_v50, %v1851_v46 }
 0x5a5   :  { %20279 = vrot.lane.b32.xlu0 %v20273_v39, %s23074_s15  ;;  %20299 = vrot.lane.b32.xlu1 %v20258_v29, %s23038_s28 }
 0x5a9   :  { %20284 = vrot.lane.b32.xlu0 %v20273_v39, %s23075_s16 }
 0x5ad   :  { %20289 = vrot.lane.b32.xlu0 %v20288_v52, %s23051_s22 }
 0x5b1   :  { %20294 = vrot.lane.b32.xlu0 %v20288_v52, %s23076_s4 }
 0x603   :  { %v20250_v54 = vpop.permute.xlu1 %20249  ;;  %v20245_v61 = vpop.permute.xlu0 %20244 }
 0x604   :  { %v20247_v26 = vunpack.i.h.bf16 %v20245_v61  ;;  %v20246_v6 = vunpack.i.l.bf16 %v20245_v61  ;;  %v20252_v14 = vunpack.i.h.bf16 %v20250_v54  ;;  %v20251_v3 = vunpack.i.l.bf16 %v20250_v54 }
 0x606   :  { %v1935_v17 = vsel %vm1933_vm5, %v23636_v9, %v20247_v26  ;;  %v1934_v11 = vsel %vm1933_vm5, %v23639_v13, %v20246_v6  ;;  %v20533_v26 = vld [vmem:[#allocation18 + $0x10] ss:$24 sps:$4 sm:$0xff]   ;;  %v20536_v6 = vld [vmem:[#allocation21] ss:$24 sps:$4 sm:$0xff]  }
 0x607   :  { %v20255_v55 = vpop.permute.xlu1 %20254  ;;  %v1938_v4 = vsel %vm25414_vm6, %v1935_v17, %v20252_v14  ;;  %v1937_v12 = vsel %vm25414_vm6, %v1934_v11, %v20251_v3  ;;  %v20541_v14 = vld [vmem:[#allocation18 + $0x44] ss:$24 sps:$4 sm:$0xff]   ;;  %v20544_v3 = vld [vmem:[#allocation21 + $0x34] ss:$24 sps:$4 sm:$0xff]   ;;  %v20542_v17 = vld [vmem:[#allocation21 + $0x30] ss:$24 sps:$4 sm:$0xff]  }
 0x608   :  { %v20257_v18 = vunpack.i.h.bf16 %v20255_v55  ;;  %v20256_v25 = vunpack.i.l.bf16 %v20255_v55  ;;  %v20547_v11 = vld [vmem:[#allocation18 + $0x74] ss:$24 sps:$4 sm:$0xff]  }
 0x60a   :  { %v1940_v1 = vsel %vm1939_vm7, %v1937_v12, %v20256_v25  ;;  %v1941_v29 = vsel %vm1939_vm7, %v1938_v4, %v20257_v18  ;;  %v20550_v18 = vld [vmem:[#allocation21 + $0x64] ss:$24 sps:$4 sm:$0xff]   ;;  %v20545_v25 = vld [vmem:[#allocation18 + $0x70] ss:$24 sps:$4 sm:$0xff]   ;;  %v20556_v12 = vld [vmem:[#allocation21 + $0x94] ss:$24 sps:$4 sm:$0xff]  }
 0x60b   :  { %v20260_v58 = vpop.permute.xlu1 %20259  ;;  %v20553_v4 = vld [vmem:[#allocation18 + $0xa4] ss:$24 sps:$4 sm:$0xff]  }
 0x60c   :  { %v20262_v16 = vunpack.i.h.bf16 %v20260_v58  ;;  %v20261_v28 = vunpack.i.l.bf16 %v20260_v58 }
 0x60e   :  { %v1943_v24 = vsel %vm1942_vm8, %v1940_v1, %v20261_v28  ;;  %v1944_v10 = vsel %vm1942_vm8, %v1941_v29, %v20262_v16  ;;  %v20551_v16 = vld [vmem:[#allocation18 + $0xa0] ss:$24 sps:$4 sm:$0xff]   ;;  %v20554_v28 = vld [vmem:[#allocation21 + $0x90] ss:$24 sps:$4 sm:$0xff]   ;;  %v20559_v1 = vld [vmem:[#allocation18 + $0xd4] ss:$24 sps:$4 sm:$0xff]  }
 0x60f   :  { %v20265_v21 = vpop.permute.xlu1 %20264  ;;  %v20562_v29 = vld [vmem:[#allocation21 + $0xc4] ss:$24 sps:$4 sm:$0xff]  }
 0x610   :  { %v20267_v9 = vunpack.i.h.bf16 %v20265_v21  ;;  %v20266_v13 = vunpack.i.l.bf16 %v20265_v21 }
 0x612   :  { %v1946_v43 = vsel %vm1945_vm9, %v1943_v24, %v20266_v13  ;;  %v1947_v19 = vsel %vm1945_vm9, %v1944_v10, %v20267_v9  ;;  %v20557_v9 = vld [vmem:[#allocation18 + $0xd0] ss:$24 sps:$4 sm:$0xff]   ;;  %v20560_v13 = vld [vmem:[#allocation21 + $0xc0] ss:$24 sps:$4 sm:$0xff]   ;;  %v20577_v24 = vld [vmem:[#allocation18 + $0x164] ss:$24 sps:$4 sm:$0xff]  }
 0x613   :  { %v20275_v0 = vpop.permute.xlu0 %20274  ;;  %v20270_v15 = vpop.permute.xlu1 %20269  ;;  %v20580_v10 = vld [vmem:[#allocation21 + $0x154] ss:$24 sps:$4 sm:$0xff]  }
 0x614   :  { %v20277_v30 = vunpack.i.h.bf16 %v20275_v0  ;;  %v20276_v31 = vunpack.i.l.bf16 %v20275_v0  ;;  %v20272_v63 = vunpack.i.h.bf16 %v20270_v15  ;;  %v20271_v62 = vunpack.i.l.bf16 %v20270_v15  ;;  %v20539_v15 = vld [vmem:[#allocation18 + $0x40] ss:$24 sps:$4 sm:$0xff]  }
 0x616   :  { %v1955_v23 = vsel %vm1933_vm5, %v23650_v37, %v20277_v30  ;;  %v1954_v44 = vsel %vm1933_vm5, %v23653_v38, %v20276_v31  ;;  %v1949_v45 = vsel %vm1948_vm10, %v1946_v43, %v20271_v62  ;;  %v1950_v47 = vsel %vm1948_vm10, %v1947_v19, %v20272_v63  ;;  %v20565_v30 = vld [vmem:[#allocation18 + $0x104] ss:$24 sps:$4 sm:$0xff]   ;;  %v20568_v31 = vld [vmem:[#allocation21 + $0xf4] ss:$24 sps:$4 sm:$0xff]   ;;  %v20566_v63 = vld [vmem:[#allocation21 + $0xf0] ss:$24 sps:$4 sm:$0xff]  }
 0x617   :  { %v20280_v8 = vpop.permute.xlu0 %20279  ;;  %v20300_v32 = vpop.permute.xlu1 %20299  ;;  %v20571_v62 = vld [vmem:[#allocation18 + $0x134] ss:$24 sps:$4 sm:$0xff]   ;;  %v20589_v43 = vld [vmem:[#allocation18 + $0x1c4] ss:$24 sps:$4 sm:$0xff]  }
 0x618   :  { %v20282_v20 = vunpack.i.h.bf16 %v20280_v8  ;;  %v20281_v34 = vunpack.i.l.bf16 %v20280_v8  ;;  %v20302_v36 = vunpack.i.h.bf16 %v20300_v32  ;;  %v20301_v40 = vunpack.i.l.bf16 %v20300_v32  ;;  %v20563_v32 = vld [vmem:[#allocation18 + $0x100] ss:$24 sps:$4 sm:$0xff]   ;;  %v20592_v19 = vld [vmem:[#allocation21 + $0x1b4] ss:$24 sps:$4 sm:$0xff]  }
 0x61a   :  { %v1956_v49 = vsel %vm25414_vm6, %v1954_v44, %v20281_v34  ;;  %v1957_v46 = vsel %vm25414_vm6, %v1955_v23, %v20282_v20  ;;  %v1952_v37 = vsel %vm25415_vm11, %v1949_v45, %v20301_v40  ;;  %v1953_v55 = vsel %vm25415_vm11, %v1950_v47, %v20302_v36  ;;  %v20574_v20 = vld [vmem:[#allocation21 + $0x124] ss:$24 sps:$4 sm:$0xff]   ;;  %v20569_v34 = vld [vmem:[#allocation18 + $0x130] ss:$24 sps:$4 sm:$0xff]   ;;  %v20583_v36 = vld [vmem:[#allocation18 + $0x194] ss:$24 sps:$4 sm:$0xff]  }
 0x61b   :  { %v20285_v59 = vpop.permute.xlu0 %20284  ;;  %v23697_v8 = vpack.c.bf16 %v1953_v55, %v1952_v37  ;;  %v20586_v40 = vld [vmem:[#allocation21 + $0x184] ss:$24 sps:$4 sm:$0xff]   ;;  %v20587_v23 = vld [vmem:[#allocation18 + $0x1c0] ss:$24 sps:$4 sm:$0xff]   ;;  %v20590_v44 = vld [vmem:[#allocation21 + $0x1b0] ss:$24 sps:$4 sm:$0xff]  }
 0x61c   :  { %v20287_v22 = vunpack.i.h.bf16 %v20285_v59  ;;  %v20286_v39 = vunpack.i.l.bf16 %v20285_v59  ;;  %v20548_v59 = vld [vmem:[#allocation21 + $0x60] ss:$24 sps:$4 sm:$0xff]   ;;  %v20595_v45 = vld [vmem:[#allocation18 + $0x1f4] ss:$24 sps:$4 sm:$0xff]   ;;  %v20598_v47 = vld [vmem:[#allocation21 + $0x1e4] ss:$24 sps:$4 sm:$0xff]  }
 0x61d   :  { %v20610_v37 = vld [vmem:[#allocation21 + $0x244] ss:$24 sps:$4 sm:$0xff]   ;;  %v20605_v55 = vld [vmem:[#allocation18 + $0x250] ss:$24 sps:$4 sm:$0xff]  }
 0x61e   :  { %v1958_v48 = vsel %vm1939_vm7, %v1956_v49, %v20286_v39  ;;  %v1959_v51 = vsel %vm1939_vm7, %v1957_v46, %v20287_v22  ;;  %v20575_v22 = vld [vmem:[#allocation18 + $0x160] ss:$24 sps:$4 sm:$0xff]   ;;  %v20578_v39 = vld [vmem:[#allocation21 + $0x150] ss:$24 sps:$4 sm:$0xff]  }
 0x61f   :  { %v20290_v35 = vpop.permute.xlu0 %20289  ;;  %v20593_v49 = vld [vmem:[#allocation18 + $0x1f0] ss:$24 sps:$4 sm:$0xff]   ;;  %v20596_v46 = vld [vmem:[#allocation21 + $0x1e0] ss:$24 sps:$4 sm:$0xff]  }
 0x620   :  { %v20292_v41 = vunpack.i.h.bf16 %v20290_v35  ;;  %v20291_v42 = vunpack.i.l.bf16 %v20290_v35  ;;  %v20572_v35 = vld [vmem:[#allocation21 + $0x120] ss:$24 sps:$4 sm:$0xff]  }
 0x622   :  { %v1961_v38 = vsel %vm1942_vm8, %v1959_v51, %v20292_v41  ;;  %v1960_v58 = vsel %vm1942_vm8, %v1958_v48, %v20291_v42  ;;  %v20581_v41 = vld [vmem:[#allocation18 + $0x190] ss:$24 sps:$4 sm:$0xff]   ;;  %v20584_v42 = vld [vmem:[#allocation21 + $0x180] ss:$24 sps:$4 sm:$0xff]   ;;  %v20604_v48 = vld [vmem:[#allocation21 + $0x214] ss:$24 sps:$4 sm:$0xff]  }
 0x623   :  { %v20295_v50 = vpop.permute.xlu0 %20294  ;;  %v20599_v51 = vld [vmem:[#allocation18 + $0x220] ss:$24 sps:$4 sm:$0xff]  }
 0x624   :  { %v20297_v52 = vunpack.i.h.bf16 %v20295_v50  ;;  %v20296_v54 = vunpack.i.l.bf16 %v20295_v50  ;;  %v20601_v50 = vld [vmem:[#allocation18 + $0x224] ss:$24 sps:$4 sm:$0xff]  }
 0x626   :  { %v1962_v61 = vsel %vm1945_vm9, %v1960_v58, %v20296_v54  ;;  %v1963_v21 = vsel %vm1945_vm9, %v1961_v38, %v20297_v52  ;;  %v20602_v52 = vld [vmem:[#allocation21 + $0x210] ss:$24 sps:$4 sm:$0xff]   ;;  %v20607_v54 = vld [vmem:[#allocation18 + $0x254] ss:$24 sps:$4 sm:$0xff]   ;;  %v20608_v38 = vld [vmem:[#allocation21 + $0x240] ss:$24 sps:$4 sm:$0xff]  }
 0x627   :  { %v23695_v0 = vpack.c.bf16 %v1963_v21, %v1962_v61  ;;  %v20613_v58 = vld [vmem:[#allocation18 + $0x284] ss:$24 sps:$4 sm:$0xff]   ;;  %v20616_v61 = vld [vmem:[#allocation21 + $0x274] ss:$24 sps:$4 sm:$0xff]   ;;  %v20611_v21 = vld [vmem:[#allocation18 + $0x280] ss:$24 sps:$4 sm:$0xff]  }
 0x629   :  { %17944 = vmatprep.mubr.msk.bf16.mxu0 %vm1948_vm10, %v23695_v0  ;;  %17945 = vmatprep.mubr.msk.bf16.mxu1 %vm1948_vm10, %v23695_v0 }
 0x62a   :  { %2506 = vmatmul.mubr.bf16.vlgmr.msra.gmra.mrb[40].mxu0 %v23697_v8  ;;  %2549 = vmatmul.mubr.bf16.vlgmr.msra.gmra.mrb[56].mxu1 %v23697_v8 }
 0x62b   :  { %2560 = vmatpush1.bf16.msra.mxu0 %v20533_v26  ;;  %3191 = vmatpush1.bf16.msra.mxu1 %v20536_v6  ;;  %v20614_v26 = vld [vmem:[#allocation21 + $0x270] ss:$24 sps:$4 sm:$0xff]   ;;  %v20619_v6 = vld [vmem:[#allocation21 + $0xc] ss:$24 sps:$4 sm:$0xff]  }
 0x62c   :  { %17946 = vmatprep.mubr.msk.bf16.mxu0 %vm1948_vm10, %v23695_v0  ;;  %18031 = vmatprep.mubr.msk.bf16.mxu1 %vm1948_vm10, %v23695_v0 }
 0x62d   :  { %2561 = vmatprep.subr.bf16.mxu0 %v20541_v14  ;;  %3192 = vmatprep.subr.bf16.mxu1 %v20544_v3  ;;  %v20622_v14 = vld [vmem:[#allocation21 + $0x14] ss:$24 sps:$4 sm:$0xff]   ;;  %v20617_v3 = vld [vmem:[#allocation21 + $0x8] ss:$24 sps:$4 sm:$0xff]  }
 0x62f   :  { %2562 = vmatpush1.bf16.msra.mxu0 %v20539_v15  ;;  %3193 = vmatpush1.bf16.msra.mxu1 %v20542_v17  ;;  %v20620_v15 = vld [vmem:[#allocation21 + $0x10] ss:$24 sps:$4 sm:$0xff]   ;;  %v20625_v17 = vld [vmem:[#allocation21 + $0x3c] ss:$24 sps:$4 sm:$0xff]  }
 0x630   :  { %2563 = vmatprep.subr.bf16.mxu0 %v20547_v11  ;;  %3194 = vmatprep.subr.bf16.mxu1 %v20550_v18  ;;  %v20628_v11 = vld [vmem:[#allocation21 + $0x44] ss:$24 sps:$4 sm:$0xff]   ;;  %v20623_v18 = vld [vmem:[#allocation21 + $0x38] ss:$24 sps:$4 sm:$0xff]  }
 0x633   :  { %2564 = vmatpush1.bf16.msra.mxu0 %v20545_v25  ;;  %3195 = vmatpush1.bf16.msra.mxu1 %v20548_v59  ;;  %v20626_v25 = vld [vmem:[#allocation21 + $0x40] ss:$24 sps:$4 sm:$0xff]   ;;  %v20631_v59 = vld [vmem:[#allocation21 + $0x6c] ss:$24 sps:$4 sm:$0xff]  }
 0x634   :  { %2565 = vmatprep.subr.bf16.mxu0 %v20553_v4  ;;  %3196 = vmatprep.subr.bf16.mxu1 %v20556_v12  ;;  %v20634_v4 = vld [vmem:[#allocation21 + $0x74] ss:$24 sps:$4 sm:$0xff]   ;;  %v20629_v12 = vld [vmem:[#allocation21 + $0x68] ss:$24 sps:$4 sm:$0xff]  }
 0x637   :  { %2566 = vmatpush1.bf16.msra.mxu0 %v20551_v16  ;;  %3197 = vmatpush1.bf16.msra.mxu1 %v20554_v28  ;;  %v20632_v16 = vld [vmem:[#allocation21 + $0x70] ss:$24 sps:$4 sm:$0xff]   ;;  %v20637_v28 = vld [vmem:[#allocation21 + $0x9c] ss:$24 sps:$4 sm:$0xff]  }
 0x638   :  { %2567 = vmatprep.subr.bf16.mxu0 %v20559_v1  ;;  %3198 = vmatprep.subr.bf16.mxu1 %v20562_v29  ;;  %v20640_v1 = vld [vmem:[#allocation21 + $0xa4] ss:$24 sps:$4 sm:$0xff]   ;;  %v20635_v29 = vld [vmem:[#allocation21 + $0x98] ss:$24 sps:$4 sm:$0xff]  }
 0x63b   :  { %2568 = vmatpush1.bf16.msra.mxu0 %v20557_v9  ;;  %3199 = vmatpush1.bf16.msra.mxu1 %v20560_v13  ;;  %v20638_v9 = vld [vmem:[#allocation21 + $0xa0] ss:$24 sps:$4 sm:$0xff]   ;;  %v20643_v13 = vld [vmem:[#allocation21 + $0xcc] ss:$24 sps:$4 sm:$0xff]  }
 0x63c   :  { %2569 = vmatprep.subr.bf16.mxu0 %v20565_v30  ;;  %3200 = vmatprep.subr.bf16.mxu1 %v20568_v31  ;;  %v20646_v30 = vld [vmem:[#allocation21 + $0xd4] ss:$24 sps:$4 sm:$0xff]   ;;  %v20641_v31 = vld [vmem:[#allocation21 + $0xc8] ss:$24 sps:$4 sm:$0xff]  }
 0x63f   :  { %2570 = vmatpush1.bf16.msra.mxu0 %v20563_v32  ;;  %3201 = vmatpush1.bf16.msra.mxu1 %v20566_v63  ;;  %v20644_v32 = vld [vmem:[#allocation21 + $0xd0] ss:$24 sps:$4 sm:$0xff]   ;;  %v20649_v63 = vld [vmem:[#allocation21 + $0xfc] ss:$24 sps:$4 sm:$0xff]  }
 0x640   :  { %2571 = vmatprep.subr.bf16.mxu0 %v20571_v62  ;;  %3202 = vmatprep.subr.bf16.mxu1 %v20574_v20  ;;  %v20652_v62 = vld [vmem:[#allocation21 + $0x104] ss:$24 sps:$4 sm:$0xff]   ;;  %v20647_v20 = vld [vmem:[#allocation21 + $0xf8] ss:$24 sps:$4 sm:$0xff]  }
 0x643   :  { %2572 = vmatpush1.bf16.msra.mxu0 %v20569_v34  ;;  %3203 = vmatpush1.bf16.msra.mxu1 %v20572_v35  ;;  %v20650_v34 = vld [vmem:[#allocation21 + $0x100] ss:$24 sps:$4 sm:$0xff]   ;;  %v20655_v35 = vld [vmem:[#allocation21 + $0x12c] ss:$24 sps:$4 sm:$0xff]  }
 0x644   :  { %2573 = vmatprep.subr.bf16.mxu0 %v20577_v24  ;;  %3204 = vmatprep.subr.bf16.mxu1 %v20580_v10  ;;  %v20658_v24 = vld [vmem:[#allocation21 + $0x134] ss:$24 sps:$4 sm:$0xff]   ;;  %v20653_v10 = vld [vmem:[#allocation21 + $0x128] ss:$24 sps:$4 sm:$0xff]  }
 0x647   :  { %2574 = vmatpush1.bf16.msra.mxu0 %v20575_v22  ;;  %3205 = vmatpush1.bf16.msra.mxu1 %v20578_v39  ;;  %v20656_v22 = vld [vmem:[#allocation21 + $0x130] ss:$24 sps:$4 sm:$0xff]   ;;  %v20661_v39 = vld [vmem:[#allocation21 + $0x15c] ss:$24 sps:$4 sm:$0xff]  }
 0x648   :  { %2575 = vmatprep.subr.bf16.mxu0 %v20583_v36  ;;  %3206 = vmatprep.subr.bf16.mxu1 %v20586_v40  ;;  %v20664_v36 = vld [vmem:[#allocation21 + $0x164] ss:$24 sps:$4 sm:$0xff]   ;;  %v20659_v40 = vld [vmem:[#allocation21 + $0x158] ss:$24 sps:$4 sm:$0xff]  }
 0x64b   :  { %2576 = vmatpush1.bf16.msra.mxu0 %v20581_v41  ;;  %3207 = vmatpush1.bf16.msra.mxu1 %v20584_v42  ;;  %v20662_v41 = vld [vmem:[#allocation21 + $0x160] ss:$24 sps:$4 sm:$0xff]   ;;  %v20667_v42 = vld [vmem:[#allocation21 + $0x18c] ss:$24 sps:$4 sm:$0xff]  }
 0x64c   :  { %2577 = vmatprep.subr.bf16.mxu0 %v20589_v43  ;;  %3208 = vmatprep.subr.bf16.mxu1 %v20592_v19  ;;  %v20670_v43 = vld [vmem:[#allocation21 + $0x194] ss:$24 sps:$4 sm:$0xff]   ;;  %v20665_v19 = vld [vmem:[#allocation21 + $0x188] ss:$24 sps:$4 sm:$0xff]  }
 0x64f   :  { %2578 = vmatpush1.bf16.msra.mxu0 %v20587_v23  ;;  %3209 = vmatpush1.bf16.msra.mxu1 %v20590_v44  ;;  %v20668_v23 = vld [vmem:[#allocation21 + $0x190] ss:$24 sps:$4 sm:$0xff]   ;;  %v20673_v44 = vld [vmem:[#allocation21 + $0x1bc] ss:$24 sps:$4 sm:$0xff]  }
 0x650   :  { %2579 = vmatprep.subr.bf16.mxu0 %v20595_v45  ;;  %3210 = vmatprep.subr.bf16.mxu1 %v20598_v47  ;;  %v20676_v45 = vld [vmem:[#allocation21 + $0x1c4] ss:$24 sps:$4 sm:$0xff]   ;;  %v20671_v47 = vld [vmem:[#allocation21 + $0x1b8] ss:$24 sps:$4 sm:$0xff]  }
 0x653   :  { %2580 = vmatpush1.bf16.msra.mxu0 %v20593_v49  ;;  %3211 = vmatpush1.bf16.msra.mxu1 %v20596_v46  ;;  %v20674_v49 = vld [vmem:[#allocation21 + $0x1c0] ss:$24 sps:$4 sm:$0xff]   ;;  %v20679_v46 = vld [vmem:[#allocation21 + $0x1ec] ss:$24 sps:$4 sm:$0xff]  }
 0x654   :  { %2581 = vmatprep.subr.bf16.mxu0 %v20601_v50  ;;  %3212 = vmatprep.subr.bf16.mxu1 %v20604_v48  ;;  %v20682_v50 = vld [vmem:[#allocation21 + $0x1f4] ss:$24 sps:$4 sm:$0xff]   ;;  %v20677_v48 = vld [vmem:[#allocation21 + $0x1e8] ss:$24 sps:$4 sm:$0xff]  }
 0x657   :  { %2582 = vmatpush1.bf16.msra.mxu0 %v20599_v51  ;;  %3213 = vmatpush1.bf16.msra.mxu1 %v20602_v52  ;;  %v20680_v51 = vld [vmem:[#allocation21 + $0x1f0] ss:$24 sps:$4 sm:$0xff]   ;;  %v20685_v52 = vld [vmem:[#allocation21 + $0x21c] ss:$24 sps:$4 sm:$0xff]  }
 0x658   :  { %2583 = vmatprep.subr.bf16.mxu0 %v20607_v54  ;;  %3214 = vmatprep.subr.bf16.mxu1 %v20610_v37  ;;  %v20688_v54 = vld [vmem:[#allocation21 + $0x224] ss:$24 sps:$4 sm:$0xff]   ;;  %v20683_v37 = vld [vmem:[#allocation21 + $0x218] ss:$24 sps:$4 sm:$0xff]  }
 0x65b   :  { %2584 = vmatpush1.bf16.msra.mxu0 %v20605_v55  ;;  %3215 = vmatpush1.bf16.msra.mxu1 %v20608_v38  ;;  %v20686_v55 = vld [vmem:[#allocation21 + $0x220] ss:$24 sps:$4 sm:$0xff]   ;;  %v20691_v38 = vld [vmem:[#allocation21 + $0x24c] ss:$24 sps:$4 sm:$0xff]  }
 0x65c   :  { %2585 = vmatprep.subr.bf16.mxu0 %v20613_v58  ;;  %3216 = vmatprep.subr.bf16.mxu1 %v20616_v61  ;;  %v20694_v58 = vld [vmem:[#allocation21 + $0x254] ss:$24 sps:$4 sm:$0xff]   ;;  %v20689_v61 = vld [vmem:[#allocation21 + $0x248] ss:$24 sps:$4 sm:$0xff]  }
 0x65f   :  { %2586 = vmatpush1.bf16.msra.mxu0 %v20611_v21  ;;  %3217 = vmatpush1.bf16.msra.mxu1 %v20614_v26  ;;  %v20692_v21 = vld [vmem:[#allocation21 + $0x250] ss:$24 sps:$4 sm:$0xff]   ;;  %v20697_v26 = vld [vmem:[#allocation21 + $0x27c] ss:$24 sps:$4 sm:$0xff]  }
 0x660   :  { %3233 = vmatprep.subr.bf16.mxu0 %v20619_v6  ;;  %3276 = vmatprep.subr.bf16.mxu1 %v20622_v14  ;;  %v20700_v6 = vld [vmem:[#allocation21 + $0x284] ss:$24 sps:$4 sm:$0xff]   ;;  %v20695_v14 = vld [vmem:[#allocation21 + $0x278] ss:$24 sps:$4 sm:$0xff]  }
 0x662   :  { %2592 = vmatmul.mubr.bf16.vlgmr.msra.gmra.mrb[44].mxu0 %v23697_v8  ;;  %3223 = vmatmul.mubr.bf16.vlgmr.msra.gmra.mrb[60].mxu1 %v23697_v8 }
 0x663   :  { %3234 = vmatpush1.bf16.msra.mxu0 %v20617_v3  ;;  %18032 = vmatprep.mubr.msk.bf16.mxu0 %vm1948_vm10, %v23695_v0  ;;  %v20698_v3 = vld [vmem:[#allocation21 + $0x280] ss:$24 sps:$4 sm:$0xff]  }
 0x664   :  { %3277 = vmatpush1.bf16.msra.mxu1 %v20620_v15  ;;  %18033 = vmatprep.mubr.msk.bf16.mxu1 %vm1948_vm10, %v23695_v0 }
 0x665   :  { %3235 = vmatprep.subr.bf16.mxu0 %v20625_v17  ;;  %3278 = vmatprep.subr.bf16.mxu1 %v20628_v11 }
 0x667   :  { %3236 = vmatpush1.bf16.msra.mxu0 %v20623_v18 }
 0x668   :  { %3279 = vmatpush1.bf16.msra.mxu1 %v20626_v25  ;;  %3237 = vmatprep.subr.bf16.mxu0 %v20631_v59 }
 0x669   :  { %3280 = vmatprep.subr.bf16.mxu1 %v20634_v4 }
 0x66b   :  { %3238 = vmatpush1.bf16.msra.mxu0 %v20629_v12 }
 0x66c   :  { %3281 = vmatpush1.bf16.msra.mxu1 %v20632_v16  ;;  %3239 = vmatprep.subr.bf16.mxu0 %v20637_v28 }
 0x66d   :  { %3282 = vmatprep.subr.bf16.mxu1 %v20640_v1 }
 0x66f   :  { %3240 = vmatpush1.bf16.msra.mxu0 %v20635_v29 }
 0x670   :  { %3283 = vmatpush1.bf16.msra.mxu1 %v20638_v9  ;;  %3241 = vmatprep.subr.bf16.mxu0 %v20643_v13  ;;  %v20703_v13 = vld [vmem:[#allocation19 + $0x4] ss:$24 sps:$4 sm:$0xff]  }
 0x671   :  { %3284 = vmatprep.subr.bf16.mxu1 %v20646_v30  ;;  %v23733_v30 = vld [vmem:[#allocation22] sm:$0xff] }
 0x673   :  { %3242 = vmatpush1.bf16.msra.mxu0 %v20641_v31  ;;  %v20701_v31 = vld [vmem:[#allocation19] ss:$24 sps:$4 sm:$0xff]  }
 0x674   :  { %3285 = vmatpush1.bf16.msra.mxu1 %v20644_v32  ;;  %3243 = vmatprep.subr.bf16.mxu0 %v20649_v63  ;;  %v20706_v32 = vld [vmem:[#allocation19 + $0x34] ss:$24 sps:$4 sm:$0xff]  }
 0x675   :  { %3286 = vmatprep.subr.bf16.mxu1 %v20652_v62  ;;  %v23740_v63 = vld [vmem:[#allocation22 + $0x8] sm:$0x3f] }
 0x676   :  { %v20704_v62 = vld [vmem:[#allocation19 + $0x30] ss:$24 sps:$4 sm:$0xff]  }
 0x677   :  { %3244 = vmatpush1.bf16.msra.mxu0 %v20647_v20  ;;  %v20709_v20 = vld [vmem:[#allocation19 + $0x64] ss:$24 sps:$4 sm:$0xff]  }
 0x678   :  { %3287 = vmatpush1.bf16.msra.mxu1 %v20650_v34  ;;  %3245 = vmatprep.subr.bf16.mxu0 %v20655_v35  ;;  %v20707_v34 = vld [vmem:[#allocation19 + $0x60] ss:$24 sps:$4 sm:$0xff]   ;;  %v20712_v35 = vld [vmem:[#allocation19 + $0x94] ss:$24 sps:$4 sm:$0xff]  }
 0x679   :  { %3288 = vmatprep.subr.bf16.mxu1 %v20658_v24  ;;  %v20710_v24 = vld [vmem:[#allocation19 + $0x90] ss:$24 sps:$4 sm:$0xff]  }
 0x67b   :  { %3246 = vmatpush1.bf16.msra.mxu0 %v20653_v10  ;;  %v20715_v10 = vld [vmem:[#allocation19 + $0xc4] ss:$24 sps:$4 sm:$0xff]  }
 0x67c   :  { %3289 = vmatpush1.bf16.msra.mxu1 %v20656_v22  ;;  %3247 = vmatprep.subr.bf16.mxu0 %v20661_v39  ;;  %v20713_v22 = vld [vmem:[#allocation19 + $0xc0] ss:$24 sps:$4 sm:$0xff]   ;;  %v20718_v39 = vld [vmem:[#allocation19 + $0xf4] ss:$24 sps:$4 sm:$0xff]  }
 0x67d   :  { %3290 = vmatprep.subr.bf16.mxu1 %v20664_v36  ;;  %v20716_v36 = vld [vmem:[#allocation19 + $0xf0] ss:$24 sps:$4 sm:$0xff]  }
 0x67f   :  { %3248 = vmatpush1.bf16.msra.mxu0 %v20659_v40  ;;  %v20721_v40 = vld [vmem:[#allocation19 + $0x124] ss:$24 sps:$4 sm:$0xff]  }
 0x680   :  { %3291 = vmatpush1.bf16.msra.mxu1 %v20662_v41  ;;  %3249 = vmatprep.subr.bf16.mxu0 %v20667_v42  ;;  %v20719_v41 = vld [vmem:[#allocation19 + $0x120] ss:$24 sps:$4 sm:$0xff]   ;;  %v20724_v42 = vld [vmem:[#allocation19 + $0x154] ss:$24 sps:$4 sm:$0xff]  }
 0x681   :  { %3292 = vmatprep.subr.bf16.mxu1 %v20670_v43  ;;  %v20722_v43 = vld [vmem:[#allocation19 + $0x150] ss:$24 sps:$4 sm:$0xff]  }
 0x683   :  { %3250 = vmatpush1.bf16.msra.mxu0 %v20665_v19  ;;  %v20727_v19 = vld [vmem:[#allocation19 + $0x184] ss:$24 sps:$4 sm:$0xff]  }
 0x684   :  { %3293 = vmatpush1.bf16.msra.mxu1 %v20668_v23  ;;  %3251 = vmatprep.subr.bf16.mxu0 %v20673_v44  ;;  %v20725_v23 = vld [vmem:[#allocation19 + $0x180] ss:$24 sps:$4 sm:$0xff]   ;;  %v20730_v44 = vld [vmem:[#allocation19 + $0x1b4] ss:$24 sps:$4 sm:$0xff]  }
 0x685   :  { %3294 = vmatprep.subr.bf16.mxu1 %v20676_v45  ;;  %v20728_v45 = vld [vmem:[#allocation19 + $0x1b0] ss:$24 sps:$4 sm:$0xff]  }
 0x687   :  { %3252 = vmatpush1.bf16.msra.mxu0 %v20671_v47  ;;  %v20733_v47 = vld [vmem:[#allocation19 + $0x1e4] ss:$24 sps:$4 sm:$0xff]  }
 0x688   :  { %3295 = vmatpush1.bf16.msra.mxu1 %v20674_v49  ;;  %3253 = vmatprep.subr.bf16.mxu0 %v20679_v46  ;;  %v20731_v49 = vld [vmem:[#allocation19 + $0x1e0] ss:$24 sps:$4 sm:$0xff]   ;;  %v20736_v46 = vld [vmem:[#allocation19 + $0x214] ss:$24 sps:$4 sm:$0xff]  }
 0x689   :  { %3296 = vmatprep.subr.bf16.mxu1 %v20682_v50  ;;  %v20734_v50 = vld [vmem:[#allocation19 + $0x210] ss:$24 sps:$4 sm:$0xff]  }
 0x68b   :  { %3254 = vmatpush1.bf16.msra.mxu0 %v20677_v48  ;;  %v20739_v48 = vld [vmem:[#allocation19 + $0x244] ss:$24 sps:$4 sm:$0xff]  }
 0x68c   :  { %3297 = vmatpush1.bf16.msra.mxu1 %v20680_v51  ;;  %3255 = vmatprep.subr.bf16.mxu0 %v20685_v52  ;;  %v20737_v51 = vld [vmem:[#allocation19 + $0x240] ss:$24 sps:$4 sm:$0xff]  }
 0x68d   :  { %3298 = vmatprep.subr.bf16.mxu1 %v20688_v54 }
 0x68f   :  { %3256 = vmatpush1.bf16.msra.mxu0 %v20683_v37  ;;  %v20742_v37 = vld [vmem:[#allocation19 + $0x274] ss:$24 sps:$4 sm:$0xff]  }
 0x690   :  { %3299 = vmatpush1.bf16.msra.mxu1 %v20686_v55  ;;  %3257 = vmatprep.subr.bf16.mxu0 %v20691_v38 }
 0x691   :  { %3300 = vmatprep.subr.bf16.mxu1 %v20694_v58 }
 0x693   :  { %3258 = vmatpush1.bf16.msra.mxu0 %v20689_v61 }
 0x694   :  { %3301 = vmatpush1.bf16.msra.mxu1 %v20692_v21  ;;  %3259 = vmatprep.subr.bf16.mxu0 %v20697_v26 }
 0x695   :  { %3302 = vmatprep.subr.bf16.mxu1 %v20700_v6 }
 0x697   :  { %3260 = vmatpush1.bf16.msra.mxu0 %v20695_v14 }
 0x698   :  { %3303 = vmatpush1.bf16.msra.mxu1 %v20698_v3  ;;  %v20740_v3 = vld [vmem:[#allocation19 + $0x270] ss:$24 sps:$4 sm:$0xff]  }
 0x69a   :  { %3266 = vmatmul.mubr.bf16.vlgmr.msra.gmra.mrb[48].mxu0 %v23697_v8 }
 0x69b   :  { %3309 = vmatmul.mubr.bf16.vlgmr.msra.gmra.mrb[64].mxu1 %v23697_v8  ;;  %3410 = vmatprep.mubr.f32.mxu0 %v23071_v27 }
 0x69c   :  { %3487 = vmatprep.mubr.f32.mxu1 %v23071_v27 }
 0x6fd   :  { %v2507_v15 = vpop.f32.mrb[40].mxu0  ;;  %v2550_v17 = vpop.f32.mrb[56].mxu1 }
 0x6fe   :  { %v2509_v11 = vpop.f32.mrb[41].mxu0  ;;  %v2552_v18 = vpop.f32.mrb[57].mxu1 }
 0x6ff   :  { %v2511_v25 = vpop.f32.mrb[42].mxu0  ;;  %v2554_v59 = vpop.f32.mrb[58].mxu1 }
 0x700   :  { %v19806_v12 = vpack.c.bf16 %v2511_v25, %v2507_v15  ;;  %v19812_v16 = vpack.c.bf16 %v2554_v59, %v2550_v17  ;;  %v2513_v28 = vpop.f32.mrb[43].mxu0  ;;  %v2556_v1 = vpop.f32.mrb[59].mxu1  ;;  %v20743_v25 = vld [vmem:[#allocation19 + $0x8] ss:$24 sps:$4 sm:$0xff]  }
 0x701   :  { %v19803_v29 = vpack.c.bf16 %v2513_v28, %v2509_v11  ;;  %v19809_v9 = vpack.c.bf16 %v2556_v1, %v2552_v18  ;;  %v20745_v11 = vld [vmem:[#allocation19 + $0xc] ss:$24 sps:$4 sm:$0xff]   ;;  %v20746_v59 = vld [vmem:[#allocation19 + $0x10] ss:$24 sps:$4 sm:$0xff]   ;;  %v20752_v1 = vld [vmem:[#allocation19 + $0x40] ss:$24 sps:$4 sm:$0xff]  }
 0x702   :  { %v20748_v18 = vld [vmem:[#allocation19 + $0x14] ss:$24 sps:$4 sm:$0xff]   ;;  %v20749_v28 = vld [vmem:[#allocation19 + $0x38] ss:$24 sps:$4 sm:$0xff]  }
 0x703   :  { %19805 = vmatprep.subr.msk.bf16.mxu0 %vm23721_vm12, %v19803_v29  ;;  %19811 = vmatprep.subr.msk.bf16.mxu1 %vm23721_vm12, %v19809_v9  ;;  %v20757_v29 = vld [vmem:[#allocation19 + $0x6c] ss:$24 sps:$4 sm:$0xff]  }
 0x704   :  { %19808 = vmatpush1.bf16.msk.msra.mxu0 %vm23721_vm12, %v19806_v12  ;;  %19814 = vmatpush1.bf16.msk.msra.mxu1 %vm23721_vm12, %v19812_v16  ;;  %v20751_v12 = vld [vmem:[#allocation19 + $0x3c] ss:$24 sps:$4 sm:$0xff]  }
 0x705   :  { %3997 = vmatprep.subr.bf16.mxu1 %v20703_v13  ;;  %v20754_v16 = vld [vmem:[#allocation19 + $0x44] ss:$24 sps:$4 sm:$0xff]   ;;  %v20760_v9 = vld [vmem:[#allocation19 + $0x74] ss:$24 sps:$4 sm:$0xff]   ;;  %v20755_v13 = vld [vmem:[#allocation19 + $0x68] ss:$24 sps:$4 sm:$0xff]  }
 0x707   :  { %18040 = vmatmul.mubr.msk.f32.vlgmr.msra.gmra.mrb[68].mxu1 %vm3321_vm13, %v23733_v30  ;;  %18036 = vmatmul.mubr.msk.f32.vlgmr.msra.gmra.mrb[52].mxu0 %vm3321_vm13, %v23733_v30 }
 0x708   :  { %3998 = vmatpush1.bf16.msra.mxu1 %v20701_v31  ;;  %3493 = vmatprep.mubr.f32.mxu1 %v23071_v27  ;;  %v20763_v31 = vld [vmem:[#allocation19 + $0x9c] ss:$24 sps:$4 sm:$0xff]  }
 0x709   :  { %3999 = vmatprep.subr.bf16.mxu1 %v20706_v32  ;;  %3416 = vmatprep.mubr.f32.mxu0 %v23071_v27  ;;  %v20766_v32 = vld [vmem:[#allocation19 + $0xa4] ss:$24 sps:$4 sm:$0xff]  }
 0x70b   :  { %18041 = vmatmul.mubr.msk.f32.gmra.mrb[70].mxu1 %vm3321_vm13, %v23740_v63  ;;  %18037 = vmatmul.mubr.msk.f32.gmra.mrb[54].mxu0 %vm3321_vm13, %v23740_v63 }
 0x70c   :  { %4000 = vmatpush1.bf16.msra.mxu1 %v20704_v62  ;;  %18130 = vmatprep.mubr.msk.bf16.mxu1 %vm1948_vm10, %v23695_v0  ;;  %v20761_v62 = vld [vmem:[#allocation19 + $0x98] ss:$24 sps:$4 sm:$0xff]  }
 0x70d   :  { %4001 = vmatprep.subr.bf16.mxu1 %v20709_v20  ;;  %3564 = vmatprep.mubr.f32.mxu0 %v23071_v27  ;;  %v20764_v20 = vld [vmem:[#allocation19 + $0xa0] ss:$24 sps:$4 sm:$0xff]  }
 0x710   :  { %4002 = vmatpush1.bf16.msra.mxu1 %v20707_v34  ;;  %v20769_v34 = vld [vmem:[#allocation19 + $0xcc] ss:$24 sps:$4 sm:$0xff]  }
 0x711   :  { %4003 = vmatprep.subr.bf16.mxu1 %v20712_v35  ;;  %v20772_v35 = vld [vmem:[#allocation19 + $0xd4] ss:$24 sps:$4 sm:$0xff]  }
 0x714   :  { %4004 = vmatpush1.bf16.msra.mxu1 %v20710_v24  ;;  %v20775_v24 = vld [vmem:[#allocation19 + $0xfc] ss:$24 sps:$4 sm:$0xff]  }
 0x715   :  { %4005 = vmatprep.subr.bf16.mxu1 %v20715_v10  ;;  %v20778_v10 = vld [vmem:[#allocation19 + $0x104] ss:$24 sps:$4 sm:$0xff]  }
 0x718   :  { %4006 = vmatpush1.bf16.msra.mxu1 %v20713_v22  ;;  %v20773_v22 = vld [vmem:[#allocation19 + $0xf8] ss:$24 sps:$4 sm:$0xff]  }
 0x719   :  { %4007 = vmatprep.subr.bf16.mxu1 %v20718_v39  ;;  %v20776_v39 = vld [vmem:[#allocation19 + $0x100] ss:$24 sps:$4 sm:$0xff]  }
 0x71c   :  { %4008 = vmatpush1.bf16.msra.mxu1 %v20716_v36  ;;  %v20781_v36 = vld [vmem:[#allocation19 + $0x12c] ss:$24 sps:$4 sm:$0xff]  }
 0x71d   :  { %4009 = vmatprep.subr.bf16.mxu1 %v20721_v40  ;;  %v20784_v40 = vld [vmem:[#allocation19 + $0x134] ss:$24 sps:$4 sm:$0xff]  }
 0x720   :  { %4010 = vmatpush1.bf16.msra.mxu1 %v20719_v41  ;;  %v20779_v41 = vld [vmem:[#allocation19 + $0x128] ss:$24 sps:$4 sm:$0xff]  }
 0x721   :  { %4011 = vmatprep.subr.bf16.mxu1 %v20724_v42  ;;  %v20782_v42 = vld [vmem:[#allocation19 + $0x130] ss:$24 sps:$4 sm:$0xff]  }
 0x724   :  { %4012 = vmatpush1.bf16.msra.mxu1 %v20722_v43  ;;  %v20787_v43 = vld [vmem:[#allocation19 + $0x15c] ss:$24 sps:$4 sm:$0xff]  }
 0x725   :  { %4013 = vmatprep.subr.bf16.mxu1 %v20727_v19  ;;  %v20790_v19 = vld [vmem:[#allocation19 + $0x164] ss:$24 sps:$4 sm:$0xff]  }
 0x728   :  { %4014 = vmatpush1.bf16.msra.mxu1 %v20725_v23  ;;  %v20785_v23 = vld [vmem:[#allocation19 + $0x158] ss:$24 sps:$4 sm:$0xff]  }
 0x729   :  { %4015 = vmatprep.subr.bf16.mxu1 %v20730_v44  ;;  %v20788_v44 = vld [vmem:[#allocation19 + $0x160] ss:$24 sps:$4 sm:$0xff]  }
 0x72c   :  { %4016 = vmatpush1.bf16.msra.mxu1 %v20728_v45  ;;  %v20793_v45 = vld [vmem:[#allocation19 + $0x18c] ss:$24 sps:$4 sm:$0xff]  }
 0x72d   :  { %4017 = vmatprep.subr.bf16.mxu1 %v20733_v47  ;;  %v20796_v47 = vld [vmem:[#allocation19 + $0x194] ss:$24 sps:$4 sm:$0xff]  }
 0x730   :  { %4018 = vmatpush1.bf16.msra.mxu1 %v20731_v49  ;;  %v20791_v49 = vld [vmem:[#allocation19 + $0x188] ss:$24 sps:$4 sm:$0xff]  }
 0x731   :  { %4019 = vmatprep.subr.bf16.mxu1 %v20736_v46  ;;  %v20794_v46 = vld [vmem:[#allocation19 + $0x190] ss:$24 sps:$4 sm:$0xff]  }
 0x734   :  { %4020 = vmatpush1.bf16.msra.mxu1 %v20734_v50  ;;  %v20799_v50 = vld [vmem:[#allocation19 + $0x1bc] ss:$24 sps:$4 sm:$0xff]  }
 0x735   :  { %v2593_v52 = vpop.f32.mrb[44].mxu0  ;;  %v23750_v54 = vpop.f32.mrb[60].mxu1  ;;  %4021 = vmatprep.subr.bf16.mxu1 %v20739_v48  ;;  %v20802_v48 = vld [vmem:[#allocation19 + $0x1c4] ss:$24 sps:$4 sm:$0xff]  }
 0x736   :  { %v2595_v55 = vpop.f32.mrb[45].mxu0  ;;  %v23752_v38 = vpop.f32.mrb[61].mxu1 }
 0x737   :  { %v2597_v58 = vpop.f32.mrb[46].mxu0  ;;  %v23754_v61 = vpop.f32.mrb[62].mxu1 }
 0x738   :  { %v19818_v21 = vpack.c.bf16 %v2597_v58, %v2593_v52  ;;  %v19824_v26 = vpack.c.bf16 %v23754_v61, %v23750_v54  ;;  %v2599_v6 = vpop.f32.mrb[47].mxu0  ;;  %v23758_v14 = vpop.f32.mrb[63].mxu1  ;;  %4022 = vmatpush1.bf16.msra.mxu1 %v20737_v51  ;;  %v20797_v51 = vld [vmem:[#allocation19 + $0x1b8] ss:$24 sps:$4 sm:$0xff]   ;;  %v20803_v58 = vld [vmem:[#allocation19 + $0x1e8] ss:$24 sps:$4 sm:$0xff]  }
 0x739   :  { %v19815_v15 = vpack.c.bf16 %v2599_v6, %v2595_v55  ;;  %v19821_v17 = vpack.c.bf16 %v23758_v14, %v23752_v38  ;;  %4023 = vmatprep.subr.bf16.mxu1 %v20742_v37  ;;  %v20800_v52 = vld [vmem:[#allocation19 + $0x1c0] ss:$24 sps:$4 sm:$0xff]   ;;  %v20805_v37 = vld [vmem:[#allocation19 + $0x1ec] ss:$24 sps:$4 sm:$0xff]   ;;  %v20811_v6 = vld [vmem:[#allocation19 + $0x21c] ss:$24 sps:$4 sm:$0xff]  }
 0x73a   :  { %v20808_v55 = vld [vmem:[#allocation19 + $0x1f4] ss:$24 sps:$4 sm:$0xff]  }
 0x73b   :  { %19817 = vmatprep.subr.msk.bf16.mxu0 %vm23721_vm12, %v19815_v15  ;;  %v20809_v15 = vld [vmem:[#allocation19 + $0x218] ss:$24 sps:$4 sm:$0xff]  }
 0x73c   :  { %19820 = vmatpush1.bf16.msk.msra.mxu0 %vm23721_vm12, %v19818_v21  ;;  %4024 = vmatpush1.bf16.msra.mxu1 %v20740_v3  ;;  %v20806_v21 = vld [vmem:[#allocation19 + $0x1f0] ss:$24 sps:$4 sm:$0xff]   ;;  %v20814_v3 = vld [vmem:[#allocation19 + $0x224] ss:$24 sps:$4 sm:$0xff]  }
 0x73d   :  { %4040 = vmatprep.subr.bf16.mxu0 %v20745_v11  ;;  %4083 = vmatprep.subr.bf16.mxu1 %v20748_v18  ;;  %v20812_v11 = vld [vmem:[#allocation19 + $0x220] ss:$24 sps:$4 sm:$0xff]   ;;  %v20817_v18 = vld [vmem:[#allocation19 + $0x24c] ss:$24 sps:$4 sm:$0xff]  }
 0x73f   :  { %18044 = vmatmul.mubr.msk.f32.vlgmr.msra.gmra.mrb[56].mxu0 %vm3321_vm13, %v23733_v30  ;;  %4030 = vmatmul.mubr.bf16.vlgmr.msra.gmra.mrb[72].mxu1 %v23697_v8  ;;  %v20758_v30 = vld [vmem:[#allocation19 + $0x70] ss:$24 sps:$4 sm:$0xff]  }
 0x740   :  { %4041 = vmatpush1.bf16.msra.mxu0 %v20743_v25  ;;  %4084 = vmatpush1.bf16.msra.mxu1 %v20746_v59  ;;  %v20820_v25 = vld [vmem:[#allocation19 + $0x254] ss:$24 sps:$4 sm:$0xff]   ;;  %v20815_v59 = vld [vmem:[#allocation19 + $0x248] ss:$24 sps:$4 sm:$0xff]  }
 0x741   :  { %18132 = vmatprep.mubr.msk.bf16.mxu1 %vm1948_vm10, %v23695_v0  ;;  %3570 = vmatprep.mubr.f32.mxu0 %v23071_v27 }
 0x742   :  { %4042 = vmatprep.subr.bf16.mxu0 %v20751_v12  ;;  %4085 = vmatprep.subr.bf16.mxu1 %v20754_v16  ;;  %v20818_v16 = vld [vmem:[#allocation19 + $0x250] ss:$24 sps:$4 sm:$0xff]  }
 0x743   :  { %18045 = vmatmul.mubr.msk.f32.gmra.mrb[58].mxu0 %vm3321_vm13, %v23740_v63  ;;  %v20767_v63 = vld [vmem:[#allocation19 + $0xc8] ss:$24 sps:$4 sm:$0xff]  }
 0x744   :  { %4043 = vmatpush1.bf16.msra.mxu0 %v20749_v28  ;;  %18131 = vmatprep.mubr.msk.bf16.mxu0 %vm1948_vm10, %v23695_v0  ;;  %v20770_v0 = vld [vmem:[#allocation19 + $0xd0] ss:$24 sps:$4 sm:$0xff]   ;;  %v20823_v28 = vld [vmem:[#allocation19 + $0x27c] ss:$24 sps:$4 sm:$0xff]  }
 0x745   :  { %4086 = vmatpush1.bf16.msra.mxu1 %v20752_v1  ;;  %4044 = vmatprep.subr.bf16.mxu0 %v20757_v29 }
 0x746   :  { %4087 = vmatprep.subr.bf16.mxu1 %v20760_v9  ;;  %v20826_v9 = vld [vmem:[#allocation19 + $0x284] ss:$24 sps:$4 sm:$0xff]  }
 0x748   :  { %4045 = vmatpush1.bf16.msra.mxu0 %v20755_v13 }
 0x749   :  { %4088 = vmatpush1.bf16.msra.mxu1 %v20758_v30  ;;  %4046 = vmatprep.subr.bf16.mxu0 %v20763_v31 }
 0x74a   :  { %4089 = vmatprep.subr.bf16.mxu1 %v20766_v32 }
 0x74c   :  { %4047 = vmatpush1.bf16.msra.mxu0 %v20761_v62 }
 0x74d   :  { %4090 = vmatpush1.bf16.msra.mxu1 %v20764_v20  ;;  %4048 = vmatprep.subr.bf16.mxu0 %v20769_v34  ;;  %v20821_v20 = vld [vmem:[#allocation19 + $0x278] ss:$24 sps:$4 sm:$0xff]  }
 0x74e   :  { %4091 = vmatprep.subr.bf16.mxu1 %v20772_v35 }
 0x750   :  { %4049 = vmatpush1.bf16.msra.mxu0 %v20767_v63 }
 0x751   :  { %4092 = vmatpush1.bf16.msra.mxu1 %v20770_v0  ;;  %4050 = vmatprep.subr.bf16.mxu0 %v20775_v24  ;;  %v20824_v0 = vld [vmem:[#allocation19 + $0x280] ss:$24 sps:$4 sm:$0xff]  }
 0x752   :  { %4093 = vmatprep.subr.bf16.mxu1 %v20778_v10  ;;  %v4126_v10 = vld [vmem:[#allocation24] sm:$0xff] }
 0x754   :  { %4051 = vmatpush1.bf16.msra.mxu0 %v20773_v22 }
 0x755   :  { %4094 = vmatpush1.bf16.msra.mxu1 %v20776_v39  ;;  %4052 = vmatprep.subr.bf16.mxu0 %v20781_v36  ;;  %v20827_v36 = vld [vmem:[%s25446_s9 + $0x40] sm:$0xff]  }
 0x756   :  { %4095 = vmatprep.subr.bf16.mxu1 %v20784_v40  ;;  %v20828_v40 = vld [vmem:[%s25446_s9] sm:$0xff]  }
 0x758   :  { %4053 = vmatpush1.bf16.msra.mxu0 %v20779_v41  ;;  %v20829_v41 = vld [vmem:[%s25446_s9 + $0x48] sm:$0xff]  }
 0x759   :  { %4096 = vmatpush1.bf16.msra.mxu1 %v20782_v42  ;;  %4054 = vmatprep.subr.bf16.mxu0 %v20787_v43  ;;  %v20830_v42 = vld [vmem:[%s25446_s9 + $0x8] sm:$0xff]   ;;  %v20831_v43 = vld [vmem:[%s25446_s9 + $0x50] sm:$0xff]  }
 0x75a   :  { %4097 = vmatprep.subr.bf16.mxu1 %v20790_v19  ;;  %v20832_v19 = vld [vmem:[%s25446_s9 + $0x10] sm:$0xff]  }
 0x75c   :  { %4055 = vmatpush1.bf16.msra.mxu0 %v20785_v23  ;;  %v23832_v23 = vand.u32 127, %v481_v53  ;;  %v20836_v53 = vld [vmem:[%s25446_s9 + $0x20] sm:$0xff]  }
 0x75d   :  { %4098 = vmatpush1.bf16.msra.mxu1 %v20788_v44  ;;  %4056 = vmatprep.subr.bf16.mxu0 %v20793_v45  ;;  %v20833_v44 = vld [vmem:[%s25446_s9 + $0x58] sm:$0xff]  }
 0x75e   :  { %4099 = vmatprep.subr.bf16.mxu1 %v20796_v47  ;;  %v20834_v45 = vld [vmem:[%s25446_s9 + $0x18] sm:$0xff]   ;;  %v23837_v47 = vadd.s32 128, %v23832_v23 }
 0x760   :  { %4057 = vmatpush1.bf16.msra.mxu0 %v20791_v49  ;;  %v23839_v49 = vstv %s4987_s7 }
 0x761   :  { %4100 = vmatpush1.bf16.msra.mxu1 %v20794_v46  ;;  %4058 = vmatprep.subr.bf16.mxu0 %v20799_v50  ;;  %v23841_v46 = vstv %s18163_s17  ;;  %v20835_v50 = vld [vmem:[%s25446_s9 + $0x60] sm:$0xff]   ;;  %vm4990_vm14 = vcmp.eq.s32.totalorder %v23837_v47, %v23839_v49  ;;  %vm4989_vm3 = vcmp.eq.s32.totalorder %v23832_v23, %v23839_v49 }
 0x762   :  { %4101 = vmatprep.subr.bf16.mxu1 %v20802_v48  ;;  %vm5016_vm15 = vcmp.eq.s32.totalorder %v23837_v47, %v23841_v46  ;;  %v4998_v48 = vsel %vm4990_vm14, 0.125, %v23071_v27  ;;  %vm5015_vm14 = vcmp.eq.s32.totalorder %v23832_v23, %v23841_v46 }
 0x764   :  { %4059 = vmatpush1.bf16.msra.mxu0 %v20797_v51  ;;  %v5024_v51 = vsel %vm5016_vm15, 0.125, %v23071_v27 }
 0x765   :  { %4102 = vmatpush1.bf16.msra.mxu1 %v20800_v52  ;;  %4060 = vmatprep.subr.bf16.mxu0 %v20805_v37  ;;  %v23851_v52 = vstv %s18164_s24  ;;  %v5032_v37 = vadd.f32 %v5024_v51, %v4998_v48  ;;  %v20846_v51 = vld [vmem:[%s25446_s9 + $0x100] sm:$0xff]  }
 0x766   :  { %4103 = vmatprep.subr.bf16.mxu1 %v20808_v55  ;;  %vm5042_vm1 = vcmp.eq.s32.totalorder %v23837_v47, %v23851_v52  ;;  %v4997_v55 = vsel %vm4989_vm3, 0.125, %v23071_v27  ;;  %vm5041_vm15 = vcmp.eq.s32.totalorder %v23832_v23, %v23851_v52 }
 0x768   :  { %4061 = vmatpush1.bf16.msra.mxu0 %v20803_v58  ;;  %v5050_v58 = vsel %vm5042_vm1, 0.125, %v23071_v27 }
 0x769   :  { %4104 = vmatpush1.bf16.msra.mxu1 %v20806_v21  ;;  %4062 = vmatprep.subr.bf16.mxu0 %v20811_v6  ;;  %v23861_v21 = vstv %s18165_s12  ;;  %v5023_v6 = vsel %vm5015_vm14, 0.125, %v23071_v27 }
 0x76a   :  { %4105 = vmatprep.subr.bf16.mxu1 %v20814_v3  ;;  %v20837_v3 = vld [vmem:[%s25446_s9 + $0x68] sm:$0xff]   ;;  %vm5068_vm0 = vcmp.eq.s32.totalorder %v23837_v47, %v23861_v21  ;;  %vm5067_vm1 = vcmp.eq.s32.totalorder %v23832_v23, %v23861_v21 }
 0x76c   :  { %4063 = vmatpush1.bf16.msra.mxu0 %v20809_v15  ;;  %v5058_v15 = vadd.f32 %v5050_v58, %v5032_v37  ;;  %v20850_v58 = vld [vmem:[%s25446_s9 + $0x108] sm:$0xff]  }
 0x76d   :  { %v3267_v12 = vpop.f32.mrb[48].mxu0  ;;  %4106 = vmatpush1.bf16.msra.mxu1 %v20812_v11  ;;  %4064 = vmatprep.subr.bf16.mxu0 %v20817_v18  ;;  %v5031_v11 = vadd.f32 %v5023_v6, %v4997_v55  ;;  %v5049_v18 = vsel %vm5041_vm15, 0.125, %v23071_v27  ;;  %v20849_v55 = vld [vmem:[%s25446_s9 + $0x148] sm:$0xff]   ;;  %v20853_v6 = vld [vmem:[%s25446_s9 + $0x150] sm:$0xff]  }
 0x76e   :  { %v3310_v1 = vpop.f32.mrb[64].mxu1  ;;  %v3269_v29 = vpop.f32.mrb[49].mxu0  ;;  %4107 = vmatprep.subr.bf16.mxu1 %v20820_v25  ;;  %v20838_v25 = vld [vmem:[%s25446_s9 + $0x28] sm:$0xff]  }
 0x76f   :  { %v3312_v13 = vpop.f32.mrb[65].mxu1  ;;  %v3271_v30 = vpop.f32.mrb[50].mxu0 }
 0x770   :  { %v19830_v31 = vpack.c.bf16 %v3271_v30, %v3267_v12  ;;  %v3314_v32 = vpop.f32.mrb[66].mxu1  ;;  %v3273_v62 = vpop.f32.mrb[51].mxu0  ;;  %4065 = vmatpush1.bf16.msra.mxu0 %v20815_v59  ;;  %v5076_v59 = vsel %vm5068_vm0, 0.125, %v23071_v27  ;;  %v23872_v12 = vstv %s18166_s25 }
 0x771   :  { %v19836_v34 = vpack.c.bf16 %v3314_v32, %v3310_v1  ;;  %v19827_v35 = vpack.c.bf16 %v3273_v62, %v3269_v29  ;;  %v3316_v63 = vpop.f32.mrb[67].mxu1  ;;  %4108 = vmatpush1.bf16.msra.mxu1 %v20818_v16  ;;  %4066 = vmatprep.subr.bf16.mxu0 %v20823_v28  ;;  %v5084_v16 = vadd.f32 %v5076_v59, %v5058_v15  ;;  %v5075_v1 = vsel %vm5067_vm1, 0.125, %v23071_v27  ;;  %v20840_v62 = vld [vmem:[%s25446_s9 + $0x30] sm:$0xff]   ;;  %v20857_v15 = vld [vmem:[%s25446_s9 + $0x158] sm:$0xff]  }
 0x772   :  { %v19833_v24 = vpack.c.bf16 %v3316_v63, %v3312_v13  ;;  %4109 = vmatprep.subr.bf16.mxu1 %v20826_v9  ;;  %vm5094_vm3 = vcmp.eq.s32.totalorder %v23837_v47, %v23872_v12  ;;  %v5057_v28 = vadd.f32 %v5049_v18, %v5031_v11  ;;  %v23880_v9 = vstv %s18167_s13  ;;  %v20839_v13 = vld [vmem:[%s25446_s9 + $0x70] sm:$0xff]   ;;  %v20858_v11 = vld [vmem:[%s25446_s9 + $0x118] sm:$0xff]  }
 0x773   :  { %v5102_v29 = vsel %vm5094_vm3, 0.125, %v23071_v27  ;;  %vm5093_vm0 = vcmp.eq.s32.totalorder %v23832_v23, %v23872_v12  ;;  %vm5120_vm14 = vcmp.eq.s32.totalorder %v23837_v47, %v23880_v9  ;;  %vm5119_vm15 = vcmp.eq.s32.totalorder %v23832_v23, %v23880_v9 }
 0x774   :  { %4067 = vmatpush1.bf16.msra.mxu0 %v20821_v20  ;;  %v5110_v30 = vadd.f32 %v5102_v29, %v5084_v16  ;;  %v5101_v32 = vsel %vm5093_vm0, 0.125, %v23071_v27  ;;  %v5128_v20 = vsel %vm5120_vm14, 0.125, %v23071_v27  ;;  %v23920_v18 = vadd.s32 640, %v23832_v23 }
 0x775   :  { %4110 = vmatpush1.bf16.msra.mxu1 %v20824_v0  ;;  %19823 = vmatprep.subr.msk.bf16.mxu0 %vm23721_vm12, %v19821_v17  ;;  %v5127_v0 = vsel %vm5119_vm15, 0.125, %v23071_v27 }
 0x776   :  { %19399 = vmatprep.subr.bf16.mxu1 %v20827_v36  ;;  %v20842_v36 = vld [vmem:[%s25446_s9 + $0x38] sm:$0xff]   ;;  %vm4994_vm15 = vcmp.eq.s32.totalorder %v23920_v18, %v23839_v49 }
 0x777   :  { %4073 = vmatmul.mubr.bf16.vlgmr.msra.gmra.mrb[60].mxu0 %v23697_v8 }
 0x778   :  { %4116 = vmatmul.mubr.bf16.vlgmr.msra.gmra.mrb[76].mxu1 %v23697_v8  ;;  %19826 = vmatpush1.bf16.msk.msra.mxu0 %vm23721_vm12, %v19824_v26  ;;  %v4127_v8 = vld [vmem:[#allocation24 + $0x8] sm:$0x3f] }
 0x779   :  { %19829 = vmatprep.subr.msk.bf16.mxu0 %vm23721_vm12, %v19827_v35  ;;  %4216 = vmatprep.mubr.f32.mxu0 %v23071_v27  ;;  %v5136_v35 = vadd.f32 %v5128_v20, %v5110_v30  ;;  %v20865_v20 = vld [vmem:[%s25446_s9 + $0x168] sm:$0xff]  }
 0x77a   :  { %19400 = vmatpush3.bf16.msra.mxu1 %v20828_v40 }
 0x77b   :  { %19401 = vmatprep.subr.bf16.mxu1 %v20829_v41 }
 0x77e   :  { %19402 = vmatpush3.bf16.msra.mxu1 %v20830_v42 }
 0x77f   :  { %18135 = vmatmul.mubr.msk.f32.vlgmr.msra.gmra.mrb[64].mxu0 %vm3321_vm13, %v4126_v10  ;;  %19403 = vmatprep.subr.bf16.mxu1 %v20831_v43 }
 0x780   :  { %19832 = vmatpush1.bf16.msk.msra.mxu0 %vm23721_vm12, %v19830_v31  ;;  %4222 = vmatprep.mubr.f32.mxu0 %v23071_v27  ;;  %v5083_v31 = vadd.f32 %v5075_v1, %v5057_v28  ;;  %v20862_v28 = vld [vmem:[%s25446_s9 + $0x120] sm:$0xff]  }
 0x781   :  { %19835 = vmatprep.subr.msk.bf16.mxu0 %vm23721_vm12, %v19833_v24 }
 0x782   :  { %19404 = vmatpush3.bf16.msra.mxu1 %v20832_v19  ;;  %v5109_v63 = vadd.f32 %v5101_v32, %v5083_v31 }
 0x783   :  { %18136 = vmatmul.mubr.msk.f32.gmra.mrb[66].mxu0 %vm3321_vm13, %v4127_v8  ;;  %19405 = vmatprep.subr.bf16.mxu1 %v20833_v44 }
 0x784   :  { %4293 = vmatprep.mubr.f32.mxu0 %v23071_v27  ;;  %v5135_v41 = vadd.f32 %v5127_v0, %v5109_v63  ;;  %v20866_v63 = vld [vmem:[%s25446_s9 + $0x128] sm:$0xff]   ;;  %v5002_v0 = vsel %vm4994_vm15, 0.125, %v23071_v27  ;;  %vm5124_vm15 = vcmp.eq.s32.totalorder %v23920_v18, %v23880_v9 }
 0x786   :  { %19406 = vmatpush3.bf16.msra.mxu1 %v20834_v45 }
 0x787   :  { %18139 = vmatmul.mubr.msk.f32.vlgmr.msra.gmra.mrb[68].mxu0 %vm3321_vm13, %v4126_v10  ;;  %19407 = vmatprep.subr.bf16.mxu1 %v20835_v50 }
 0x788   :  { %19838 = vmatpush1.bf16.msk.msra.mxu0 %vm23721_vm12, %v19836_v34  ;;  %4299 = vmatprep.mubr.f32.mxu0 %v23071_v27  ;;  %v23890_v34 = vstv %s18168_s18 }
 0x789   :  { %vm5146_vm1 = vcmp.eq.s32.totalorder %v23837_v47, %v23890_v34  ;;  %vm5145_vm3 = vcmp.eq.s32.totalorder %v23832_v23, %v23890_v34 }
 0x78a   :  { %19408 = vmatpush3.bf16.msra.mxu1 %v20836_v53  ;;  %v5154_v24 = vsel %vm5146_vm1, 0.125, %v23071_v27  ;;  %v5153_v42 = vsel %vm5145_vm3, 0.125, %v23071_v27  ;;  %v20845_v53 = vld [vmem:[%s25446_s9 + $0x140] sm:$0xff]   ;;  %vm5020_vm1 = vcmp.eq.s32.totalorder %v23920_v18, %v23841_v46  ;;  %vm5046_vm3 = vcmp.eq.s32.totalorder %v23920_v18, %v23851_v52 }
 0x78b   :  { %18140 = vmatmul.mubr.msk.f32.gmra.mrb[70].mxu0 %vm3321_vm13, %v4127_v8  ;;  %19409 = vmatprep.subr.bf16.mxu1 %v20837_v3  ;;  %v5162_v40 = vadd.f32 %v5154_v24, %v5136_v35  ;;  %v5161_v44 = vadd.f32 %v5153_v42, %v5135_v41  ;;  %v20854_v3 = vld [vmem:[%s25446_s9 + $0x110] sm:$0xff]   ;;  %v20873_v41 = vld [vmem:[%s25446_s9 + $0x178] sm:$0xff]  }
 0x78c   :  { %4370 = vmatprep.mubr.f32.mxu0 %v23071_v27 }
 0x78e   :  { %19410 = vmatpush3.bf16.msra.mxu1 %v20838_v25  ;;  %v20861_v25 = vld [vmem:[%s25446_s9 + $0x160] sm:$0xff]  }
 0x78f   :  { %18143 = vmatmul.mubr.msk.f32.vlgmr.msra.gmra.mrb[72].mxu0 %vm3321_vm13, %v4126_v10  ;;  %19411 = vmatprep.subr.bf16.mxu1 %v20839_v13  ;;  %v23898_v10 = vstv %s18169_s23 }
 0x790   :  { %4376 = vmatprep.mubr.f32.mxu0 %v23071_v27  ;;  %vm5172_vm0 = vcmp.eq.s32.totalorder %v23837_v47, %v23898_v10  ;;  %vm5171_vm14 = vcmp.eq.s32.totalorder %v23832_v23, %v23898_v10 }
 0x791   :  { %v5180_v43 = vsel %vm5172_vm0, 0.125, %v23071_v27  ;;  %v5179_v45 = vsel %vm5171_vm14, 0.125, %v23071_v27  ;;  %vm5072_vm0 = vcmp.eq.s32.totalorder %v23920_v18, %v23861_v21  ;;  %vm5098_vm14 = vcmp.eq.s32.totalorder %v23920_v18, %v23872_v12 }
 0x792   :  { %19412 = vmatpush3.bf16.msra.mxu1 %v20840_v62  ;;  %v5188_v19 = vadd.f32 %v5180_v43, %v5162_v40  ;;  %v5187_v48 = vadd.f32 %v5179_v45, %v5161_v44  ;;  %v5080_v42 = vsel %vm5072_vm0, 0.125, %v23071_v27  ;;  %v20874_v43 = vld [vmem:[%s25446_s9 + $0x138] sm:$0xff]   ;;  %v5106_v44 = vsel %vm5098_vm14, 0.125, %v23071_v27 }
 0x793   :  { %18144 = vmatmul.mubr.msk.f32.gmra.mrb[74].mxu0 %vm3321_vm13, %v4127_v8  ;;  %v20841_v8 = vld [vmem:[%s25446_s9 + $0x78] sm:$0xff]   ;;  %v5132_v45 = vsel %vm5124_vm15, 0.125, %v23071_v27 }
 0x794   :  { %4537 = vmatprep.mubr.f32.mxu0 %v23071_v27  ;;  %19413 = vmatprep.subr.bf16.mxu1 %v20841_v8  ;;  %v5196_v50 = vpack.c.bf16 %v5188_v19, %v5188_v19  ;;  %v5195_v37 = vpack.c.bf16 %v5187_v48, %v5187_v48 }
 0x796   :  { %19414 = vmatpush3.bf16.msra.mxu1 %v20842_v36  ;;  %5742 = vmatprep.mubr.bf16.mxu1 %v5196_v50  ;;  %v5054_v36 = vsel %vm5046_vm3, 0.125, %v23071_v27  ;;  %v23971_v50 = vadd.s32 512, %v23832_v23  ;;  %vm5176_vm3 = vcmp.eq.s32.totalorder %v23920_v18, %v23898_v10 }
 0x797   :  { %19443 = vmatprep.subr.bf16.mxu1 %v20845_v53 }
 0x798   :  { %vm4993_vm0 = vcmp.eq.s32.totalorder %v23971_v50, %v23839_v49  ;;  %vm5019_vm14 = vcmp.eq.s32.totalorder %v23971_v50, %v23841_v46  ;;  %vm5045_vm15 = vcmp.eq.s32.totalorder %v23971_v50, %v23851_v52  ;;  %vm5071_vm6 = vcmp.eq.s32.totalorder %v23971_v50, %v23861_v21 }
 0x799   :  { %5743 = vmatmul.mubr.bf16.vlgmr.msra.gmra.mrb[80].mxu1 %v5195_v37  ;;  %v5001_v37 = vsel %vm4993_vm0, 0.125, %v23071_v27  ;;  %vm5123_vm11 = vcmp.eq.s32.totalorder %v23971_v50, %v23880_v9  ;;  %vm5175_vm0 = vcmp.eq.s32.totalorder %v23971_v50, %v23898_v10 }
 0x79a   :  { %19444 = vmatpush3.bf16.msra.mxu1 %v20846_v51 }
 0x79b   :  { %19445 = vmatprep.subr.bf16.mxu1 %v20849_v55  ;;  %v5027_v55 = vsel %vm5019_vm14, 0.125, %v23071_v27 }
 0x79e   :  { %19446 = vmatpush3.bf16.msra.mxu1 %v20850_v58  ;;  %v5053_v58 = vsel %vm5045_vm15, 0.125, %v23071_v27 }
 0x79f   :  { %19447 = vmatprep.subr.bf16.mxu1 %v20853_v6  ;;  %v5184_v6 = vsel %vm5176_vm3, 0.125, %v23071_v27  ;;  %vm5149_vm3 = vcmp.eq.s32.totalorder %v23971_v50, %v23890_v34 }
 0x7a2   :  { %19448 = vmatpush3.bf16.msra.mxu1 %v20854_v3  ;;  %v5035_v3 = vadd.f32 %v5027_v55, %v5001_v37 }
 0x7a3   :  { %19449 = vmatprep.subr.bf16.mxu1 %v20857_v15 }
 0x7a6   :  { %19450 = vmatpush3.bf16.msra.mxu1 %v20858_v11  ;;  %v5079_v11 = vsel %vm5071_vm6, 0.125, %v23071_v27 }
 0x7a7   :  { %19451 = vmatprep.subr.bf16.mxu1 %v20861_v25  ;;  %v5061_v25 = vadd.f32 %v5053_v58, %v5035_v3 }
 0x7aa   :  { %19452 = vmatpush3.bf16.msra.mxu1 %v20862_v28 }
 0x7ab   :  { %19453 = vmatprep.subr.bf16.mxu1 %v20865_v20 }
 0x7ae   :  { %19454 = vmatpush3.bf16.msra.mxu1 %v20866_v63  ;;  %v5157_v63 = vsel %vm5149_vm3, 0.125, %v23071_v27 }
 0x7da   :  { %v23809_v54 = vpop.f32.mrb[68].mxu1  ;;  %v23811_v38 = vpop.f32.mrb[52].mxu0 }
 0x7db   :  { %v23813_v61 = vpop.f32.mrb[69].mxu1  ;;  %v23815_v26 = vpop.f32.mrb[53].mxu0 }
 0x7de   :  { %v23817_v14 = vpop.f32.mrb[54].mxu0  ;;  %v23819_v17 = vpop.f32.mrb[70].mxu1 }
 0x7df   :  { %v23821_v22 = vpop.f32.mrb[55].mxu0  ;;  %v23823_v39 = vpop.f32.mrb[71].mxu1 }
 0x812   :  { %v23923_v59 = vpop.f32.mrb[56].mxu0  ;;  %v4031_v16 = vpop.f32.mrb[72].mxu1 }
 0x813   :  { %v23926_v1 = vpop.f32.mrb[57].mxu0  ;;  %v23929_v29 = vadd.f32 %v4031_v16, %v23811_v38  ;;  %v4033_v13 = vpop.f32.mrb[73].mxu1 }
 0x814   :  { %v23934_v30 = vadd.f32 %v4033_v13, %v23815_v26  ;;  %v4035_v31 = vpop.f32.mrb[74].mxu1  ;;  %v5028_v26 = vsel %vm5020_vm1, 0.125, %v23071_v27  ;;  %vm5150_vm1 = vcmp.eq.s32.totalorder %v23920_v18, %v23890_v34  ;;  %v5087_v13 = vadd.f32 %v5079_v11, %v5061_v25 }
 0x815   :  { %v23937_v32 = vadd.f32 %v4035_v31, %v23817_v14  ;;  %v4037_v62 = vpop.f32.mrb[75].mxu1  ;;  %v20869_v14 = vld [vmem:[%s25446_s9 + $0x170] sm:$0xff]   ;;  %v5036_v8 = vadd.f32 %v5028_v26, %v5002_v0  ;;  %v5158_v48 = vsel %vm5150_vm1, 0.125, %v23071_v27  ;;  %vm5097_vm1 = vcmp.eq.s32.totalorder %v23971_v50, %v23872_v12 }
 0x816   :  { %v23941_v35 = vadd.f32 %v4037_v62, %v23821_v22  ;;  %v23943_v38 = vpop.f32.mrb[58].mxu0  ;;  %v20870_v22 = vld [vmem:[%s25446_s9 + $0x130] sm:$0xff]   ;;  %19455 = vmatprep.subr.bf16.mxu1 %v20869_v14  ;;  %v5105_v28 = vsel %vm5097_vm1, 0.125, %v23071_v27  ;;  %v5131_v62 = vsel %vm5123_vm11, 0.125, %v23071_v27  ;;  %v5183_v26 = vsel %vm5175_vm0, 0.125, %v23071_v27 }
 0x817   :  { %v23947_v24 = vpop.f32.mrb[59].mxu0  ;;  %v5062_v40 = vadd.f32 %v5054_v36, %v5036_v8  ;;  %19456 = vmatpush3.bf16.msra.mxu1 %v20870_v22  ;;  %v5113_v20 = vadd.f32 %v5105_v28, %v5087_v13 }
 0x818   :  { %19457 = vmatprep.subr.bf16.mxu1 %v20873_v41 }
 0x819   :  { %v5088_v19 = vadd.f32 %v5080_v42, %v5062_v40  ;;  %v5139_v0 = vadd.f32 %v5131_v62, %v5113_v20 }
 0x81b   :  { %v5114_v53 = vadd.f32 %v5106_v44, %v5088_v19  ;;  %19458 = vmatpush3.bf16.msra.mxu1 %v20874_v43  ;;  %v5165_v14 = vadd.f32 %v5157_v63, %v5139_v0 }
 0x81c   :  { %19699 = vmatprep.subr.bf16.mxu1 %v23071_v27 }
 0x81d   :  { %v5140_v51 = vadd.f32 %v5132_v45, %v5114_v53  ;;  %v5191_v8 = vadd.f32 %v5183_v26, %v5165_v14 }
 0x81f   :  { %v5166_v15 = vadd.f32 %v5158_v48, %v5140_v51  ;;  %v5199_v22 = vpack.c.bf16 %v5191_v8, %v5191_v8 }
 0x821   :  { %v5192_v16 = vadd.f32 %v5184_v6, %v5166_v15 }
 0x823   :  { %v5200_v31 = vpack.c.bf16 %v5192_v16, %v5192_v16 }
 0x825   :  { %5822 = vmatprep.mubr.bf16.mxu1 %v5200_v31 }
 0x826   :  { %5823 = vmatmul.mubr.bf16.vlgmr.msra.gmra.mrb[84].mxu1 %v5199_v22 }
 0x84a   :  { %v4074_v36 = vpop.f32.mrb[60].mxu0 }
 0x84b   :  { %v4075_v40 = vadd.f32 %v4074_v36, %v23809_v54  ;;  %v4076_v41 = vpop.f32.mrb[61].mxu0  ;;  %v4117_v42 = vpop.f32.mrb[76].mxu1 }
 0x84c   :  { %v4077_v43 = vadd.f32 %v4076_v41, %v23813_v61  ;;  %v24005_v19 = vadd.f32 %v4117_v42, %v23923_v59  ;;  %v4078_v44 = vpop.f32.mrb[62].mxu0  ;;  %v4119_v45 = vpop.f32.mrb[77].mxu1  ;;  %v4395_v59 = vld [vmem:[#allocation28] sm:$0x3f]  ;;  %v4415_v42 = vsub.s32 4, %v23553_v57 }
 0x84d   :  { %v4079_v53 = vadd.f32 %v4078_v44, %v23819_v17  ;;  %v24009_v48 = vadd.f32 %v4119_v45, %v23926_v1  ;;  %v4080_v51 = vpop.f32.mrb[63].mxu0  ;;  %v4121_v37 = vpop.f32.mrb[78].mxu1  ;;  %v4400_v17 = vrot.slane %v4395_v59, %v23558_v5  ;;  %v4404_v11 = vrot.slane %v4395_v59, %v23561_v7 }
 0x84e   :  { %v4081_v55 = vadd.f32 %v4080_v51, %v23823_v39  ;;  %v24013_v54 = vadd.f32 %v4121_v37, %v23943_v38  ;;  %v4123_v58 = vpop.f32.mrb[79].mxu1  ;;  %v24023_v39 = vadd.s32 384, %v23832_v23  ;;  %v4408_v20 = vrot.slane %v4395_v59, %v23568_v56 }
 0x84f   :  { %v24016_v61 = vadd.f32 %v4123_v58, %v23947_v24 }
 0x850   :  { %vm4992_vm6 = vcmp.eq.s32.totalorder %v24023_v39, %v23839_v49  ;;  %vm5018_vm11 = vcmp.eq.s32.totalorder %v24023_v39, %v23841_v46  ;;  %vm5044_vm14 = vcmp.eq.s32.totalorder %v24023_v39, %v23851_v52  ;;  %vm5070_vm15 = vcmp.eq.s32.totalorder %v24023_v39, %v23861_v21 }
 0x851   :  { %v5000_v44 = vsel %vm4992_vm6, 0.125, %v23071_v27  ;;  %vm5096_vm1 = vcmp.eq.s32.totalorder %v24023_v39, %v23872_v12  ;;  %vm5122_vm3 = vcmp.eq.s32.totalorder %v24023_v39, %v23880_v9  ;;  %vm5148_vm0 = vcmp.eq.s32.totalorder %v24023_v39, %v23890_v34 }
 0x852   :  { %v4218_v6 = vpop.f32.mrb[64].mxu0  ;;  %vm5174_vm6 = vcmp.eq.s32.totalorder %v24023_v39, %v23898_v10 }
 0x853   :  { %v4383_v3 = vadd.f32 %v4218_v6, %v23929_v29  ;;  %v4220_v15 = vpop.f32.mrb[65].mxu0  ;;  %v4419_v6 = vsub.s32 5, %v23553_v57 }
 0x854   :  { %v4384_v1 = vadd.f32 %v4220_v15, %v23934_v30 }
 0x855   :  { %v4427_v38 = vadd.f32 %v4400_v17, %v4383_v3 }
 0x856   :  { %v4224_v25 = vpop.f32.mrb[66].mxu0  ;;  %v4428_v28 = vadd.f32 %v4404_v11, %v4384_v1 }
 0x857   :  { %v4389_v16 = vadd.f32 %v4224_v25, %v23937_v32  ;;  %v4226_v24 = vpop.f32.mrb[67].mxu0  ;;  %v4439_v30 = vmax.f32 %v4427_v38, 0.0 }
 0x858   :  { %v4390_v13 = vadd.f32 %v4226_v24, %v23941_v35  ;;  %v4440_v32 = vmax.f32 %v4428_v28, 0.0  ;;  %v4412_v35 = vrot.slane %v4395_v59, %v23571_v60 }
 0x859   :  { %v4433_v31 = vadd.f32 %v4400_v17, %v4389_v16  ;;  %v4451_v17 = vld [vmem:[#allocation25] sm:$0x7f] }
 0x85a   :  { %v4434_v29 = vadd.f32 %v4404_v11, %v4390_v13  ;;  %v4295_v62 = vpop.f32.mrb[68].mxu0  ;;  %v4416_v11 = vrot.slane %v4395_v59, %v4415_v42 }
 0x85b   :  { %v4445_v63 = vmax.f32 %v4433_v31, 0.0  ;;  %v4385_v0 = vadd.f32 %v4295_v62, %v4075_v40  ;;  %v4297_v26 = vpop.f32.mrb[69].mxu0  ;;  %v5026_v40 = vsel %vm5018_vm11, 0.125, %v23071_v27 }
 0x85c   :  { %v4446_v14 = vmax.f32 %v4434_v29, 0.0  ;;  %v4386_v8 = vadd.f32 %v4297_v26, %v4077_v43  ;;  %v5034_v15 = vadd.f32 %v5026_v40, %v5000_v44  ;;  %v4420_v29 = vrot.slane %v4395_v59, %v4419_v6 }
 0x85d   :  { %v24033_v22 = vpack.c.bf16 %v4445_v63, %v4439_v30  ;;  %v4429_v45 = vadd.f32 %v4408_v20, %v4385_v0 }
 0x85e   :  { %v24035_v36 = vpack.c.bf16 %v4446_v14, %v4440_v32  ;;  %v4301_v41 = vpop.f32.mrb[70].mxu0  ;;  %v4430_v43 = vadd.f32 %v4412_v35, %v4386_v8 }
 0x85f   :  { %v4391_v51 = vadd.f32 %v4301_v41, %v4079_v53  ;;  %v4303_v37 = vpop.f32.mrb[71].mxu0  ;;  %v4441_v25 = vmax.f32 %v4429_v45, 0.0  ;;  %v5104_v41 = vsel %vm5096_vm1, 0.125, %v23071_v27 }
 0x860   :  { %v4392_v58 = vadd.f32 %v4303_v37, %v4081_v55  ;;  %19841 = vmatprep.subr.msk.bf16.mxu0 %vm23721_vm12, %v24035_v36  ;;  %v5052_v55 = vsel %vm5044_vm14, 0.125, %v23071_v27  ;;  %v4442_v28 = vmax.f32 %v4430_v43, 0.0  ;;  %v5130_v43 = vsel %vm5122_vm3, 0.125, %v23071_v27 }
 0x861   :  { %v4435_v3 = vadd.f32 %v4408_v20, %v4391_v51  ;;  %19844 = vmatpush1.bf16.msk.msra.mxu0 %vm23721_vm12, %v24033_v22  ;;  %v5060_v20 = vadd.f32 %v5052_v55, %v5034_v15  ;;  %v4686_v15 = vld [vmem:[#allocation27] sm:$0x7f]  ;;  %v20844_v55 = vld [vmem:[%s25446_s9 + $0x80] sm:$0xff]  }
 0x862   :  { %v4436_v53 = vadd.f32 %v4412_v35, %v4392_v58  ;;  %v4372_v1 = vpop.f32.mrb[72].mxu0 }
 0x863   :  { %v4447_v38 = vmax.f32 %v4435_v3, 0.0  ;;  %v4387_v16 = vadd.f32 %v4372_v1, %v24005_v19  ;;  %v4374_v24 = vpop.f32.mrb[73].mxu0  ;;  %v5078_v19 = vsel %vm5070_vm15, 0.125, %v23071_v27  ;;  %v5156_v3 = vsel %vm5148_vm0, 0.125, %v23071_v27 }
 0x864   :  { %v4448_v13 = vmax.f32 %v4436_v53, 0.0  ;;  %v4388_v31 = vadd.f32 %v4374_v24, %v24009_v48  ;;  %18147 = vmatmul.mubr.msk.f32.vlgmr.msra.gmra.mrb[76].mxu0 %vm3321_vm13, %v4451_v17  ;;  %v5086_v8 = vadd.f32 %v5078_v19, %v5060_v20  ;;  %v24096_v1 = vadd.s32 256, %v23832_v23  ;;  %v20847_v24 = vld [vmem:[%s25446_s9 + $0xc8] sm:$0xff]  }
 0x865   :  { %v19848_v62 = vpack.c.bf16 %v4447_v38, %v4441_v25  ;;  %4608 = vmatprep.mubr.f32.mxu0 %v23071_v27  ;;  %v4431_v0 = vadd.f32 %v4416_v11, %v4387_v16 }
 0x866   :  { %v19845_v30 = vpack.c.bf16 %v4448_v13, %v4442_v28  ;;  %v4378_v63 = vpop.f32.mrb[74].mxu0  ;;  %v4432_v48 = vadd.f32 %v4420_v29, %v4388_v31  ;;  %v5112_v51 = vadd.f32 %v5104_v41, %v5086_v8  ;;  %vm4991_vm11 = vcmp.eq.s32.totalorder %v24096_v1, %v23839_v49  ;;  %v20856_v8 = vld [vmem:[%s25446_s9 + $0x98] sm:$0xff]  }
 0x867   :  { %v4393_v26 = vadd.f32 %v4378_v63, %v24013_v54  ;;  %v4380_v32 = vpop.f32.mrb[75].mxu0  ;;  %v4443_v44 = vmax.f32 %v4431_v0, 0.0  ;;  %vm5017_vm14 = vcmp.eq.s32.totalorder %v24096_v1, %v23841_v46  ;;  %v4999_v38 = vsel %vm4991_vm11, 0.125, %v23071_v27  ;;  %v20852_v0 = vld [vmem:[%s25446_s9 + $0x90] sm:$0xff]  }
 0x868   :  { %v4394_v59 = vadd.f32 %v4380_v32, %v24016_v61  ;;  %19847 = vmatprep.subr.msk.bf16.mxu0 %vm23721_vm12, %v19845_v30  ;;  %v4444_v40 = vmax.f32 %v4432_v48, 0.0  ;;  %v5138_v58 = vadd.f32 %v5130_v43, %v5112_v51  ;;  %v5025_v16 = vsel %vm5017_vm14, 0.125, %v23071_v27  ;;  %v20855_v48 = vld [vmem:[%s25446_s9 + $0xd8] sm:$0xff]  }
 0x869   :  { %v4437_v14 = vadd.f32 %v4416_v11, %v4393_v26  ;;  %19850 = vmatpush1.bf16.msk.msra.mxu0 %vm23721_vm12, %v19848_v62  ;;  %v24099_v11 = vadd.s32 896, %v23832_v23  ;;  %vm5043_vm3 = vcmp.eq.s32.totalorder %v24096_v1, %v23851_v52  ;;  %v5033_v31 = vadd.f32 %v5025_v16, %v4999_v38  ;;  %v20871_v16 = vld [vmem:[%s25446_s9 + $0xf8] sm:$0xff]  }
 0x86a   :  { %v4438_v35 = vadd.f32 %v4420_v29, %v4394_v59  ;;  %v5164_v53 = vadd.f32 %v5156_v3, %v5138_v58  ;;  %v20848_v29 = vld [vmem:[%s25446_s9 + $0x88] sm:$0xff]   ;;  %vm5095_vm14 = vcmp.eq.s32.totalorder %v24096_v1, %v23872_v12 }
 0x86b   :  { %v4449_v54 = vmax.f32 %v4437_v14, 0.0  ;;  %vm4996_vm15 = vcmp.eq.s32.totalorder %v24099_v11, %v23839_v49  ;;  %vm5022_vm1 = vcmp.eq.s32.totalorder %v24099_v11, %v23841_v46  ;;  %vm5048_vm0 = vcmp.eq.s32.totalorder %v24099_v11, %v23851_v52  ;;  %v20864_v3 = vld [vmem:[%s25446_s9 + $0xa8] sm:$0xff]  }
 0x86c   :  { %v4450_v45 = vmax.f32 %v4438_v35, 0.0  ;;  %18150 = vmatmul.mubr.msk.f32.vlgmr.msra.gmra.mrb[78].mxu0 %vm3321_vm13, %v4451_v17  ;;  %v5004_v28 = vsel %vm4996_vm15, 0.125, %v23071_v27  ;;  %v5030_v13 = vsel %vm5022_vm1, 0.125, %v23071_v27  ;;  %v5056_v63 = vsel %vm5048_vm0, 0.125, %v23071_v27 }
 0x86d   :  { %v19854_v61 = vpack.c.bf16 %v4449_v54, %v4443_v44  ;;  %4679 = vmatprep.mubr.f32.mxu0 %v23071_v27  ;;  %v5038_v20 = vadd.f32 %v5030_v13, %v5004_v28  ;;  %vm5074_vm11 = vcmp.eq.s32.totalorder %v24099_v11, %v23861_v21  ;;  %vm5100_vm15 = vcmp.eq.s32.totalorder %v24099_v11, %v23872_v12  ;;  %v20859_v44 = vld [vmem:[%s25446_s9 + $0xe0] sm:$0xff]   ;;  %v20872_v13 = vld [vmem:[%s25446_s9 + $0xb8] sm:$0xff]  }
 0x86e   :  { %v19851_v37 = vpack.c.bf16 %v4450_v45, %v4444_v40  ;;  %v5082_v59 = vsel %vm5074_vm11, 0.125, %v23071_v27  ;;  %v5103_v35 = vsel %vm5095_vm14, 0.125, %v23071_v27  ;;  %vm5121_vm1 = vcmp.eq.s32.totalorder %v24096_v1, %v23880_v9  ;;  %v20860_v45 = vld [vmem:[%s25446_s9 + $0xa0] sm:$0xff]  }
 0x86f   :  { %v5064_v32 = vadd.f32 %v5056_v63, %v5038_v20  ;;  %v5108_v54 = vsel %vm5100_vm15, 0.125, %v23071_v27  ;;  %vm5147_vm0 = vcmp.eq.s32.totalorder %v24096_v1, %v23890_v34  ;;  %vm5173_vm11 = vcmp.eq.s32.totalorder %v24096_v1, %v23898_v10  ;;  %v20877_v63 = vld [vmem:[%s25446_s9 + $0x190] sm:$0xff]  }
 0x870   :  { %19853 = vmatprep.subr.msk.bf16.mxu0 %vm23721_vm12, %v19851_v37  ;;  %vm5178_vm14 = vcmp.eq.s32.totalorder %v24099_v11, %v23898_v10  ;;  %vm5703_vm15 = vcmask 850944  }
 0x871   :  { %19856 = vmatpush1.bf16.msk.msra.mxu0 %vm23721_vm12, %v19854_v61  ;;  %v5090_v41 = vadd.f32 %v5082_v59, %v5064_v32  ;;  %v24190_v32 = vadd.s32 768, %v23832_v23  ;;  %v20882_v59 = vld [vmem:[%s25446_s9 + $0x1b8] sm:$0xff]  }
 0x872   :  { %19859 = vmatprep.subr.msk.bf16.mxu0 %vm23721_vm12, %v24035_v36  ;;  %v5182_v36 = vsel %vm5174_vm6, 0.125, %v23071_v27  ;;  %vm5069_vm6 = vcmp.eq.s32.totalorder %v24096_v1, %v23861_v21 }
 0x873   :  { %v5077_v26 = vsel %vm5069_vm6, 0.125, %v23071_v27  ;;  %v5116_v51 = vadd.f32 %v5108_v54, %v5090_v41  ;;  %vm5152_vm6 = vcmp.eq.s32.totalorder %v24099_v11, %v23890_v34  ;;  %v20883_v41 = vld [vmem:[%s25446_s9 + $0x1c0] sm:$0xff]  }
 0x874   :  { %18153 = vmatmul.mubr.msk.f32.vlgmr.msra.gmra.mrb[80].mxu0 %vm3321_vm13, %v4451_v17  ;;  %v20843_v17 = vld [vmem:[%s25446_s9 + $0xc0] sm:$0xff]  }
 0x875   :  { %19862 = vmatpush1.bf16.msk.msra.mxu0 %vm23721_vm12, %v24033_v22  ;;  %4754 = vmatprep.mubr.f32.mxu0 %v23071_v27  ;;  %v5190_v22 = vadd.f32 %v5182_v36, %v5164_v53  ;;  %v20867_v36 = vld [vmem:[%s25446_s9 + $0xf0] sm:$0xff]  }
 0x876   :  { %19865 = vmatprep.subr.msk.bf16.mxu0 %vm23721_vm12, %v19845_v30  ;;  %v20851_v30 = vld [vmem:[%s25446_s9 + $0xd0] sm:$0xff]  }
 0x877   :  { %v5198_v25 = vpack.c.bf16 %v5190_v22, %v5190_v22  ;;  %v5160_v22 = vsel %vm5152_vm6, 0.125, %v23071_v27  ;;  %vm5073_vm6 = vcmp.eq.s32.totalorder %v24190_v32, %v23861_v21 }
 0x878   :  { %18156 = vmatmul.mubr.msk.f32.vlgmr.msra.gmra.mrb[82].mxu0 %vm3321_vm13, %v4686_v15  ;;  %v5081_v54 = vsel %vm5073_vm6, 0.125, %v23071_v27  ;;  %vm25447_vm6 = vcmask 916480  }
 0x879   :  { %19868 = vmatpush1.bf16.msk.msra.mxu0 %vm23721_vm12, %v19848_v62  ;;  %4825 = vmatprep.mubr.f32.mxu0 %v23071_v27  ;;  %v5051_v62 = vsel %vm5043_vm3, 0.125, %v23071_v27  ;;  %vm5126_vm3 = vcmp.eq.s32.totalorder %v24099_v11, %v23880_v9 }
 0x87a   :  { %19871 = vmatprep.subr.msk.bf16.mxu0 %vm23721_vm12, %v19851_v37  ;;  %v5059_v19 = vadd.f32 %v5051_v62, %v5033_v31  ;;  %v20863_v37 = vld [vmem:[%s25446_s9 + $0xe8] sm:$0xff]   ;;  %v5134_v43 = vsel %vm5126_vm3, 0.125, %v23071_v27  ;;  %v20875_v62 = vld [vmem:[%s25446_s9 + $0x180] sm:$0xff]   ;;  %vm5021_vm3 = vcmp.eq.s32.totalorder %v24190_v32, %v23841_v46 }
 0x87b   :  { %v5142_v53 = vadd.f32 %v5134_v43, %v5116_v51 }
 0x87c   :  { %18159 = vmatmul.mubr.msk.f32.vlgmr.msra.gmra.mrb[84].mxu0 %vm3321_vm13, %v4686_v15  ;;  %v5085_v14 = vadd.f32 %v5077_v26, %v5059_v19  ;;  %v20878_v19 = vld [vmem:[%s25446_s9 + $0x198] sm:$0xff]   ;;  %v20880_v26 = vld [vmem:[%s25446_s9 + $0x1a8] sm:$0xff]  }
 0x87d   :  { %19874 = vmatpush1.bf16.msk.msra.mxu0 %vm23721_vm12, %v19854_v61  ;;  %4896 = vmatprep.mubr.f32.mxu0 %v23071_v27  ;;  %v5129_v61 = vsel %vm5121_vm1, 0.125, %v23071_v27  ;;  %v5168_v38 = vadd.f32 %v5160_v22, %v5142_v53  ;;  %vm4995_vm1 = vcmp.eq.s32.totalorder %v24190_v32, %v23839_v49  ;;  %v19415_v22 = vpop.f32.mrb[80].mxu1 }
 0x87e   :  { %19421 = vmatprep.subr.bf16.mxu0 %v20843_v17  ;;  %v5111_v40 = vadd.f32 %v5103_v35, %v5085_v14  ;;  %v5003_v14 = vsel %vm4995_vm1, 0.125, %v23071_v27  ;;  %vm5151_vm1 = vcmp.eq.s32.totalorder %v24190_v32, %v23890_v34 }
 0x87f   :  { %v5159_v43 = vsel %vm5151_vm1, 0.125, %v23071_v27 }
 0x880   :  { %18162 = vmatmul.mubr.msk.f32.vlgmr.msra.gmra.mrb[86].mxu0 %vm3321_vm13, %v4686_v15  ;;  %v5137_v58 = vadd.f32 %v5129_v61, %v5111_v40  ;;  %v5155_v15 = vsel %vm5147_vm0, 0.125, %v23071_v27  ;;  %vm5047_vm0 = vcmp.eq.s32.totalorder %v24190_v32, %v23851_v52  ;;  %v20885_v40 = vld [vmem:[%s25446_s9 + $0x1d0] sm:$0xff]   ;;  %v20886_v61 = vld [vmem:[%s25446_s9 + $0x1d8] sm:$0xff]  }
 0x881   :  { %19422 = vmatpush3.bf16.msra.mxu0 %v20844_v55  ;;  %5782 = vmatprep.mubr.bf16.mxu0 %v5198_v25  ;;  %v20868_v55 = vld [vmem:[%s25446_s9 + $0xb0] sm:$0xff]   ;;  %v5181_v25 = vsel %vm5173_vm11, 0.125, %v23071_v27  ;;  %v5055_v49 = vsel %vm5047_vm0, 0.125, %v23071_v27  ;;  %vm5099_vm11 = vcmp.eq.s32.totalorder %v24190_v32, %v23872_v12  ;;  %vm23078_vm0 = vmmov 0  }
 0x882   :  { %19423 = vmatprep.subr.bf16.mxu0 %v20847_v24  ;;  %v5163_v17 = vadd.f32 %v5155_v15, %v5137_v58  ;;  %v5186_v24 = vsel %vm5178_vm14, 0.125, %v23071_v27  ;;  %vm5125_vm14 = vcmp.eq.s32.totalorder %v24190_v32, %v23880_v9  ;;  %v20888_v58 = vld [vmem:[%s25446_s9 + $0x1e8] sm:$0xff]   ;;  %v20889_v15 = vld [vmem:[%s25446_s9 + $0x1f0] ss:$0 sps:$4 sm:$0xff]   ;;  %19707 = vmatprep.mubr.msk.bf16.mxu1 %vm23078_vm0, %v23071_v27 }
 0x883   :  { %v5194_v31 = vadd.f32 %v5186_v24, %v5168_v38  ;;  %v5133_v51 = vsel %vm5125_vm14, 0.125, %v23071_v27  ;;  %v5708_v34 = vsel %vm848_vm2, %v20889_v15, 0  ;;  %v20890_v38 = vld [vmem:[#allocation34] sm:$0xff]   ;;  %v20892_v24 = vld [vmem:[#allocation34 + $0x10] sm:$0xff]   ;;  %vm25449_vm14 = vcmask 1045504  }
 0x884   :  { %v5189_v28 = vadd.f32 %v5181_v25, %v5163_v17  ;;  %v19416_v17 = vpop.f32.mrb[81].mxu1  ;;  %19700 = vmatpush3.bf16.msra.mxu1 %v20890_v38  ;;  %v20903_v15 = vld [vmem:[#allocation30 + $0x30] ss:$8 sps:$4 sm:$0xff]   ;;  %vm25450_vm1 = vmmov %vm25449_vm14 }
 0x885   :  { %19424 = vmatpush3.bf16.msra.mxu0 %v20848_v29  ;;  %v5202_v20 = vpack.c.bf16 %v5194_v31, %v5194_v31  ;;  %19701 = vmatprep.subr.bf16.mxu1 %v23071_v27 }
 0x886   :  { %19425 = vmatprep.subr.bf16.mxu0 %v20851_v30  ;;  %v5197_v29 = vpack.c.bf16 %v5189_v28, %v5189_v28  ;;  %v20876_v30 = vld [vmem:[%s25446_s9 + $0x188] sm:$0xff]  }
 0x889   :  { %19426 = vmatpush3.bf16.msra.mxu0 %v20852_v0  ;;  %v20879_v0 = vld [vmem:[%s25446_s9 + $0x1a0] sm:$0xff]  }
 0x88a   :  { %19427 = vmatprep.subr.bf16.mxu0 %v20855_v48  ;;  %v20881_v48 = vld [vmem:[%s25446_s9 + $0x1b0] sm:$0xff]  }
 0x88d   :  { %19428 = vmatpush3.bf16.msra.mxu0 %v20856_v8  ;;  %v5029_v8 = vsel %vm5021_vm3, 0.125, %v23071_v27  ;;  %vm5177_vm3 = vcmp.eq.s32.totalorder %v24190_v32, %v23898_v10  ;;  %v19418_v10 = vpop.f32.mrb[82].mxu1 }
 0x88e   :  { %19429 = vmatprep.subr.bf16.mxu0 %v20859_v44  ;;  %v5037_v35 = vadd.f32 %v5029_v8, %v5003_v14  ;;  %v20884_v44 = vld [vmem:[%s25446_s9 + $0x1c8] sm:$0xff]   ;;  %v19419_v25 = vpop.f32.mrb[83].mxu1  ;;  %v20912_v10 = vld [vmem:[#allocation30 + $0x60] ss:$8 sps:$4 sm:$0xff]  }
 0x88f   :  { %v20917_v25 = vld [vmem:[#allocation30 + $0x74] ss:$8 sps:$4 sm:$0xff]  }
 0x890   :  { %v5063_v46 = vadd.f32 %v5055_v49, %v5037_v35 }
 0x891   :  { %19430 = vmatpush3.bf16.msra.mxu0 %v20860_v45  ;;  %v5107_v45 = vsel %vm5099_vm11, 0.125, %v23071_v27  ;;  %vm25448_vm11 = vcmask 261120  }
 0x892   :  { %19431 = vmatprep.subr.bf16.mxu0 %v20863_v37  ;;  %v5089_v52 = vadd.f32 %v5081_v54, %v5063_v46  ;;  %v20887_v37 = vld [vmem:[%s25446_s9 + $0x1e0] sm:$0xff]  }
 0x894   :  { %v5115_v21 = vadd.f32 %v5107_v45, %v5089_v52 }
 0x895   :  { %19432 = vmatpush3.bf16.msra.mxu0 %v20864_v3  ;;  %v5185_v3 = vsel %vm5177_vm3, 0.125, %v23071_v27  ;;  %vm25451_vm3 = vcmask 228352  }
 0x896   :  { %19433 = vmatprep.subr.bf16.mxu0 %v20867_v36  ;;  %v5141_v12 = vadd.f32 %v5133_v51, %v5115_v21  ;;  %v20894_v51 = vld [vmem:[#allocation30] ss:$8 sps:$4 sm:$0xff]  }
 0x898   :  { %v5167_v9 = vadd.f32 %v5159_v43, %v5141_v12  ;;  %v20896_v12 = vld [vmem:[#allocation30 + $0x4] ss:$8 sps:$4 sm:$0xff]   ;;  %v20897_v43 = vld [vmem:[#allocation30 + $0x10] ss:$8 sps:$4 sm:$0xff]  }
 0x899   :  { %19434 = vmatpush3.bf16.msra.mxu0 %v20868_v55  ;;  %v24235_v55 = vadd.f32 %v19416_v17, %v19415_v22  ;;  %v20909_v22 = vld [vmem:[#allocation30 + $0x50] ss:$8 sps:$4 sm:$0xff]   ;;  %v20914_v17 = vld [vmem:[#allocation30 + $0x64] ss:$8 sps:$4 sm:$0xff]  }
 0x89a   :  { %19435 = vmatprep.subr.bf16.mxu0 %v20871_v16  ;;  %v5193_v53 = vadd.f32 %v5185_v3, %v5167_v9  ;;  %v20891_v16 = vld [vmem:[#allocation34 + $0x8] sm:$0xff]   ;;  %v20902_v9 = vld [vmem:[#allocation30 + $0x24] ss:$8 sps:$4 sm:$0xff]  }
 0x89b   :  { %19702 = vmatpush3.bf16.msra.mxu1 %v20891_v16  ;;  %v20905_v3 = vld [vmem:[#allocation30 + $0x34] ss:$8 sps:$4 sm:$0xff]  }
 0x89c   :  { %v5201_v36 = vpack.c.bf16 %v5193_v53, %v5193_v53  ;;  %19703 = vmatprep.subr.bf16.mxu1 %v23071_v27  ;;  %v20908_v53 = vld [vmem:[#allocation30 + $0x44] ss:$8 sps:$4 sm:$0xff]  }
 0x89d   :  { %19436 = vmatpush3.bf16.msra.mxu0 %v20872_v13 }
 0x89e   :  { %5830 = vmatprep.subr.bf16.mxu0 %v23070_v2 }
 0x89f   :  { %19704 = vmatpush3.bf16.msra.mxu1 %v20892_v24  ;;  %v20915_v24 = vld [vmem:[#allocation30 + $0x70] ss:$8 sps:$4 sm:$0xff]  }
 0x8a0   :  { %5783 = vmatmul.mubr.bf16.vlgmr.msra.gmra.mrb[88].mxu0 %v5197_v29  ;;  %19705 = vmatprep.subr.bf16.mxu1 %v23071_v27 }
 0x8a1   :  { %5831 = vmatpush1.bf16.msra.mxu0 %v20875_v62  ;;  %18233 = vmatprep.mubr.msk.bf16.mxu0 %vm5703_vm15, %v5202_v20  ;;  %v20893_v20 = vld [vmem:[#allocation34 + $0x18] sm:$0xff]  }
 0x8a2   :  { %5832 = vmatprep.subr.bf16.mxu0 %v23070_v2 }
 0x8a3   :  { %19706 = vmatpush3.bf16.msra.mxu1 %v20893_v20 }
 0x8a5   :  { %5833 = vmatpush1.bf16.msra.mxu0 %v20876_v30 }
 0x8a6   :  { %5834 = vmatprep.subr.bf16.mxu0 %v23070_v2 }
 0x8a9   :  { %5835 = vmatpush1.bf16.msra.mxu0 %v20877_v63 }
 0x8aa   :  { %5836 = vmatprep.subr.bf16.mxu0 %v23070_v2 }
 0x8ad   :  { %5837 = vmatpush1.bf16.msra.mxu0 %v20878_v19 }
 0x8ae   :  { %5838 = vmatprep.subr.bf16.mxu0 %v23070_v2 }
 0x8b1   :  { %5839 = vmatpush1.bf16.msra.mxu0 %v20879_v0 }
 0x8b2   :  { %5840 = vmatprep.subr.bf16.mxu0 %v23070_v2 }
 0x8b5   :  { %5841 = vmatpush1.bf16.msra.mxu0 %v20880_v26 }
 0x8b6   :  { %5842 = vmatprep.subr.bf16.mxu0 %v23070_v2 }
 0x8b9   :  { %5843 = vmatpush1.bf16.msra.mxu0 %v20881_v48 }
 0x8ba   :  { %5844 = vmatprep.subr.bf16.mxu0 %v23070_v2 }
 0x8bd   :  { %5845 = vmatpush1.bf16.msra.mxu0 %v20882_v59 }
 0x8be   :  { %5846 = vmatprep.subr.bf16.mxu0 %v23070_v2 }
 0x8c1   :  { %5847 = vmatpush1.bf16.msra.mxu0 %v20883_v41 }
 0x8c2   :  { %5848 = vmatprep.subr.bf16.mxu0 %v23070_v2 }
 0x8c5   :  { %5849 = vmatpush1.bf16.msra.mxu0 %v20884_v44 }
 0x8c6   :  { %5850 = vmatprep.subr.bf16.mxu0 %v23070_v2 }
 0x8c9   :  { %5851 = vmatpush1.bf16.msra.mxu0 %v20885_v40 }
 0x8ca   :  { %5852 = vmatprep.subr.bf16.mxu0 %v23070_v2 }
 0x8cd   :  { %5853 = vmatpush1.bf16.msra.mxu0 %v20886_v61 }
 0x8ce   :  { %5854 = vmatprep.subr.bf16.mxu0 %v23070_v2 }
 0x8d1   :  { %5855 = vmatpush1.bf16.msra.mxu0 %v20887_v37  ;;  %v20899_v37 = vld [vmem:[#allocation30 + $0x14] ss:$8 sps:$4 sm:$0xff]  }
 0x8d2   :  { %5856 = vmatprep.subr.bf16.mxu0 %v23070_v2 }
 0x8d5   :  { %5857 = vmatpush1.bf16.msra.mxu0 %v20888_v58  ;;  %v20900_v58 = vld [vmem:[#allocation30 + $0x20] ss:$8 sps:$4 sm:$0xff]  }
 0x8d6   :  { %5858 = vmatprep.subr.bf16.mxu0 %v23070_v2 }
 0x8d9   :  { %5859 = vmatpush1.bf16.msra.mxu0 %v5708_v34  ;;  %v20906_v34 = vld [vmem:[#allocation30 + $0x40] ss:$8 sps:$4 sm:$0xff]  }
 0x8da   :  { %6361 = vmatprep.subr.bf16.mxu0 %v20896_v12  ;;  %v20938_v12 = vld [vmem:[#allocation30 + $0xe4] ss:$8 sps:$4 sm:$0xff]  }
 0x8dc   :  { %5863 = vmatmul.mubr.bf16.vlgmr.msra.gmra.mrb[92].mxu0 %v5201_v36  ;;  %v20911_v36 = vld [vmem:[#allocation30 + $0x54] ss:$8 sps:$4 sm:$0xff]  }
 0x8dd   :  { %6362 = vmatpush1.bf16.msra.mxu0 %v20894_v51  ;;  %v20933_v51 = vld [vmem:[#allocation30 + $0xd0] ss:$8 sps:$4 sm:$0xff]  }
 0x8de   :  { %6363 = vmatprep.subr.bf16.mxu0 %v20899_v37  ;;  %v20936_v37 = vld [vmem:[#allocation30 + $0xe0] ss:$8 sps:$4 sm:$0xff]  }
 0x8e1   :  { %6364 = vmatpush1.bf16.msra.mxu0 %v20897_v43 }
 0x8e2   :  { %6365 = vmatprep.subr.bf16.mxu0 %v20902_v9 }
 0x8e5   :  { %6366 = vmatpush1.bf16.msra.mxu0 %v20900_v58 }
 0x8e6   :  { %6367 = vmatprep.subr.bf16.mxu0 %v20905_v3  ;;  %v20941_v3 = vld [vmem:[#allocation30 + $0xf4] ss:$8 sps:$4 sm:$0xff]  }
 0x8e9   :  { %6368 = vmatpush1.bf16.msra.mxu0 %v20903_v15  ;;  %v20939_v15 = vld [vmem:[#allocation30 + $0xf0] ss:$8 sps:$4 sm:$0xff]  }
 0x8ea   :  { %6369 = vmatprep.subr.bf16.mxu0 %v20908_v53 }
 0x8ed   :  { %6370 = vmatpush1.bf16.msra.mxu0 %v20906_v34 }
 0x8ee   :  { %6371 = vmatprep.subr.bf16.mxu0 %v20911_v36 }
 0x8f1   :  { %6372 = vmatpush1.bf16.msra.mxu0 %v20909_v22 }
 0x8f2   :  { %6373 = vmatprep.subr.bf16.mxu0 %v20914_v17 }
 0x8f5   :  { %6374 = vmatpush1.bf16.msra.mxu0 %v20912_v10  ;;  %v20944_v10 = vld [vmem:[#allocation30 + $0x104] ss:$8 sps:$4 sm:$0xff]  }
 0x8f6   :  { %6375 = vmatprep.subr.bf16.mxu0 %v20917_v25 }
 0x8f9   :  { %v19459_v28 = vpop.f32.mrb[84].mxu1  ;;  %6376 = vmatpush1.bf16.msra.mxu0 %v20915_v24 }
 0x8fa   :  { %v19460_v13 = vpop.f32.mrb[85].mxu1 }
 0x8fb   :  { %v24240_v31 = vadd.f32 %v19460_v13, %v19459_v28  ;;  %v19462_v29 = vpop.f32.mrb[86].mxu1 }
 0x8fc   :  { %v19463_v62 = vpop.f32.mrb[87].mxu1  ;;  %v20920_v29 = vld [vmem:[#allocation30 + $0x84] ss:$8 sps:$4 sm:$0xff]  }
 0x8fd   :  { %6377 = vmatprep.subr.bf16.mxu0 %v20920_v29 }
 0x937   :  { %v4539_v30 = vpop.f32.mrb[76].mxu0 }
 0x938   :  { %v4541_v63 = vpop.f32.mrb[77].mxu0 }
 0x93f   :  { %v4610_v19 = vpop.f32.mrb[78].mxu0 }
 0x940   :  { %v4612_v0 = vpop.f32.mrb[79].mxu0 }
 0x947   :  { %v4681_v26 = vpop.f32.mrb[80].mxu0 }
 0x948   :  { %v4683_v48 = vpop.f32.mrb[81].mxu0 }
 0x94b   :  { %v4756_v59 = vpop.f32.mrb[82].mxu0 }
 0x94c   :  { %v24244_v14 = vmax.f32 %v4539_v30, %v4756_v59  ;;  %v4758_v8 = vpop.f32.mrb[83].mxu0  ;;  %v20918_v30 = vld [vmem:[#allocation30 + $0x80] ss:$8 sps:$4 sm:$0xff]   ;;  %v20929_v59 = vld [vmem:[#allocation30 + $0xb4] ss:$8 sps:$4 sm:$0xff]  }
 0x94d   :  { %v24246_v35 = vmax.f32 %v4541_v63, %v4758_v8  ;;  %6378 = vmatpush1.bf16.msra.mxu0 %v20918_v30  ;;  %v20927_v8 = vld [vmem:[#allocation30 + $0xb0] ss:$8 sps:$4 sm:$0xff]   ;;  %v20971_v30 = vld [vmem:[#allocation31 + $0x4] ss:$8 sps:$4 sm:$0xff]  }
 0x94e   :  { %6046 = vmatprep.subr.bf16.mxu1 %v20971_v30  ;;  %v20959_v30 = vld [vmem:[#allocation30 + $0x2a4] ss:$8 sps:$4 sm:$0xff]  }
 0x94f   :  { %v4827_v41 = vpop.f32.mrb[84].mxu0 }
 0x950   :  { %v24248_v49 = vmax.f32 %v4610_v19, %v4827_v41  ;;  %v4829_v46 = vpop.f32.mrb[85].mxu0  ;;  %v20923_v19 = vld [vmem:[#allocation30 + $0x94] ss:$8 sps:$4 sm:$0xff]   ;;  %v20932_v41 = vld [vmem:[#allocation30 + $0xc4] ss:$8 sps:$4 sm:$0xff]  }
 0x951   :  { %v24250_v44 = vmax.f32 %v4612_v0, %v4829_v46  ;;  %v20921_v0 = vld [vmem:[#allocation30 + $0x90] ss:$8 sps:$4 sm:$0xff]   ;;  %6379 = vmatprep.subr.bf16.mxu0 %v20923_v19  ;;  %v20977_v19 = vld [vmem:[#allocation31 + $0x14] ss:$8 sps:$4 sm:$0xff]  }
 0x952   :  { %v20303_v54 = vpack.i.bf16 %v24248_v49, %v24246_v35  ;;  %6380 = vmatpush1.bf16.msra.mxu0 %v20921_v0  ;;  %v20981_v0 = vld [vmem:[#allocation31 + $0x20] ss:$8 sps:$4 sm:$0xff]  }
 0x953   :  { %v4898_v52 = vpop.f32.mrb[86].mxu0 }
 0x954   :  { %v24254_v40 = vmax.f32 %v4681_v26, %v4898_v52  ;;  %20304 = vrot.lane.b32.xlu0 %v20303_v54, %s23075_s16  ;;  %v4900_v45 = vpop.f32.mrb[87].mxu0  ;;  %v20926_v26 = vld [vmem:[#allocation30 + $0xa4] ss:$8 sps:$4 sm:$0xff]  }
 0x955   :  { %v4908_v21 = vmax.f32 %v4683_v48, %v4900_v45  ;;  %v20924_v48 = vld [vmem:[#allocation30 + $0xa0] ss:$8 sps:$4 sm:$0xff]   ;;  %6381 = vmatprep.subr.bf16.mxu0 %v20926_v26 }
 0x956   :  { %v20308_v61 = vpack.i.bf16 %v24254_v40, %v24250_v44  ;;  %6382 = vmatpush1.bf16.msra.mxu0 %v20924_v48  ;;  %v20987_v26 = vld [vmem:[#allocation31 + $0x30] ss:$8 sps:$4 sm:$0xff]   ;;  %v20989_v48 = vld [vmem:[#allocation31 + $0x34] ss:$8 sps:$4 sm:$0xff]  }
 0x957   :  { %6383 = vmatprep.subr.bf16.mxu0 %v20929_v59  ;;  %v20993_v59 = vld [vmem:[#allocation31 + $0x40] ss:$8 sps:$4 sm:$0xff]  }
 0x958   :  { %20309 = vrot.lane.b32.xlu1 %v20308_v61, %s23075_s16  ;;  %4940 = vrot.lane.b32.xlu0 %v4908_v21, %s23075_s16  ;;  %v20935_v61 = vld [vmem:[#allocation30 + $0xd4] ss:$8 sps:$4 sm:$0xff]  }
 0x95a   :  { %6384 = vmatpush1.bf16.msra.mxu0 %v20927_v8  ;;  %v20999_v8 = vld [vmem:[#allocation31 + $0x50] ss:$8 sps:$4 sm:$0xff]  }
 0x95b   :  { %6385 = vmatprep.subr.bf16.mxu0 %v20932_v41  ;;  %v21001_v41 = vld [vmem:[#allocation31 + $0x54] ss:$8 sps:$4 sm:$0xff]  }
 0x973   :  { %v19437_v38 = vpop.f32.mrb[88].mxu0 }
 0x974   :  { %v19438_v16 = vpop.f32.mrb[89].mxu0 }
 0x975   :  { %v19439_v28 = vadd.f32 %v19438_v16, %v19437_v38  ;;  %v19440_v13 = vpop.f32.mrb[90].mxu0 }
 0x976   :  { %v19441_v62 = vpop.f32.mrb[91].mxu0 }
 0x977   :  { %v5785_v20 = vadd.f32 %v19439_v28, %v24235_v55  ;;  %v20930_v55 = vld [vmem:[#allocation30 + $0xc0] ss:$8 sps:$4 sm:$0xff]  }
 0x978   :  { %6386 = vmatpush1.bf16.msra.mxu0 %v20930_v55  ;;  %v21005_v55 = vld [vmem:[#allocation31 + $0x60] ss:$8 sps:$4 sm:$0xff]  }
 0x979   :  { %v5825_v63 = vadd.f32 %v24240_v31, %v5785_v20  ;;  %6387 = vmatprep.subr.bf16.mxu0 %v20935_v61 }
 0x97c   :  { %6388 = vmatpush1.bf16.msra.mxu0 %v20933_v51 }
 0x97d   :  { %6389 = vmatprep.subr.bf16.mxu0 %v20938_v12 }
 0x980   :  { %6390 = vmatpush1.bf16.msra.mxu0 %v20936_v37 }
 0x981   :  { %6391 = vmatprep.subr.bf16.mxu0 %v20941_v3 }
 0x984   :  { %6392 = vmatpush1.bf16.msra.mxu0 %v20939_v15 }
 0x985   :  { %6402 = vmatprep.subr.bf16.mxu0 %v20944_v10  ;;  %v20942_v10 = vld [vmem:[#allocation30 + $0x100] ss:$8 sps:$4 sm:$0xff]  }
 0x9af   :  { %v5864_v46 = vpop.f32.mrb[92].mxu0 }
 0x9b0   :  { %v5865_v31 = vadd.f32 %v5864_v46, %v5825_v63  ;;  %v5866_v54 = vpop.f32.mrb[93].mxu0  ;;  %v20975_v63 = vld [vmem:[#allocation31 + $0x10] ss:$8 sps:$4 sm:$0xff]   ;;  %v21007_v46 = vld [vmem:[#allocation31 + $0x64] ss:$8 sps:$4 sm:$0xff]  }
 0x9b1   :  { %v5867_v52 = vpop.f32.mrb[94].mxu0  ;;  %v21011_v54 = vld [vmem:[#allocation31 + $0x70] ss:$8 sps:$4 sm:$0xff]  }
 0x9b2   :  { %v5870_v45 = vpack.c.bf16 %v5865_v31, %v5865_v31  ;;  %v5868_v21 = vpop.f32.mrb[95].mxu0  ;;  %v21013_v31 = vld [vmem:[#allocation31 + $0x74] ss:$8 sps:$4 sm:$0xff]   ;;  %v21019_v52 = vld [vmem:[#allocation30 + $0x154] ss:$8 sps:$4 sm:$0xff]  }
 0x9b4   :  { %19708 = vmatmul.mubr.msk.bf16.vlgmr.msra.gmra.mrb[88].mxu1 %vm1942_vm8, %v5870_v45 }
 0x9b5   :  { %6078 = vmatprep.mubr.bf16.mxu1 %v23070_v2 }
 0x9c6   :  { %v20305_v43 = vpop.permute.xlu0 %20304 }
 0x9c7   :  { %v20307_v9 = vunpack.i.h.bf16 %v20305_v43  ;;  %v20306_v58 = vunpack.i.l.bf16 %v20305_v43 }
 0x9c9   :  { %v4919_v53 = vmax.f32 %v24246_v35, %v20306_v58  ;;  %v4918_v34 = vmax.f32 %v24244_v14, %v20306_v58  ;;  %v4923_v22 = vsel %vm1945_vm9, %v20306_v58, %v20307_v9  ;;  %v4927_v16 = vmax.f32 %v24248_v49, %v20307_v9  ;;  %v20969_v49 = vld [vmem:[#allocation31] ss:$8 sps:$4 sm:$0xff]  }
 0x9ca   :  { %v20310_v36 = vpop.permute.xlu1 %20309  ;;  %v4925_v38 = vmax.f32 %v24246_v35, %v4923_v22  ;;  %v4941_v28 = vpop.permute.xlu0 %4940  ;;  %6047 = vmatpush1.bf16.msra.mxu1 %v20969_v49 }
 0x9cb   :  { %4949 = vrot.lane.b32.xlu0 %v4919_v53, %s23075_s16  ;;  %v20313_v17 = vpack.i.bf16 %v4918_v34, %v24244_v14  ;;  %v20312_v25 = vunpack.i.h.bf16 %v20310_v36  ;;  %v20311_v24 = vunpack.i.l.bf16 %v20310_v36  ;;  %6048 = vmatprep.subr.bf16.mxu1 %v20977_v19  ;;  %v20957_v19 = vld [vmem:[#allocation30 + $0x2a0] ss:$8 sps:$4 sm:$0xff]  }
 0x9cd   :  { %20314 = vrot.lane.b32.xlu1 %v20313_v17, %s23075_s16  ;;  %v4937_v13 = vmax.f32 %v24250_v44, %v20312_v25  ;;  %v4942_v29 = vsel %vm1945_vm9, %v20312_v25, %v4941_v28  ;;  %v4932_v62 = vmax.f32 %v24250_v44, %v20311_v24  ;;  %v4938_v35 = vmax.f32 %v24254_v40, %v20312_v25  ;;  %v20983_v44 = vld [vmem:[#allocation31 + $0x24] ss:$8 sps:$4 sm:$0xff]   ;;  %v20948_v24 = vld [vmem:[#allocation30 + $0x120] ss:$8 sps:$4 sm:$0xff]  }
 0x9ce   :  { %v4944_v20 = vmax.f32 %v24254_v40, %v4942_v29  ;;  %6049 = vmatpush1.bf16.msra.mxu1 %v20975_v63  ;;  %v20995_v40 = vld [vmem:[#allocation31 + $0x44] ss:$8 sps:$4 sm:$0xff]   ;;  %v20951_v29 = vld [vmem:[#allocation30 + $0x130] ss:$8 sps:$4 sm:$0xff]  }
 0x9cf   :  { %4954 = vrot.lane.b32.xlu0 %v4925_v38, %s23077_s8  ;;  %6050 = vmatprep.subr.bf16.mxu1 %v20983_v44  ;;  %v20947_v25 = vld [vmem:[#allocation30 + $0x114] ss:$8 sps:$4 sm:$0xff]   ;;  %v20945_v38 = vld [vmem:[#allocation30 + $0x110] ss:$8 sps:$4 sm:$0xff]  }
 0x9d0   :  { %v20953_v28 = vld [vmem:[#allocation30 + $0x134] ss:$8 sps:$4 sm:$0xff]  }
 0x9d1   :  { %4958 = vrot.lane.b32.xlu1 %v4927_v16, %s23073_s30  ;;  %v20950_v16 = vld [vmem:[#allocation30 + $0x124] ss:$8 sps:$4 sm:$0xff]   ;;  %v20962_v44 = vld [vmem:[#allocation30 + $0x2b4] ss:$8 sps:$4 sm:$0xff]  }
 0x9d2   :  { %6051 = vmatpush1.bf16.msra.mxu1 %v20981_v0 }
 0x9d3   :  { %4967 = vrot.lane.b32.xlu0 %v4937_v13, %s23038_s28  ;;  %6052 = vmatprep.subr.bf16.mxu1 %v20989_v48  ;;  %v20960_v48 = vld [vmem:[#allocation30 + $0x2b0] ss:$8 sps:$4 sm:$0xff]  }
 0x9d5   :  { %4962 = vrot.lane.b32.xlu1 %v4932_v62, %s23051_s22  ;;  %v20956_v62 = vld [vmem:[#allocation30 + $0x144] ss:$8 sps:$4 sm:$0xff]  }
 0x9d6   :  { %6053 = vmatpush1.bf16.msra.mxu1 %v20987_v26 }
 0x9d7   :  { %4975 = vrot.lane.b32.xlu0 %v4944_v20, %s23074_s15  ;;  %6054 = vmatprep.subr.bf16.mxu1 %v20995_v40  ;;  %v20963_v40 = vld [vmem:[#allocation30 + $0x2c0] ss:$8 sps:$4 sm:$0xff]  }
 0x9d9   :  { %4969 = vrot.lane.b32.xlu1 %v4938_v35, %s23038_s28  ;;  %v20954_v35 = vld [vmem:[#allocation30 + $0x140] ss:$8 sps:$4 sm:$0xff]  }
 0x9da   :  { %6055 = vmatpush1.bf16.msra.mxu1 %v20993_v59  ;;  %v20965_v59 = vld [vmem:[#allocation30 + $0x2c4] ss:$8 sps:$4 sm:$0xff]  }
 0x9db   :  { %6056 = vmatprep.subr.bf16.mxu1 %v21001_v41  ;;  %v20966_v41 = vld [vmem:[#allocation30 + $0x2d0] ss:$8 sps:$4 sm:$0xff]  }
 0x9de   :  { %6057 = vmatpush1.bf16.msra.mxu1 %v20999_v8  ;;  %v20968_v8 = vld [vmem:[#allocation30 + $0x2d4] ss:$8 sps:$4 sm:$0xff]  }
 0x9df   :  { %6058 = vmatprep.subr.bf16.mxu1 %v21007_v46  ;;  %v20972_v46 = vld [vmem:[#allocation30 + $0x2e0] ss:$8 sps:$4 sm:$0xff]  }
 0x9e2   :  { %6059 = vmatpush1.bf16.msra.mxu1 %v21005_v55  ;;  %v20974_v55 = vld [vmem:[#allocation30 + $0x2e4] ss:$8 sps:$4 sm:$0xff]  }
 0x9e3   :  { %6060 = vmatprep.subr.bf16.mxu1 %v21013_v31  ;;  %v20980_v31 = vld [vmem:[#allocation30 + $0x2f4] ss:$8 sps:$4 sm:$0xff]  }
 0x9e6   :  { %6061 = vmatpush1.bf16.msra.mxu1 %v21011_v54  ;;  %v20978_v54 = vld [vmem:[#allocation30 + $0x2f0] ss:$8 sps:$4 sm:$0xff]  }
 0x9e7   :  { %6727 = vmatprep.subr.bf16.mxu1 %v21019_v52  ;;  %v20986_v52 = vld [vmem:[#allocation30 + $0x304] ss:$8 sps:$4 sm:$0xff]  }
 0xa3d   :  { %v4950_v45 = vpop.permute.xlu0 %4949 }
 0xa3f   :  { %v20315_v21 = vpop.permute.xlu1 %20314 }
 0xa40   :  { %v20317_v61 = vunpack.i.h.bf16 %v20315_v21  ;;  %v20316_v51 = vunpack.i.l.bf16 %v20315_v21  ;;  %v20992_v21 = vld [vmem:[#allocation30 + $0x314] ss:$8 sps:$4 sm:$0xff]  }
 0xa41   :  { %v4955_v43 = vpop.permute.xlu0 %4954 }
 0xa42   :  { %v4913_v12 = vmax.f32 %v24244_v14, %v20316_v51  ;;  %v4951_v37 = vsel %vm1945_vm9, %v20317_v61, %v4950_v45  ;;  %v20984_v45 = vld [vmem:[#allocation30 + $0x300] ss:$8 sps:$4 sm:$0xff]   ;;  %v20990_v61 = vld [vmem:[#allocation30 + $0x310] ss:$8 sps:$4 sm:$0xff]   ;;  %v20998_v51 = vld [vmem:[#allocation30 + $0x324] ss:$8 sps:$4 sm:$0xff]  }
 0xa43   :  { %v4959_v9 = vpop.permute.xlu1 %4958 }
 0xa44   :  { %v4978_v58 = vsel %vm1939_vm7, %v4913_v12, %v4951_v37  ;;  %v4980_v3 = vsel %vm1933_vm5, %v4955_v43, %v4959_v9  ;;  %v20996_v12 = vld [vmem:[#allocation30 + $0x320] ss:$8 sps:$4 sm:$0xff]   ;;  %v21004_v37 = vld [vmem:[#allocation30 + $0x334] ss:$8 sps:$4 sm:$0xff]   ;;  %v21010_v9 = vld [vmem:[#allocation30 + $0x344] ss:$8 sps:$4 sm:$0xff]  }
 0xa45   :  { %v4979_v53 = vsel %vm1948_vm10, %v4978_v58, %v4955_v43  ;;  %v4968_v34 = vpop.permute.xlu0 %4967  ;;  %v21002_v43 = vld [vmem:[#allocation30 + $0x330] ss:$8 sps:$4 sm:$0xff]  }
 0xa46   :  { %v24293_v14 = vpack.c.bf16 %v4979_v53, %v4979_v53  ;;  %v5879_v58 = vld [vmem:[#allocation36] sm:$0x1]  ;;  %v21016_v53 = vld [vmem:[#allocation30 + $0x354] ss:$8 sps:$4 sm:$0xff]  }
 0xa47   :  { %v4963_v15 = vpop.permute.xlu1 %4962 }
 0xa48   :  { %v4981_v36 = vsel %vm1942_vm8, %v4980_v3, %v4963_v15  ;;  %v21008_v3 = vld [vmem:[#allocation30 + $0x340] ss:$8 sps:$4 sm:$0xff]  }
 0xa49   :  { %v4982_v22 = vsel %vm25447_vm6, %v4981_v36, %v4968_v34  ;;  %v4976_v49 = vpop.permute.xlu0 %4975  ;;  %vm25452_vm6 = vmmov %vm25450_vm1 }
 0xa4a   :  { %v24291_v17 = vpack.c.bf16 %v4982_v22, %v4982_v22 }
 0xa4b   :  { %v4970_v13 = vpop.permute.xlu1 %4969 }
 0xa4c   :  { %6393 = vmatprep.mubr.bf16.mxu0 %v24291_v17  ;;  %v4971_v20 = vsel %vm1933_vm5, %v4968_v34, %v4970_v13  ;;  %v6874_v26 = vrot.slane %v24291_v17, 1  ;;  %v21025_v13 = vld [vmem:[#allocation30 + $0x164] ss:$8 sps:$4 sm:$0xff]  }
 0xa4d   :  { %6394 = vmatmul.mubr.bf16.vlgmr.msra.gmra.mrb[96].mxu0 %v24293_v14  ;;  %v4983_v63 = vsel %vm25448_vm11, %v4971_v20, %v4976_v49  ;;  %v21023_v20 = vld [vmem:[#allocation30 + $0x160] ss:$8 sps:$4 sm:$0xff]   ;;  %v21031_v49 = vld [vmem:[#allocation30 + $0x174] ss:$8 sps:$4 sm:$0xff]   ;;  %vm25453_vm11 = vmmov %vm25450_vm1 }
 0xa4e   :  { %6403 = vmatpush1.bf16.msra.mxu0 %v20942_v10  ;;  %6434 = vmatprep.mubr.bf16.mxu0 %v23070_v2  ;;  %v24300_v0 = vpack.c.bf16 %v4983_v63, %v4983_v63  ;;  %v21029_v63 = vld [vmem:[#allocation30 + $0x170] ss:$8 sps:$4 sm:$0xff]  }
 0xa4f   :  { %6404 = vmatprep.subr.bf16.mxu0 %v20947_v25 }
 0xa52   :  { %6405 = vmatpush1.bf16.msra.mxu0 %v20945_v38  ;;  %v21014_v38 = vld [vmem:[#allocation30 + $0x350] ss:$8 sps:$4 sm:$0xff]  }
 0xa53   :  { %6406 = vmatprep.subr.bf16.mxu0 %v20950_v16  ;;  %v21017_v16 = vld [vmem:[#allocation30 + $0x150] ss:$8 sps:$4 sm:$0xff]  }
 0xa56   :  { %6407 = vmatpush1.bf16.msra.mxu0 %v20948_v24 }
 0xa57   :  { %6408 = vmatprep.subr.bf16.mxu0 %v20953_v28  ;;  %v21022_v28 = vld [vmem:[#allocation30 + $0x364] ss:$8 sps:$4 sm:$0xff]  }
 0xa5a   :  { %6409 = vmatpush1.bf16.msra.mxu0 %v20951_v29  ;;  %v24306_v29 = vshrl.u32 %v24291_v17, 16 }
 0xa5b   :  { %6410 = vmatprep.subr.bf16.mxu0 %v20956_v62  ;;  %v21020_v62 = vld [vmem:[#allocation30 + $0x360] ss:$8 sps:$4 sm:$0xff]  }
 0xa5e   :  { %6411 = vmatpush1.bf16.msra.mxu0 %v20954_v35  ;;  %v21028_v35 = vld [vmem:[#allocation30 + $0x374] ss:$8 sps:$4 sm:$0xff]  }
 0xa5f   :  { %7091 = vmatprep.subr.bf16.mxu0 %v20959_v30  ;;  %v21026_v30 = vld [vmem:[#allocation30 + $0x370] ss:$8 sps:$4 sm:$0xff]  }
 0xa61   :  { %18297 = vmatmul.mubr.msk.bf16.vlgmr.msra.gmra.mrb[96].mxu0 %vm1945_vm9, %v24300_v0 }
 0xa62   :  { %7092 = vmatpush1.bf16.msra.mxu0 %v20957_v19  ;;  %7123 = vmatprep.mubr.bf16.mxu0 %v6874_v26  ;;  %v21034_v19 = vld [vmem:[#allocation30 + $0x384] ss:$8 sps:$4 sm:$0xff]   ;;  %v21032_v26 = vld [vmem:[#allocation30 + $0x380] ss:$8 sps:$4 sm:$0xff]  }
 0xa63   :  { %7093 = vmatprep.subr.bf16.mxu0 %v20962_v44  ;;  %v21037_v44 = vld [vmem:[#allocation30 + $0x184] ss:$8 sps:$4 sm:$0xff]  }
 0xa66   :  { %7094 = vmatpush1.bf16.msra.mxu0 %v20960_v48  ;;  %v21035_v48 = vld [vmem:[#allocation30 + $0x180] ss:$8 sps:$4 sm:$0xff]  }
 0xa67   :  { %7095 = vmatprep.subr.bf16.mxu0 %v20965_v59  ;;  %v21040_v59 = vld [vmem:[#allocation30 + $0x394] ss:$8 sps:$4 sm:$0xff]  }
 0xa6a   :  { %7096 = vmatpush1.bf16.msra.mxu0 %v20963_v40  ;;  %v21043_v40 = vld [vmem:[#allocation30 + $0x194] ss:$8 sps:$4 sm:$0xff]  }
 0xa6b   :  { %7097 = vmatprep.subr.bf16.mxu0 %v20968_v8  ;;  %v21038_v8 = vld [vmem:[#allocation30 + $0x390] ss:$8 sps:$4 sm:$0xff]  }
 0xa6e   :  { %7098 = vmatpush1.bf16.msra.mxu0 %v20966_v41  ;;  %v21041_v41 = vld [vmem:[#allocation30 + $0x190] ss:$8 sps:$4 sm:$0xff]  }
 0xa6f   :  { %7099 = vmatprep.subr.bf16.mxu0 %v20974_v55  ;;  %v21046_v55 = vld [vmem:[#allocation30 + $0x3a4] ss:$8 sps:$4 sm:$0xff]  }
 0xa72   :  { %7100 = vmatpush1.bf16.msra.mxu0 %v20972_v46  ;;  %v21049_v46 = vld [vmem:[#allocation30 + $0x1a4] ss:$8 sps:$4 sm:$0xff]  }
 0xa73   :  { %7101 = vmatprep.subr.bf16.mxu0 %v20980_v31  ;;  %v21044_v31 = vld [vmem:[#allocation30 + $0x3a0] ss:$8 sps:$4 sm:$0xff]  }
 0xa76   :  { %7102 = vmatpush1.bf16.msra.mxu0 %v20978_v54  ;;  %v6873_v54 = vrot.slane %v24293_v14, 1 }
 0xa77   :  { %7103 = vmatprep.subr.bf16.mxu0 %v20986_v52  ;;  %v21047_v52 = vld [vmem:[#allocation30 + $0x1a0] ss:$8 sps:$4 sm:$0xff]  }
 0xa7a   :  { %7104 = vmatpush1.bf16.msra.mxu0 %v20984_v45  ;;  %v21052_v45 = vld [vmem:[#allocation30 + $0x3b4] ss:$8 sps:$4 sm:$0xff]  }
 0xa7b   :  { %7105 = vmatprep.subr.bf16.mxu0 %v20992_v21  ;;  %v21055_v21 = vld [vmem:[#allocation30 + $0x1b4] ss:$8 sps:$4 sm:$0xff]  }
 0xa7e   :  { %7106 = vmatpush1.bf16.msra.mxu0 %v20990_v61  ;;  %v21050_v61 = vld [vmem:[#allocation30 + $0x3b0] ss:$8 sps:$4 sm:$0xff]  }
 0xa7f   :  { %7107 = vmatprep.subr.bf16.mxu0 %v20998_v51  ;;  %v21053_v51 = vld [vmem:[#allocation30 + $0x1b0] ss:$8 sps:$4 sm:$0xff]  }
 0xa82   :  { %7108 = vmatpush1.bf16.msra.mxu0 %v20996_v12  ;;  %v21058_v12 = vld [vmem:[#allocation30 + $0x3c4] ss:$8 sps:$4 sm:$0xff]  }
 0xa83   :  { %7109 = vmatprep.subr.bf16.mxu0 %v21004_v37  ;;  %v21061_v37 = vld [vmem:[#allocation30 + $0x1c4] ss:$8 sps:$4 sm:$0xff]  }
 0xa86   :  { %7110 = vmatpush1.bf16.msra.mxu0 %v21002_v43  ;;  %v21056_v43 = vld [vmem:[#allocation30 + $0x3c0] ss:$8 sps:$4 sm:$0xff]  }
 0xa87   :  { %v5941_v15 = vpop.f32.mrb[88].mxu1  ;;  %7111 = vmatprep.subr.bf16.mxu0 %v21010_v9  ;;  %v21059_v9 = vld [vmem:[#allocation30 + $0x1c0] ss:$8 sps:$4 sm:$0xff]  }
 0xa88   :  { %v5942_v34 = vadd.f32 %v5941_v15, %v5879_v58  ;;  %v19709_v36 = vpop.f32.mrb[89].mxu1  ;;  %v21064_v58 = vld [vmem:[#allocation30 + $0x3d4] ss:$8 sps:$4 sm:$0xff]   ;;  %v21062_v15 = vld [vmem:[#allocation30 + $0x3d0] ss:$8 sps:$4 sm:$0xff]  }
 0xa89   :  { %v5944_v22 = vpop.f32.mrb[90].mxu1  ;;  %v21073_v36 = vld [vmem:[#allocation30 + $0x1e4] ss:$8 sps:$4 sm:$0xff]  }
 0xa8a   :  { %v5947_v10 = vmax.f32 %v5942_v34, 0.0  ;;  %7112 = vmatpush1.bf16.msra.mxu0 %v21008_v3  ;;  %v19710_v25 = vpop.f32.mrb[91].mxu1  ;;  %v21067_v3 = vld [vmem:[#allocation30 + $0x1d4] ss:$8 sps:$4 sm:$0xff]   ;;  %v21070_v34 = vld [vmem:[#allocation30 + $0x3e4] ss:$8 sps:$4 sm:$0xff]  }
 0xa8b   :  { %7113 = vmatprep.subr.bf16.mxu0 %v21016_v53  ;;  %v21065_v53 = vld [vmem:[#allocation30 + $0x1d0] ss:$8 sps:$4 sm:$0xff]   ;;  %v21068_v22 = vld [vmem:[#allocation30 + $0x3e0] ss:$8 sps:$4 sm:$0xff]   ;;  %v21076_v25 = vld [vmem:[#allocation30 + $0x544] ss:$8 sps:$4 sm:$0xff]  }
 0xa8c   :  { %v5949_v24 = vpack.c.bf16 %v5947_v10, %v5947_v10  ;;  %v21071_v10 = vld [vmem:[#allocation30 + $0x1e0] ss:$8 sps:$4 sm:$0xff]  }
 0xa8e   :  { %7114 = vmatpush1.bf16.msra.mxu0 %v21014_v38  ;;  %6079 = vmatmul.mubr.bf16.vlgmr.msra.gmra.mrb[92].mxu1 %v5949_v24  ;;  %v21079_v38 = vld [vmem:[#allocation30 + $0x1f4] ss:$8 sps:$4 sm:$0xff]   ;;  %v6875_v24 = vrot.slane %v24300_v0, 1 }
 0xa8f   :  { %6728 = vmatpush1.bf16.msra.mxu1 %v21017_v16  ;;  %6759 = vmatprep.mubr.bf16.mxu1 %v24306_v29  ;;  %v21074_v16 = vld [vmem:[#allocation30 + $0x540] ss:$8 sps:$4 sm:$0xff]  }
 0xa90   :  { %7115 = vmatprep.subr.bf16.mxu0 %v21022_v28  ;;  %6729 = vmatprep.subr.bf16.mxu1 %v21025_v13  ;;  %v21077_v28 = vld [vmem:[#allocation30 + $0x1f0] ss:$8 sps:$4 sm:$0xff]   ;;  %v21082_v13 = vld [vmem:[#allocation30 + $0x554] ss:$8 sps:$4 sm:$0xff]  }
 0xa92   :  { %7116 = vmatpush1.bf16.msra.mxu0 %v21020_v62  ;;  %v7596_v62 = vrot.slane %v24291_v17, 2 }
 0xa93   :  { %6730 = vmatpush1.bf16.msra.mxu1 %v21023_v20  ;;  %7117 = vmatprep.subr.bf16.mxu0 %v21028_v35  ;;  %v21085_v20 = vld [vmem:[#allocation30 + $0x204] ss:$8 sps:$4 sm:$0xff]   ;;  %v21080_v35 = vld [vmem:[#allocation30 + $0x550] ss:$8 sps:$4 sm:$0xff]  }
 0xa94   :  { %6731 = vmatprep.subr.bf16.mxu1 %v21031_v49  ;;  %v21083_v49 = vld [vmem:[#allocation30 + $0x200] ss:$8 sps:$4 sm:$0xff]  }
 0xa96   :  { %7118 = vmatpush1.bf16.msra.mxu0 %v21026_v30  ;;  %v21088_v30 = vld [vmem:[#allocation30 + $0x564] ss:$8 sps:$4 sm:$0xff]  }
 0xa97   :  { %6732 = vmatpush1.bf16.msra.mxu1 %v21029_v63  ;;  %7119 = vmatprep.subr.bf16.mxu0 %v21034_v19  ;;  %v21091_v63 = vld [vmem:[#allocation30 + $0x214] ss:$8 sps:$4 sm:$0xff]   ;;  %v21086_v19 = vld [vmem:[#allocation30 + $0x560] ss:$8 sps:$4 sm:$0xff]  }
 0xa98   :  { %6733 = vmatprep.subr.bf16.mxu1 %v21037_v44  ;;  %v21089_v44 = vld [vmem:[#allocation30 + $0x210] ss:$8 sps:$4 sm:$0xff]  }
 0xa9a   :  { %7120 = vmatpush1.bf16.msra.mxu0 %v21032_v26  ;;  %v21094_v26 = vld [vmem:[#allocation30 + $0x574] ss:$8 sps:$4 sm:$0xff]  }
 0xa9b   :  { %6734 = vmatpush1.bf16.msra.mxu1 %v21035_v48  ;;  %7121 = vmatprep.subr.bf16.mxu0 %v21040_v59  ;;  %v21097_v48 = vld [vmem:[#allocation30 + $0x224] ss:$8 sps:$4 sm:$0xff]   ;;  %v21092_v59 = vld [vmem:[#allocation30 + $0x570] ss:$8 sps:$4 sm:$0xff]  }
 0xa9c   :  { %6735 = vmatprep.subr.bf16.mxu1 %v21043_v40  ;;  %v21095_v40 = vld [vmem:[#allocation30 + $0x220] ss:$8 sps:$4 sm:$0xff]  }
 0xa9e   :  { %7122 = vmatpush1.bf16.msra.mxu0 %v21038_v8  ;;  %v21100_v8 = vld [vmem:[#allocation30 + $0x584] ss:$8 sps:$4 sm:$0xff]  }
 0xa9f   :  { %6736 = vmatpush1.bf16.msra.mxu1 %v21041_v41  ;;  %7132 = vmatprep.subr.bf16.mxu0 %v21046_v55  ;;  %v21103_v41 = vld [vmem:[#allocation30 + $0x234] ss:$8 sps:$4 sm:$0xff]   ;;  %v21098_v55 = vld [vmem:[#allocation30 + $0x580] ss:$8 sps:$4 sm:$0xff]  }
 0xaa0   :  { %6737 = vmatprep.subr.bf16.mxu1 %v21049_v46  ;;  %v21101_v46 = vld [vmem:[#allocation30 + $0x230] ss:$8 sps:$4 sm:$0xff]  }
 0xaa1   :  { %7124 = vmatmul.mubr.bf16.vlgmr.msra.gmra.mrb[100].mxu0 %v6873_v54  ;;  %v21109_v54 = vld [vmem:[#allocation30 + $0x244] ss:$8 sps:$4 sm:$0xff]  }
 0xaa2   :  { %7133 = vmatpush1.bf16.msra.mxu0 %v21044_v31  ;;  %7164 = vmatprep.mubr.bf16.mxu0 %v23070_v2  ;;  %v21106_v31 = vld [vmem:[#allocation30 + $0x594] ss:$8 sps:$4 sm:$0xff]  }
 0xaa3   :  { %6738 = vmatpush1.bf16.msra.mxu1 %v21047_v52  ;;  %7134 = vmatprep.subr.bf16.mxu0 %v21052_v45  ;;  %v21104_v52 = vld [vmem:[#allocation30 + $0x590] ss:$8 sps:$4 sm:$0xff]   ;;  %v21107_v45 = vld [vmem:[#allocation30 + $0x240] ss:$8 sps:$4 sm:$0xff]  }
 0xaa4   :  { %6739 = vmatprep.subr.bf16.mxu1 %v21055_v21  ;;  %v21112_v21 = vld [vmem:[#allocation30 + $0x5a4] ss:$8 sps:$4 sm:$0xff]  }
 0xaa6   :  { %7135 = vmatpush1.bf16.msra.mxu0 %v21050_v61  ;;  %v21115_v61 = vld [vmem:[#allocation30 + $0x254] ss:$8 sps:$4 sm:$0xff]  }
 0xaa7   :  { %6740 = vmatpush1.bf16.msra.mxu1 %v21053_v51  ;;  %7136 = vmatprep.subr.bf16.mxu0 %v21058_v12  ;;  %v21110_v51 = vld [vmem:[#allocation30 + $0x5a0] ss:$8 sps:$4 sm:$0xff]   ;;  %v21113_v12 = vld [vmem:[#allocation30 + $0x250] ss:$8 sps:$4 sm:$0xff]  }
 0xaa8   :  { %6741 = vmatprep.subr.bf16.mxu1 %v21061_v37  ;;  %v21118_v37 = vld [vmem:[#allocation30 + $0x5b4] ss:$8 sps:$4 sm:$0xff]  }
 0xaaa   :  { %7137 = vmatpush1.bf16.msra.mxu0 %v21056_v43  ;;  %v24315_v43 = vshrl.u32 %v24293_v14, 16 }
 0xaab   :  { %6742 = vmatpush1.bf16.msra.mxu1 %v21059_v9  ;;  %7138 = vmatprep.subr.bf16.mxu0 %v21064_v58  ;;  %v21121_v9 = vld [vmem:[#allocation30 + $0x264] ss:$8 sps:$4 sm:$0xff]   ;;  %v21116_v58 = vld [vmem:[#allocation30 + $0x5b0] ss:$8 sps:$4 sm:$0xff]  }
 0xaac   :  { %6743 = vmatprep.subr.bf16.mxu1 %v21067_v3  ;;  %v21119_v3 = vld [vmem:[#allocation30 + $0x260] ss:$8 sps:$4 sm:$0xff]  }
 0xaae   :  { %7139 = vmatpush1.bf16.msra.mxu0 %v21062_v15  ;;  %v21124_v15 = vld [vmem:[#allocation30 + $0x5c4] ss:$8 sps:$4 sm:$0xff]  }
 0xaaf   :  { %6744 = vmatpush1.bf16.msra.mxu1 %v21065_v53  ;;  %7140 = vmatprep.subr.bf16.mxu0 %v21070_v34  ;;  %v21127_v53 = vld [vmem:[#allocation30 + $0x274] ss:$8 sps:$4 sm:$0xff]   ;;  %v21122_v34 = vld [vmem:[#allocation30 + $0x5c0] ss:$8 sps:$4 sm:$0xff]  }
 0xab0   :  { %6745 = vmatprep.subr.bf16.mxu1 %v21073_v36  ;;  %v21125_v36 = vld [vmem:[#allocation30 + $0x270] ss:$8 sps:$4 sm:$0xff]  }
 0xab2   :  { %7141 = vmatpush1.bf16.msra.mxu0 %v21068_v22  ;;  %v21130_v22 = vld [vmem:[#allocation30 + $0x5d4] ss:$8 sps:$4 sm:$0xff]  }
 0xab3   :  { %6746 = vmatpush1.bf16.msra.mxu1 %v21071_v10  ;;  %7813 = vmatprep.subr.bf16.mxu0 %v21076_v25  ;;  %v21133_v10 = vld [vmem:[#allocation30 + $0x284] ss:$8 sps:$4 sm:$0xff]   ;;  %v21128_v25 = vld [vmem:[#allocation30 + $0x5d0] ss:$8 sps:$4 sm:$0xff]  }
 0xab4   :  { %6747 = vmatprep.subr.bf16.mxu1 %v21079_v38  ;;  %v21131_v38 = vld [vmem:[#allocation30 + $0x280] ss:$8 sps:$4 sm:$0xff]  }
 0xab5   :  { %18383 = vmatmul.mubr.msk.bf16.vlgmr.msra.gmra.mrb[100].mxu0 %vm1945_vm9, %v6875_v24  ;;  %v21139_v24 = vld [vmem:[#allocation30 + $0x294] ss:$8 sps:$4 sm:$0xff]  }
 0xab6   :  { %7814 = vmatpush1.bf16.msra.mxu0 %v21074_v16  ;;  %7845 = vmatprep.mubr.bf16.mxu0 %v7596_v62  ;;  %v21136_v16 = vld [vmem:[#allocation30 + $0x5e4] ss:$8 sps:$4 sm:$0xff]   ;;  %v21142_v62 = vld [vmem:[#allocation30 + $0x5f4] ss:$8 sps:$4 sm:$0xff]  }
 0xab7   :  { %6748 = vmatpush1.bf16.msra.mxu1 %v21077_v28  ;;  %7815 = vmatprep.subr.bf16.mxu0 %v21082_v13  ;;  %v21134_v28 = vld [vmem:[#allocation30 + $0x5e0] ss:$8 sps:$4 sm:$0xff]   ;;  %v21137_v13 = vld [vmem:[#allocation30 + $0x290] ss:$8 sps:$4 sm:$0xff]  }
 0xab8   :  { %6749 = vmatprep.subr.bf16.mxu1 %v21085_v20  ;;  %v21145_v20 = vld [vmem:[#allocation30 + $0x3f4] ss:$8 sps:$4 sm:$0xff]  }
 0xaba   :  { %7816 = vmatpush1.bf16.msra.mxu0 %v21080_v35  ;;  %v21140_v35 = vld [vmem:[#allocation30 + $0x5f0] ss:$8 sps:$4 sm:$0xff]  }
 0xabb   :  { %6750 = vmatpush1.bf16.msra.mxu1 %v21083_v49  ;;  %7817 = vmatprep.subr.bf16.mxu0 %v21088_v30  ;;  %v21143_v49 = vld [vmem:[#allocation30 + $0x3f0] ss:$8 sps:$4 sm:$0xff]   ;;  %v24320_v30 = vshrl.u32 %v24300_v0, 16 }
 0xabc   :  { %6751 = vmatprep.subr.bf16.mxu1 %v21091_v63  ;;  %v21148_v63 = vld [vmem:[#allocation30 + $0x604] ss:$8 sps:$4 sm:$0xff]  }
 0xabe   :  { %7818 = vmatpush1.bf16.msra.mxu0 %v21086_v19  ;;  %v21151_v19 = vld [vmem:[#allocation30 + $0x404] ss:$8 sps:$4 sm:$0xff]  }
 0xabf   :  { %6752 = vmatpush1.bf16.msra.mxu1 %v21089_v44  ;;  %7819 = vmatprep.subr.bf16.mxu0 %v21094_v26  ;;  %v7235_v44 = vrot.slane %v24306_v29, 1  ;;  %v21146_v26 = vld [vmem:[#allocation30 + $0x600] ss:$8 sps:$4 sm:$0xff]  }
 0xac0   :  { %6753 = vmatprep.subr.bf16.mxu1 %v21097_v48  ;;  %v21149_v48 = vld [vmem:[#allocation30 + $0x400] ss:$8 sps:$4 sm:$0xff]  }
 0xac2   :  { %7820 = vmatpush1.bf16.msra.mxu0 %v21092_v59  ;;  %v21154_v59 = vld [vmem:[#allocation30 + $0x614] ss:$8 sps:$4 sm:$0xff]  }
 0xac3   :  { %6754 = vmatpush1.bf16.msra.mxu1 %v21095_v40  ;;  %7821 = vmatprep.subr.bf16.mxu0 %v21100_v8  ;;  %v21157_v40 = vld [vmem:[#allocation30 + $0x414] ss:$8 sps:$4 sm:$0xff]   ;;  %v21152_v8 = vld [vmem:[#allocation30 + $0x610] ss:$8 sps:$4 sm:$0xff]  }
 0xac4   :  { %6755 = vmatprep.subr.bf16.mxu1 %v21103_v41  ;;  %v21155_v41 = vld [vmem:[#allocation30 + $0x410] ss:$8 sps:$4 sm:$0xff]  }
 0xac6   :  { %7822 = vmatpush1.bf16.msra.mxu0 %v21098_v55  ;;  %v21160_v55 = vld [vmem:[#allocation30 + $0x624] ss:$8 sps:$4 sm:$0xff]  }
 0xac7   :  { %6756 = vmatpush1.bf16.msra.mxu1 %v21101_v46  ;;  %7823 = vmatprep.subr.bf16.mxu0 %v21106_v31  ;;  %v21163_v46 = vld [vmem:[#allocation30 + $0x424] ss:$8 sps:$4 sm:$0xff]   ;;  %v21158_v31 = vld [vmem:[#allocation30 + $0x620] ss:$8 sps:$4 sm:$0xff]  }
 0xac8   :  { %6757 = vmatprep.subr.bf16.mxu1 %v21109_v54  ;;  %v21161_v54 = vld [vmem:[#allocation30 + $0x420] ss:$8 sps:$4 sm:$0xff]  }
 0xaca   :  { %7824 = vmatpush1.bf16.msra.mxu0 %v21104_v52  ;;  %v21166_v52 = vld [vmem:[#allocation30 + $0x634] ss:$8 sps:$4 sm:$0xff]  }
 0xacb   :  { %6758 = vmatpush1.bf16.msra.mxu1 %v21107_v45  ;;  %7825 = vmatprep.subr.bf16.mxu0 %v21112_v21  ;;  %v21169_v45 = vld [vmem:[#allocation30 + $0x434] ss:$8 sps:$4 sm:$0xff]   ;;  %v21164_v21 = vld [vmem:[#allocation30 + $0x630] ss:$8 sps:$4 sm:$0xff]  }
 0xacc   :  { %6768 = vmatprep.subr.bf16.mxu1 %v21115_v61  ;;  %v21167_v61 = vld [vmem:[#allocation30 + $0x430] ss:$8 sps:$4 sm:$0xff]  }
 0xace   :  { %6760 = vmatmul.mubr.bf16.vlgmr.msra.gmra.mrb[96].mxu1 %v24315_v43  ;;  %7826 = vmatpush1.bf16.msra.mxu0 %v21110_v51  ;;  %v21172_v51 = vld [vmem:[#allocation30 + $0x644] ss:$8 sps:$4 sm:$0xff]  }
 0xacf   :  { %6769 = vmatpush1.bf16.msra.mxu1 %v21113_v12  ;;  %7827 = vmatprep.subr.bf16.mxu0 %v21118_v37  ;;  %v21175_v12 = vld [vmem:[#allocation30 + $0x444] ss:$8 sps:$4 sm:$0xff]   ;;  %v21170_v37 = vld [vmem:[#allocation30 + $0x640] ss:$8 sps:$4 sm:$0xff]  }
 0xad0   :  { %6770 = vmatprep.subr.bf16.mxu1 %v21121_v9  ;;  %6800 = vmatprep.mubr.bf16.mxu1 %v23070_v2  ;;  %v7595_v9 = vrot.slane %v24293_v14, 2 }
 0xad2   :  { %7828 = vmatpush1.bf16.msra.mxu0 %v21116_v58  ;;  %v21173_v58 = vld [vmem:[#allocation30 + $0x440] ss:$8 sps:$4 sm:$0xff]  }
 0xad3   :  { %6771 = vmatpush1.bf16.msra.mxu1 %v21119_v3  ;;  %7829 = vmatprep.subr.bf16.mxu0 %v21124_v15  ;;  %v21178_v3 = vld [vmem:[#allocation30 + $0x654] ss:$8 sps:$4 sm:$0xff]  }
 0xad4   :  { %6772 = vmatprep.subr.bf16.mxu1 %v21127_v53  ;;  %v21181_v15 = vld [vmem:[#allocation30 + $0x454] ss:$8 sps:$4 sm:$0xff]   ;;  %v21176_v53 = vld [vmem:[#allocation30 + $0x650] ss:$8 sps:$4 sm:$0xff]  }
 0xad6   :  { %7830 = vmatpush1.bf16.msra.mxu0 %v21122_v34  ;;  %v21179_v34 = vld [vmem:[#allocation30 + $0x450] ss:$8 sps:$4 sm:$0xff]  }
 0xad7   :  { %6773 = vmatpush1.bf16.msra.mxu1 %v21125_v36  ;;  %7831 = vmatprep.subr.bf16.mxu0 %v21130_v22  ;;  %v21184_v36 = vld [vmem:[#allocation30 + $0x664] ss:$8 sps:$4 sm:$0xff]  }
 0xad8   :  { %6774 = vmatprep.subr.bf16.mxu1 %v21133_v10  ;;  %v21187_v22 = vld [vmem:[#allocation30 + $0x464] ss:$8 sps:$4 sm:$0xff]   ;;  %v21182_v10 = vld [vmem:[#allocation30 + $0x660] ss:$8 sps:$4 sm:$0xff]  }
 0xada   :  { %7832 = vmatpush1.bf16.msra.mxu0 %v21128_v25  ;;  %v21185_v25 = vld [vmem:[#allocation30 + $0x460] ss:$8 sps:$4 sm:$0xff]  }
 0xadb   :  { %6775 = vmatpush1.bf16.msra.mxu1 %v21131_v38  ;;  %7833 = vmatprep.subr.bf16.mxu0 %v21136_v16  ;;  %v21190_v38 = vld [vmem:[#allocation30 + $0x674] ss:$8 sps:$4 sm:$0xff]  }
 0xadc   :  { %6776 = vmatprep.subr.bf16.mxu1 %v21139_v24  ;;  %v21193_v16 = vld [vmem:[#allocation30 + $0x474] ss:$8 sps:$4 sm:$0xff]   ;;  %v21188_v24 = vld [vmem:[#allocation30 + $0x670] ss:$8 sps:$4 sm:$0xff]  }
 0xade   :  { %7834 = vmatpush1.bf16.msra.mxu0 %v21134_v28  ;;  %v21191_v28 = vld [vmem:[#allocation30 + $0x470] ss:$8 sps:$4 sm:$0xff]  }
 0xadf   :  { %6777 = vmatpush1.bf16.msra.mxu1 %v21137_v13  ;;  %7835 = vmatprep.subr.bf16.mxu0 %v21142_v62  ;;  %v21196_v13 = vld [vmem:[#allocation30 + $0x684] ss:$8 sps:$4 sm:$0xff]  }
 0xae0   :  { %7452 = vmatprep.subr.bf16.mxu1 %v21145_v20  ;;  %v21199_v62 = vld [vmem:[#allocation30 + $0x484] ss:$8 sps:$4 sm:$0xff]   ;;  %v21194_v20 = vld [vmem:[#allocation30 + $0x680] ss:$8 sps:$4 sm:$0xff]  }
 0xae2   :  { %18340 = vmatmul.mubr.msk.bf16.vlgmr.msra.gmra.mrb[96].mxu1 %vm1945_vm9, %v24320_v30  ;;  %7836 = vmatpush1.bf16.msra.mxu0 %v21140_v35  ;;  %v21197_v35 = vld [vmem:[#allocation30 + $0x480] ss:$8 sps:$4 sm:$0xff]  }
 0xae3   :  { %7453 = vmatpush1.bf16.msra.mxu1 %v21143_v49  ;;  %7484 = vmatprep.mubr.bf16.mxu1 %v7235_v44  ;;  %v21202_v49 = vld [vmem:[#allocation30 + $0x7e4] ss:$8 sps:$4 sm:$0xff]   ;;  %v7597_v44 = vrot.slane %v24300_v0, 2 }
 0xae4   :  { %7837 = vmatprep.subr.bf16.mxu0 %v21148_v63  ;;  %7454 = vmatprep.subr.bf16.mxu1 %v21151_v19  ;;  %v21205_v63 = vld [vmem:[#allocation30 + $0x494] ss:$8 sps:$4 sm:$0xff]   ;;  %v21200_v19 = vld [vmem:[#allocation30 + $0x7e0] ss:$8 sps:$4 sm:$0xff]  }
 0xae6   :  { %7838 = vmatpush1.bf16.msra.mxu0 %v21146_v26  ;;  %v21203_v26 = vld [vmem:[#allocation30 + $0x490] ss:$8 sps:$4 sm:$0xff]  }
 0xae7   :  { %7455 = vmatpush1.bf16.msra.mxu1 %v21149_v48  ;;  %7839 = vmatprep.subr.bf16.mxu0 %v21154_v59  ;;  %v21208_v48 = vld [vmem:[#allocation30 + $0x7f4] ss:$8 sps:$4 sm:$0xff]   ;;  %v8318_v59 = vrot.slane %v24291_v17, 3  ;;  %v21223_v17 = vld [vmem:[#allocation30 + $0x4c4] ss:$8 sps:$4 sm:$0xff]  }
 0xae8   :  { %7456 = vmatprep.subr.bf16.mxu1 %v21157_v40  ;;  %v21211_v40 = vld [vmem:[#allocation30 + $0x4a4] ss:$8 sps:$4 sm:$0xff]  }
 0xaea   :  { %7840 = vmatpush1.bf16.msra.mxu0 %v21152_v8  ;;  %v21206_v8 = vld [vmem:[#allocation30 + $0x7f0] ss:$8 sps:$4 sm:$0xff]  }
 0xaeb   :  { %7457 = vmatpush1.bf16.msra.mxu1 %v21155_v41  ;;  %7841 = vmatprep.subr.bf16.mxu0 %v21160_v55  ;;  %v21209_v41 = vld [vmem:[#allocation30 + $0x4a0] ss:$8 sps:$4 sm:$0xff]   ;;  %v21214_v55 = vld [vmem:[#allocation30 + $0x804] ss:$8 sps:$4 sm:$0xff]  }
 0xaec   :  { %7458 = vmatprep.subr.bf16.mxu1 %v21163_v46  ;;  %v21217_v46 = vld [vmem:[#allocation30 + $0x4b4] ss:$8 sps:$4 sm:$0xff]  }
 0xaee   :  { %7842 = vmatpush1.bf16.msra.mxu0 %v21158_v31  ;;  %v21212_v31 = vld [vmem:[#allocation30 + $0x800] ss:$8 sps:$4 sm:$0xff]  }
 0xaef   :  { %7459 = vmatpush1.bf16.msra.mxu1 %v21161_v54  ;;  %7843 = vmatprep.subr.bf16.mxu0 %v21166_v52  ;;  %v21215_v54 = vld [vmem:[#allocation30 + $0x4b0] ss:$8 sps:$4 sm:$0xff]   ;;  %v21220_v52 = vld [vmem:[#allocation30 + $0x814] ss:$8 sps:$4 sm:$0xff]  }
 0xaf0   :  { %7460 = vmatprep.subr.bf16.mxu1 %v21169_v45  ;;  %v21218_v45 = vld [vmem:[#allocation30 + $0x810] ss:$8 sps:$4 sm:$0xff]  }
 0xaf2   :  { %7844 = vmatpush1.bf16.msra.mxu0 %v21164_v21  ;;  %v21221_v21 = vld [vmem:[#allocation30 + $0x4c0] ss:$8 sps:$4 sm:$0xff]  }
 0xaf3   :  { %7461 = vmatpush1.bf16.msra.mxu1 %v21167_v61  ;;  %7854 = vmatprep.subr.bf16.mxu0 %v21172_v51  ;;  %v21226_v61 = vld [vmem:[#allocation30 + $0x824] ss:$8 sps:$4 sm:$0xff]   ;;  %v21229_v51 = vld [vmem:[#allocation30 + $0x4d4] ss:$8 sps:$4 sm:$0xff]  }
 0xaf4   :  { %7462 = vmatprep.subr.bf16.mxu1 %v21175_v12  ;;  %v21224_v12 = vld [vmem:[#allocation30 + $0x820] ss:$8 sps:$4 sm:$0xff]  }
 0xaf5   :  { %7846 = vmatmul.mubr.bf16.vlgmr.msra.gmra.mrb[104].mxu0 %v7595_v9  ;;  %v21232_v9 = vld [vmem:[#allocation30 + $0x834] ss:$8 sps:$4 sm:$0xff]  }
 0xaf6   :  { %7855 = vmatpush1.bf16.msra.mxu0 %v21170_v37  ;;  %7886 = vmatprep.mubr.bf16.mxu0 %v23070_v2  ;;  %v21227_v37 = vld [vmem:[#allocation30 + $0x4d0] ss:$8 sps:$4 sm:$0xff]  }
 0xaf7   :  { %7463 = vmatpush1.bf16.msra.mxu1 %v21173_v58  ;;  %7856 = vmatprep.subr.bf16.mxu0 %v21178_v3  ;;  %v21235_v58 = vld [vmem:[#allocation30 + $0x4e4] ss:$8 sps:$4 sm:$0xff]   ;;  %v21230_v3 = vld [vmem:[#allocation30 + $0x830] ss:$8 sps:$4 sm:$0xff]  }
 0xaf8   :  { %7464 = vmatprep.subr.bf16.mxu1 %v21181_v15  ;;  %v21233_v15 = vld [vmem:[#allocation30 + $0x4e0] ss:$8 sps:$4 sm:$0xff]  }
 0xafa   :  { %7857 = vmatpush1.bf16.msra.mxu0 %v21176_v53  ;;  %v21238_v53 = vld [vmem:[#allocation30 + $0x844] ss:$8 sps:$4 sm:$0xff]  }
 0xafb   :  { %7465 = vmatpush1.bf16.msra.mxu1 %v21179_v34  ;;  %7858 = vmatprep.subr.bf16.mxu0 %v21184_v36  ;;  %v21241_v34 = vld [vmem:[#allocation30 + $0x4f4] ss:$8 sps:$4 sm:$0xff]   ;;  %v21236_v36 = vld [vmem:[#allocation30 + $0x840] ss:$8 sps:$4 sm:$0xff]  }
 0xafc   :  { %7466 = vmatprep.subr.bf16.mxu1 %v21187_v22  ;;  %v21239_v22 = vld [vmem:[#allocation30 + $0x4f0] ss:$8 sps:$4 sm:$0xff]  }
 0xafe   :  { %7859 = vmatpush1.bf16.msra.mxu0 %v21182_v10  ;;  %v21244_v10 = vld [vmem:[#allocation30 + $0x854] ss:$8 sps:$4 sm:$0xff]  }
 0xaff   :  { %7467 = vmatpush1.bf16.msra.mxu1 %v21185_v25  ;;  %7860 = vmatprep.subr.bf16.mxu0 %v21190_v38  ;;  %v7234_v25 = vrot.slane %v24315_v43, 1  ;;  %v21247_v38 = vld [vmem:[#allocation30 + $0x504] ss:$8 sps:$4 sm:$0xff]  }
 0xb00   :  { %7468 = vmatprep.subr.bf16.mxu1 %v21193_v16  ;;  %v21242_v16 = vld [vmem:[#allocation30 + $0x850] ss:$8 sps:$4 sm:$0xff]  }
 0xb02   :  { %7861 = vmatpush1.bf16.msra.mxu0 %v21188_v24  ;;  %v21245_v24 = vld [vmem:[#allocation30 + $0x500] ss:$8 sps:$4 sm:$0xff]  }
 0xb03   :  { %7469 = vmatpush1.bf16.msra.mxu1 %v21191_v28  ;;  %7862 = vmatprep.subr.bf16.mxu0 %v21196_v13  ;;  %v21250_v28 = vld [vmem:[#allocation30 + $0x864] ss:$8 sps:$4 sm:$0xff]   ;;  %v21253_v13 = vld [vmem:[#allocation30 + $0x514] ss:$8 sps:$4 sm:$0xff]  }
 0xb04   :  { %7470 = vmatprep.subr.bf16.mxu1 %v21199_v62  ;;  %v21248_v62 = vld [vmem:[#allocation30 + $0x860] ss:$8 sps:$4 sm:$0xff]  }
 0xb06   :  { %7863 = vmatpush1.bf16.msra.mxu0 %v21194_v20  ;;  %v21251_v20 = vld [vmem:[#allocation30 + $0x510] ss:$8 sps:$4 sm:$0xff]  }
 0xb07   :  { %7471 = vmatpush1.bf16.msra.mxu1 %v21197_v35  ;;  %8535 = vmatprep.subr.bf16.mxu0 %v21202_v49  ;;  %v21256_v35 = vld [vmem:[#allocation30 + $0x874] ss:$8 sps:$4 sm:$0xff]   ;;  %v21259_v49 = vld [vmem:[#allocation30 + $0x524] ss:$8 sps:$4 sm:$0xff]  }
 0xb08   :  { %7472 = vmatprep.subr.bf16.mxu1 %v21205_v63  ;;  %v21254_v63 = vld [vmem:[#allocation30 + $0x870] ss:$8 sps:$4 sm:$0xff]  }
 0xb09   :  { %18469 = vmatmul.mubr.msk.bf16.vlgmr.msra.gmra.mrb[104].mxu0 %vm1945_vm9, %v7597_v44  ;;  %v21262_v44 = vld [vmem:[#allocation30 + $0x884] ss:$8 sps:$4 sm:$0xff]  }
 0xb0a   :  { %8536 = vmatpush1.bf16.msra.mxu0 %v21200_v19  ;;  %8567 = vmatprep.mubr.bf16.mxu0 %v8318_v59  ;;  %v21257_v19 = vld [vmem:[#allocation30 + $0x520] ss:$8 sps:$4 sm:$0xff]   ;;  %v21263_v59 = vld [vmem:[#allocation30 + $0x530] ss:$8 sps:$4 sm:$0xff]  }
 0xb0b   :  { %7473 = vmatpush1.bf16.msra.mxu1 %v21203_v26  ;;  %8537 = vmatprep.subr.bf16.mxu0 %v21208_v48  ;;  %v21265_v26 = vld [vmem:[#allocation30 + $0x534] ss:$8 sps:$4 sm:$0xff]   ;;  %v21260_v48 = vld [vmem:[#allocation30 + $0x880] ss:$8 sps:$4 sm:$0xff]  }
 0xb0c   :  { %7474 = vmatprep.subr.bf16.mxu1 %v21211_v40  ;;  %v21268_v40 = vld [vmem:[#allocation30 + $0x894] ss:$8 sps:$4 sm:$0xff]  }
 0xb0e   :  { %8538 = vmatpush1.bf16.msra.mxu0 %v21206_v8  ;;  %v21271_v8 = vld [vmem:[#allocation30 + $0x694] ss:$8 sps:$4 sm:$0xff]  }
 0xb0f   :  { %7475 = vmatpush1.bf16.msra.mxu1 %v21209_v41  ;;  %8539 = vmatprep.subr.bf16.mxu0 %v21214_v55  ;;  %v21266_v41 = vld [vmem:[#allocation30 + $0x890] ss:$8 sps:$4 sm:$0xff]  }
 0xb10   :  { %7476 = vmatprep.subr.bf16.mxu1 %v21217_v46  ;;  %v21269_v55 = vld [vmem:[#allocation30 + $0x690] ss:$8 sps:$4 sm:$0xff]  }
 0xb12   :  { %8540 = vmatpush1.bf16.msra.mxu0 %v21212_v31  ;;  %v7236_v31 = vrot.slane %v24320_v30, 1 }
 0xb13   :  { %7477 = vmatpush1.bf16.msra.mxu1 %v21215_v54  ;;  %8541 = vmatprep.subr.bf16.mxu0 %v21220_v52  ;;  %v21274_v54 = vld [vmem:[#allocation30 + $0x8a4] ss:$8 sps:$4 sm:$0xff]  }
 0xb14   :  { %7478 = vmatprep.subr.bf16.mxu1 %v21223_v17  ;;  %v21277_v52 = vld [vmem:[#allocation30 + $0x6a4] ss:$8 sps:$4 sm:$0xff]  }
 0xb16   :  { %8542 = vmatpush1.bf16.msra.mxu0 %v21218_v45  ;;  %v7957_v45 = vrot.slane %v24306_v29, 2  ;;  %v21281_v29 = vld [vmem:[#allocation30 + $0x6b0] ss:$8 sps:$4 sm:$0xff]  }
 0xb17   :  { %7479 = vmatpush1.bf16.msra.mxu1 %v21221_v21  ;;  %8543 = vmatprep.subr.bf16.mxu0 %v21226_v61 }
 0xb18   :  { %7480 = vmatprep.subr.bf16.mxu1 %v21229_v51  ;;  %v21272_v51 = vld [vmem:[#allocation30 + $0x8a0] ss:$8 sps:$4 sm:$0xff]  }
 0xb1a   :  { %8544 = vmatpush1.bf16.msra.mxu0 %v21224_v12 }
 0xb1b   :  { %7481 = vmatpush1.bf16.msra.mxu1 %v21227_v37  ;;  %8545 = vmatprep.subr.bf16.mxu0 %v21232_v9  ;;  %v21275_v37 = vld [vmem:[#allocation30 + $0x6a0] ss:$8 sps:$4 sm:$0xff]   ;;  %v21280_v9 = vld [vmem:[#allocation30 + $0x8b4] ss:$8 sps:$4 sm:$0xff]  }
 0xb1c   :  { %7482 = vmatprep.subr.bf16.mxu1 %v21235_v58  ;;  %v21283_v58 = vld [vmem:[#allocation30 + $0x6b4] ss:$8 sps:$4 sm:$0xff]  }
 0xb1e   :  { %8546 = vmatpush1.bf16.msra.mxu0 %v21230_v3  ;;  %v21278_v3 = vld [vmem:[#allocation30 + $0x8b0] ss:$8 sps:$4 sm:$0xff]  }
 0xb1f   :  { %7483 = vmatpush1.bf16.msra.mxu1 %v21233_v15  ;;  %8547 = vmatprep.subr.bf16.mxu0 %v21238_v53  ;;  %v21286_v15 = vld [vmem:[#allocation30 + $0x8c4] ss:$8 sps:$4 sm:$0xff]  }
 0xb20   :  { %7493 = vmatprep.subr.bf16.mxu1 %v21241_v34  ;;  %v21289_v53 = vld [vmem:[#allocation30 + $0x6c4] ss:$8 sps:$4 sm:$0xff]   ;;  %v21284_v34 = vld [vmem:[#allocation30 + $0x8c0] ss:$8 sps:$4 sm:$0xff]  }
 0xb22   :  { %7485 = vmatmul.mubr.bf16.vlgmr.msra.gmra.mrb[100].mxu1 %v7234_v25  ;;  %8548 = vmatpush1.bf16.msra.mxu0 %v21236_v36  ;;  %v21287_v36 = vld [vmem:[#allocation30 + $0x6c0] ss:$8 sps:$4 sm:$0xff]   ;;  %v21290_v25 = vld [vmem:[#allocation30 + $0x8d0] ss:$8 sps:$4 sm:$0xff]  }
 0xb23   :  { %7494 = vmatpush1.bf16.msra.mxu1 %v21239_v22  ;;  %8549 = vmatprep.subr.bf16.mxu0 %v21244_v10  ;;  %v21292_v22 = vld [vmem:[#allocation30 + $0x8d4] ss:$8 sps:$4 sm:$0xff]  }
 0xb24   :  { %7495 = vmatprep.subr.bf16.mxu1 %v21247_v38  ;;  %7525 = vmatprep.mubr.bf16.mxu1 %v23070_v2  ;;  %v21295_v10 = vld [vmem:[#allocation30 + $0x6d4] ss:$8 sps:$4 sm:$0xff]   ;;  %v21293_v38 = vld [vmem:[#allocation30 + $0x6d0] ss:$8 sps:$4 sm:$0xff]  }
 0xb26   :  { %8550 = vmatpush1.bf16.msra.mxu0 %v21242_v16  ;;  %v21298_v16 = vld [vmem:[#allocation30 + $0x8e4] ss:$8 sps:$4 sm:$0xff]  }
 0xb27   :  { %7496 = vmatpush1.bf16.msra.mxu1 %v21245_v24  ;;  %8551 = vmatprep.subr.bf16.mxu0 %v21250_v28  ;;  %v21301_v24 = vld [vmem:[#allocation30 + $0x6e4] ss:$8 sps:$4 sm:$0xff]   ;;  %v21296_v28 = vld [vmem:[#allocation30 + $0x8e0] ss:$8 sps:$4 sm:$0xff]  }
 0xb28   :  { %7497 = vmatprep.subr.bf16.mxu1 %v21253_v13  ;;  %v8317_v13 = vrot.slane %v24293_v14, 3  ;;  %v21311_v14 = vld [vmem:[#allocation30 + $0x700] ss:$8 sps:$4 sm:$0xff]  }
 0xb2a   :  { %8552 = vmatpush1.bf16.msra.mxu0 %v21248_v62  ;;  %v21299_v62 = vld [vmem:[#allocation30 + $0x6e0] ss:$8 sps:$4 sm:$0xff]  }
 0xb2b   :  { %7498 = vmatpush1.bf16.msra.mxu1 %v21251_v20  ;;  %8553 = vmatprep.subr.bf16.mxu0 %v21256_v35  ;;  %v21304_v20 = vld [vmem:[#allocation30 + $0x8f4] ss:$8 sps:$4 sm:$0xff]  }
 0xb2c   :  { %7499 = vmatprep.subr.bf16.mxu1 %v21259_v49  ;;  %v21307_v35 = vld [vmem:[#allocation30 + $0x6f4] ss:$8 sps:$4 sm:$0xff]   ;;  %v21302_v49 = vld [vmem:[#allocation30 + $0x8f0] ss:$8 sps:$4 sm:$0xff]  }
 0xb2e   :  { %8554 = vmatpush1.bf16.msra.mxu0 %v21254_v63  ;;  %v21305_v63 = vld [vmem:[#allocation30 + $0x6f0] ss:$8 sps:$4 sm:$0xff]  }
 0xb2f   :  { %7500 = vmatpush1.bf16.msra.mxu1 %v21257_v19  ;;  %8555 = vmatprep.subr.bf16.mxu0 %v21262_v44  ;;  %v21310_v19 = vld [vmem:[#allocation30 + $0x904] ss:$8 sps:$4 sm:$0xff]  }
 0xb30   :  { %7501 = vmatprep.subr.bf16.mxu1 %v21265_v26  ;;  %v21313_v44 = vld [vmem:[#allocation30 + $0x704] ss:$8 sps:$4 sm:$0xff]   ;;  %v21308_v26 = vld [vmem:[#allocation30 + $0x900] ss:$8 sps:$4 sm:$0xff]  }
 0xb32   :  { %8556 = vmatpush1.bf16.msra.mxu0 %v21260_v48  ;;  %v21316_v48 = vld [vmem:[#allocation30 + $0x914] ss:$8 sps:$4 sm:$0xff]  }
 0xb33   :  { %7502 = vmatpush1.bf16.msra.mxu1 %v21263_v59  ;;  %8557 = vmatprep.subr.bf16.mxu0 %v21268_v40  ;;  %v21319_v59 = vld [vmem:[#allocation30 + $0x714] ss:$8 sps:$4 sm:$0xff]   ;;  %v21314_v40 = vld [vmem:[#allocation30 + $0x910] ss:$8 sps:$4 sm:$0xff]  }
 0xb34   :  { %v24332_v46 = vpop.f32.mrb[96].mxu0  ;;  %8174 = vmatprep.subr.bf16.mxu1 %v21271_v8  ;;  %v21317_v8 = vld [vmem:[#allocation30 + $0x710] ss:$8 sps:$4 sm:$0xff]  }
 0xb35   :  { %v24335_v17 = vpop.f32.mrb[97].mxu0 }
 0xb36   :  { %v6445_v21 = vcombine.low %v24332_v46, %v24335_v17  ;;  %v6440_v61 = vpop.f32.mrb[98].mxu0  ;;  %18426 = vmatmul.mubr.msk.bf16.vlgmr.msra.gmra.mrb[100].mxu1 %vm1945_vm9, %v7236_v31  ;;  %8558 = vmatpush1.bf16.msra.mxu0 %v21266_v41  ;;  %v21322_v41 = vld [vmem:[#allocation30 + $0x924] ss:$8 sps:$4 sm:$0xff]   ;;  %v21320_v31 = vld [vmem:[#allocation30 + $0x920] ss:$8 sps:$4 sm:$0xff]  }
 0xb37   :  { %v6441_v12 = vpop.f32.mrb[99].mxu0  ;;  %8175 = vmatpush1.bf16.msra.mxu1 %v21269_v55  ;;  %8206 = vmatprep.mubr.bf16.mxu1 %v7957_v45  ;;  %v21325_v55 = vld [vmem:[#allocation30 + $0x724] ss:$8 sps:$4 sm:$0xff]   ;;  %v23079_v45 = vmov 1966171168  }
 0xb38   :  { %8559 = vmatprep.subr.bf16.mxu0 %v21274_v54  ;;  %8176 = vmatprep.subr.bf16.mxu1 %v21277_v52  ;;  %v21323_v54 = vld [vmem:[#allocation30 + $0x720] ss:$8 sps:$4 sm:$0xff]   ;;  %v21328_v52 = vld [vmem:[#allocation30 + $0x734] ss:$8 sps:$4 sm:$0xff]   ;;  %v6091_v61 = vunpack.c.l.s4 %v23079_v45  ;;  %v21326_v12 = vld [vmem:[#allocation30 + $0x730] ss:$8 sps:$4 sm:$0xff]  }
 0xb39   :  { %v21341_v46 = vld [vmem:[#allocation30 + $0x780] ss:$8 sps:$4 sm:$0xff]   ;;  %v21346_v17 = vld [vmem:[#allocation30 + $0x794] ss:$8 sps:$4 sm:$0xff]  }
 0xb3a   :  { %8560 = vmatpush1.bf16.msra.mxu0 %v21272_v51  ;;  %v8319_v51 = vrot.slane %v24300_v0, 3 }
 0xb3b   :  { %8177 = vmatpush1.bf16.msra.mxu1 %v21275_v37  ;;  %8561 = vmatprep.subr.bf16.mxu0 %v21280_v9  ;;  %v21331_v37 = vld [vmem:[#allocation30 + $0x744] ss:$8 sps:$4 sm:$0xff]   ;;  %v6092_v9 = vunpack.c.0.s8 %v6091_v61 }
 0xb3c   :  { %8178 = vmatprep.subr.bf16.mxu1 %v21283_v58  ;;  %v21329_v58 = vld [vmem:[#allocation30 + $0x740] ss:$8 sps:$4 sm:$0xff]  }
 0xb3e   :  { %8562 = vmatpush1.bf16.msra.mxu0 %v21278_v3  ;;  %v21334_v3 = vld [vmem:[#allocation30 + $0x754] ss:$8 sps:$4 sm:$0xff]  }
 0xb3f   :  { %8179 = vmatpush1.bf16.msra.mxu1 %v21281_v29  ;;  %8563 = vmatprep.subr.bf16.mxu0 %v21286_v15  ;;  %v24347_v29 = vsub.s32 %v6092_v9, %v23553_v57  ;;  %v21361_v9 = vld [vmem:[#allocation37 + $0x48] sm:$0xff]  }
 0xb40   :  { %8180 = vmatprep.subr.bf16.mxu1 %v21289_v53 }
 0xb42   :  { %8564 = vmatpush1.bf16.msra.mxu0 %v21284_v34 }
 0xb43   :  { %8181 = vmatpush1.bf16.msra.mxu1 %v21287_v36  ;;  %8565 = vmatprep.subr.bf16.mxu0 %v21292_v22  ;;  %v21332_v36 = vld [vmem:[#allocation30 + $0x750] ss:$8 sps:$4 sm:$0xff]  }
 0xb44   :  { %8182 = vmatprep.subr.bf16.mxu1 %v21295_v10  ;;  %v21337_v10 = vld [vmem:[#allocation30 + $0x764] ss:$8 sps:$4 sm:$0xff]  }
 0xb46   :  { %8566 = vmatpush1.bf16.msra.mxu0 %v21290_v25  ;;  %v6452_v25 = vrot.slane %v6445_v21, %v24347_v29  ;;  %v21344_v21 = vld [vmem:[#allocation30 + $0x790] ss:$8 sps:$4 sm:$0xff]  }
 0xb47   :  { %8183 = vmatpush1.bf16.msra.mxu1 %v21293_v38  ;;  %8576 = vmatprep.subr.bf16.mxu0 %v21298_v16  ;;  %v5948_v16 = vld [vmem:[#allocation33] sm:$0x3] }
 0xb48   :  { %8184 = vmatprep.subr.bf16.mxu1 %v21301_v24 }
 0xb49   :  { %8568 = vmatmul.mubr.bf16.vlgmr.msra.gmra.mrb[108].mxu0 %v8317_v13  ;;  %v21340_v13 = vld [vmem:[#allocation30 + $0x774] ss:$8 sps:$4 sm:$0xff]  }
 0xb4a   :  { %8577 = vmatpush1.bf16.msra.mxu0 %v21296_v28  ;;  %8608 = vmatprep.mubr.bf16.mxu0 %v23070_v2  ;;  %v21335_v28 = vld [vmem:[#allocation30 + $0x760] ss:$8 sps:$4 sm:$0xff]  }
 0xb4b   :  { %8185 = vmatpush1.bf16.msra.mxu1 %v21299_v62  ;;  %8578 = vmatprep.subr.bf16.mxu0 %v21304_v20  ;;  %v6459_v62 = vrot.slane %v6452_v25, %v24347_v29  ;;  %v21364_v25 = vld [vmem:[#allocation37 + $0x10] sm:$0xff]  }
 0xb4c   :  { %8186 = vmatprep.subr.bf16.mxu1 %v21307_v35  ;;  %v21338_v35 = vld [vmem:[#allocation30 + $0x770] ss:$8 sps:$4 sm:$0xff]  }
 0xb4e   :  { %8579 = vmatpush1.bf16.msra.mxu0 %v21302_v49 }
 0xb4f   :  { %8187 = vmatpush1.bf16.msra.mxu1 %v21305_v63  ;;  %8580 = vmatprep.subr.bf16.mxu0 %v21310_v19  ;;  %v21343_v63 = vld [vmem:[#allocation30 + $0x784] ss:$8 sps:$4 sm:$0xff]   ;;  %v7956_v19 = vrot.slane %v24315_v43, 2 }
 0xb50   :  { %8188 = vmatprep.subr.bf16.mxu1 %v21313_v44  ;;  %v21349_v44 = vld [vmem:[#allocation30 + $0x7a4] ss:$8 sps:$4 sm:$0xff]  }
 0xb52   :  { %8581 = vmatpush1.bf16.msra.mxu0 %v21308_v26  ;;  %v21347_v26 = vld [vmem:[#allocation30 + $0x7a0] ss:$8 sps:$4 sm:$0xff]  }
 0xb53   :  { %8189 = vmatpush1.bf16.msra.mxu1 %v21311_v14  ;;  %8582 = vmatprep.subr.bf16.mxu0 %v21316_v48  ;;  %v21352_v14 = vld [vmem:[#allocation30 + $0x7b4] ss:$8 sps:$4 sm:$0xff]   ;;  %v21350_v48 = vld [vmem:[#allocation30 + $0x7b0] ss:$8 sps:$4 sm:$0xff]  }
 0xb54   :  { %8190 = vmatprep.subr.bf16.mxu1 %v21319_v59  ;;  %v21355_v59 = vld [vmem:[#allocation30 + $0x7c4] ss:$8 sps:$4 sm:$0xff]  }
 0xb56   :  { %8583 = vmatpush1.bf16.msra.mxu0 %v21314_v40  ;;  %v21353_v40 = vld [vmem:[#allocation30 + $0x7c0] ss:$8 sps:$4 sm:$0xff]  }
 0xb57   :  { %8191 = vmatpush1.bf16.msra.mxu1 %v21317_v8  ;;  %8584 = vmatprep.subr.bf16.mxu0 %v21322_v41  ;;  %v21358_v8 = vld [vmem:[#allocation30 + $0x7d4] ss:$8 sps:$4 sm:$0xff]   ;;  %v21356_v41 = vld [vmem:[#allocation30 + $0x7d0] ss:$8 sps:$4 sm:$0xff]  }
 0xb58   :  { %8192 = vmatprep.subr.bf16.mxu1 %v21325_v55  ;;  %v7958_v55 = vrot.slane %v24320_v30, 2  ;;  %v21362_v30 = vld [vmem:[#allocation37 + $0x8] sm:$0xff]  }
 0xb5a   :  { %8585 = vmatpush1.bf16.msra.mxu0 %v21320_v31 }
 0xb5b   :  { %8193 = vmatpush1.bf16.msra.mxu1 %v21323_v54 }
 0xb5c   :  { %8194 = vmatprep.subr.bf16.mxu1 %v21328_v52 }
 0xb5d   :  { %18555 = vmatmul.mubr.msk.bf16.vlgmr.msra.gmra.mrb[108].mxu0 %vm1945_vm9, %v8319_v51 }
 0xb5e   :  { %9207 = vmatprep.mubr.bf16.mxu0 %v23070_v2 }
 0xb5f   :  { %8195 = vmatpush1.bf16.msra.mxu1 %v21326_v12  ;;  %v21359_v12 = vld [vmem:[#allocation37 + $0x40] sm:$0xff]  }
 0xb60   :  { %8196 = vmatprep.subr.bf16.mxu1 %v21331_v37  ;;  %v21360_v37 = vld [vmem:[#allocation37] sm:$0xff]  }
 0xb61   :  { %v6080_v15 = vpop.f32.mrb[92].mxu1 }
 0xb62   :  { %v6082_v53 = vpop.f32.mrb[93].mxu1 }
 0xb63   :  { %v6089_v34 = vcombine.low %v6080_v15, %v6082_v53  ;;  %8197 = vmatpush1.bf16.msra.mxu1 %v21329_v58  ;;  %v6084_v0 = vpop.f32.mrb[94].mxu1 }
 0xb64   :  { %v6085_v22 = vpop.f32.mrb[95].mxu1  ;;  %8198 = vmatprep.subr.bf16.mxu1 %v21334_v3  ;;  %v21363_v0 = vld [vmem:[#allocation37 + $0x50] sm:$0xff]  }
 0xb65   :  { %v6096_v38 = vrot.slane %v6089_v34, %v24347_v29 }
 0xb67   :  { %v6103_v24 = vrot.slane %v6096_v38, %v24347_v29  ;;  %8199 = vmatpush1.bf16.msra.mxu1 %v21332_v36 }
 0xb68   :  { %8200 = vmatprep.subr.bf16.mxu1 %v21337_v10 }
 0xb69   :  { %v6105_v20 = vadd.f32 %v6103_v24, %v5948_v16 }
 0xb6b   :  { %8201 = vmatpush1.bf16.msra.mxu1 %v21335_v28  ;;  %v6461_v49 = vadd.f32 %v6459_v62, %v6105_v20  ;;  %v21365_v28 = vld [vmem:[#allocation37 + $0x58] sm:$0xff]  }
 0xb6c   :  { %8202 = vmatprep.subr.bf16.mxu1 %v21340_v13  ;;  %v21366_v20 = vld [vmem:[#allocation37 + $0x18] sm:$0xff]  }
 0xb6f   :  { %8203 = vmatpush1.bf16.msra.mxu1 %v21338_v35 }
 0xb70   :  { %8204 = vmatprep.subr.bf16.mxu1 %v21343_v63  ;;  %v21367_v63 = vld [vmem:[#allocation37 + $0x60] sm:$0xff]  }
 0xb73   :  { %8205 = vmatpush1.bf16.msra.mxu1 %v21341_v46  ;;  %v21368_v46 = vld [vmem:[#allocation37 + $0x20] sm:$0xff]  }
 0xb74   :  { %8215 = vmatprep.subr.bf16.mxu1 %v21346_v17  ;;  %v21369_v17 = vld [vmem:[#allocation37 + $0x68] sm:$0xff]  }
 0xb76   :  { %8207 = vmatmul.mubr.bf16.vlgmr.msra.gmra.mrb[104].mxu1 %v7956_v19  ;;  %v21372_v19 = vld [vmem:[#allocation37 + $0x30] sm:$0xff]  }
 0xb77   :  { %8216 = vmatpush1.bf16.msra.mxu1 %v21344_v21  ;;  %8247 = vmatprep.mubr.bf16.mxu1 %v23070_v2  ;;  %v21371_v21 = vld [vmem:[#allocation37 + $0x70] sm:$0xff]  }
 0xb78   :  { %8217 = vmatprep.subr.bf16.mxu1 %v21349_v44  ;;  %v21373_v44 = vld [vmem:[#allocation37 + $0x78] sm:$0xff]  }
 0xb7b   :  { %8218 = vmatpush1.bf16.msra.mxu1 %v21347_v26  ;;  %v21374_v26 = vld [vmem:[#allocation37 + $0x38] sm:$0xff]  }
 0xb7c   :  { %8219 = vmatprep.subr.bf16.mxu1 %v21352_v14  ;;  %v21375_v14 = vld [vmem:[#allocation40 + $0x40] sm:$0xff]  }
 0xb7f   :  { %8220 = vmatpush1.bf16.msra.mxu1 %v21350_v48 }
 0xb80   :  { %8221 = vmatprep.subr.bf16.mxu1 %v21355_v59 }
 0xb83   :  { %8222 = vmatpush1.bf16.msra.mxu1 %v21353_v40 }
 0xb84   :  { %8223 = vmatprep.subr.bf16.mxu1 %v21358_v8 }
 0xb87   :  { %8224 = vmatpush1.bf16.msra.mxu1 %v21356_v41 }
 0xb88   :  { %v7166_v43 = vpop.f32.mrb[100].mxu0  ;;  %19470 = vmatprep.subr.bf16.mxu1 %v21359_v12  ;;  %v21394_v12 = vld [vmem:[#allocation6 + $0x24] ss:$16 sps:$4 sm:$0x3f]  }
 0xb89   :  { %v7168_v31 = vpop.f32.mrb[101].mxu0 }
 0xb8a   :  { %v7175_v54 = vcombine.low %v7166_v43, %v7168_v31  ;;  %v7170_v52 = vpop.f32.mrb[102].mxu0  ;;  %18512 = vmatmul.mubr.msk.bf16.vlgmr.msra.gmra.mrb[104].mxu1 %vm1945_vm9, %v7958_v55 }
 0xb8b   :  { %v7171_v45 = vpop.f32.mrb[103].mxu0  ;;  %19471 = vmatpush3.bf16.msra.mxu1 %v21360_v37  ;;  %v21396_v37 = vld [vmem:[#allocation6 + $0x20] ss:$16 sps:$4 sm:$0x3f]  }
 0xb8c   :  { %v7182_v53 = vrot.slane %v7175_v54, %v24347_v29  ;;  %19472 = vmatprep.subr.bf16.mxu1 %v21361_v9  ;;  %v477_v9 = vld [vmem:[%s25441_s19 + $0x20] sm:$0xff] }
 0xb8e   :  { %v7189_v22 = vrot.slane %v7182_v53, %v24347_v29 }
 0xb8f   :  { %19473 = vmatpush3.bf16.msra.mxu1 %v21362_v30  ;;  %v21400_v30 = vld [vmem:[#allocation6 + $0x2c] ss:$16 sps:$4 sm:$0x3f]  }
 0xb90   :  { %19474 = vmatprep.subr.bf16.mxu1 %v21363_v0  ;;  %v21402_v0 = vld [vmem:[#allocation6 + $0x28] ss:$16 sps:$4 sm:$0x3f]  }
 0xb93   :  { %19475 = vmatpush3.bf16.msra.mxu1 %v21364_v25  ;;  %v21405_v25 = vld [vmem:[#allocation9 + $0xc] ss:$16 sps:$4 sm:$0xff]  }
 0xb94   :  { %19476 = vmatprep.subr.bf16.mxu1 %v21365_v28  ;;  %v21408_v28 = vld [vmem:[#allocation9 + $0x28] ss:$16 sps:$4 sm:$0x3f]  }
 0xb97   :  { %19477 = vmatpush3.bf16.msra.mxu1 %v21366_v20 }
 0xb98   :  { %19478 = vmatprep.subr.bf16.mxu1 %v21367_v63 }
 0xb9b   :  { %19479 = vmatpush3.bf16.msra.mxu1 %v21368_v46 }
 0xb9c   :  { %19480 = vmatprep.subr.bf16.mxu1 %v21369_v17 }
 0xbb5   :  { %v6802_v61 = vpop.f32.mrb[96].mxu1 }
 0xbb6   :  { %v6804_v51 = vpop.f32.mrb[97].mxu1 }
 0xbb7   :  { %v6811_v58 = vcombine.low %v6802_v61, %v6804_v51  ;;  %v6806_v3 = vpop.f32.mrb[98].mxu1  ;;  %v21391_v61 = vld [vmem:[#allocation6] ss:$16 sps:$4 sm:$0xff]   ;;  %v21393_v51 = vld [vmem:[#allocation6 + $0x4] ss:$16 sps:$4 sm:$0xff]  }
 0xbb8   :  { %v6807_v15 = vpop.f32.mrb[99].mxu1  ;;  %9175 = vmatprep.subr.bf16.mxu0 %v21393_v51  ;;  %v9164_v3 = vsel %vm25450_vm1, %v21396_v37, 0  ;;  %vm25455_vm1 = vmmov %vm25451_vm3  ;;  %v21377_v37 = vld [vmem:[#allocation40 + $0x48] sm:$0xff]  }
 0xbb9   :  { %v6818_v34 = vrot.slane %v6811_v58, %v24347_v29  ;;  %9176 = vmatpush1.bf16.msra.mxu0 %v21391_v61  ;;  %v478_v58 = vld [vmem:[%s25441_s19 + $0x28] sm:$0xff] }
 0xbba   :  { %18596 = vmatprep.subr.msk.bf16.mxu0 %vm25449_vm14, %v21394_v12  ;;  %v21399_v15 = vld [vmem:[#allocation6 + $0xc] ss:$16 sps:$4 sm:$0xff]   ;;  %v24372_v53 = vpack.c.bf16 %v478_v58, %v477_v9  ;;  %vm25454_vm14 = vmmov %vm25451_vm3  ;;  %v21376_v12 = vld [vmem:[#allocation40] sm:$0xff]  }
 0xbbb   :  { %v6825_v36 = vrot.slane %v6818_v34, %v24347_v29  ;;  %v21397_v34 = vld [vmem:[#allocation6 + $0x8] ss:$16 sps:$4 sm:$0xff]   ;;  %v21379_v58 = vld [vmem:[#allocation40 + $0x50] sm:$0xff]  }
 0xbbd   :  { %v6827_v10 = vadd.f32 %v6825_v36, %v6461_v49  ;;  %v21370_v49 = vld [vmem:[#allocation37 + $0x28] sm:$0xff]   ;;  %9178 = vmatpush1.bf16.msra.mxu0 %v9164_v3  ;;  %v21380_v3 = vld [vmem:[#allocation40 + $0x10] sm:$0xff]  }
 0xbbe   :  { %19481 = vmatpush3.bf16.msra.mxu1 %v21370_v49  ;;  %9228 = vmatprep.subr.bf16.mxu0 %v21399_v15  ;;  %v479_v36 = vld [vmem:[%s25441_s19 + $0x30] sm:$0xff]  ;;  %v21381_v15 = vld [vmem:[#allocation40 + $0x58] sm:$0xff]  }
 0xbbf   :  { %v7191_v38 = vadd.f32 %v7189_v22, %v6827_v10  ;;  %19482 = vmatprep.subr.bf16.mxu1 %v21371_v21  ;;  %v480_v22 = vld [vmem:[%s25441_s19 + $0x38] sm:$0xf]  ;;  %v9170_v10 = vsel %vm25453_vm11, %v21402_v0, 0  ;;  %vm25458_vm11 = vmmov %vm25455_vm1  ;;  %v21384_v0 = vld [vmem:[#allocation40 + $0x20] sm:$0xff]  }
 0xbc0   :  { %18597 = vmatmul.mubr.msk.bf16.vlgmr.msra.gmra.mrb[112].mxu0 %vm25451_vm3, %v24372_v53  ;;  %vm25456_vm3 = vmmov %vm25452_vm6 }
 0xbc1   :  { %9217 = vmatprep.mubr.bf16.mxu0 %v23070_v2  ;;  %9229 = vmatpush1.bf16.msra.mxu0 %v21397_v34  ;;  %v21382_v34 = vld [vmem:[#allocation40 + $0x18] sm:$0xff]  }
 0xbc2   :  { %19483 = vmatpush3.bf16.msra.mxu1 %v21372_v19  ;;  %18599 = vmatprep.subr.msk.bf16.mxu0 %vm25452_vm6, %v21400_v30  ;;  %vm25457_vm6 = vmmov %vm25456_vm3  ;;  %v21383_v30 = vld [vmem:[#allocation40 + $0x60] sm:$0xff]  }
 0xbc3   :  { %19484 = vmatprep.subr.bf16.mxu1 %v21373_v44 }
 0xbc5   :  { %9231 = vmatpush1.bf16.msra.mxu0 %v9170_v10  ;;  %v21387_v10 = vld [vmem:[#allocation40 + $0x70] sm:$0xff]  }
 0xbc6   :  { %19485 = vmatpush3.bf16.msra.mxu1 %v21374_v26  ;;  %9398 = vmatprep.subr.bf16.mxu0 %v21405_v25  ;;  %v21388_v25 = vld [vmem:[#allocation40 + $0x30] sm:$0xff]  }
 0xbc7   :  { %19492 = vmatprep.subr.bf16.mxu1 %v21375_v14 }
 0xbdc   :  { %v7888_v16 = vpop.f32.mrb[104].mxu0 }
 0xbdd   :  { %v7890_v24 = vpop.f32.mrb[105].mxu0 }
 0xbde   :  { %v7897_v13 = vcombine.low %v7888_v16, %v7890_v24  ;;  %v7892_v62 = vpop.f32.mrb[106].mxu0  ;;  %v21403_v16 = vld [vmem:[#allocation9 + $0x8] ss:$16 sps:$4 sm:$0xff]   ;;  %v21406_v24 = vld [vmem:[#allocation9 + $0x2c] ss:$16 sps:$4 sm:$0x3f]  }
 0xbdf   :  { %v7893_v35 = vpop.f32.mrb[107].mxu0  ;;  %v9340_v62 = vsel %vm25457_vm6, %v21408_v28, 0  ;;  %vm25460_vm6 = vmmov %vm25455_vm1 }
 0xbe0   :  { %v7904_v43 = vrot.slane %v7897_v13, %v24347_v29 }
 0xbe2   :  { %v7911_v54 = vrot.slane %v7904_v43, %v24347_v29 }
 0xc09   :  { %v7527_v48 = vpop.f32.mrb[100].mxu1 }
 0xc0a   :  { %v7529_v59 = vpop.f32.mrb[101].mxu1 }
 0xc0b   :  { %v7536_v40 = vcombine.low %v7527_v48, %v7529_v59  ;;  %v7531_v8 = vpop.f32.mrb[102].mxu1 }
 0xc0c   :  { %v7532_v41 = vpop.f32.mrb[103].mxu1 }
 0xc0d   :  { %v7543_v55 = vrot.slane %v7536_v40, %v24347_v29 }
 0xc0f   :  { %v7550_v31 = vrot.slane %v7543_v55, %v24347_v29 }
 0xc11   :  { %v7552_v52 = vadd.f32 %v7550_v31, %v7191_v38  ;;  %v24381_v38 = vpack.c.bf16 %v480_v22, %v479_v36  ;;  %v21385_v36 = vld [vmem:[#allocation40 + $0x68] sm:$0xff]  }
 0xc12   :  { %v21386_v22 = vld [vmem:[#allocation40 + $0x28] sm:$0xff]  }
 0xc13   :  { %v7913_v45 = vadd.f32 %v7911_v54, %v7552_v52  ;;  %18598 = vmatmul.mubr.msk.bf16.gmra.mrb[116].mxu0 %vm25454_vm14, %v24381_v38  ;;  %vm25459_vm14 = vmmov %vm25455_vm1 }
 0xc14   :  { %9260 = vmatprep.mubr.bf16.mxu0 %v23070_v2 }
 0xc1b   :  { %18600 = vmatmul.mubr.msk.bf16.vlgmr.msra.gmra.mrb[120].mxu0 %vm25455_vm1, %v24372_v53 }
 0xc1c   :  { %9270 = vmatprep.mubr.bf16.mxu0 %v23070_v2  ;;  %9399 = vmatpush1.bf16.msra.mxu0 %v21403_v16  ;;  %v21389_v16 = vld [vmem:[#allocation40 + $0x78] sm:$0xff]  }
 0xc1d   :  { %18613 = vmatprep.subr.msk.bf16.mxu0 %vm25456_vm3, %v21406_v24  ;;  %v21390_v24 = vld [vmem:[#allocation40 + $0x38] sm:$0xff]  }
 0xc20   :  { %9401 = vmatpush1.bf16.msra.mxu0 %v9340_v62  ;;  %v9022_v62 = vld [vmem:[%s23229_s29 + $0x80] sm:$0xff] }
 0xc23   :  { %18601 = vmatmul.mubr.msk.bf16.gmra.mrb[124].mxu0 %vm25458_vm11, %v24381_v38  ;;  %vm25461_vm11 = vcmask 1045504  }
 0xc24   :  { %9430 = vmatprep.mubr.bf16.mxu0 %v23070_v2 }
 0xc2b   :  { %18614 = vmatmul.mubr.msk.bf16.vlgmr.msra.gmra.mrb[128].mxu0 %vm25459_vm14, %v24372_v53  ;;  %vm25462_vm14 = vmmov %vm25461_vm11 }
 0xc2c   :  { %9440 = vmatprep.mubr.bf16.mxu0 %v23070_v2 }
 0xc30   :  { %v8610_v13 = vpop.f32.mrb[108].mxu0 }
 0xc31   :  { %v8612_v20 = vpop.f32.mrb[109].mxu0 }
 0xc32   :  { %v8619_v35 = vcombine.low %v8610_v13, %v8612_v20  ;;  %v8614_v63 = vpop.f32.mrb[110].mxu0  ;;  %v9023_v20 = vld [vmem:[%s23229_s29 + $0x88] sm:$0xff] }
 0xc33   :  { %v8615_v46 = vpop.f32.mrb[111].mxu0  ;;  %18615 = vmatmul.mubr.msk.bf16.gmra.mrb[132].mxu0 %vm25455_vm1, %v24381_v38  ;;  %v9006_v63 = vld [vmem:[%s23229_s29] sm:$0xff] }
 0xc34   :  { %9632 = vmatprep.mubr.f32.mxu0 %v23071_v27  ;;  %v8626_v26 = vrot.slane %v8619_v35, %v24347_v29  ;;  %v19875_v35 = vpack.c.bf16 %v9023_v20, %v9022_v62  ;;  %v9007_v46 = vld [vmem:[%s23229_s29 + $0x8] sm:$0xff]  ;;  %v9036_v62 = vld [vmem:[%s23229_s29 + $0xf0] sm:$0xff]  ;;  %v9037_v20 = vld [vmem:[%s23229_s29 + $0xf8] sm:$0xff] }
 0xc36   :  { %v8633_v59 = vrot.slane %v8626_v26, %v24347_v29 }
 0xc5d   :  { %v8249_v17 = vpop.f32.mrb[104].mxu1 }
 0xc5e   :  { %v8251_v49 = vpop.f32.mrb[105].mxu1 }
 0xc5f   :  { %v8258_v21 = vcombine.low %v8249_v17, %v8251_v49  ;;  %v8253_v19 = vpop.f32.mrb[106].mxu1  ;;  %v9024_v17 = vld [vmem:[%s23229_s29 + $0x90] sm:$0xff]  ;;  %v19877_v49 = vpack.c.bf16 %v9007_v46, %v9006_v63  ;;  %v9021_v46 = vld [vmem:[%s23229_s29 + $0x78] sm:$0xff] }
 0xc60   :  { %v8254_v44 = vpop.f32.mrb[107].mxu1  ;;  %v9008_v19 = vld [vmem:[%s23229_s29 + $0x10] sm:$0xff] }
 0xc61   :  { %v8265_v14 = vrot.slane %v8258_v21, %v24347_v29  ;;  %v9025_v21 = vld [vmem:[%s23229_s29 + $0x98] sm:$0xff]  ;;  %v9020_v63 = vld [vmem:[%s23229_s29 + $0x70] sm:$0xff] }
 0xc62   :  { %v9009_v44 = vld [vmem:[%s23229_s29 + $0x18] sm:$0xff]  ;;  %v19879_v26 = vpack.c.bf16 %v9025_v21, %v9024_v17  ;;  %v19905_v17 = vpack.c.bf16 %v9021_v46, %v9020_v63  ;;  %v24480_v46 = vld [vmem:[#allocation10 + $0x10] sm:$0xff] }
 0xc63   :  { %v8272_v48 = vrot.slane %v8265_v14, %v24347_v29  ;;  %v9026_v14 = vld [vmem:[%s23229_s29 + $0xa0] sm:$0xff] }
 0xc65   :  { %v8274_v40 = vadd.f32 %v8272_v48, %v7913_v45  ;;  %v21378_v45 = vld [vmem:[#allocation40 + $0x8] sm:$0xff]   ;;  %v9027_v48 = vld [vmem:[%s23229_s29 + $0xa8] sm:$0xff] }
 0xc67   :  { %v8635_v8 = vadd.f32 %v8633_v59, %v8274_v40  ;;  %v19881_v59 = vpack.c.bf16 %v9009_v44, %v9008_v19  ;;  %v19883_v40 = vpack.c.bf16 %v9027_v48, %v9026_v14 }
 0xc69   :  { %v8636_v41 = vmax.f32 %v8635_v8, 0.0  ;;  %v9010_v8 = vld [vmem:[%s23229_s29 + $0x20] sm:$0xff] }
 0xc6b   :  { %v8637_v43 = vand.u32 2147483647, %v8636_v41  ;;  %v8831_v52 = vrot.slane %v8636_v41, %v23561_v7  ;;  %v8827_v28 = vrot.slane %v8636_v41, %v23558_v5 }
 0xc6d   :  { %vm8638_vm3 = vcmp.gt.f32.partialorder %v8637_v43, 0.05  ;;  %v8835_v9 = vpack.c.bf16 %v8831_v52, %v8831_v52  ;;  %v8834_v13 = vpack.c.bf16 %v8827_v28, %v8827_v28  ;;  %v9028_v43 = vld [vmem:[%s23229_s29 + $0xb0] sm:$0xff]  ;;  %v9019_v28 = vld [vmem:[%s23229_s29 + $0x68] sm:$0xff] }
 0xc6e   :  { %v8639_v55 = vsel %vm8638_vm3, %v8636_v41, 0.0  ;;  %v9011_v41 = vld [vmem:[%s23229_s29 + $0x28] sm:$0xff]  ;;  %v9012_v52 = vld [vmem:[%s23229_s29 + $0x30] sm:$0xff]  ;;  %vm25463_vm3 = vmmov %vm25455_vm1 }
 0xc6f   :  { %v8644_v31 = vrot.slane %v8639_v55, %v23558_v5  ;;  %v8648_v54 = vrot.slane %v8639_v55, %v23561_v7  ;;  %v9029_v55 = vld [vmem:[%s23229_s29 + $0xb8] sm:$0xff] }
 0xc71   :  { %v8651_v61 = vpack.c.bf16 %v8644_v31, %v8644_v31  ;;  %v8652_v51 = vpack.c.bf16 %v8648_v54, %v8648_v54  ;;  %v19885_v31 = vpack.c.bf16 %v9011_v41, %v9010_v8  ;;  %v19887_v54 = vpack.c.bf16 %v9029_v55, %v9028_v43 }
 0xc73   :  { %8814 = vmatprep.mubr.bf16.mxu1 %v8652_v51  ;;  %v9030_v51 = vld [vmem:[%s23229_s29 + $0xc0] sm:$0xff] }
 0xc74   :  { %8815 = vmatmul.mubr.bf16.vlgmr.msra.gmra.mrb[108].mxu1 %v8651_v61  ;;  %v9013_v61 = vld [vmem:[%s23229_s29 + $0x38] sm:$0xff] }
 0xc75   :  { %19493 = vmatpush3.bf16.msra.mxu1 %v21376_v12  ;;  %8997 = vmatprep.mubr.bf16.mxu1 %v8835_v9  ;;  %v9031_v12 = vld [vmem:[%s23229_s29 + $0xc8] sm:$0xff] }
 0xc76   :  { %19494 = vmatprep.subr.bf16.mxu1 %v21377_v37  ;;  %v19889_v37 = vpack.c.bf16 %v9013_v61, %v9012_v52  ;;  %v19891_v9 = vpack.c.bf16 %v9031_v12, %v9030_v51 }
 0xc79   :  { %19495 = vmatpush3.bf16.msra.mxu1 %v21378_v45  ;;  %v9014_v45 = vld [vmem:[%s23229_s29 + $0x40] sm:$0xff] }
 0xc7a   :  { %19496 = vmatprep.subr.bf16.mxu1 %v21379_v58  ;;  %v9015_v58 = vld [vmem:[%s23229_s29 + $0x48] sm:$0xff] }
 0xc7d   :  { %19497 = vmatpush3.bf16.msra.mxu1 %v21380_v3  ;;  %v9032_v3 = vld [vmem:[%s23229_s29 + $0xd0] sm:$0xff] }
 0xc7e   :  { %19498 = vmatprep.subr.bf16.mxu1 %v21381_v15  ;;  %v9033_v15 = vld [vmem:[%s23229_s29 + $0xd8] sm:$0xff] }
 0xc81   :  { %19499 = vmatpush3.bf16.msra.mxu1 %v21382_v34  ;;  %v19893_v34 = vpack.c.bf16 %v9015_v58, %v9014_v45 }
 0xc82   :  { %19500 = vmatprep.subr.bf16.mxu1 %v21383_v30  ;;  %v19895_v30 = vpack.c.bf16 %v9033_v15, %v9032_v3 }
 0xc85   :  { %19501 = vmatpush3.bf16.msra.mxu1 %v21384_v0  ;;  %v9016_v0 = vld [vmem:[%s23229_s29 + $0x50] sm:$0xff] }
 0xc86   :  { %19502 = vmatprep.subr.bf16.mxu1 %v21385_v36  ;;  %v9017_v36 = vld [vmem:[%s23229_s29 + $0x58] sm:$0xff] }
 0xc89   :  { %19503 = vmatpush3.bf16.msra.mxu1 %v21386_v22  ;;  %v19897_v22 = vpack.c.bf16 %v9017_v36, %v9016_v0  ;;  %v24466_v0 = vld [vmem:[#allocation10] sm:$0xff] }
 0xc8a   :  { %19504 = vmatprep.subr.bf16.mxu1 %v21387_v10  ;;  %v9034_v10 = vld [vmem:[%s23229_s29 + $0xe0] sm:$0xff] }
 0xc8d   :  { %19505 = vmatpush3.bf16.msra.mxu1 %v21388_v25  ;;  %v9035_v25 = vld [vmem:[%s23229_s29 + $0xe8] sm:$0xff] }
 0xc8e   :  { %19506 = vmatprep.subr.bf16.mxu1 %v21389_v16  ;;  %v19899_v16 = vpack.c.bf16 %v9035_v25, %v9034_v10  ;;  %v21418_v10 = vld [vmem:[#allocation7 + $0x2c] ss:$16 sps:$4 sm:$0x3f]  }
 0xc91   :  { %19507 = vmatpush3.bf16.msra.mxu1 %v21390_v24  ;;  %v9018_v24 = vld [vmem:[%s23229_s29 + $0x60] sm:$0xff] }
 0xc92   :  { %19876 = vmatprep.subr.bf16.mxu1 %v19875_v35  ;;  %v19903_v35 = vpack.c.bf16 %v9037_v20, %v9036_v62  ;;  %v24473_v62 = vld [vmem:[#allocation10 + $0x8] sm:$0xff] }
 0xc93   :  { %v24440_v21 = vpop.f32.mrb[112].mxu0 }
 0xc94   :  { %8998 = vmatmul.mubr.bf16.vlgmr.msra.gmra.mrb[112].mxu1 %v8834_v13  ;;  %v19901_v13 = vpack.c.bf16 %v9019_v28, %v9018_v24  ;;  %v24442_v19 = vpop.f32.mrb[113].mxu0 }
 0xc95   :  { %19878 = vmatpush3.bf16.msra.mxu1 %v19877_v49  ;;  %v21411_v49 = vld [vmem:[#allocation9 + $0x4] ss:$16 sps:$4 sm:$0xff]   ;;  %v24444_v44 = vpop.f32.mrb[114].mxu0 }
 0xc96   :  { %19880 = vmatprep.subr.bf16.mxu1 %v19879_v26  ;;  %v19909_v26 = vpack.c.bf16 %v24444_v44, %v24440_v21  ;;  %v24448_v14 = vpop.f32.mrb[115].mxu0  ;;  %v21421_v21 = vld [vmem:[#allocation7] ss:$16 sps:$4 sm:$0xff]  }
 0xc97   :  { %v19907_v48 = vpack.c.bf16 %v24448_v14, %v24442_v19  ;;  %v21424_v19 = vld [vmem:[#allocation7 + $0x24] ss:$16 sps:$4 sm:$0x3f]   ;;  %v21426_v44 = vld [vmem:[#allocation7 + $0x20] ss:$16 sps:$4 sm:$0x3f]  }
 0xc99   :  { %19882 = vmatpush3.bf16.msra.mxu1 %v19881_v59 }
 0xc9a   :  { %19884 = vmatprep.subr.bf16.mxu1 %v19883_v40 }
 0xc9d   :  { %19886 = vmatpush3.bf16.msra.mxu1 %v19885_v31 }
 0xc9e   :  { %19888 = vmatprep.subr.bf16.mxu1 %v19887_v54 }
 0xca1   :  { %19890 = vmatpush3.bf16.msra.mxu1 %v19889_v37 }
 0xca2   :  { %19892 = vmatprep.subr.bf16.mxu1 %v19891_v9 }
 0xca5   :  { %19894 = vmatpush3.bf16.msra.mxu1 %v19893_v34  ;;  %v21417_v34 = vld [vmem:[#allocation7 + $0xc] ss:$16 sps:$4 sm:$0xff]  }
 0xca6   :  { %19896 = vmatprep.subr.bf16.mxu1 %v19895_v30 }
 0xca9   :  { %19898 = vmatpush3.bf16.msra.mxu1 %v19897_v22  ;;  %v21415_v22 = vld [vmem:[#allocation7 + $0x8] ss:$16 sps:$4 sm:$0xff]  }
 0xcaa   :  { %19900 = vmatprep.subr.bf16.mxu1 %v19899_v16  ;;  %v21420_v16 = vld [vmem:[#allocation7 + $0x28] ss:$16 sps:$4 sm:$0x3f]  }
 0xcab   :  { %v9700_v20 = vsel %vm25462_vm14, %v21420_v16, 0  ;;  %vm25466_vm14 = vmmov %vm25455_vm1 }
 0xcad   :  { %19902 = vmatpush3.bf16.msra.mxu1 %v19901_v13 }
 0xcae   :  { %19904 = vmatprep.subr.bf16.mxu1 %v19903_v35 }
 0xcb1   :  { %19906 = vmatpush3.bf16.msra.mxu1 %v19905_v17 }
 0xcb2   :  { %9345 = vmatprep.subr.bf16.mxu1 %v21411_v49 }
 0xce6   :  { %v24452_v59 = vpop.f32.mrb[116].mxu0 }
 0xce7   :  { %v24454_v40 = vpop.f32.mrb[117].mxu0 }
 0xce8   :  { %v24456_v8 = vpop.f32.mrb[118].mxu0 }
 0xce9   :  { %v19914_v41 = vpack.c.bf16 %v24456_v8, %v24452_v59  ;;  %v24460_v43 = vpop.f32.mrb[119].mxu0 }
 0xcea   :  { %v19911_v55 = vpack.c.bf16 %v24460_v43, %v24454_v40 }
 0xcee   :  { %v9262_v31 = vpop.f32.mrb[120].mxu0 }
 0xcef   :  { %v9264_v54 = vpop.f32.mrb[121].mxu0 }
 0xcf0   :  { %v9266_v52 = vpop.f32.mrb[122].mxu0 }
 0xcf1   :  { %v19919_v61 = vpack.c.bf16 %v9266_v52, %v9262_v31  ;;  %v9268_v51 = vpop.f32.mrb[123].mxu0  ;;  %v24485_v52 = vld [vmem:[#allocation10 + $0x18] sm:$0xf] }
 0xcf2   :  { %v19917_v12 = vpack.c.bf16 %v9268_v51, %v9264_v54  ;;  %v24505_v51 = vld [vmem:[#allocation12 + $0x8] sm:$0xff] }
 0xcf4   :  { %19918 = vmatprep.subr.bf16.mxu0 %v19917_v12  ;;  %v24510_v12 = vld [vmem:[#allocation12 + $0x10] sm:$0xff] }
 0xcf5   :  { %19920 = vmatpush1.bf16.msra.mxu0 %v19919_v61  ;;  %v24500_v61 = vld [vmem:[#allocation12] sm:$0xff] }
 0xcf6   :  { %v9272_v37 = vpop.f32.mrb[124].mxu0 }
 0xcf7   :  { %v9274_v9 = vpop.f32.mrb[125].mxu0 }
 0xcf8   :  { %v9276_v45 = vpop.f32.mrb[126].mxu0 }
 0xcf9   :  { %v19924_v58 = vpack.c.bf16 %v9276_v45, %v9272_v37  ;;  %v9278_v3 = vpop.f32.mrb[127].mxu0  ;;  %v24515_v37 = vld [vmem:[#allocation12 + $0x18] sm:$0xf] }
 0xcfa   :  { %v19921_v15 = vpack.c.bf16 %v9278_v3, %v9274_v9 }
 0xcfc   :  { %19923 = vmatprep.subr.msk.bf16.mxu0 %vm23472_vm4, %v19921_v15 }
 0xcfd   :  { %19926 = vmatpush1.bf16.msk.msra.mxu0 %vm23472_vm4, %v19924_v58 }
 0xcfe   :  { %v9432_v30 = vpop.f32.mrb[128].mxu0  ;;  %9758 = vmatprep.subr.bf16.mxu0 %v21417_v34  ;;  %v8685_v34 = vld [vmem:[#allocation39] sm:$0x1] }
 0xcff   :  { %v9434_v36 = vpop.f32.mrb[129].mxu0 }
 0xd00   :  { %v9436_v25 = vpop.f32.mrb[130].mxu0  ;;  %18624 = vmatmul.mubr.msk.f32.vlgmr.msra.gmra.mrb[136].mxu0 %vm25460_vm6, %v24466_v0  ;;  %vm25464_vm6 = vmmov %vm25455_vm1 }
 0xd01   :  { %v19939_v24 = vpack.c.bf16 %v9436_v25, %v9432_v30  ;;  %v9438_v28 = vpop.f32.mrb[131].mxu0  ;;  %9638 = vmatprep.mubr.f32.mxu0 %v23071_v27  ;;  %9759 = vmatpush1.bf16.msra.mxu0 %v21415_v22 }
 0xd02   :  { %v19937_v13 = vpack.c.bf16 %v9438_v28, %v9434_v36  ;;  %18639 = vmatprep.subr.msk.bf16.mxu0 %vm25461_vm11, %v21418_v10  ;;  %vm25465_vm11 = vmmov %vm25455_vm1  ;;  %v8868_v36 = vld [vmem:[#allocation42] sm:$0x1] }
 0xd04   :  { %18625 = vmatmul.mubr.msk.f32.gmra.mrb[138].mxu0 %vm25455_vm1, %v24473_v62 }
 0xd05   :  { %9644 = vmatprep.mubr.f32.mxu0 %v23071_v27  ;;  %9761 = vmatpush1.bf16.msra.mxu0 %v9700_v20  ;;  %v21409_v20 = vld [vmem:[#allocation9] ss:$16 sps:$4 sm:$0xff]  }
 0xd06   :  { %v9442_v35 = vpop.f32.mrb[132].mxu0  ;;  %19938 = vmatprep.subr.bf16.mxu0 %v19937_v13 }
 0xd07   :  { %v9444_v63 = vpop.f32.mrb[133].mxu0 }
 0xd08   :  { %v9446_v17 = vpop.f32.mrb[134].mxu0  ;;  %18626 = vmatmul.mubr.msk.f32.gmra.mrb[140].mxu0 %vm25463_vm3, %v24480_v46  ;;  %vm25467_vm3 = vmmov %vm25455_vm1 }
 0xd09   :  { %v19944_v49 = vpack.c.bf16 %v9446_v17, %v9442_v35  ;;  %v9448_v31 = vpop.f32.mrb[135].mxu0  ;;  %9650 = vmatprep.mubr.f32.mxu0 %v23071_v27  ;;  %v21412_v35 = vld [vmem:[#allocation9 + $0x24] ss:$16 sps:$4 sm:$0x3f]  }
 0xd0a   :  { %v19941_v54 = vpack.c.bf16 %v9448_v31, %v9444_v63  ;;  %v21414_v17 = vld [vmem:[#allocation9 + $0x20] ss:$16 sps:$4 sm:$0x3f]   ;;  %v21423_v31 = vld [vmem:[#allocation7 + $0x4] ss:$16 sps:$4 sm:$0xff]  }
 0xd0c   :  { %18627 = vmatmul.mubr.msk.f32.gmra.mrb[142].mxu0 %vm25464_vm6, %v24485_v52  ;;  %vm25468_vm6 = vmmov %vm25455_vm1 }
 0xd0d   :  { %9790 = vmatprep.mubr.bf16.mxu0 %v23070_v2 }
 0xd10   :  { %18640 = vmatmul.mubr.msk.bf16.vlgmr.msra.gmra.mrb[144].mxu0 %vm25465_vm11, %v24372_v53  ;;  %vm25469_vm11 = vmmov %vm25455_vm1 }
 0xd11   :  { %9800 = vmatprep.mubr.bf16.mxu0 %v23070_v2  ;;  %19940 = vmatpush1.bf16.msra.mxu0 %v19939_v24 }
 0xd12   :  { %19943 = vmatprep.subr.msk.bf16.mxu0 %vm23472_vm4, %v19941_v54 }
 0xd15   :  { %19946 = vmatpush1.bf16.msk.msra.mxu0 %vm23472_vm4, %v19944_v49 }
 0xd18   :  { %18641 = vmatmul.mubr.msk.bf16.gmra.mrb[148].mxu0 %vm25466_vm14, %v24381_v38  ;;  %vm25470_vm14 = vcmask 1045504  }
 0xd19   :  { %9992 = vmatprep.mubr.f32.mxu0 %v23071_v27 }
 0xd20   :  { %18650 = vmatmul.mubr.msk.f32.vlgmr.msra.gmra.mrb[152].mxu0 %vm25455_vm1, %v24500_v61  ;;  %vm25471_vm1 = vmmov %vm25470_vm14 }
 0xd21   :  { %9998 = vmatprep.mubr.f32.mxu0 %v23071_v27  ;;  %v9334_v49 = vsel %vm25471_vm1, %v21414_v17, 0 }
 0xd24   :  { %18651 = vmatmul.mubr.msk.f32.gmra.mrb[154].mxu0 %vm25467_vm3, %v24505_v51 }
 0xd25   :  { %10004 = vmatprep.mubr.f32.mxu0 %v23071_v27 }
 0xd28   :  { %18652 = vmatmul.mubr.msk.f32.gmra.mrb[156].mxu0 %vm25468_vm6, %v24510_v12  ;;  %vm25472_vm6 = vmmov %vm25467_vm3 }
 0xd29   :  { %10010 = vmatprep.mubr.f32.mxu0 %v23071_v27 }
 0xd2c   :  { %18653 = vmatmul.mubr.msk.f32.gmra.mrb[158].mxu0 %vm25469_vm11, %v24515_v37  ;;  %vm25473_vm11 = vmmov %vm25467_vm3 }
 0xd2d   :  { %10248 = vmatprep.mubr.f32.mxu0 %v23071_v27 }
 0xd47   :  { %v19486_v9 = vpop.f32.mrb[108].mxu1 }
 0xd48   :  { %v19487_v45 = vpop.f32.mrb[109].mxu1 }
 0xd49   :  { %v19488_v58 = vadd.f32 %v19487_v45, %v19486_v9  ;;  %v19489_v3 = vpop.f32.mrb[110].mxu1 }
 0xd4a   :  { %v19490_v15 = vpop.f32.mrb[111].mxu1 }
 0xd4b   :  { %v8817_v16 = vadd.f32 %v19488_v58, %v8685_v34 }
 0xd4d   :  { %v8822_v63 = vmax.f32 %v8817_v16, 0.0 }
 0xd67   :  { %v19508_v30 = vpop.f32.mrb[112].mxu1 }
 0xd68   :  { %v19509_v22 = vpop.f32.mrb[113].mxu1 }
 0xd69   :  { %v19510_v10 = vadd.f32 %v19509_v22, %v19508_v30  ;;  %v19511_v25 = vpop.f32.mrb[114].mxu1 }
 0xd6a   :  { %v19512_v24 = vpop.f32.mrb[115].mxu1 }
 0xd6b   :  { %v9000_v28 = vadd.f32 %v19510_v10, %v8868_v36  ;;  %v24565_v10 = vld [vmem:[#allocation16] sm:$0xf] }
 0xd6c   :  { %v10046_v25 = vrot.slane %v24565_v10, %v23568_v56  ;;  %v10050_v24 = vrot.slane %v24565_v10, %v23571_v60 }
 0xd6d   :  { %v9005_v13 = vmax.f32 %v9000_v28, 0.0 }
 0xd6f   :  { %9103 = vmatprep.mubr.f32.mxu1 %v9005_v13 }
 0xd70   :  { %9104 = vmatmul.mubr.f32.vlgmr.msra.gmra.mrb[116].mxu1 %v8822_v63 }
 0xd71   :  { %9346 = vmatpush1.bf16.msra.mxu1 %v21409_v20  ;;  %9377 = vmatprep.mubr.bf16.mxu1 %v23070_v2 }
 0xd72   :  { %18610 = vmatprep.subr.msk.bf16.mxu1 %vm25470_vm14, %v21412_v35  ;;  %vm25474_vm14 = vmmov %vm25471_vm1 }
 0xd75   :  { %9348 = vmatpush1.bf16.msra.mxu1 %v9334_v49 }
 0xd76   :  { %19908 = vmatprep.subr.bf16.mxu1 %v19907_v48 }
 0xd78   :  { %18611 = vmatmul.mubr.msk.bf16.vlgmr.msra.gmra.mrb[120].mxu1 %vm25467_vm3, %v24372_v53 }
 0xd79   :  { %9387 = vmatprep.mubr.bf16.mxu1 %v23070_v2  ;;  %19910 = vmatpush1.bf16.msra.mxu1 %v19909_v26  ;;  %v9694_v26 = vsel %vm25471_vm1, %v21426_v44, 0  ;;  %vm25478_vm1 = vmmov %vm25467_vm3 }
 0xd7a   :  { %19913 = vmatprep.subr.msk.bf16.mxu1 %vm23472_vm4, %v19911_v55 }
 0xd7d   :  { %19916 = vmatpush1.bf16.msk.msra.mxu1 %vm23472_vm4, %v19914_v41 }
 0xd7e   :  { %9705 = vmatprep.subr.bf16.mxu1 %v21423_v31 }
 0xd80   :  { %18612 = vmatmul.mubr.msk.bf16.gmra.mrb[124].mxu1 %vm25472_vm6, %v24381_v38  ;;  %vm25475_vm6 = vmmov %vm25467_vm3 }
 0xd81   :  { %9543 = vmatprep.mubr.f32.mxu1 %v23071_v27 }
 0xd88   :  { %18618 = vmatmul.mubr.msk.f32.vlgmr.msra.gmra.mrb[118].mxu1 %vm25473_vm11, %v24466_v0  ;;  %vm25476_vm11 = vmmov %vm25467_vm3 }
 0xd89   :  { %9549 = vmatprep.mubr.f32.mxu1 %v23071_v27  ;;  %9706 = vmatpush1.bf16.msra.mxu1 %v21421_v21 }
 0xd8a   :  { %18636 = vmatprep.subr.msk.bf16.mxu1 %vm25474_vm14, %v21424_v19  ;;  %vm25477_vm14 = vmmov %vm25467_vm3 }
 0xd8c   :  { %18619 = vmatmul.mubr.msk.f32.gmra.mrb[128].mxu1 %vm25467_vm3, %v24473_v62  ;;  %vm25479_vm3 = vmmov %vm25478_vm1 }
 0xd8d   :  { %9555 = vmatprep.mubr.f32.mxu1 %v23071_v27  ;;  %9708 = vmatpush1.bf16.msra.mxu1 %v9694_v26 }
 0xd90   :  { %18620 = vmatmul.mubr.msk.f32.gmra.mrb[130].mxu1 %vm25475_vm6, %v24480_v46  ;;  %vm25480_vm6 = vmmov %vm25478_vm1 }
 0xd91   :  { %9561 = vmatprep.mubr.f32.mxu1 %v23071_v27 }
 0xd94   :  { %18621 = vmatmul.mubr.msk.f32.gmra.mrb[132].mxu1 %vm25476_vm11, %v24485_v52  ;;  %vm25481_vm11 = vmmov %vm25478_vm1 }
 0xd95   :  { %9737 = vmatprep.mubr.bf16.mxu1 %v23070_v2 }
 0xd98   :  { %18637 = vmatmul.mubr.msk.bf16.vlgmr.msra.gmra.mrb[136].mxu1 %vm25477_vm14, %v24372_v53  ;;  %vm25482_vm14 = vmmov %vm25478_vm1 }
 0xd99   :  { %9747 = vmatprep.mubr.bf16.mxu1 %v23070_v2 }
 0xda0   :  { %18638 = vmatmul.mubr.msk.bf16.gmra.mrb[140].mxu1 %vm25478_vm1, %v24381_v38  ;;  %vm25416_vm1 = vcmask 73728  }
 0xda1   :  { %9903 = vmatprep.mubr.f32.mxu1 %v23071_v27 }
 0xdd3   :  { %v9634_v14 = vpop.f32.mrb[136].mxu0 }
 0xdd4   :  { %v9636_v48 = vpop.f32.mrb[137].mxu0 }
 0xdd7   :  { %v9640_v59 = vpop.f32.mrb[138].mxu0 }
 0xdd8   :  { %v9642_v40 = vpop.f32.mrb[139].mxu0 }
 0xddb   :  { %v9646_v8 = vpop.f32.mrb[140].mxu0 }
 0xddc   :  { %v9648_v41 = vpop.f32.mrb[141].mxu0 }
 0xddf   :  { %v9652_v43 = vpop.f32.mrb[142].mxu0 }
 0xde0   :  { %v9654_v55 = vpop.f32.mrb[143].mxu0 }
 0xde3   :  { %v9792_v0 = vpop.f32.mrb[144].mxu0 }
 0xde4   :  { %v9793_v62 = vadd.f32 %v9792_v0, %v9634_v14  ;;  %v9794_v46 = vpop.f32.mrb[145].mxu0 }
 0xde5   :  { %v9795_v54 = vadd.f32 %v9794_v46, %v9636_v48  ;;  %v9796_v53 = vpop.f32.mrb[146].mxu0 }
 0xde6   :  { %v9797_v52 = vadd.f32 %v9796_v53, %v9640_v59  ;;  %v9798_v9 = vpop.f32.mrb[147].mxu0 }
 0xde7   :  { %v9799_v45 = vadd.f32 %v9798_v9, %v9642_v40 }
 0xdeb   :  { %v9802_v58 = vpop.f32.mrb[148].mxu0 }
 0xdec   :  { %v9803_v38 = vadd.f32 %v9802_v58, %v9646_v8  ;;  %v9804_v3 = vpop.f32.mrb[149].mxu0 }
 0xded   :  { %v9805_v15 = vadd.f32 %v9804_v3, %v9648_v41  ;;  %v9806_v34 = vpop.f32.mrb[150].mxu0 }
 0xdee   :  { %v9807_v30 = vadd.f32 %v9806_v34, %v9652_v43  ;;  %v9808_v36 = vpop.f32.mrb[151].mxu0 }
 0xdef   :  { %v9809_v22 = vadd.f32 %v9808_v36, %v9654_v55 }
 0xdf3   :  { %v9994_v16 = vpop.f32.mrb[152].mxu0 }
 0xdf4   :  { %v10019_v28 = vadd.f32 %v9994_v16, %v9793_v62  ;;  %v9996_v13 = vpop.f32.mrb[153].mxu0 }
 0xdf5   :  { %v10020_v20 = vadd.f32 %v9996_v13, %v9795_v54  ;;  %v9038_v13 = vld [vmem:[#allocation43] sm:$0x1] }
 0xdf6   :  { %v10057_v35 = vadd.f32 %v10046_v25, %v10019_v28 }
 0xdf7   :  { %v10058_v63 = vadd.f32 %v10050_v24, %v10020_v20  ;;  %v10000_v17 = vpop.f32.mrb[154].mxu0 }
 0xdf8   :  { %v10023_v49 = vadd.f32 %v10000_v17, %v9797_v52  ;;  %v10002_v31 = vpop.f32.mrb[155].mxu0  ;;  %v10073_v19 = vmax.f32 %v10057_v35, 0.0 }
 0xdf9   :  { %v10024_v21 = vadd.f32 %v10002_v31, %v9799_v45  ;;  %v10074_v26 = vmax.f32 %v10058_v63, 0.0 }
 0xdfa   :  { %v10061_v44 = vadd.f32 %v10046_v25, %v10023_v49 }
 0xdfb   :  { %v10062_v14 = vadd.f32 %v10050_v24, %v10024_v21  ;;  %v10006_v48 = vpop.f32.mrb[156].mxu0 }
 0xdfc   :  { %v10077_v59 = vmax.f32 %v10061_v44, 0.0  ;;  %v10027_v40 = vadd.f32 %v10006_v48, %v9803_v38  ;;  %v10008_v8 = vpop.f32.mrb[157].mxu0 }
 0xdfd   :  { %v10078_v41 = vmax.f32 %v10062_v14, 0.0  ;;  %v10028_v43 = vadd.f32 %v10008_v8, %v9805_v15  ;;  %v24575_v15 = vld [vmem:[#allocation13] sm:$0xff] }
 0xdfe   :  { %v19959_v55 = vpack.c.bf16 %v10077_v59, %v10073_v19  ;;  %v10065_v0 = vadd.f32 %v10046_v25, %v10027_v40 }
 0xdff   :  { %v10066_v62 = vadd.f32 %v10050_v24, %v10028_v43  ;;  %v10012_v46 = vpop.f32.mrb[158].mxu0  ;;  %v19957_v54 = vpack.c.bf16 %v10078_v41, %v10074_v26 }
 0xe00   :  { %v10031_v53 = vadd.f32 %v10012_v46, %v9807_v30  ;;  %v10014_v9 = vpop.f32.mrb[159].mxu0  ;;  %v10081_v45 = vmax.f32 %v10065_v0, 0.0  ;;  %v24580_v30 = vld [vmem:[#allocation13 + $0x8] sm:$0x3f] }
 0xe01   :  { %v10032_v52 = vadd.f32 %v10014_v9, %v9809_v22  ;;  %19958 = vmatprep.subr.bf16.mxu0 %v19957_v54  ;;  %v10082_v3 = vmax.f32 %v10066_v62, 0.0  ;;  %v24589_v22 = vld [vmem:[#allocation15] sm:$0xff] }
 0xe02   :  { %v10069_v58 = vadd.f32 %v10046_v25, %v10031_v53  ;;  %19960 = vmatpush1.bf16.msra.mxu0 %v19959_v55  ;;  %v24594_v25 = vld [vmem:[#allocation15 + $0x8] sm:$0x3f] }
 0xe03   :  { %v10070_v34 = vadd.f32 %v10050_v24, %v10032_v52 }
 0xe04   :  { %v10085_v36 = vmax.f32 %v10069_v58, 0.0 }
 0xe05   :  { %v10086_v16 = vmax.f32 %v10070_v34, 0.0 }
 0xe06   :  { %v19964_v38 = vpack.c.bf16 %v10085_v36, %v10081_v45 }
 0xe07   :  { %v19961_v28 = vpack.c.bf16 %v10086_v16, %v10082_v3 }
 0xe09   :  { %19963 = vmatprep.subr.msk.bf16.mxu0 %vm23472_vm4, %v19961_v28 }
 0xe0a   :  { %19966 = vmatpush1.bf16.msk.msra.mxu0 %vm23472_vm4, %v19964_v38 }
 0xe0b   :  { %19978 = vmatprep.subr.bf16.mxu0 %v19957_v54 }
 0xe0d   :  { %18660 = vmatmul.mubr.msk.f32.vlgmr.msra.gmra.mrb[160].mxu0 %vm25479_vm3, %v24575_v15 }
 0xe0e   :  { %19980 = vmatpush1.bf16.msra.mxu0 %v19959_v55  ;;  %10254 = vmatprep.mubr.f32.mxu0 %v23071_v27 }
 0xe0f   :  { %19983 = vmatprep.subr.msk.bf16.mxu0 %vm23472_vm4, %v19961_v28 }
 0xe11   :  { %18661 = vmatmul.mubr.msk.f32.gmra.mrb[162].mxu0 %vm25480_vm6, %v24580_v30  ;;  %vm25483_vm6 = vmmov %vm25479_vm3 }
 0xe12   :  { %19986 = vmatpush1.bf16.msk.msra.mxu0 %vm23472_vm4, %v19964_v38  ;;  %10410 = vmatprep.mubr.f32.mxu0 %v23071_v27 }
 0xe15   :  { %18668 = vmatmul.mubr.msk.f32.vlgmr.msra.gmra.mrb[164].mxu0 %vm25481_vm11, %v24589_v22  ;;  %vm25484_vm11 = vmmov %vm25479_vm3 }
 0xe16   :  { %10416 = vmatprep.mubr.f32.mxu0 %v23071_v27 }
 0xe19   :  { %18669 = vmatmul.mubr.msk.f32.gmra.mrb[166].mxu0 %vm25482_vm14, %v24594_v25  ;;  %vm25485_vm14 = vmmov %vm25479_vm3 }
 0xe43   :  { %v19546_v24 = vpop.f32.mrb[116].mxu1 }
 0xe44   :  { %v19547_v20 = vpop.f32.mrb[117].mxu1 }
 0xe45   :  { %v19548_v35 = vadd.f32 %v19547_v20, %v19546_v24 }
 0xe47   :  { %v9106_v63 = vadd.f32 %v19548_v35, %v9038_v13 }
 0xe49   :  { %9110 = vst.msk [vmem:[#allocation45] sm:$0x1] %vm25416_vm1, %v9106_v63 }
 0xe4b   :  { %v9379_v17 = vpop.f32.mrb[120].mxu1 }
 0xe4c   :  { %v9381_v49 = vpop.f32.mrb[121].mxu1 }
 0xe4d   :  { %v9383_v31 = vpop.f32.mrb[122].mxu1 }
 0xe4e   :  { %v19929_v21 = vpack.c.bf16 %v9383_v31, %v9379_v17  ;;  %v9385_v19 = vpop.f32.mrb[123].mxu1 }
 0xe4f   :  { %v19927_v44 = vpack.c.bf16 %v9385_v19, %v9381_v49 }
 0xe51   :  { %19928 = vmatprep.subr.bf16.mxu1 %v19927_v44 }
 0xe52   :  { %19930 = vmatpush1.bf16.msra.mxu1 %v19929_v21 }
 0xe53   :  { %v9389_v26 = vpop.f32.mrb[124].mxu1 }
 0xe54   :  { %v9391_v14 = vpop.f32.mrb[125].mxu1 }
 0xe55   :  { %v9393_v48 = vpop.f32.mrb[126].mxu1 }
 0xe56   :  { %v19934_v59 = vpack.c.bf16 %v9393_v48, %v9389_v26  ;;  %v9395_v40 = vpop.f32.mrb[127].mxu1 }
 0xe57   :  { %v19931_v8 = vpack.c.bf16 %v9395_v40, %v9391_v14 }
 0xe59   :  { %19933 = vmatprep.subr.msk.bf16.mxu1 %vm23472_vm4, %v19931_v8 }
 0xe5a   :  { %19936 = vmatpush1.bf16.msk.msra.mxu1 %vm23472_vm4, %v19934_v59 }
 0xe5b   :  { %v9545_v41 = vpop.f32.mrb[118].mxu1 }
 0xe5c   :  { %v9547_v43 = vpop.f32.mrb[119].mxu1 }
 0xe5d   :  { %18644 = vmatmul.mubr.msk.f32.vlgmr.msra.gmra.mrb[134].mxu1 %vm25479_vm3, %v24500_v61 }
 0xe5e   :  { %9909 = vmatprep.mubr.f32.mxu1 %v23071_v27 }
 0xe5f   :  { %v9551_v55 = vpop.f32.mrb[128].mxu1 }
 0xe60   :  { %v9553_v0 = vpop.f32.mrb[129].mxu1 }
 0xe61   :  { %18645 = vmatmul.mubr.msk.f32.gmra.mrb[144].mxu1 %vm25483_vm6, %v24505_v51  ;;  %vm25486_vm6 = vmmov %vm25479_vm3 }
 0xe62   :  { %9915 = vmatprep.mubr.f32.mxu1 %v23071_v27 }
 0xe63   :  { %v9557_v62 = vpop.f32.mrb[130].mxu1 }
 0xe64   :  { %v9559_v46 = vpop.f32.mrb[131].mxu1 }
 0xe65   :  { %18646 = vmatmul.mubr.msk.f32.gmra.mrb[146].mxu1 %vm25484_vm11, %v24510_v12  ;;  %vm25487_vm11 = vmmov %vm25479_vm3 }
 0xe66   :  { %9921 = vmatprep.mubr.f32.mxu1 %v23071_v27 }
 0xe67   :  { %v9563_v54 = vpop.f32.mrb[132].mxu1 }
 0xe68   :  { %v9565_v53 = vpop.f32.mrb[133].mxu1 }
 0xe69   :  { %18647 = vmatmul.mubr.msk.f32.gmra.mrb[148].mxu1 %vm25485_vm14, %v24515_v37  ;;  %vm25488_vm14 = vmmov %vm25479_vm3 }
 0xe6a   :  { %10171 = vmatprep.mubr.f32.mxu1 %v23071_v27 }
 0xe6b   :  { %v9739_v61 = vpop.f32.mrb[136].mxu1 }
 0xe6c   :  { %v9740_v9 = vadd.f32 %v9739_v61, %v9545_v41  ;;  %v9741_v52 = vpop.f32.mrb[137].mxu1 }
 0xe6d   :  { %v9742_v51 = vadd.f32 %v9741_v52, %v9547_v43  ;;  %v9743_v45 = vpop.f32.mrb[138].mxu1  ;;  %v10038_v43 = vrot.slane %v24565_v10, %v23558_v5 }
 0xe6e   :  { %v9744_v58 = vadd.f32 %v9743_v45, %v9551_v55  ;;  %v9745_v3 = vpop.f32.mrb[139].mxu1 }
 0xe6f   :  { %v9746_v34 = vadd.f32 %v9745_v3, %v9553_v0 }
 0xe73   :  { %v9749_v36 = vpop.f32.mrb[140].mxu1 }
 0xe74   :  { %v9750_v16 = vadd.f32 %v9749_v36, %v9557_v62  ;;  %v9751_v12 = vpop.f32.mrb[141].mxu1  ;;  %v10042_v62 = vrot.slane %v24565_v10, %v23561_v7 }
 0xe75   :  { %v9752_v38 = vadd.f32 %v9751_v12, %v9559_v46  ;;  %v9753_v28 = vpop.f32.mrb[142].mxu1 }
 0xe76   :  { %v9754_v24 = vadd.f32 %v9753_v28, %v9563_v54  ;;  %v9755_v13 = vpop.f32.mrb[143].mxu1 }
 0xe77   :  { %v9756_v20 = vadd.f32 %v9755_v13, %v9565_v53 }
 0xee0   :  { %v10250_v35 = vpop.f32.mrb[160].mxu0 }
 0xee1   :  { %v10252_v37 = vpop.f32.mrb[161].mxu0 }
 0xee4   :  { %v10256_v63 = vpop.f32.mrb[162].mxu0 }
 0xee5   :  { %v10258_v17 = vpop.f32.mrb[163].mxu0 }
 0xee8   :  { %v10412_v49 = vpop.f32.mrb[164].mxu0 }
 0xee9   :  { %v24615_v31 = vmax.f32 %v10250_v35, %v10412_v49  ;;  %v10414_v21 = vpop.f32.mrb[165].mxu0 }
 0xeea   :  { %v24617_v19 = vmax.f32 %v10252_v37, %v10414_v21 }
 0xeec   :  { %v10418_v44 = vpop.f32.mrb[166].mxu0 }
 0xeed   :  { %v24619_v26 = vmax.f32 %v10256_v63, %v10418_v44  ;;  %v10420_v14 = vpop.f32.mrb[167].mxu0 }
 0xeee   :  { %v24621_v48 = vmax.f32 %v10258_v17, %v10420_v14 }
 0xeef   :  { %v20318_v59 = vpack.i.bf16 %v24619_v26, %v24615_v31 }
 0xef0   :  { %v20333_v40 = vpack.i.bf16 %v24621_v48, %v24617_v19 }
 0xef1   :  { %20319 = vrot.lane.b32.xlu0 %v20318_v59, %s23073_s30 }
 0xef5   :  { %20334 = vrot.lane.b32.xlu0 %v20333_v40, %s23073_s30 }
 0xf30   :  { %v9905_v8 = vpop.f32.mrb[134].mxu1 }
 0xf31   :  { %v10017_v41 = vadd.f32 %v9905_v8, %v9740_v9  ;;  %v9907_v55 = vpop.f32.mrb[135].mxu1 }
 0xf32   :  { %v10018_v0 = vadd.f32 %v9907_v55, %v9742_v51 }
 0xf33   :  { %v10055_v54 = vadd.f32 %v10038_v43, %v10017_v41 }
 0xf34   :  { %v9911_v46 = vpop.f32.mrb[144].mxu1  ;;  %v10056_v52 = vadd.f32 %v10042_v62, %v10018_v0 }
 0xf35   :  { %v10021_v53 = vadd.f32 %v9911_v46, %v9744_v58  ;;  %v9913_v61 = vpop.f32.mrb[145].mxu1  ;;  %v10071_v28 = vmax.f32 %v10055_v54, 0.0 }
 0xf36   :  { %v10022_v45 = vadd.f32 %v9913_v61, %v9746_v34  ;;  %v10072_v37 = vmax.f32 %v10056_v52, 0.0 }
 0xf37   :  { %v10059_v3 = vadd.f32 %v10038_v43, %v10021_v53 }
 0xf38   :  { %v10060_v36 = vadd.f32 %v10042_v62, %v10022_v45  ;;  %v9917_v12 = vpop.f32.mrb[146].mxu1 }
 0xf39   :  { %v10075_v13 = vmax.f32 %v10059_v3, 0.0  ;;  %v10025_v9 = vadd.f32 %v9917_v12, %v9750_v16  ;;  %v9919_v35 = vpop.f32.mrb[147].mxu1 }
 0xf3a   :  { %v10076_v63 = vmax.f32 %v10060_v36, 0.0  ;;  %v10026_v17 = vadd.f32 %v9919_v35, %v9752_v38  ;;  %v21429_v35 = vld [vmem:[#allocation18 + $0x4] ss:$24 sps:$4 sm:$0xff]  }
 0xf3b   :  { %v19949_v51 = vpack.c.bf16 %v10075_v13, %v10071_v28  ;;  %v10063_v10 = vadd.f32 %v10038_v43, %v10025_v9  ;;  %v21427_v9 = vld [vmem:[#allocation18] ss:$24 sps:$4 sm:$0xff]  }
 0xf3c   :  { %v9923_v49 = vpop.f32.mrb[148].mxu1  ;;  %v19947_v21 = vpack.c.bf16 %v10076_v63, %v10072_v37  ;;  %v10064_v58 = vadd.f32 %v10042_v62, %v10026_v17  ;;  %v21430_v37 = vld [vmem:[#allocation18 + $0x8] ss:$24 sps:$4 sm:$0xff]   ;;  %v21435_v63 = vld [vmem:[#allocation18 + $0x34] ss:$24 sps:$4 sm:$0xff]  }
 0xf3d   :  { %v10029_v44 = vadd.f32 %v9923_v49, %v9754_v24  ;;  %v9925_v14 = vpop.f32.mrb[149].mxu1  ;;  %v10079_v8 = vmax.f32 %v10063_v10, 0.0  ;;  %v21433_v17 = vld [vmem:[#allocation18 + $0x30] ss:$24 sps:$4 sm:$0xff]   ;;  %v21441_v49 = vld [vmem:[#allocation18 + $0x64] ss:$24 sps:$4 sm:$0xff]  }
 0xf3e   :  { %v10030_v59 = vadd.f32 %v9925_v14, %v9756_v20  ;;  %19948 = vmatprep.subr.bf16.mxu1 %v19947_v21  ;;  %v10080_v55 = vmax.f32 %v10064_v58, 0.0  ;;  %v21439_v10 = vld [vmem:[#allocation18 + $0x60] ss:$24 sps:$4 sm:$0xff]   ;;  %v21447_v14 = vld [vmem:[#allocation18 + $0x94] ss:$24 sps:$4 sm:$0xff]  }
 0xf3f   :  { %v10067_v34 = vadd.f32 %v10038_v43, %v10029_v44  ;;  %19950 = vmatpush1.bf16.msra.mxu1 %v19949_v51  ;;  %v21442_v44 = vld [vmem:[#allocation18 + $0x68] ss:$24 sps:$4 sm:$0xff]   ;;  %v21450_v58 = vld [vmem:[#allocation18 + $0x9c] ss:$24 sps:$4 sm:$0xff]  }
 0xf40   :  { %v10068_v40 = vadd.f32 %v10042_v62, %v10030_v59  ;;  %v21445_v59 = vld [vmem:[#allocation18 + $0x90] ss:$24 sps:$4 sm:$0xff]  }
 0xf41   :  { %v10083_v41 = vmax.f32 %v10067_v34, 0.0  ;;  %v21448_v34 = vld [vmem:[#allocation18 + $0x98] ss:$24 sps:$4 sm:$0xff]  }
 0xf42   :  { %v10084_v16 = vmax.f32 %v10068_v40, 0.0  ;;  %v21453_v40 = vld [vmem:[#allocation18 + $0xc4] ss:$24 sps:$4 sm:$0xff]  }
 0xf43   :  { %v19954_v0 = vpack.c.bf16 %v10083_v41, %v10079_v8  ;;  %v21456_v8 = vld [vmem:[#allocation18 + $0xcc] ss:$24 sps:$4 sm:$0xff]   ;;  %v21451_v41 = vld [vmem:[#allocation18 + $0xc0] ss:$24 sps:$4 sm:$0xff]  }
 0xf44   :  { %v19951_v46 = vpack.c.bf16 %v10084_v16, %v10080_v55  ;;  %v21454_v55 = vld [vmem:[#allocation18 + $0xc8] ss:$24 sps:$4 sm:$0xff]   ;;  %v21459_v16 = vld [vmem:[#allocation18 + $0xf4] ss:$24 sps:$4 sm:$0xff]  }
 0xf46   :  { %19953 = vmatprep.subr.msk.bf16.mxu1 %vm23472_vm4, %v19951_v46 }
 0xf47   :  { %19956 = vmatpush1.bf16.msk.msra.mxu1 %vm23472_vm4, %v19954_v0 }
 0xf48   :  { %19968 = vmatprep.subr.bf16.mxu1 %v19947_v21  ;;  %v21444_v21 = vld [vmem:[#allocation18 + $0x6c] ss:$24 sps:$4 sm:$0xff]  }
 0xf4a   :  { %18656 = vmatmul.mubr.msk.f32.vlgmr.msra.gmra.mrb[150].mxu1 %vm25479_vm3, %v24575_v15 }
 0xf4b   :  { %19970 = vmatpush1.bf16.msra.mxu1 %v19949_v51  ;;  %10177 = vmatprep.mubr.f32.mxu1 %v23071_v27  ;;  %v21436_v51 = vld [vmem:[#allocation18 + $0x38] ss:$24 sps:$4 sm:$0xff]  }
 0xf4c   :  { %19973 = vmatprep.subr.msk.bf16.mxu1 %vm23472_vm4, %v19951_v46  ;;  %v21457_v46 = vld [vmem:[#allocation18 + $0xf0] ss:$24 sps:$4 sm:$0xff]  }
 0xf4e   :  { %18657 = vmatmul.mubr.msk.f32.gmra.mrb[152].mxu1 %vm25486_vm6, %v24580_v30 }
 0xf4f   :  { %19976 = vmatpush1.bf16.msk.msra.mxu1 %vm23472_vm4, %v19954_v0  ;;  %10333 = vmatprep.mubr.f32.mxu1 %v23071_v27  ;;  %v21462_v0 = vld [vmem:[#allocation18 + $0xfc] ss:$24 sps:$4 sm:$0xff]   ;;  %vm25489_vm4 = vcmask 261120  }
 0xf50   :  { %11084 = vmatprep.subr.bf16.mxu1 %v21429_v35  ;;  %v21486_v35 = vld [vmem:[#allocation18 + $0x1bc] ss:$24 sps:$4 sm:$0xff]   ;;  %vm25490_vm3 = vmmov %vm25489_vm4 }
 0xf51   :  { %vm25491_vm6 = vmmov %vm25490_vm3 }
 0xf52   :  { %18664 = vmatmul.mubr.msk.f32.vlgmr.msra.gmra.mrb[154].mxu1 %vm25487_vm11, %v24589_v22  ;;  %vm25492_vm11 = vmmov %vm25490_vm3 }
 0xf53   :  { %10339 = vmatprep.mubr.f32.mxu1 %v23071_v27  ;;  %11085 = vmatpush1.bf16.msra.mxu1 %v21427_v9  ;;  %v21483_v9 = vld [vmem:[#allocation18 + $0x1b4] ss:$24 sps:$4 sm:$0xff]  }
 0xf54   :  { %11086 = vmatprep.subr.bf16.mxu1 %v21435_v63 }
 0xf56   :  { %18665 = vmatmul.mubr.msk.f32.gmra.mrb[156].mxu1 %vm25488_vm14, %v24594_v25  ;;  %vm25493_vm14 = vcmask 916480  }
 0xf57   :  { %11087 = vmatpush1.bf16.msra.mxu1 %v21433_v17 }
 0xf58   :  { %11088 = vmatprep.subr.bf16.mxu1 %v21441_v49 }
 0xf5b   :  { %11089 = vmatpush1.bf16.msra.mxu1 %v21439_v10  ;;  %v21492_v10 = vld [vmem:[#allocation18 + $0x1ec] ss:$24 sps:$4 sm:$0xff]  }
 0xf5c   :  { %11090 = vmatprep.subr.bf16.mxu1 %v21447_v14  ;;  %v21490_v14 = vld [vmem:[#allocation18 + $0x1e8] ss:$24 sps:$4 sm:$0xff]  }
 0xf5f   :  { %11091 = vmatpush1.bf16.msra.mxu1 %v21445_v59 }
 0xf60   :  { %11092 = vmatprep.subr.bf16.mxu1 %v21453_v40 }
 0xf63   :  { %v20320_v22 = vpop.permute.xlu0 %20319  ;;  %11093 = vmatpush1.bf16.msra.mxu1 %v21451_v41 }
 0xf64   :  { %v20322_v45 = vunpack.i.h.bf16 %v20320_v22  ;;  %v20321_v3 = vunpack.i.l.bf16 %v20320_v22  ;;  %11094 = vmatprep.subr.bf16.mxu1 %v21459_v16  ;;  %v21472_v22 = vld [vmem:[#allocation18 + $0x158] ss:$24 sps:$4 sm:$0xff]  }
 0xf66   :  { %v24664_v36 = vmax.f32 %v24619_v26, %v20322_v45  ;;  %v24667_v12 = vmax.f32 %v24615_v31, %v20321_v3  ;;  %v21432_v26 = vld [vmem:[#allocation18 + $0xc] ss:$24 sps:$4 sm:$0xff]   ;;  %v21438_v31 = vld [vmem:[#allocation18 + $0x3c] ss:$24 sps:$4 sm:$0xff]  }
 0xf67   :  { %11127 = vmatprep.subr.bf16.mxu0 %v21432_v26  ;;  %11095 = vmatpush1.bf16.msra.mxu1 %v21457_v46  ;;  %v21477_v45 = vld [vmem:[#allocation18 + $0x184] ss:$24 sps:$4 sm:$0xff]   ;;  %v21484_v26 = vld [vmem:[#allocation18 + $0x1b8] ss:$24 sps:$4 sm:$0xff]  }
 0xf68   :  { %v20338_v13 = vpack.i.bf16 %v24664_v36, %v24667_v12  ;;  %11128 = vmatpush1.bf16.msra.mxu0 %v21430_v37  ;;  %v21480_v3 = vld [vmem:[#allocation18 + $0x18c] ss:$24 sps:$4 sm:$0xff]   ;;  %v21481_v37 = vld [vmem:[#allocation18 + $0x1b0] ss:$24 sps:$4 sm:$0xff]  }
 0xf69   :  { %11129 = vmatprep.subr.bf16.mxu0 %v21438_v31  ;;  %v21493_v46 = vld [vmem:[#allocation18 + $0x210] ss:$24 sps:$4 sm:$0xff]  }
 0xf6c   :  { %11130 = vmatpush1.bf16.msra.mxu0 %v21436_v51 }
 0xf6d   :  { %11131 = vmatprep.subr.bf16.mxu0 %v21444_v21  ;;  %v21489_v21 = vld [vmem:[#allocation18 + $0x1e4] ss:$24 sps:$4 sm:$0xff]  }
 0xf70   :  { %11132 = vmatpush1.bf16.msra.mxu0 %v21442_v44  ;;  %v21487_v44 = vld [vmem:[#allocation18 + $0x1e0] ss:$24 sps:$4 sm:$0xff]  }
 0xf71   :  { %11133 = vmatprep.subr.bf16.mxu0 %v21450_v58 }
 0xf74   :  { %11134 = vmatpush1.bf16.msra.mxu0 %v21448_v34 }
 0xf75   :  { %11135 = vmatprep.subr.bf16.mxu0 %v21456_v8 }
 0xf78   :  { %11136 = vmatpush1.bf16.msra.mxu0 %v21454_v55 }
 0xf79   :  { %11137 = vmatprep.subr.bf16.mxu0 %v21462_v0  ;;  %v21495_v0 = vld [vmem:[#allocation18 + $0x214] ss:$24 sps:$4 sm:$0xff]  }
0x101d   :  { %v10173_v15 = vpop.f32.mrb[150].mxu1 }
0x101e   :  { %v10175_v38 = vpop.f32.mrb[151].mxu1 }
0x1021   :  { %v10179_v24 = vpop.f32.mrb[152].mxu1 }
0x1022   :  { %v10181_v20 = vpop.f32.mrb[153].mxu1 }
0x1025   :  { %v10335_v43 = vpop.f32.mrb[154].mxu1 }
0x1026   :  { %v24652_v62 = vmax.f32 %v10173_v15, %v10335_v43  ;;  %v10337_v30 = vpop.f32.mrb[155].mxu1  ;;  %v21460_v15 = vld [vmem:[#allocation18 + $0xf8] ss:$24 sps:$4 sm:$0xff]   ;;  %v21466_v43 = vld [vmem:[#allocation18 + $0x128] ss:$24 sps:$4 sm:$0xff]  }
0x1027   :  { %v24654_v33 = vmax.f32 %v10175_v38, %v10337_v30  ;;  %v21465_v38 = vld [vmem:[#allocation18 + $0x124] ss:$24 sps:$4 sm:$0xff]   ;;  %11138 = vmatpush1.bf16.msra.mxu0 %v21460_v15  ;;  %v21471_v30 = vld [vmem:[#allocation18 + $0x154] ss:$24 sps:$4 sm:$0xff]   ;;  %v21496_v15 = vld [vmem:[#allocation18 + $0x218] ss:$24 sps:$4 sm:$0xff]  }
0x1028   :  { %11096 = vmatprep.subr.bf16.mxu1 %v21465_v38  ;;  %v21501_v38 = vld [vmem:[#allocation18 + $0x244] ss:$24 sps:$4 sm:$0xff]  }
0x1029   :  { %v10341_v54 = vpop.f32.mrb[156].mxu1 }
0x102a   :  { %v24656_v53 = vmax.f32 %v10179_v24, %v10341_v54  ;;  %v10343_v61 = vpop.f32.mrb[157].mxu1  ;;  %v21468_v24 = vld [vmem:[#allocation18 + $0x12c] ss:$24 sps:$4 sm:$0xff]   ;;  %v21474_v54 = vld [vmem:[#allocation18 + $0x15c] ss:$24 sps:$4 sm:$0xff]  }
0x102b   :  { %v24658_v52 = vmax.f32 %v10181_v20, %v10343_v61  ;;  %v21463_v20 = vld [vmem:[#allocation18 + $0x120] ss:$24 sps:$4 sm:$0xff]   ;;  %11139 = vmatprep.subr.bf16.mxu0 %v21468_v24  ;;  %v21469_v61 = vld [vmem:[#allocation18 + $0x150] ss:$24 sps:$4 sm:$0xff]   ;;  %v21504_v24 = vld [vmem:[#allocation18 + $0x24c] ss:$24 sps:$4 sm:$0xff]  }
0x102c   :  { %v20323_v25 = vpack.i.bf16 %v24656_v53, %v24652_v62  ;;  %11097 = vmatpush1.bf16.msra.mxu1 %v21463_v20  ;;  %11140 = vmatpush1.bf16.msra.mxu0 %v21466_v43  ;;  %v21499_v20 = vld [vmem:[#allocation18 + $0x240] ss:$24 sps:$4 sm:$0xff]  }
0x102d   :  { %v20328_v28 = vpack.i.bf16 %v24658_v52, %v24654_v33  ;;  %11098 = vmatprep.subr.bf16.mxu1 %v21471_v30  ;;  %11141 = vmatprep.subr.bf16.mxu0 %v21474_v54  ;;  %v21502_v43 = vld [vmem:[#allocation18 + $0x248] ss:$24 sps:$4 sm:$0xff]   ;;  %v21507_v54 = vld [vmem:[#allocation18 + $0x274] ss:$24 sps:$4 sm:$0xff]  }
0x102e   :  { %20324 = vrot.lane.b32.xlu1 %v20323_v25, %s23073_s30  ;;  %v21475_v25 = vld [vmem:[#allocation18 + $0x180] ss:$24 sps:$4 sm:$0xff]  }
0x1030   :  { %11099 = vmatpush1.bf16.msra.mxu1 %v21469_v61  ;;  %11142 = vmatpush1.bf16.msra.mxu0 %v21472_v22  ;;  %v21510_v61 = vld [vmem:[#allocation18 + $0x27c] ss:$24 sps:$4 sm:$0xff]   ;;  %v21508_v22 = vld [vmem:[#allocation18 + $0x278] ss:$24 sps:$4 sm:$0xff]  }
0x1031   :  { %11100 = vmatprep.subr.bf16.mxu1 %v21477_v45  ;;  %11143 = vmatprep.subr.bf16.mxu0 %v21480_v3  ;;  %v21516_v45 = vld [vmem:[#allocation21 + $0x4] ss:$24 sps:$4 sm:$0xff]  }
0x1032   :  { %20329 = vrot.lane.b32.xlu1 %v20328_v28, %s23073_s30  ;;  %v21478_v28 = vld [vmem:[#allocation18 + $0x188] ss:$24 sps:$4 sm:$0xff]  }
0x1034   :  { %11101 = vmatpush1.bf16.msra.mxu1 %v21475_v25  ;;  %11144 = vmatpush1.bf16.msra.mxu0 %v21478_v28 }
0x1035   :  { %11102 = vmatprep.subr.bf16.mxu1 %v21483_v9  ;;  %11145 = vmatprep.subr.bf16.mxu0 %v21486_v35 }
0x1036   :  { %20339 = vrot.lane.b32.xlu1 %v20338_v13, %s23073_s30 }
0x1038   :  { %11103 = vmatpush1.bf16.msra.mxu1 %v21481_v37  ;;  %11146 = vmatpush1.bf16.msra.mxu0 %v21484_v26 }
0x1039   :  { %11104 = vmatprep.subr.bf16.mxu1 %v21489_v21  ;;  %11147 = vmatprep.subr.bf16.mxu0 %v21492_v10 }
0x103a   :  { %20344 = vrot.lane.b32.xlu1 %v20338_v13, %s23074_s15 }
0x103c   :  { %11105 = vmatpush1.bf16.msra.mxu1 %v21487_v44  ;;  %11148 = vmatpush1.bf16.msra.mxu0 %v21490_v14 }
0x103d   :  { %11106 = vmatprep.subr.bf16.mxu1 %v21495_v0 }
0x103e   :  { %20349 = vrot.lane.b32.xlu1 %v20338_v13, %s23075_s16  ;;  %v20335_v13 = vpop.permute.xlu0 %20334 }
0x103f   :  { %v20337_v63 = vunpack.i.h.bf16 %v20335_v13  ;;  %v20336_v31 = vunpack.i.l.bf16 %v20335_v13 }
0x1040   :  { %11107 = vmatpush1.bf16.msra.mxu1 %v21493_v46 }
0x1041   :  { %v10469_v40 = vmax.f32 %v24617_v19, %v20336_v31  ;;  %v10470_v8 = vmax.f32 %v24621_v48, %v20337_v63  ;;  %11108 = vmatprep.subr.bf16.mxu1 %v21501_v38 }
0x1044   :  { %11109 = vmatpush1.bf16.msra.mxu1 %v21499_v20 }
0x1045   :  { %11110 = vmatprep.subr.bf16.mxu1 %v21507_v54 }
0x10a0   :  { %v20325_v17 = vpop.permute.xlu1 %20324 }
0x10a1   :  { %v20327_v51 = vunpack.i.h.bf16 %v20325_v17  ;;  %v20326_v49 = vunpack.i.l.bf16 %v20325_v17 }
0x10a3   :  { %v24678_v58 = vmax.f32 %v24656_v53, %v20327_v51  ;;  %v24681_v59 = vmax.f32 %v24652_v62, %v20326_v49  ;;  %v21498_v53 = vld [vmem:[#allocation18 + $0x21c] ss:$24 sps:$4 sm:$0xff]   ;;  %v20358_v62 = vpack.i.bf16 %v10470_v8, %v10469_v40 }
0x10a4   :  { %v20330_v34 = vpop.permute.xlu1 %20329  ;;  %11149 = vmatprep.subr.bf16.mxu0 %v21498_v53 }
0x10a5   :  { %v20332_v41 = vunpack.i.h.bf16 %v20330_v34  ;;  %v20331_v55 = vunpack.i.l.bf16 %v20330_v34  ;;  %v20353_v16 = vpack.i.bf16 %v24678_v58, %v24681_v59  ;;  %11150 = vmatpush1.bf16.msra.mxu0 %v21496_v15 }
0x10a6   :  { %11151 = vmatprep.subr.bf16.mxu0 %v21504_v24 }
0x10a7   :  { %20354 = vrot.lane.b32.xlu1 %v20353_v16, %s23073_s30  ;;  %20369 = vrot.lane.b32.xlu0 %v20353_v16, %s23074_s15  ;;  %v10450_v19 = vmax.f32 %v24658_v52, %v20332_v41  ;;  %v10449_v48 = vmax.f32 %v24654_v33, %v20331_v55  ;;  %v21505_v52 = vld [vmem:[#allocation18 + $0x270] ss:$24 sps:$4 sm:$0xff]   ;;  %v21513_v33 = vld [vmem:[#allocation18 + $0x14] ss:$24 sps:$4 sm:$0xff]  }
0x10a8   :  { %11111 = vmatpush1.bf16.msra.mxu1 %v21505_v52  ;;  %v20340_v3 = vpop.permute.xlu1 %20339 }
0x10a9   :  { %v20378_v30 = vpack.i.bf16 %v10450_v19, %v10449_v48  ;;  %11152 = vmatpush1.bf16.msra.mxu0 %v21502_v43  ;;  %11170 = vmatprep.subr.bf16.mxu1 %v21513_v33  ;;  %v20342_v35 = vunpack.i.h.bf16 %v20340_v3  ;;  %v20341_v37 = vunpack.i.l.bf16 %v20340_v3 }
0x10aa   :  { %11153 = vmatprep.subr.bf16.mxu0 %v21510_v61 }
0x10ab   :  { %20374 = vrot.lane.b32.xlu0 %v20353_v16, %s23075_s16  ;;  %20359 = vrot.lane.b32.xlu1 %v20358_v62, %s23051_s22  ;;  %v10566_v44 = vsel %vm1933_vm5, %v24664_v36, %v20342_v35  ;;  %v10565_v14 = vsel %vm1933_vm5, %v24667_v12, %v20341_v37 }
0x10ac   :  { %v20345_v25 = vpop.permute.xlu1 %20344 }
0x10ad   :  { %11154 = vmatpush1.bf16.msra.mxu0 %v21508_v22  ;;  %v20347_v26 = vunpack.i.h.bf16 %v20345_v25  ;;  %v20346_v63 = vunpack.i.l.bf16 %v20345_v25 }
0x10ae   :  { %11801 = vmatprep.subr.bf16.mxu0 %v21516_v45 }
0x10af   :  { %20379 = vrot.lane.b32.xlu0 %v20378_v30, %s23051_s22  ;;  %20364 = vrot.lane.b32.xlu1 %v20358_v62, %s23076_s4  ;;  %v10567_v34 = vsel %vm25489_vm4, %v10565_v14, %v20346_v63  ;;  %v10568_v40 = vsel %vm25490_vm3, %v10566_v44, %v20347_v26  ;;  %vm25494_vm4 = vmmov %vm25493_vm14  ;;  %v21511_v14 = vld [vmem:[#allocation18 + $0x10] ss:$24 sps:$4 sm:$0xff]  }
0x10b0   :  { %v20350_v28 = vpop.permute.xlu1 %20349 }
0x10b1   :  { %v20352_v51 = vunpack.i.h.bf16 %v20350_v28  ;;  %v20351_v49 = vunpack.i.l.bf16 %v20350_v28 }
0x10b3   :  { %20384 = vrot.lane.b32.xlu0 %v20378_v30, %s23076_s4  ;;  %v10569_v55 = vsel %vm1939_vm7, %v10567_v34, %v20351_v49  ;;  %v10570_v16 = vsel %vm1939_vm7, %v10568_v40, %v20352_v51  ;;  %v21514_v34 = vld [vmem:[#allocation21] ss:$24 sps:$4 sm:$0xff]  }
0x10b7   :  { %20389 = vrot.lane.b32.xlu0 %v20378_v30, %s23077_s8 }
0x10bb   :  { %20394 = vrot.lane.b32.xlu0 %v20378_v30, %s23038_s28 }
0x1119   :  { %v20355_v13 = vpop.permute.xlu1 %20354  ;;  %v20370_v9 = vpop.permute.xlu0 %20369 }
0x111a   :  { %v20357_v36 = vunpack.i.h.bf16 %v20355_v13  ;;  %v20356_v62 = vunpack.i.l.bf16 %v20355_v13  ;;  %v20372_v24 = vunpack.i.h.bf16 %v20370_v9  ;;  %v20371_v20 = vunpack.i.l.bf16 %v20370_v9 }
0x111c   :  { %v10552_v43 = vsel %vm1933_vm5, %v24678_v58, %v20357_v36  ;;  %v10551_v30 = vsel %vm1933_vm5, %v24681_v59, %v20356_v62  ;;  %v21531_v36 = vld [vmem:[#allocation18 + $0xa4] ss:$24 sps:$4 sm:$0xff]   ;;  %v21534_v62 = vld [vmem:[#allocation21 + $0x94] ss:$24 sps:$4 sm:$0xff]  }
0x111d   :  { %v20375_v31 = vpop.permute.xlu0 %20374  ;;  %v20360_v17 = vpop.permute.xlu1 %20359  ;;  %v10554_v25 = vsel %vm25491_vm6, %v10552_v43, %v20372_v24  ;;  %v10553_v28 = vsel %vm25492_vm11, %v10551_v30, %v20371_v20  ;;  %v21540_v24 = vld [vmem:[#allocation21 + $0xc4] ss:$24 sps:$4 sm:$0xff]   ;;  %v21535_v20 = vld [vmem:[#allocation18 + $0xd0] ss:$24 sps:$4 sm:$0xff]   ;;  %v21538_v43 = vld [vmem:[#allocation21 + $0xc0] ss:$24 sps:$4 sm:$0xff]  }
0x111e   :  { %v20362_v21 = vunpack.i.h.bf16 %v20360_v17  ;;  %v20361_v10 = vunpack.i.l.bf16 %v20360_v17  ;;  %v20377_v54 = vunpack.i.h.bf16 %v20375_v31  ;;  %v20376_v61 = vunpack.i.l.bf16 %v20375_v31  ;;  %v21543_v30 = vld [vmem:[#allocation18 + $0x104] ss:$24 sps:$4 sm:$0xff]  }
0x1120   :  { %v10572_v46 = vsel %vm1942_vm8, %v10570_v16, %v20362_v21  ;;  %v10571_v15 = vsel %vm1942_vm8, %v10569_v55, %v20361_v10  ;;  %v10555_v35 = vsel %vm1939_vm7, %v10553_v28, %v20376_v61  ;;  %v10556_v58 = vsel %vm1939_vm7, %v10554_v25, %v20377_v54  ;;  %v21517_v55 = vld [vmem:[#allocation18 + $0x40] ss:$24 sps:$4 sm:$0xff]   ;;  %v21520_v16 = vld [vmem:[#allocation21 + $0x30] ss:$24 sps:$4 sm:$0xff]   ;;  %v21546_v54 = vld [vmem:[#allocation21 + $0xf4] ss:$24 sps:$4 sm:$0xff]  }
0x1121   :  { %v20380_v8 = vpop.permute.xlu0 %20379  ;;  %v20365_v41 = vpop.permute.xlu1 %20364  ;;  %v21541_v61 = vld [vmem:[#allocation18 + $0x100] ss:$24 sps:$4 sm:$0xff]   ;;  %v21555_v25 = vld [vmem:[#allocation18 + $0x164] ss:$24 sps:$4 sm:$0xff]   ;;  %v21558_v28 = vld [vmem:[#allocation21 + $0x154] ss:$24 sps:$4 sm:$0xff]  }
0x1122   :  { %v20367_v0 = vunpack.i.h.bf16 %v20365_v41  ;;  %v20366_v53 = vunpack.i.l.bf16 %v20365_v41  ;;  %v20382_v52 = vunpack.i.h.bf16 %v20380_v8  ;;  %v20381_v22 = vunpack.i.l.bf16 %v20380_v8  ;;  %v21519_v8 = vld [vmem:[#allocation18 + $0x44] ss:$24 sps:$4 sm:$0xff]   ;;  %v21522_v41 = vld [vmem:[#allocation21 + $0x34] ss:$24 sps:$4 sm:$0xff]  }
0x1124   :  { %v10573_v12 = vsel %vm1945_vm9, %v10571_v15, %v20366_v53  ;;  %v10574_v19 = vsel %vm1945_vm9, %v10572_v46, %v20367_v0  ;;  %v10557_v37 = vsel %vm1942_vm8, %v10555_v35, %v20381_v22  ;;  %v10558_v59 = vsel %vm1942_vm8, %v10556_v58, %v20382_v52  ;;  %v21525_v0 = vld [vmem:[#allocation18 + $0x74] ss:$24 sps:$4 sm:$0xff]   ;;  %v21528_v53 = vld [vmem:[#allocation21 + $0x64] ss:$24 sps:$4 sm:$0xff]   ;;  %v21523_v46 = vld [vmem:[#allocation18 + $0x70] ss:$24 sps:$4 sm:$0xff]  }
0x1125   :  { %v24710_v48 = vpack.c.bf16 %v10574_v19, %v10573_v12  ;;  %v20385_v38 = vpop.permute.xlu0 %20384  ;;  %v21526_v15 = vld [vmem:[#allocation21 + $0x60] ss:$24 sps:$4 sm:$0xff]   ;;  %v21532_v19 = vld [vmem:[#allocation21 + $0x90] ss:$24 sps:$4 sm:$0xff]   ;;  %v21549_v22 = vld [vmem:[#allocation18 + $0x134] ss:$24 sps:$4 sm:$0xff]  }
0x1126   :  { %v20387_v45 = vunpack.i.h.bf16 %v20385_v38  ;;  %v20386_v3 = vunpack.i.l.bf16 %v20385_v38  ;;  %v21529_v12 = vld [vmem:[#allocation18 + $0xa0] ss:$24 sps:$4 sm:$0xff]   ;;  %v21537_v38 = vld [vmem:[#allocation18 + $0xd4] ss:$24 sps:$4 sm:$0xff]   ;;  %v21544_v52 = vld [vmem:[#allocation21 + $0xf0] ss:$24 sps:$4 sm:$0xff]  }
0x1127   :  { %18754 = vmatprep.mubr.msk.bf16.mxu1 %vm1948_vm10, %v24710_v48  ;;  %18755 = vmatprep.mubr.msk.bf16.mxu0 %vm1948_vm10, %v24710_v48  ;;  %v21561_v35 = vld [vmem:[#allocation18 + $0x194] ss:$24 sps:$4 sm:$0xff]   ;;  %v21564_v58 = vld [vmem:[#allocation21 + $0x184] ss:$24 sps:$4 sm:$0xff]  }
0x1128   :  { %v10559_v63 = vsel %vm1945_vm9, %v10557_v37, %v20386_v3  ;;  %v10560_v31 = vsel %vm1945_vm9, %v10558_v59, %v20387_v45  ;;  %v21547_v45 = vld [vmem:[#allocation18 + $0x130] ss:$24 sps:$4 sm:$0xff]   ;;  %v21550_v3 = vld [vmem:[#allocation21 + $0x120] ss:$24 sps:$4 sm:$0xff]  }
0x1129   :  { %v20390_v33 = vpop.permute.xlu0 %20389  ;;  %v21559_v37 = vld [vmem:[#allocation18 + $0x190] ss:$24 sps:$4 sm:$0xff]   ;;  %v21562_v59 = vld [vmem:[#allocation21 + $0x180] ss:$24 sps:$4 sm:$0xff]  }
0x112a   :  { %v20392_v13 = vunpack.i.h.bf16 %v20390_v33  ;;  %v20391_v9 = vunpack.i.l.bf16 %v20390_v33  ;;  %v21552_v33 = vld [vmem:[#allocation21 + $0x124] ss:$24 sps:$4 sm:$0xff]  }
0x112c   :  { %v10561_v49 = vsel %vm1948_vm10, %v10559_v63, %v20391_v9  ;;  %v10562_v21 = vsel %vm1948_vm10, %v10560_v31, %v20392_v13  ;;  %v21553_v13 = vld [vmem:[#allocation18 + $0x160] ss:$24 sps:$4 sm:$0xff]   ;;  %v21556_v9 = vld [vmem:[#allocation21 + $0x150] ss:$24 sps:$4 sm:$0xff]   ;;  %v21570_v63 = vld [vmem:[#allocation21 + $0x1b4] ss:$24 sps:$4 sm:$0xff]  }
0x112d   :  { %v20395_v26 = vpop.permute.xlu0 %20394  ;;  %v21565_v31 = vld [vmem:[#allocation18 + $0x1c0] ss:$24 sps:$4 sm:$0xff]  }
0x112e   :  { %v20397_v17 = vunpack.i.h.bf16 %v20395_v26  ;;  %v20396_v51 = vunpack.i.l.bf16 %v20395_v26  ;;  %v21567_v26 = vld [vmem:[#allocation18 + $0x1c4] ss:$24 sps:$4 sm:$0xff]  }
0x1130   :  { %v10563_v10 = vsel %vm25493_vm14, %v10561_v49, %v20396_v51  ;;  %v10564_v44 = vsel %vm25494_vm4, %v10562_v21, %v20397_v17  ;;  %v21568_v17 = vld [vmem:[#allocation21 + $0x1b0] ss:$24 sps:$4 sm:$0xff]   ;;  %v21573_v51 = vld [vmem:[#allocation18 + $0x1f4] ss:$24 sps:$4 sm:$0xff]   ;;  %v21576_v49 = vld [vmem:[#allocation21 + $0x1e4] ss:$24 sps:$4 sm:$0xff]  }
0x1131   :  { %v24732_v40 = vpack.c.bf16 %v10564_v44, %v10563_v10  ;;  %v21571_v21 = vld [vmem:[#allocation18 + $0x1f0] ss:$24 sps:$4 sm:$0xff]   ;;  %v21574_v10 = vld [vmem:[#allocation21 + $0x1e0] ss:$24 sps:$4 sm:$0xff]   ;;  %v21579_v44 = vld [vmem:[#allocation18 + $0x224] ss:$24 sps:$4 sm:$0xff]  }
0x1133   :  { %11117 = vmatmul.mubr.bf16.vlgmr.msra.gmra.mrb[160].mxu1 %v24732_v40  ;;  %11160 = vmatmul.mubr.bf16.vlgmr.msra.gmra.mrb[168].mxu0 %v24732_v40 }
0x1134   :  { %11171 = vmatpush1.bf16.msra.mxu1 %v21511_v14  ;;  %11802 = vmatpush1.bf16.msra.mxu0 %v21514_v34  ;;  %v21582_v14 = vld [vmem:[#allocation21 + $0x214] ss:$24 sps:$4 sm:$0xff]   ;;  %v21577_v34 = vld [vmem:[#allocation18 + $0x220] ss:$24 sps:$4 sm:$0xff]  }
0x1135   :  { %18756 = vmatprep.mubr.msk.bf16.mxu1 %vm1948_vm10, %v24710_v48  ;;  %18841 = vmatprep.mubr.msk.bf16.mxu0 %vm1948_vm10, %v24710_v48 }
0x1136   :  { %11172 = vmatprep.subr.bf16.mxu1 %v21519_v8  ;;  %11803 = vmatprep.subr.bf16.mxu0 %v21522_v41  ;;  %v21580_v8 = vld [vmem:[#allocation21 + $0x210] ss:$24 sps:$4 sm:$0xff]   ;;  %v21585_v41 = vld [vmem:[#allocation18 + $0x254] ss:$24 sps:$4 sm:$0xff]  }
0x1138   :  { %11173 = vmatpush1.bf16.msra.mxu1 %v21517_v55  ;;  %11804 = vmatpush1.bf16.msra.mxu0 %v21520_v16  ;;  %v21588_v55 = vld [vmem:[#allocation21 + $0x244] ss:$24 sps:$4 sm:$0xff]   ;;  %v21583_v16 = vld [vmem:[#allocation18 + $0x250] ss:$24 sps:$4 sm:$0xff]  }
0x1139   :  { %11174 = vmatprep.subr.bf16.mxu1 %v21525_v0  ;;  %11805 = vmatprep.subr.bf16.mxu0 %v21528_v53  ;;  %v21586_v0 = vld [vmem:[#allocation21 + $0x240] ss:$24 sps:$4 sm:$0xff]   ;;  %v21591_v53 = vld [vmem:[#allocation18 + $0x284] ss:$24 sps:$4 sm:$0xff]  }
0x113c   :  { %11175 = vmatpush1.bf16.msra.mxu1 %v21523_v46  ;;  %11806 = vmatpush1.bf16.msra.mxu0 %v21526_v15  ;;  %v21594_v46 = vld [vmem:[#allocation21 + $0x274] ss:$24 sps:$4 sm:$0xff]   ;;  %v21589_v15 = vld [vmem:[#allocation18 + $0x280] ss:$24 sps:$4 sm:$0xff]  }
0x113d   :  { %11176 = vmatprep.subr.bf16.mxu1 %v21531_v36  ;;  %11807 = vmatprep.subr.bf16.mxu0 %v21534_v62  ;;  %v21592_v36 = vld [vmem:[#allocation21 + $0x270] ss:$24 sps:$4 sm:$0xff]   ;;  %v21597_v62 = vld [vmem:[#allocation21 + $0xc] ss:$24 sps:$4 sm:$0xff]  }
0x1140   :  { %11177 = vmatpush1.bf16.msra.mxu1 %v21529_v12  ;;  %11808 = vmatpush1.bf16.msra.mxu0 %v21532_v19  ;;  %v21600_v12 = vld [vmem:[#allocation21 + $0x14] ss:$24 sps:$4 sm:$0xff]   ;;  %v21595_v19 = vld [vmem:[#allocation21 + $0x8] ss:$24 sps:$4 sm:$0xff]  }
0x1141   :  { %11178 = vmatprep.subr.bf16.mxu1 %v21537_v38  ;;  %11809 = vmatprep.subr.bf16.mxu0 %v21540_v24  ;;  %v21598_v38 = vld [vmem:[#allocation21 + $0x10] ss:$24 sps:$4 sm:$0xff]   ;;  %v21603_v24 = vld [vmem:[#allocation21 + $0x3c] ss:$24 sps:$4 sm:$0xff]  }
0x1144   :  { %11179 = vmatpush1.bf16.msra.mxu1 %v21535_v20  ;;  %11810 = vmatpush1.bf16.msra.mxu0 %v21538_v43  ;;  %v21606_v20 = vld [vmem:[#allocation21 + $0x44] ss:$24 sps:$4 sm:$0xff]   ;;  %v21601_v43 = vld [vmem:[#allocation21 + $0x38] ss:$24 sps:$4 sm:$0xff]  }
0x1145   :  { %11180 = vmatprep.subr.bf16.mxu1 %v21543_v30  ;;  %11811 = vmatprep.subr.bf16.mxu0 %v21546_v54  ;;  %v21604_v30 = vld [vmem:[#allocation21 + $0x40] ss:$24 sps:$4 sm:$0xff]   ;;  %v21609_v54 = vld [vmem:[#allocation21 + $0x6c] ss:$24 sps:$4 sm:$0xff]  }
0x1148   :  { %11181 = vmatpush1.bf16.msra.mxu1 %v21541_v61  ;;  %11812 = vmatpush1.bf16.msra.mxu0 %v21544_v52  ;;  %v21612_v61 = vld [vmem:[#allocation21 + $0x74] ss:$24 sps:$4 sm:$0xff]   ;;  %v21607_v52 = vld [vmem:[#allocation21 + $0x68] ss:$24 sps:$4 sm:$0xff]  }
0x1149   :  { %11182 = vmatprep.subr.bf16.mxu1 %v21549_v22  ;;  %11813 = vmatprep.subr.bf16.mxu0 %v21552_v33  ;;  %v21610_v22 = vld [vmem:[#allocation21 + $0x70] ss:$24 sps:$4 sm:$0xff]   ;;  %v21615_v33 = vld [vmem:[#allocation21 + $0x9c] ss:$24 sps:$4 sm:$0xff]  }
0x114c   :  { %11183 = vmatpush1.bf16.msra.mxu1 %v21547_v45  ;;  %11814 = vmatpush1.bf16.msra.mxu0 %v21550_v3  ;;  %v21618_v45 = vld [vmem:[#allocation21 + $0xa4] ss:$24 sps:$4 sm:$0xff]   ;;  %v21613_v3 = vld [vmem:[#allocation21 + $0x98] ss:$24 sps:$4 sm:$0xff]  }
0x114d   :  { %11184 = vmatprep.subr.bf16.mxu1 %v21555_v25  ;;  %11815 = vmatprep.subr.bf16.mxu0 %v21558_v28  ;;  %v21616_v25 = vld [vmem:[#allocation21 + $0xa0] ss:$24 sps:$4 sm:$0xff]   ;;  %v21621_v28 = vld [vmem:[#allocation21 + $0xcc] ss:$24 sps:$4 sm:$0xff]  }
0x1150   :  { %11185 = vmatpush1.bf16.msra.mxu1 %v21553_v13  ;;  %11816 = vmatpush1.bf16.msra.mxu0 %v21556_v9  ;;  %v21624_v13 = vld [vmem:[#allocation21 + $0xd4] ss:$24 sps:$4 sm:$0xff]   ;;  %v21619_v9 = vld [vmem:[#allocation21 + $0xc8] ss:$24 sps:$4 sm:$0xff]  }
0x1151   :  { %11186 = vmatprep.subr.bf16.mxu1 %v21561_v35  ;;  %11817 = vmatprep.subr.bf16.mxu0 %v21564_v58  ;;  %v21622_v35 = vld [vmem:[#allocation21 + $0xd0] ss:$24 sps:$4 sm:$0xff]   ;;  %v21627_v58 = vld [vmem:[#allocation21 + $0xfc] ss:$24 sps:$4 sm:$0xff]  }
0x1154   :  { %11187 = vmatpush1.bf16.msra.mxu1 %v21559_v37  ;;  %11818 = vmatpush1.bf16.msra.mxu0 %v21562_v59  ;;  %v21630_v37 = vld [vmem:[#allocation21 + $0x104] ss:$24 sps:$4 sm:$0xff]   ;;  %v21625_v59 = vld [vmem:[#allocation21 + $0xf8] ss:$24 sps:$4 sm:$0xff]  }
0x1155   :  { %11188 = vmatprep.subr.bf16.mxu1 %v21567_v26  ;;  %11819 = vmatprep.subr.bf16.mxu0 %v21570_v63  ;;  %v21628_v26 = vld [vmem:[#allocation21 + $0x100] ss:$24 sps:$4 sm:$0xff]   ;;  %v21633_v63 = vld [vmem:[#allocation21 + $0x12c] ss:$24 sps:$4 sm:$0xff]  }
0x1158   :  { %11189 = vmatpush1.bf16.msra.mxu1 %v21565_v31  ;;  %11820 = vmatpush1.bf16.msra.mxu0 %v21568_v17  ;;  %v21636_v31 = vld [vmem:[#allocation21 + $0x134] ss:$24 sps:$4 sm:$0xff]   ;;  %v21631_v17 = vld [vmem:[#allocation21 + $0x128] ss:$24 sps:$4 sm:$0xff]  }
0x1159   :  { %11190 = vmatprep.subr.bf16.mxu1 %v21573_v51  ;;  %11821 = vmatprep.subr.bf16.mxu0 %v21576_v49  ;;  %v21634_v51 = vld [vmem:[#allocation21 + $0x130] ss:$24 sps:$4 sm:$0xff]   ;;  %v21639_v49 = vld [vmem:[#allocation21 + $0x15c] ss:$24 sps:$4 sm:$0xff]  }
0x115c   :  { %11191 = vmatpush1.bf16.msra.mxu1 %v21571_v21  ;;  %11822 = vmatpush1.bf16.msra.mxu0 %v21574_v10  ;;  %v21642_v21 = vld [vmem:[#allocation21 + $0x164] ss:$24 sps:$4 sm:$0xff]   ;;  %v21637_v10 = vld [vmem:[#allocation21 + $0x158] ss:$24 sps:$4 sm:$0xff]  }
0x115d   :  { %11192 = vmatprep.subr.bf16.mxu1 %v21579_v44  ;;  %11823 = vmatprep.subr.bf16.mxu0 %v21582_v14  ;;  %v21640_v44 = vld [vmem:[#allocation21 + $0x160] ss:$24 sps:$4 sm:$0xff]   ;;  %v21645_v14 = vld [vmem:[#allocation21 + $0x18c] ss:$24 sps:$4 sm:$0xff]  }
0x1160   :  { %11193 = vmatpush1.bf16.msra.mxu1 %v21577_v34  ;;  %11824 = vmatpush1.bf16.msra.mxu0 %v21580_v8  ;;  %v21648_v34 = vld [vmem:[#allocation21 + $0x194] ss:$24 sps:$4 sm:$0xff]   ;;  %v21643_v8 = vld [vmem:[#allocation21 + $0x188] ss:$24 sps:$4 sm:$0xff]  }
0x1161   :  { %11194 = vmatprep.subr.bf16.mxu1 %v21585_v41  ;;  %11825 = vmatprep.subr.bf16.mxu0 %v21588_v55  ;;  %v21646_v41 = vld [vmem:[#allocation21 + $0x190] ss:$24 sps:$4 sm:$0xff]   ;;  %v21651_v55 = vld [vmem:[#allocation21 + $0x1bc] ss:$24 sps:$4 sm:$0xff]  }
0x1164   :  { %11195 = vmatpush1.bf16.msra.mxu1 %v21583_v16  ;;  %11826 = vmatpush1.bf16.msra.mxu0 %v21586_v0  ;;  %v21654_v16 = vld [vmem:[#allocation21 + $0x1c4] ss:$24 sps:$4 sm:$0xff]   ;;  %v21649_v0 = vld [vmem:[#allocation21 + $0x1b8] ss:$24 sps:$4 sm:$0xff]  }
0x1165   :  { %11196 = vmatprep.subr.bf16.mxu1 %v21591_v53  ;;  %11827 = vmatprep.subr.bf16.mxu0 %v21594_v46  ;;  %v21652_v53 = vld [vmem:[#allocation21 + $0x1c0] ss:$24 sps:$4 sm:$0xff]   ;;  %v21657_v46 = vld [vmem:[#allocation21 + $0x1ec] ss:$24 sps:$4 sm:$0xff]  }
0x1168   :  { %11197 = vmatpush1.bf16.msra.mxu1 %v21589_v15  ;;  %11828 = vmatpush1.bf16.msra.mxu0 %v21592_v36  ;;  %v21660_v15 = vld [vmem:[#allocation21 + $0x1f4] ss:$24 sps:$4 sm:$0xff]   ;;  %v21655_v36 = vld [vmem:[#allocation21 + $0x1e8] ss:$24 sps:$4 sm:$0xff]  }
0x1169   :  { %11844 = vmatprep.subr.bf16.mxu1 %v21597_v62  ;;  %11887 = vmatprep.subr.bf16.mxu0 %v21600_v12  ;;  %v21658_v62 = vld [vmem:[#allocation21 + $0x1f0] ss:$24 sps:$4 sm:$0xff]   ;;  %v21663_v12 = vld [vmem:[#allocation21 + $0x21c] ss:$24 sps:$4 sm:$0xff]  }
0x116b   :  { %11203 = vmatmul.mubr.bf16.vlgmr.msra.gmra.mrb[164].mxu1 %v24732_v40  ;;  %11834 = vmatmul.mubr.bf16.vlgmr.msra.gmra.mrb[172].mxu0 %v24732_v40 }
0x116c   :  { %11845 = vmatpush1.bf16.msra.mxu1 %v21595_v19  ;;  %18842 = vmatprep.mubr.msk.bf16.mxu1 %vm1948_vm10, %v24710_v48  ;;  %v21666_v19 = vld [vmem:[#allocation21 + $0x224] ss:$24 sps:$4 sm:$0xff]  }
0x116d   :  { %11888 = vmatpush1.bf16.msra.mxu0 %v21598_v38  ;;  %18843 = vmatprep.mubr.msk.bf16.mxu0 %vm1948_vm10, %v24710_v48  ;;  %v21661_v38 = vld [vmem:[#allocation21 + $0x218] ss:$24 sps:$4 sm:$0xff]  }
0x116e   :  { %11846 = vmatprep.subr.bf16.mxu1 %v21603_v24  ;;  %11889 = vmatprep.subr.bf16.mxu0 %v21606_v20  ;;  %v21664_v24 = vld [vmem:[#allocation21 + $0x220] ss:$24 sps:$4 sm:$0xff]   ;;  %v21669_v20 = vld [vmem:[#allocation21 + $0x24c] ss:$24 sps:$4 sm:$0xff]  }
0x1170   :  { %11847 = vmatpush1.bf16.msra.mxu1 %v21601_v43  ;;  %v21672_v43 = vld [vmem:[#allocation21 + $0x254] ss:$24 sps:$4 sm:$0xff]  }
0x1171   :  { %11890 = vmatpush1.bf16.msra.mxu0 %v21604_v30  ;;  %11848 = vmatprep.subr.bf16.mxu1 %v21609_v54  ;;  %v21667_v30 = vld [vmem:[#allocation21 + $0x248] ss:$24 sps:$4 sm:$0xff]  }
0x1172   :  { %11891 = vmatprep.subr.bf16.mxu0 %v21612_v61  ;;  %v21670_v54 = vld [vmem:[#allocation21 + $0x250] ss:$24 sps:$4 sm:$0xff]   ;;  %v21675_v61 = vld [vmem:[#allocation21 + $0x27c] ss:$24 sps:$4 sm:$0xff]  }
0x1174   :  { %11849 = vmatpush1.bf16.msra.mxu1 %v21607_v52  ;;  %v21678_v52 = vld [vmem:[#allocation21 + $0x284] ss:$24 sps:$4 sm:$0xff]  }
0x1175   :  { %11892 = vmatpush1.bf16.msra.mxu0 %v21610_v22  ;;  %11850 = vmatprep.subr.bf16.mxu1 %v21615_v33  ;;  %v21673_v22 = vld [vmem:[#allocation21 + $0x278] ss:$24 sps:$4 sm:$0xff]  }
0x1176   :  { %11893 = vmatprep.subr.bf16.mxu0 %v21618_v45  ;;  %v21676_v33 = vld [vmem:[#allocation21 + $0x280] ss:$24 sps:$4 sm:$0xff]  }
0x1178   :  { %11851 = vmatpush1.bf16.msra.mxu1 %v21613_v3 }
0x1179   :  { %11894 = vmatpush1.bf16.msra.mxu0 %v21616_v25  ;;  %11852 = vmatprep.subr.bf16.mxu1 %v21621_v28 }
0x117a   :  { %11895 = vmatprep.subr.bf16.mxu0 %v21624_v13 }
0x117c   :  { %11853 = vmatpush1.bf16.msra.mxu1 %v21619_v9 }
0x117d   :  { %11896 = vmatpush1.bf16.msra.mxu0 %v21622_v35  ;;  %11854 = vmatprep.subr.bf16.mxu1 %v21627_v58 }
0x117e   :  { %11897 = vmatprep.subr.bf16.mxu0 %v21630_v37 }
0x1180   :  { %11855 = vmatpush1.bf16.msra.mxu1 %v21625_v59 }
0x1181   :  { %11898 = vmatpush1.bf16.msra.mxu0 %v21628_v26  ;;  %11856 = vmatprep.subr.bf16.mxu1 %v21633_v63 }
0x1182   :  { %11899 = vmatprep.subr.bf16.mxu0 %v21636_v31  ;;  %v21681_v31 = vld [vmem:[#allocation19 + $0x4] ss:$24 sps:$4 sm:$0xff]  }
0x1184   :  { %11857 = vmatpush1.bf16.msra.mxu1 %v21631_v17  ;;  %v24758_v17 = vld [vmem:[#allocation22] sm:$0xff] }
0x1185   :  { %11900 = vmatpush1.bf16.msra.mxu0 %v21634_v51  ;;  %11858 = vmatprep.subr.bf16.mxu1 %v21639_v49  ;;  %v21679_v51 = vld [vmem:[#allocation19] ss:$24 sps:$4 sm:$0xff]   ;;  %v21684_v49 = vld [vmem:[#allocation19 + $0x34] ss:$24 sps:$4 sm:$0xff]  }
0x1186   :  { %11901 = vmatprep.subr.bf16.mxu0 %v21642_v21  ;;  %v24765_v21 = vld [vmem:[#allocation22 + $0x8] sm:$0x3f] }
0x1188   :  { %11859 = vmatpush1.bf16.msra.mxu1 %v21637_v10  ;;  %v21682_v10 = vld [vmem:[#allocation19 + $0x30] ss:$24 sps:$4 sm:$0xff]  }
0x1189   :  { %11902 = vmatpush1.bf16.msra.mxu0 %v21640_v44  ;;  %11860 = vmatprep.subr.bf16.mxu1 %v21645_v14  ;;  %v21687_v44 = vld [vmem:[#allocation19 + $0x64] ss:$24 sps:$4 sm:$0xff]   ;;  %v21685_v14 = vld [vmem:[#allocation19 + $0x60] ss:$24 sps:$4 sm:$0xff]  }
0x118a   :  { %11903 = vmatprep.subr.bf16.mxu0 %v21648_v34  ;;  %v21690_v34 = vld [vmem:[#allocation19 + $0x94] ss:$24 sps:$4 sm:$0xff]  }
0x118c   :  { %11861 = vmatpush1.bf16.msra.mxu1 %v21643_v8  ;;  %v21688_v8 = vld [vmem:[#allocation19 + $0x90] ss:$24 sps:$4 sm:$0xff]  }
0x118d   :  { %11904 = vmatpush1.bf16.msra.mxu0 %v21646_v41  ;;  %11862 = vmatprep.subr.bf16.mxu1 %v21651_v55  ;;  %v21693_v41 = vld [vmem:[#allocation19 + $0xc4] ss:$24 sps:$4 sm:$0xff]   ;;  %v21691_v55 = vld [vmem:[#allocation19 + $0xc0] ss:$24 sps:$4 sm:$0xff]  }
0x118e   :  { %11905 = vmatprep.subr.bf16.mxu0 %v21654_v16  ;;  %v21696_v16 = vld [vmem:[#allocation19 + $0xf4] ss:$24 sps:$4 sm:$0xff]  }
0x1190   :  { %11863 = vmatpush1.bf16.msra.mxu1 %v21649_v0  ;;  %v21694_v0 = vld [vmem:[#allocation19 + $0xf0] ss:$24 sps:$4 sm:$0xff]  }
0x1191   :  { %11906 = vmatpush1.bf16.msra.mxu0 %v21652_v53  ;;  %11864 = vmatprep.subr.bf16.mxu1 %v21657_v46  ;;  %v21699_v53 = vld [vmem:[#allocation19 + $0x124] ss:$24 sps:$4 sm:$0xff]   ;;  %v21697_v46 = vld [vmem:[#allocation19 + $0x120] ss:$24 sps:$4 sm:$0xff]  }
0x1192   :  { %11907 = vmatprep.subr.bf16.mxu0 %v21660_v15  ;;  %v21702_v15 = vld [vmem:[#allocation19 + $0x154] ss:$24 sps:$4 sm:$0xff]  }
0x1194   :  { %11865 = vmatpush1.bf16.msra.mxu1 %v21655_v36  ;;  %v21700_v36 = vld [vmem:[#allocation19 + $0x150] ss:$24 sps:$4 sm:$0xff]  }
0x1195   :  { %11908 = vmatpush1.bf16.msra.mxu0 %v21658_v62  ;;  %11866 = vmatprep.subr.bf16.mxu1 %v21663_v12  ;;  %v21705_v62 = vld [vmem:[#allocation19 + $0x184] ss:$24 sps:$4 sm:$0xff]   ;;  %v21703_v12 = vld [vmem:[#allocation19 + $0x180] ss:$24 sps:$4 sm:$0xff]  }
0x1196   :  { %11909 = vmatprep.subr.bf16.mxu0 %v21666_v19  ;;  %v21708_v19 = vld [vmem:[#allocation19 + $0x1b4] ss:$24 sps:$4 sm:$0xff]  }
0x1198   :  { %11867 = vmatpush1.bf16.msra.mxu1 %v21661_v38  ;;  %v21706_v38 = vld [vmem:[#allocation19 + $0x1b0] ss:$24 sps:$4 sm:$0xff]  }
0x1199   :  { %11910 = vmatpush1.bf16.msra.mxu0 %v21664_v24  ;;  %11868 = vmatprep.subr.bf16.mxu1 %v21669_v20  ;;  %v21711_v24 = vld [vmem:[#allocation19 + $0x1e4] ss:$24 sps:$4 sm:$0xff]   ;;  %v21709_v20 = vld [vmem:[#allocation19 + $0x1e0] ss:$24 sps:$4 sm:$0xff]  }
0x119a   :  { %11911 = vmatprep.subr.bf16.mxu0 %v21672_v43  ;;  %v21714_v43 = vld [vmem:[#allocation19 + $0x214] ss:$24 sps:$4 sm:$0xff]  }
0x119c   :  { %11869 = vmatpush1.bf16.msra.mxu1 %v21667_v30  ;;  %v21712_v30 = vld [vmem:[#allocation19 + $0x210] ss:$24 sps:$4 sm:$0xff]  }
0x119d   :  { %11912 = vmatpush1.bf16.msra.mxu0 %v21670_v54  ;;  %11870 = vmatprep.subr.bf16.mxu1 %v21675_v61  ;;  %v21717_v54 = vld [vmem:[#allocation19 + $0x244] ss:$24 sps:$4 sm:$0xff]   ;;  %v21715_v61 = vld [vmem:[#allocation19 + $0x240] ss:$24 sps:$4 sm:$0xff]  }
0x119e   :  { %11913 = vmatprep.subr.bf16.mxu0 %v21678_v52 }
0x11a0   :  { %11871 = vmatpush1.bf16.msra.mxu1 %v21673_v22 }
0x11a1   :  { %11914 = vmatpush1.bf16.msra.mxu0 %v21676_v33  ;;  %v21720_v33 = vld [vmem:[#allocation19 + $0x274] ss:$24 sps:$4 sm:$0xff]  }
0x11a3   :  { %11877 = vmatmul.mubr.bf16.vlgmr.msra.gmra.mrb[168].mxu1 %v24732_v40 }
0x11a4   :  { %11920 = vmatmul.mubr.bf16.vlgmr.msra.gmra.mrb[176].mxu0 %v24732_v40  ;;  %12020 = vmatprep.mubr.f32.mxu1 %v23071_v27 }
0x11a5   :  { %12097 = vmatprep.mubr.f32.mxu0 %v23071_v27 }
0x1206   :  { %v11118_v45 = vpop.f32.mrb[160].mxu1  ;;  %v11161_v3 = vpop.f32.mrb[168].mxu0 }
0x1207   :  { %v11120_v25 = vpop.f32.mrb[161].mxu1  ;;  %v11163_v28 = vpop.f32.mrb[169].mxu0 }
0x1208   :  { %v11122_v13 = vpop.f32.mrb[162].mxu1  ;;  %v11165_v9 = vpop.f32.mrb[170].mxu0 }
0x1209   :  { %v19990_v35 = vpack.c.bf16 %v11122_v13, %v11118_v45  ;;  %v19996_v58 = vpack.c.bf16 %v11165_v9, %v11161_v3  ;;  %v11124_v37 = vpop.f32.mrb[163].mxu1  ;;  %v11167_v59 = vpop.f32.mrb[171].mxu0 }
0x120a   :  { %v19987_v26 = vpack.c.bf16 %v11124_v37, %v11120_v25  ;;  %v19993_v63 = vpack.c.bf16 %v11167_v59, %v11163_v28  ;;  %v21718_v37 = vld [vmem:[#allocation19 + $0x270] ss:$24 sps:$4 sm:$0xff]  }
0x120c   :  { %19989 = vmatprep.subr.msk.bf16.mxu1 %vm23721_vm12, %v19987_v26  ;;  %19995 = vmatprep.subr.msk.bf16.mxu0 %vm23721_vm12, %v19993_v63  ;;  %v21723_v63 = vld [vmem:[#allocation19 + $0xc] ss:$24 sps:$4 sm:$0xff]  }
0x120d   :  { %19992 = vmatpush1.bf16.msk.msra.mxu1 %vm23721_vm12, %v19990_v35  ;;  %19998 = vmatpush1.bf16.msk.msra.mxu0 %vm23721_vm12, %v19996_v58 }
0x120e   :  { %12607 = vmatprep.subr.bf16.mxu0 %v21681_v31  ;;  %v21726_v31 = vld [vmem:[#allocation19 + $0x14] ss:$24 sps:$4 sm:$0xff]  }
0x1210   :  { %18850 = vmatmul.mubr.msk.f32.vlgmr.msra.gmra.mrb[180].mxu0 %vm3321_vm13, %v24758_v17  ;;  %18846 = vmatmul.mubr.msk.f32.vlgmr.msra.gmra.mrb[158].mxu1 %vm3321_vm13, %v24758_v17 }
0x1211   :  { %12608 = vmatpush1.bf16.msra.mxu0 %v21679_v51  ;;  %12103 = vmatprep.mubr.f32.mxu0 %v23071_v27  ;;  %v21721_v51 = vld [vmem:[#allocation19 + $0x8] ss:$24 sps:$4 sm:$0xff]  }
0x1212   :  { %12609 = vmatprep.subr.bf16.mxu0 %v21684_v49  ;;  %12026 = vmatprep.mubr.f32.mxu1 %v23071_v27  ;;  %v21724_v49 = vld [vmem:[#allocation19 + $0x10] ss:$24 sps:$4 sm:$0xff]  }
0x1214   :  { %18851 = vmatmul.mubr.msk.f32.gmra.mrb[182].mxu0 %vm3321_vm13, %v24765_v21  ;;  %18847 = vmatmul.mubr.msk.f32.gmra.mrb[172].mxu1 %vm3321_vm13, %v24765_v21 }
0x1215   :  { %12610 = vmatpush1.bf16.msra.mxu0 %v21682_v10  ;;  %18940 = vmatprep.mubr.msk.bf16.mxu0 %vm1948_vm10, %v24710_v48  ;;  %v21729_v10 = vld [vmem:[#allocation19 + $0x3c] ss:$24 sps:$4 sm:$0xff]  }
0x1216   :  { %12611 = vmatprep.subr.bf16.mxu0 %v21687_v44  ;;  %12174 = vmatprep.mubr.f32.mxu1 %v23071_v27  ;;  %v21732_v44 = vld [vmem:[#allocation19 + $0x44] ss:$24 sps:$4 sm:$0xff]  }
0x1219   :  { %12612 = vmatpush1.bf16.msra.mxu0 %v21685_v14  ;;  %v21727_v14 = vld [vmem:[#allocation19 + $0x38] ss:$24 sps:$4 sm:$0xff]  }
0x121a   :  { %12613 = vmatprep.subr.bf16.mxu0 %v21690_v34  ;;  %v21730_v34 = vld [vmem:[#allocation19 + $0x40] ss:$24 sps:$4 sm:$0xff]  }
0x121d   :  { %12614 = vmatpush1.bf16.msra.mxu0 %v21688_v8  ;;  %v21735_v8 = vld [vmem:[#allocation19 + $0x6c] ss:$24 sps:$4 sm:$0xff]  }
0x121e   :  { %12615 = vmatprep.subr.bf16.mxu0 %v21693_v41  ;;  %v21738_v41 = vld [vmem:[#allocation19 + $0x74] ss:$24 sps:$4 sm:$0xff]  }
0x1221   :  { %12616 = vmatpush1.bf16.msra.mxu0 %v21691_v55  ;;  %v21736_v55 = vld [vmem:[#allocation19 + $0x70] ss:$24 sps:$4 sm:$0xff]  }
0x1222   :  { %12617 = vmatprep.subr.bf16.mxu0 %v21696_v16  ;;  %v21741_v16 = vld [vmem:[#allocation19 + $0x9c] ss:$24 sps:$4 sm:$0xff]  }
0x1225   :  { %12618 = vmatpush1.bf16.msra.mxu0 %v21694_v0  ;;  %v21744_v0 = vld [vmem:[#allocation19 + $0xa4] ss:$24 sps:$4 sm:$0xff]  }
0x1226   :  { %12619 = vmatprep.subr.bf16.mxu0 %v21699_v53  ;;  %v21739_v53 = vld [vmem:[#allocation19 + $0x98] ss:$24 sps:$4 sm:$0xff]  }
0x1229   :  { %12620 = vmatpush1.bf16.msra.mxu0 %v21697_v46  ;;  %v21742_v46 = vld [vmem:[#allocation19 + $0xa0] ss:$24 sps:$4 sm:$0xff]  }
0x122a   :  { %12621 = vmatprep.subr.bf16.mxu0 %v21702_v15  ;;  %v21747_v15 = vld [vmem:[#allocation19 + $0xcc] ss:$24 sps:$4 sm:$0xff]  }
0x122d   :  { %12622 = vmatpush1.bf16.msra.mxu0 %v21700_v36  ;;  %v21750_v36 = vld [vmem:[#allocation19 + $0xd4] ss:$24 sps:$4 sm:$0xff]  }
0x122e   :  { %12623 = vmatprep.subr.bf16.mxu0 %v21705_v62  ;;  %v21753_v62 = vld [vmem:[#allocation19 + $0xfc] ss:$24 sps:$4 sm:$0xff]  }
0x1231   :  { %12624 = vmatpush1.bf16.msra.mxu0 %v21703_v12  ;;  %v21756_v12 = vld [vmem:[#allocation19 + $0x104] ss:$24 sps:$4 sm:$0xff]  }
0x1232   :  { %12625 = vmatprep.subr.bf16.mxu0 %v21708_v19  ;;  %v21751_v19 = vld [vmem:[#allocation19 + $0xf8] ss:$24 sps:$4 sm:$0xff]  }
0x1235   :  { %12626 = vmatpush1.bf16.msra.mxu0 %v21706_v38  ;;  %v21754_v38 = vld [vmem:[#allocation19 + $0x100] ss:$24 sps:$4 sm:$0xff]  }
0x1236   :  { %12627 = vmatprep.subr.bf16.mxu0 %v21711_v24  ;;  %v21759_v24 = vld [vmem:[#allocation19 + $0x12c] ss:$24 sps:$4 sm:$0xff]  }
0x1239   :  { %12628 = vmatpush1.bf16.msra.mxu0 %v21709_v20  ;;  %v21762_v20 = vld [vmem:[#allocation19 + $0x134] ss:$24 sps:$4 sm:$0xff]  }
0x123a   :  { %12629 = vmatprep.subr.bf16.mxu0 %v21714_v43  ;;  %v21757_v43 = vld [vmem:[#allocation19 + $0x128] ss:$24 sps:$4 sm:$0xff]  }
0x123d   :  { %12630 = vmatpush1.bf16.msra.mxu0 %v21712_v30  ;;  %v21760_v30 = vld [vmem:[#allocation19 + $0x130] ss:$24 sps:$4 sm:$0xff]  }
0x123e   :  { %v11204_v52 = vpop.f32.mrb[164].mxu1  ;;  %v24775_v22 = vpop.f32.mrb[172].mxu0  ;;  %12631 = vmatprep.subr.bf16.mxu0 %v21717_v54  ;;  %v21765_v54 = vld [vmem:[#allocation19 + $0x15c] ss:$24 sps:$4 sm:$0xff]  }
0x123f   :  { %v11206_v45 = vpop.f32.mrb[165].mxu1  ;;  %v24777_v3 = vpop.f32.mrb[173].mxu0 }
0x1240   :  { %v11208_v25 = vpop.f32.mrb[166].mxu1  ;;  %v24779_v28 = vpop.f32.mrb[174].mxu0 }
0x1241   :  { %v20002_v13 = vpack.c.bf16 %v11208_v25, %v11204_v52  ;;  %v20008_v9 = vpack.c.bf16 %v24779_v28, %v24775_v22  ;;  %v11210_v35 = vpop.f32.mrb[167].mxu1  ;;  %v24783_v58 = vpop.f32.mrb[175].mxu0  ;;  %12632 = vmatpush1.bf16.msra.mxu0 %v21715_v61  ;;  %v21768_v61 = vld [vmem:[#allocation19 + $0x164] ss:$24 sps:$4 sm:$0xff]   ;;  %v21763_v52 = vld [vmem:[#allocation19 + $0x158] ss:$24 sps:$4 sm:$0xff]  }
0x1242   :  { %v19999_v59 = vpack.c.bf16 %v11210_v35, %v11206_v45  ;;  %v20005_v26 = vpack.c.bf16 %v24783_v58, %v24777_v3  ;;  %12633 = vmatprep.subr.bf16.mxu0 %v21720_v33  ;;  %v21766_v33 = vld [vmem:[#allocation19 + $0x160] ss:$24 sps:$4 sm:$0xff]   ;;  %v21771_v45 = vld [vmem:[#allocation19 + $0x18c] ss:$24 sps:$4 sm:$0xff]   ;;  %v21772_v35 = vld [vmem:[#allocation19 + $0x190] ss:$24 sps:$4 sm:$0xff]  }
0x1243   :  { %v21774_v25 = vld [vmem:[#allocation19 + $0x194] ss:$24 sps:$4 sm:$0xff]  }
0x1244   :  { %20001 = vmatprep.subr.msk.bf16.mxu1 %vm23721_vm12, %v19999_v59  ;;  %v21780_v59 = vld [vmem:[#allocation19 + $0x1c4] ss:$24 sps:$4 sm:$0xff]  }
0x1245   :  { %20004 = vmatpush1.bf16.msk.msra.mxu1 %vm23721_vm12, %v20002_v13  ;;  %12634 = vmatpush1.bf16.msra.mxu0 %v21718_v37  ;;  %v21769_v13 = vld [vmem:[#allocation19 + $0x188] ss:$24 sps:$4 sm:$0xff]   ;;  %v21777_v37 = vld [vmem:[#allocation19 + $0x1bc] ss:$24 sps:$4 sm:$0xff]  }
0x1246   :  { %12650 = vmatprep.subr.bf16.mxu1 %v21723_v63  ;;  %12693 = vmatprep.subr.bf16.mxu0 %v21726_v31  ;;  %v21775_v63 = vld [vmem:[#allocation19 + $0x1b8] ss:$24 sps:$4 sm:$0xff]  }
0x1247   :  { %v21778_v31 = vld [vmem:[#allocation19 + $0x1c0] ss:$24 sps:$4 sm:$0xff]  }
0x1248   :  { %18854 = vmatmul.mubr.msk.f32.vlgmr.msra.gmra.mrb[174].mxu1 %vm3321_vm13, %v24758_v17  ;;  %12640 = vmatmul.mubr.bf16.vlgmr.msra.gmra.mrb[184].mxu0 %v24732_v40  ;;  %v21733_v17 = vld [vmem:[#allocation19 + $0x68] ss:$24 sps:$4 sm:$0xff]  }
0x1249   :  { %12651 = vmatpush1.bf16.msra.mxu1 %v21721_v51  ;;  %12694 = vmatpush1.bf16.msra.mxu0 %v21724_v49  ;;  %v21783_v51 = vld [vmem:[#allocation19 + $0x1ec] ss:$24 sps:$4 sm:$0xff]  }
0x124a   :  { %18942 = vmatprep.mubr.msk.bf16.mxu0 %vm1948_vm10, %v24710_v48  ;;  %12180 = vmatprep.mubr.f32.mxu1 %v23071_v27  ;;  %v21786_v49 = vld [vmem:[#allocation19 + $0x1f4] ss:$24 sps:$4 sm:$0xff]  }
0x124b   :  { %12652 = vmatprep.subr.bf16.mxu1 %v21729_v10  ;;  %12695 = vmatprep.subr.bf16.mxu0 %v21732_v44  ;;  %v21781_v10 = vld [vmem:[#allocation19 + $0x1e8] ss:$24 sps:$4 sm:$0xff]  }
0x124c   :  { %18855 = vmatmul.mubr.msk.f32.gmra.mrb[176].mxu1 %vm3321_vm13, %v24765_v21  ;;  %v21745_v21 = vld [vmem:[#allocation19 + $0xc8] ss:$24 sps:$4 sm:$0xff]  }
0x124d   :  { %12653 = vmatpush1.bf16.msra.mxu1 %v21727_v14  ;;  %18941 = vmatprep.mubr.msk.bf16.mxu1 %vm1948_vm10, %v24710_v48  ;;  %v21748_v48 = vld [vmem:[#allocation19 + $0xd0] ss:$24 sps:$4 sm:$0xff]   ;;  %v21789_v14 = vld [vmem:[#allocation19 + $0x21c] ss:$24 sps:$4 sm:$0xff]  }
0x124e   :  { %12696 = vmatpush1.bf16.msra.mxu0 %v21730_v34  ;;  %12654 = vmatprep.subr.bf16.mxu1 %v21735_v8  ;;  %v21784_v44 = vld [vmem:[#allocation19 + $0x1f0] ss:$24 sps:$4 sm:$0xff]   ;;  %v21792_v34 = vld [vmem:[#allocation19 + $0x224] ss:$24 sps:$4 sm:$0xff]  }
0x124f   :  { %12697 = vmatprep.subr.bf16.mxu0 %v21738_v41  ;;  %v21787_v8 = vld [vmem:[#allocation19 + $0x218] ss:$24 sps:$4 sm:$0xff]  }
0x1250   :  { %v21790_v41 = vld [vmem:[#allocation19 + $0x220] ss:$24 sps:$4 sm:$0xff]  }
0x1251   :  { %12655 = vmatpush1.bf16.msra.mxu1 %v21733_v17  ;;  %v21795_v17 = vld [vmem:[#allocation19 + $0x24c] ss:$24 sps:$4 sm:$0xff]  }
0x1252   :  { %12698 = vmatpush1.bf16.msra.mxu0 %v21736_v55  ;;  %12656 = vmatprep.subr.bf16.mxu1 %v21741_v16  ;;  %v21798_v55 = vld [vmem:[#allocation19 + $0x254] ss:$24 sps:$4 sm:$0xff]   ;;  %v21793_v16 = vld [vmem:[#allocation19 + $0x248] ss:$24 sps:$4 sm:$0xff]  }
0x1253   :  { %12699 = vmatprep.subr.bf16.mxu0 %v21744_v0 }
0x1255   :  { %12657 = vmatpush1.bf16.msra.mxu1 %v21739_v53  ;;  %v21796_v53 = vld [vmem:[#allocation19 + $0x250] ss:$24 sps:$4 sm:$0xff]  }
0x1256   :  { %12700 = vmatpush1.bf16.msra.mxu0 %v21742_v46  ;;  %12658 = vmatprep.subr.bf16.mxu1 %v21747_v15  ;;  %v21801_v46 = vld [vmem:[#allocation19 + $0x27c] ss:$24 sps:$4 sm:$0xff]  }
0x1257   :  { %12701 = vmatprep.subr.bf16.mxu0 %v21750_v36 }
0x1259   :  { %12659 = vmatpush1.bf16.msra.mxu1 %v21745_v21  ;;  %v21804_v21 = vld [vmem:[#allocation19 + $0x284] ss:$24 sps:$4 sm:$0xff]  }
0x125a   :  { %12702 = vmatpush1.bf16.msra.mxu0 %v21748_v48  ;;  %12660 = vmatprep.subr.bf16.mxu1 %v21753_v62 }
0x125b   :  { %12703 = vmatprep.subr.bf16.mxu0 %v21756_v12 }
0x125d   :  { %12661 = vmatpush1.bf16.msra.mxu1 %v21751_v19 }
0x125e   :  { %12704 = vmatpush1.bf16.msra.mxu0 %v21754_v38  ;;  %12662 = vmatprep.subr.bf16.mxu1 %v21759_v24  ;;  %v21799_v24 = vld [vmem:[#allocation19 + $0x278] ss:$24 sps:$4 sm:$0xff]  }
0x125f   :  { %12705 = vmatprep.subr.bf16.mxu0 %v21762_v20 }
0x1261   :  { %12663 = vmatpush1.bf16.msra.mxu1 %v21757_v43 }
0x1262   :  { %12706 = vmatpush1.bf16.msra.mxu0 %v21760_v30  ;;  %12664 = vmatprep.subr.bf16.mxu1 %v21765_v54  ;;  %v21802_v54 = vld [vmem:[#allocation19 + $0x280] ss:$24 sps:$4 sm:$0xff]  }
0x1263   :  { %12707 = vmatprep.subr.bf16.mxu0 %v21768_v61 }
0x1265   :  { %12665 = vmatpush1.bf16.msra.mxu1 %v21763_v52  ;;  %v12736_v52 = vld [vmem:[#allocation24] sm:$0xff] }
0x1266   :  { %12708 = vmatpush1.bf16.msra.mxu0 %v21766_v33  ;;  %12666 = vmatprep.subr.bf16.mxu1 %v21771_v45 }
0x1267   :  { %12709 = vmatprep.subr.bf16.mxu0 %v21774_v25  ;;  %v21805_v25 = vld [vmem:[%s25446_s9 + $0x40] sm:$0xff]  }
0x1269   :  { %12667 = vmatpush1.bf16.msra.mxu1 %v21769_v13  ;;  %v21806_v13 = vld [vmem:[%s25446_s9] sm:$0xff]  }
0x126a   :  { %12710 = vmatpush1.bf16.msra.mxu0 %v21772_v35  ;;  %12668 = vmatprep.subr.bf16.mxu1 %v21777_v37  ;;  %v21807_v35 = vld [vmem:[%s25446_s9 + $0x48] sm:$0xff]  }
0x126b   :  { %12711 = vmatprep.subr.bf16.mxu0 %v21780_v59  ;;  %v21808_v37 = vld [vmem:[%s25446_s9 + $0x8] sm:$0xff]   ;;  %v21809_v59 = vld [vmem:[%s25446_s9 + $0x50] sm:$0xff]  }
0x126d   :  { %12669 = vmatpush1.bf16.msra.mxu1 %v21775_v63  ;;  %v21810_v63 = vld [vmem:[%s25446_s9 + $0x10] sm:$0xff]  }
0x126e   :  { %12712 = vmatpush1.bf16.msra.mxu0 %v21778_v31  ;;  %12670 = vmatprep.subr.bf16.mxu1 %v21783_v51  ;;  %v21811_v31 = vld [vmem:[%s25446_s9 + $0x58] sm:$0xff]  }
0x126f   :  { %12713 = vmatprep.subr.bf16.mxu0 %v21786_v49  ;;  %v21812_v51 = vld [vmem:[%s25446_s9 + $0x18] sm:$0xff]   ;;  %v24858_v49 = vstv %s18973_s1 }
0x1270   :  { %vm13600_vm3 = vcmp.eq.s32.totalorder %v23837_v47, %v24858_v49  ;;  %vm13599_vm11 = vcmp.eq.s32.totalorder %v23832_v23, %v24858_v49 }
0x1271   :  { %12671 = vmatpush1.bf16.msra.mxu1 %v21781_v10  ;;  %v24860_v10 = vstv %s18974_s6 }
0x1272   :  { %12714 = vmatpush1.bf16.msra.mxu0 %v21784_v44  ;;  %12672 = vmatprep.subr.bf16.mxu1 %v21789_v14  ;;  %v21813_v44 = vld [vmem:[%s25446_s9 + $0x60] sm:$0xff]   ;;  %vm13626_vm6 = vcmp.eq.s32.totalorder %v23837_v47, %v24860_v10  ;;  %vm13625_vm4 = vcmp.eq.s32.totalorder %v23832_v23, %v24860_v10 }
0x1273   :  { %12715 = vmatprep.subr.bf16.mxu0 %v21792_v34  ;;  %v21814_v14 = vld [vmem:[%s25446_s9 + $0x20] sm:$0xff]   ;;  %v13608_v34 = vsel %vm13600_vm3, 0.125, %v23071_v27 }
0x1275   :  { %12673 = vmatpush1.bf16.msra.mxu1 %v21787_v8  ;;  %v13634_v8 = vsel %vm13626_vm6, 0.125, %v23071_v27 }
0x1276   :  { %v11878_v0 = vpop.f32.mrb[168].mxu1  ;;  %12716 = vmatpush1.bf16.msra.mxu0 %v21790_v41  ;;  %12674 = vmatprep.subr.bf16.mxu1 %v21795_v17  ;;  %v24870_v41 = vstv %s18975_s14  ;;  %v13642_v17 = vadd.f32 %v13634_v8, %v13608_v34  ;;  %v21822_v8 = vld [vmem:[%s25446_s9 + $0x38] sm:$0xff]  }
0x1277   :  { %v11921_v15 = vpop.f32.mrb[176].mxu0  ;;  %v11880_v36 = vpop.f32.mrb[169].mxu1  ;;  %12717 = vmatprep.subr.bf16.mxu0 %v21798_v55  ;;  %vm13652_vm14 = vcmp.eq.s32.totalorder %v23837_v47, %v24870_v41  ;;  %v13607_v55 = vsel %vm13599_vm11, 0.125, %v23071_v27  ;;  %vm13651_vm3 = vcmp.eq.s32.totalorder %v23832_v23, %v24870_v41 }
0x1278   :  { %v11923_v48 = vpop.f32.mrb[177].mxu0  ;;  %v11882_v62 = vpop.f32.mrb[170].mxu1 }
0x1279   :  { %v20014_v12 = vpack.c.bf16 %v11882_v62, %v11878_v0  ;;  %v11925_v19 = vpop.f32.mrb[178].mxu0  ;;  %v11884_v38 = vpop.f32.mrb[171].mxu1  ;;  %12675 = vmatpush1.bf16.msra.mxu1 %v21793_v16  ;;  %v13660_v16 = vsel %vm13652_vm14, 0.125, %v23071_v27  ;;  %v24880_v0 = vstv %s18976_s0 }
0x127a   :  { %v20020_v20 = vpack.c.bf16 %v11925_v19, %v11921_v15  ;;  %v20011_v43 = vpack.c.bf16 %v11884_v38, %v11880_v36  ;;  %v11927_v30 = vpop.f32.mrb[179].mxu0  ;;  %12718 = vmatpush1.bf16.msra.mxu0 %v21796_v53  ;;  %12676 = vmatprep.subr.bf16.mxu1 %v21801_v46  ;;  %v13633_v53 = vsel %vm13625_vm4, 0.125, %v23071_v27  ;;  %v21815_v46 = vld [vmem:[%s25446_s9 + $0x68] sm:$0xff]   ;;  %v13668_v15 = vadd.f32 %v13660_v16, %v13642_v17 }
0x127b   :  { %v20017_v61 = vpack.c.bf16 %v11927_v30, %v11923_v48  ;;  %12719 = vmatprep.subr.bf16.mxu0 %v21804_v21  ;;  %vm13678_vm6 = vcmp.eq.s32.totalorder %v23837_v47, %v24880_v0  ;;  %v13641_v36 = vadd.f32 %v13633_v53, %v13607_v55  ;;  %v13659_v21 = vsel %vm13651_vm3, 0.125, %v23071_v27  ;;  %v21816_v48 = vld [vmem:[%s25446_s9 + $0x28] sm:$0xff]   ;;  %v21817_v30 = vld [vmem:[%s25446_s9 + $0x70] sm:$0xff]  }
0x127c   :  { %v13686_v62 = vsel %vm13678_vm6, 0.125, %v23071_v27  ;;  %vm13677_vm11 = vcmp.eq.s32.totalorder %v23832_v23, %v24880_v0  ;;  %vm13681_vm1 = vcmp.eq.s32.totalorder %v23971_v50, %v24880_v0 }
0x127d   :  { %12677 = vmatpush1.bf16.msra.mxu1 %v21799_v24  ;;  %v13694_v19 = vadd.f32 %v13686_v62, %v13668_v15  ;;  %v13667_v38 = vadd.f32 %v13659_v21, %v13641_v36  ;;  %v13685_v24 = vsel %vm13677_vm11, 0.125, %v23071_v27  ;;  %v21827_v36 = vld [vmem:[%s25446_s9 + $0x100] sm:$0xff]   ;;  %v21833_v62 = vld [vmem:[%s25446_s9 + $0x150] sm:$0xff]  }
0x127e   :  { %12720 = vmatpush1.bf16.msra.mxu0 %v21802_v54  ;;  %20007 = vmatprep.subr.msk.bf16.mxu1 %vm23721_vm12, %v20005_v26 }
0x127f   :  { %19549 = vmatprep.subr.bf16.mxu0 %v21805_v25 }
0x1280   :  { %12683 = vmatmul.mubr.bf16.vlgmr.msra.gmra.mrb[180].mxu1 %v24732_v40 }
0x1281   :  { %12726 = vmatmul.mubr.bf16.vlgmr.msra.gmra.mrb[188].mxu0 %v24732_v40  ;;  %20010 = vmatpush1.bf16.msk.msra.mxu1 %vm23721_vm12, %v20008_v9  ;;  %v12737_v40 = vld [vmem:[#allocation24 + $0x8] sm:$0x3f] }
0x1282   :  { %20013 = vmatprep.subr.msk.bf16.mxu1 %vm23721_vm12, %v20011_v43  ;;  %12826 = vmatprep.mubr.f32.mxu1 %v23071_v27  ;;  %v24899_v43 = vstv %s18978_s26 }
0x1283   :  { %19550 = vmatpush3.bf16.msra.mxu0 %v21806_v13  ;;  %vm13730_vm3 = vcmp.eq.s32.totalorder %v23837_v47, %v24899_v43  ;;  %v24909_v13 = vstv %s18979_s5  ;;  %vm13729_vm6 = vcmp.eq.s32.totalorder %v23832_v23, %v24899_v43 }
0x1284   :  { %19551 = vmatprep.subr.bf16.mxu0 %v21807_v35  ;;  %v13738_v25 = vsel %vm13730_vm3, 0.125, %v23071_v27  ;;  %vm13756_vm11 = vcmp.eq.s32.totalorder %v23837_v47, %v24909_v13 }
0x1287   :  { %19552 = vmatpush3.bf16.msra.mxu0 %v21808_v37 }
0x1288   :  { %18945 = vmatmul.mubr.msk.f32.vlgmr.msra.gmra.mrb[178].mxu1 %vm3321_vm13, %v12736_v52  ;;  %19553 = vmatprep.subr.bf16.mxu0 %v21809_v59  ;;  %v13737_v59 = vsel %vm13729_vm6, 0.125, %v23071_v27  ;;  %vm13604_vm6 = vcmp.eq.s32.totalorder %v23920_v18, %v24858_v49 }
0x1289   :  { %20016 = vmatpush1.bf16.msk.msra.mxu1 %vm23721_vm12, %v20014_v12  ;;  %12832 = vmatprep.mubr.f32.mxu1 %v23071_v27  ;;  %v24891_v12 = vstv %s18977_s3 }
0x128a   :  { %20019 = vmatprep.subr.msk.bf16.mxu1 %vm23721_vm12, %v20017_v61  ;;  %vm13704_vm14 = vcmp.eq.s32.totalorder %v23837_v47, %v24891_v12  ;;  %vm13703_vm4 = vcmp.eq.s32.totalorder %v23832_v23, %v24891_v12  ;;  %v13693_v61 = vadd.f32 %v13685_v24, %v13667_v38  ;;  %v21837_v38 = vld [vmem:[%s25446_s9 + $0x158] sm:$0xff]  }
0x128b   :  { %19554 = vmatpush3.bf16.msra.mxu0 %v21810_v63  ;;  %v13764_v63 = vsel %vm13756_vm11, 0.125, %v23071_v27  ;;  %v21839_v24 = vld [vmem:[%s25446_s9 + $0x118] sm:$0xff]   ;;  %vm13630_vm11 = vcmp.eq.s32.totalorder %v23920_v18, %v24860_v10 }
0x128c   :  { %18946 = vmatmul.mubr.msk.f32.gmra.mrb[184].mxu1 %vm3321_vm13, %v12737_v40  ;;  %19555 = vmatprep.subr.bf16.mxu0 %v21811_v31  ;;  %v24917_v31 = vstv %s18980_s2 }
0x128d   :  { %12903 = vmatprep.mubr.f32.mxu1 %v23071_v27  ;;  %vm13781_vm3 = vcmp.eq.s32.totalorder %v23832_v23, %v24917_v31 }
0x128e   :  { %v13789_v53 = vsel %vm13781_vm3, 0.125, %v23071_v27  ;;  %vm13708_vm3 = vcmp.eq.s32.totalorder %v23920_v18, %v24891_v12 }
0x128f   :  { %19556 = vmatpush3.bf16.msra.mxu0 %v21812_v51  ;;  %v21821_v51 = vld [vmem:[%s25446_s9 + $0x78] sm:$0xff]  }
0x1290   :  { %18949 = vmatmul.mubr.msk.f32.vlgmr.msra.gmra.mrb[186].mxu1 %vm3321_vm13, %v12736_v52  ;;  %19557 = vmatprep.subr.bf16.mxu0 %v21813_v44 }
0x1291   :  { %20022 = vmatpush1.bf16.msk.msra.mxu1 %vm23721_vm12, %v20020_v20  ;;  %12909 = vmatprep.mubr.f32.mxu1 %v23071_v27  ;;  %v13712_v20 = vsel %vm13704_vm14, 0.125, %v23071_v27  ;;  %vm13755_vm14 = vcmp.eq.s32.totalorder %v23832_v23, %v24909_v13  ;;  %v21829_v23 = vld [vmem:[%s25446_s9 + $0x148] sm:$0xff]  }
0x1292   :  { %v13720_v54 = vadd.f32 %v13712_v20, %v13694_v19  ;;  %v13763_v34 = vsel %vm13755_vm14, 0.125, %v23071_v27  ;;  %v21835_v19 = vld [vmem:[%s25446_s9 + $0x110] sm:$0xff]   ;;  %v21841_v20 = vld [vmem:[%s25446_s9 + $0x160] sm:$0xff]   ;;  %vm13656_vm14 = vcmp.eq.s32.totalorder %v23920_v18, %v24870_v41 }
0x1293   :  { %19558 = vmatpush3.bf16.msra.mxu0 %v21814_v14 }
0x1294   :  { %18950 = vmatmul.mubr.msk.f32.gmra.mrb[188].mxu1 %vm3321_vm13, %v12737_v40  ;;  %19559 = vmatprep.subr.bf16.mxu0 %v21815_v46  ;;  %v13746_v35 = vadd.f32 %v13738_v25, %v13720_v54  ;;  %v21825_v46 = vld [vmem:[%s25446_s9 + $0x140] sm:$0xff]  }
0x1295   :  { %12980 = vmatprep.mubr.f32.mxu1 %v23071_v27 }
0x1296   :  { %v13772_v44 = vadd.f32 %v13764_v63, %v13746_v35 }
0x1297   :  { %19560 = vmatpush3.bf16.msra.mxu0 %v21816_v48  ;;  %v21831_v48 = vld [vmem:[%s25446_s9 + $0x108] sm:$0xff]  }
0x1298   :  { %18953 = vmatmul.mubr.msk.f32.vlgmr.msra.gmra.mrb[190].mxu1 %vm3321_vm13, %v12736_v52  ;;  %v13711_v52 = vsel %vm13703_vm4, 0.125, %v23071_v27  ;;  %19561 = vmatprep.subr.bf16.mxu0 %v21817_v30  ;;  %vm13782_vm4 = vcmp.eq.s32.totalorder %v23837_v47, %v24917_v31 }
0x1299   :  { %12986 = vmatprep.mubr.f32.mxu1 %v23071_v27  ;;  %v13719_v37 = vadd.f32 %v13711_v52, %v13693_v61  ;;  %v13790_v17 = vsel %vm13782_vm4, 0.125, %v23071_v27  ;;  %v21843_v61 = vld [vmem:[%s25446_s9 + $0x120] sm:$0xff]   ;;  %vm13682_vm4 = vcmp.eq.s32.totalorder %v23920_v18, %v24880_v0 }
0x129a   :  { %v13798_v55 = vadd.f32 %v13790_v17, %v13772_v44 }
0x129b   :  { %v13745_v14 = vadd.f32 %v13737_v59, %v13719_v37 }
0x129c   :  { %18954 = vmatmul.mubr.msk.f32.gmra.mrb[192].mxu1 %vm3321_vm13, %v12737_v40  ;;  %v21818_v40 = vld [vmem:[%s25446_s9 + $0x30] sm:$0xff]   ;;  %v13806_v47 = vpack.c.bf16 %v13798_v55, %v13798_v55  ;;  %v13664_v55 = vsel %vm13656_vm14, 0.125, %v23071_v27  ;;  %vm13603_vm14 = vcmp.eq.s32.totalorder %v23971_v50, %v24858_v49 }
0x129d   :  { %13147 = vmatprep.mubr.f32.mxu1 %v23071_v27  ;;  %19562 = vmatpush3.bf16.msra.mxu0 %v21818_v40  ;;  %v13771_v16 = vadd.f32 %v13763_v34, %v13745_v14  ;;  %v21847_v14 = vld [vmem:[%s25446_s9 + $0x128] sm:$0xff]   ;;  %v13612_v34 = vsel %vm13604_vm6, 0.125, %v23071_v27  ;;  %vm13734_vm6 = vcmp.eq.s32.totalorder %v23920_v18, %v24899_v43 }
0x129e   :  { %19563 = vmatprep.subr.bf16.mxu0 %v21821_v51  ;;  %14351 = vmatprep.mubr.bf16.mxu0 %v13806_v47  ;;  %v21845_v51 = vld [vmem:[%s25446_s9 + $0x168] sm:$0xff]   ;;  %v13690_v47 = vsel %vm13682_vm4, 0.125, %v23071_v27  ;;  %vm13786_vm4 = vcmp.eq.s32.totalorder %v23920_v18, %v24917_v31 }
0x129f   :  { %v13797_v15 = vadd.f32 %v13789_v53, %v13771_v16  ;;  %v21852_v53 = vld [vmem:[%s25446_s9 + $0x178] sm:$0xff]  }
0x12a1   :  { %19564 = vmatpush3.bf16.msra.mxu0 %v21822_v8  ;;  %v13805_v21 = vpack.c.bf16 %v13797_v15, %v13797_v15 }
0x12a2   :  { %19593 = vmatprep.subr.bf16.mxu0 %v21825_v46  ;;  %v21853_v46 = vld [vmem:[%s25446_s9 + $0x138] sm:$0xff]  }
0x12a4   :  { %14352 = vmatmul.mubr.bf16.vlgmr.msra.gmra.mrb[192].mxu0 %v13805_v21  ;;  %v13742_v21 = vsel %vm13734_vm6, 0.125, %v23071_v27  ;;  %vm13655_vm6 = vcmp.eq.s32.totalorder %v23971_v50, %v24870_v41 }
0x12a5   :  { %19594 = vmatpush3.bf16.msra.mxu0 %v21827_v36  ;;  %v13716_v36 = vsel %vm13708_vm3, 0.125, %v23071_v27  ;;  %vm13629_vm3 = vcmp.eq.s32.totalorder %v23971_v50, %v24860_v10 }
0x12a6   :  { %19595 = vmatprep.subr.bf16.mxu0 %v21829_v23 }
0x12a9   :  { %19596 = vmatpush3.bf16.msra.mxu0 %v21831_v48  ;;  %v13611_v48 = vsel %vm13603_vm14, 0.125, %v23071_v27  ;;  %vm13733_vm14 = vcmp.eq.s32.totalorder %v23971_v50, %v24899_v43 }
0x12aa   :  { %19597 = vmatprep.subr.bf16.mxu0 %v21833_v62 }
0x12ad   :  { %19598 = vmatpush3.bf16.msra.mxu0 %v21835_v19 }
0x12ae   :  { %19599 = vmatprep.subr.bf16.mxu0 %v21837_v38  ;;  %v13637_v38 = vsel %vm13629_vm3, 0.125, %v23071_v27  ;;  %vm13785_vm3 = vcmp.eq.s32.totalorder %v23971_v50, %v24917_v31 }
0x12b1   :  { %19600 = vmatpush3.bf16.msra.mxu0 %v21839_v24  ;;  %v13663_v24 = vsel %vm13655_vm6, 0.125, %v23071_v27  ;;  %vm13654_vm6 = vcmp.eq.s32.totalorder %v24023_v39, %v24870_v41 }
0x12b2   :  { %19601 = vmatprep.subr.bf16.mxu0 %v21841_v20  ;;  %v13645_v20 = vadd.f32 %v13637_v38, %v13611_v48 }
0x12b5   :  { %19602 = vmatpush3.bf16.msra.mxu0 %v21843_v61  ;;  %v13689_v61 = vsel %vm13681_vm1, 0.125, %v23071_v27  ;;  %vm13628_vm1 = vcmp.eq.s32.totalorder %v24023_v39, %v24860_v10 }
0x12b6   :  { %19603 = vmatprep.subr.bf16.mxu0 %v21845_v51 }
0x12b9   :  { %19604 = vmatpush3.bf16.msra.mxu0 %v21847_v14 }
0x12e3   :  { %v24834_v22 = vpop.f32.mrb[180].mxu0  ;;  %v24836_v3 = vpop.f32.mrb[158].mxu1 }
0x12e4   :  { %v24838_v28 = vpop.f32.mrb[181].mxu0  ;;  %v24840_v9 = vpop.f32.mrb[159].mxu1 }
0x12e7   :  { %v24842_v58 = vpop.f32.mrb[182].mxu0  ;;  %v24844_v26 = vpop.f32.mrb[172].mxu1 }
0x12e8   :  { %v24846_v33 = vpop.f32.mrb[183].mxu0  ;;  %v24848_v45 = vpop.f32.mrb[173].mxu1 }
0x131b   :  { %v12641_v30 = vpop.f32.mrb[184].mxu0  ;;  %v24939_v54 = vpop.f32.mrb[174].mxu1 }
0x131c   :  { %v24943_v52 = vadd.f32 %v12641_v30, %v24836_v3  ;;  %v12643_v40 = vpop.f32.mrb[185].mxu0  ;;  %v24945_v25 = vpop.f32.mrb[175].mxu1 }
0x131d   :  { %v24950_v35 = vadd.f32 %v12643_v40, %v24840_v9  ;;  %v12645_v37 = vpop.f32.mrb[186].mxu0  ;;  %v13638_v9 = vsel %vm13630_vm11, 0.125, %v23071_v27  ;;  %vm13760_vm11 = vcmp.eq.s32.totalorder %v23920_v18, %v24909_v13  ;;  %v13794_v18 = vsel %vm13786_vm4, 0.125, %v23071_v27 }
0x131e   :  { %v24953_v59 = vadd.f32 %v12645_v37, %v24844_v26  ;;  %v12647_v63 = vpop.f32.mrb[187].mxu0  ;;  %v21849_v26 = vld [vmem:[%s25446_s9 + $0x170] sm:$0xff]   ;;  %v13646_v17 = vadd.f32 %v13638_v9, %v13612_v34  ;;  %v13768_v62 = vsel %vm13760_vm11, 0.125, %v23071_v27  ;;  %vm13707_vm11 = vcmp.eq.s32.totalorder %v23971_v50, %v24891_v12 }
0x131f   :  { %v24957_v3 = vadd.f32 %v12647_v63, %v24848_v45  ;;  %v24959_v44 = vpop.f32.mrb[176].mxu1  ;;  %v21850_v45 = vld [vmem:[%s25446_s9 + $0x130] sm:$0xff]   ;;  %19605 = vmatprep.subr.bf16.mxu0 %v21849_v26  ;;  %v13671_v40 = vadd.f32 %v13663_v24, %v13645_v20  ;;  %v13715_v63 = vsel %vm13707_vm11, 0.125, %v23071_v27  ;;  %vm13759_vm4 = vcmp.eq.s32.totalorder %v23971_v50, %v24909_v13 }
0x1320   :  { %v24963_v8 = vpop.f32.mrb[177].mxu1  ;;  %v13672_v16 = vadd.f32 %v13664_v55, %v13646_v17  ;;  %19606 = vmatpush3.bf16.msra.mxu0 %v21850_v45  ;;  %v13741_v34 = vsel %vm13733_vm14, 0.125, %v23071_v27  ;;  %v13767_v26 = vsel %vm13759_vm4, 0.125, %v23071_v27  ;;  %v13793_v45 = vsel %vm13785_vm3, 0.125, %v23071_v27 }
0x1321   :  { %19607 = vmatprep.subr.bf16.mxu0 %v21852_v53  ;;  %v13697_v51 = vadd.f32 %v13689_v61, %v13671_v40  ;;  %vm13680_vm11 = vcmp.eq.s32.totalorder %v24023_v39, %v24880_v0  ;;  %vm13706_vm14 = vcmp.eq.s32.totalorder %v24023_v39, %v24891_v12  ;;  %vm13732_vm4 = vcmp.eq.s32.totalorder %v24023_v39, %v24899_v43 }
0x1322   :  { %v13698_v15 = vadd.f32 %v13690_v47, %v13672_v16  ;;  %vm13758_vm3 = vcmp.eq.s32.totalorder %v24023_v39, %v24909_v13 }
0x1323   :  { %v13723_v9 = vadd.f32 %v13715_v63, %v13697_v51 }
0x1324   :  { %v13724_v23 = vadd.f32 %v13716_v36, %v13698_v15  ;;  %19608 = vmatpush3.bf16.msra.mxu0 %v21853_v46 }
0x1325   :  { %19711 = vmatprep.subr.bf16.mxu0 %v23071_v27  ;;  %v13749_v17 = vadd.f32 %v13741_v34, %v13723_v9 }
0x1326   :  { %v13750_v19 = vadd.f32 %v13742_v21, %v13724_v23 }
0x1327   :  { %v13775_v55 = vadd.f32 %v13767_v26, %v13749_v17 }
0x1328   :  { %v13776_v30 = vadd.f32 %v13768_v62, %v13750_v19 }
0x1329   :  { %v13801_v16 = vadd.f32 %v13793_v45, %v13775_v55 }
0x132a   :  { %v13802_v37 = vadd.f32 %v13794_v18, %v13776_v30 }
0x132b   :  { %v13809_v53 = vpack.c.bf16 %v13801_v16, %v13801_v16 }
0x132c   :  { %v13810_v14 = vpack.c.bf16 %v13802_v37, %v13802_v37 }
0x132e   :  { %14431 = vmatprep.mubr.bf16.mxu0 %v13810_v14 }
0x132f   :  { %14432 = vmatmul.mubr.bf16.vlgmr.msra.gmra.mrb[196].mxu0 %v13809_v53 }
0x1330   :  { %19719 = vmatprep.mubr.msk.bf16.mxu0 %vm23078_vm0, %v23071_v27  ;;  %vm13602_vm0 = vcmp.eq.s32.totalorder %v24023_v39, %v24858_v49 }
0x1353   :  { %v12684_v47 = vpop.f32.mrb[180].mxu1 }
0x1354   :  { %v12685_v46 = vadd.f32 %v12684_v47, %v24834_v22  ;;  %v12686_v15 = vpop.f32.mrb[181].mxu1  ;;  %v12727_v36 = vpop.f32.mrb[188].mxu0 }
0x1355   :  { %v12687_v50 = vadd.f32 %v12686_v15, %v24838_v28  ;;  %v12728_v21 = vadd.f32 %v12727_v36, %v24939_v54  ;;  %v12688_v23 = vpop.f32.mrb[182].mxu1  ;;  %v12729_v48 = vpop.f32.mrb[189].mxu0  ;;  %v13005_v28 = vld [vmem:[#allocation28] sm:$0x3f] }
0x1356   :  { %v12689_v62 = vadd.f32 %v12688_v23, %v24842_v58  ;;  %v12730_v19 = vadd.f32 %v12729_v48, %v24945_v25  ;;  %v12690_v38 = vpop.f32.mrb[183].mxu1  ;;  %v12731_v24 = vpop.f32.mrb[190].mxu0  ;;  %v13010_v40 = vrot.slane %v13005_v28, %v23558_v5  ;;  %v13014_v37 = vrot.slane %v13005_v28, %v23561_v7 }
0x1357   :  { %v12691_v18 = vadd.f32 %v12690_v38, %v24846_v33  ;;  %v25024_v20 = vadd.f32 %v12731_v24, %v24959_v44  ;;  %v12733_v22 = vpop.f32.mrb[191].mxu0  ;;  %v13636_v23 = vsel %vm13628_vm1, 0.125, %v23071_v27  ;;  %vm13601_vm1 = vcmp.eq.s32.totalorder %v24096_v1, %v24858_v49 }
0x1358   :  { %v25027_v30 = vadd.f32 %v12733_v22, %v24963_v8 }
0x135b   :  { %v12828_v61 = vpop.f32.mrb[178].mxu1 }
0x135c   :  { %v12993_v54 = vadd.f32 %v12828_v61, %v24943_v52  ;;  %v12830_v58 = vpop.f32.mrb[179].mxu1  ;;  %v13018_v52 = vrot.slane %v13005_v28, %v23568_v56  ;;  %v13610_v56 = vsel %vm13602_vm0, 0.125, %v23071_v27  ;;  %vm13784_vm0 = vcmp.eq.s32.totalorder %v24023_v39, %v24917_v31 }
0x135d   :  { %v12994_v25 = vadd.f32 %v12830_v58, %v24950_v35  ;;  %v13644_v61 = vadd.f32 %v13636_v23, %v13610_v56  ;;  %v13662_v58 = vsel %vm13654_vm6, 0.125, %v23071_v27  ;;  %v13766_v23 = vsel %vm13758_vm3, 0.125, %v23071_v27 }
0x135e   :  { %v13037_v33 = vadd.f32 %v13010_v40, %v12993_v54  ;;  %vm13627_vm6 = vcmp.eq.s32.totalorder %v24096_v1, %v24860_v10  ;;  %vm13679_vm3 = vcmp.eq.s32.totalorder %v24096_v1, %v24880_v0 }
0x135f   :  { %v12834_v63 = vpop.f32.mrb[184].mxu1  ;;  %v13038_v14 = vadd.f32 %v13014_v37, %v12994_v25 }
0x1360   :  { %v12999_v44 = vadd.f32 %v12834_v63, %v24953_v59  ;;  %v12836_v51 = vpop.f32.mrb[185].mxu1  ;;  %v13049_v17 = vmax.f32 %v13037_v33, 0.0 }
0x1361   :  { %v13000_v8 = vadd.f32 %v12836_v51, %v24957_v3  ;;  %v13050_v59 = vmax.f32 %v13038_v14, 0.0  ;;  %v13022_v3 = vrot.slane %v13005_v28, %v23571_v60  ;;  %v13030_v14 = vrot.slane %v13005_v28, %v4419_v6 }
0x1362   :  { %v13043_v34 = vadd.f32 %v13010_v40, %v12999_v44 }
0x1363   :  { %v13044_v9 = vadd.f32 %v13014_v37, %v13000_v8  ;;  %v12905_v26 = vpop.f32.mrb[186].mxu1 }
0x1364   :  { %v13055_v35 = vmax.f32 %v13043_v34, 0.0  ;;  %v12995_v45 = vadd.f32 %v12905_v26, %v12685_v46  ;;  %v12907_v55 = vpop.f32.mrb[187].mxu1 }
0x1365   :  { %v13056_v16 = vmax.f32 %v13044_v9, 0.0  ;;  %v12996_v53 = vadd.f32 %v12907_v55, %v12687_v50  ;;  %v13061_v50 = vld [vmem:[#allocation25] sm:$0x7f] }
0x1366   :  { %v25041_v47 = vpack.c.bf16 %v13055_v35, %v13049_v17  ;;  %v13039_v48 = vadd.f32 %v13018_v52, %v12995_v45  ;;  %v13714_v45 = vsel %vm13706_vm14, 0.125, %v23071_v27  ;;  %vm13632_vm14 = vcmp.eq.s32.totalorder %v24099_v11, %v24860_v10 }
0x1367   :  { %v20023_v15 = vpack.c.bf16 %v13056_v16, %v13050_v59  ;;  %v12911_v36 = vpop.f32.mrb[188].mxu1  ;;  %v13040_v24 = vadd.f32 %v13022_v3, %v12996_v53  ;;  %v13640_v4 = vsel %vm13632_vm14, 0.125, %v23071_v27  ;;  %vm13757_vm14 = vcmp.eq.s32.totalorder %v24096_v1, %v24909_v13 }
0x1368   :  { %v13001_v38 = vadd.f32 %v12911_v36, %v12689_v62  ;;  %v12913_v46 = vpop.f32.mrb[189].mxu1  ;;  %v13026_v62 = vrot.slane %v13005_v28, %v4415_v42  ;;  %v13051_v25 = vmax.f32 %v13039_v48, 0.0  ;;  %v13670_v42 = vadd.f32 %v13662_v58, %v13644_v61  ;;  %v13296_v48 = vld [vmem:[#allocation27] sm:$0x7f] }
0x1369   :  { %v13002_v22 = vadd.f32 %v12913_v46, %v12691_v18  ;;  %20025 = vmatprep.subr.msk.bf16.mxu1 %vm23721_vm12, %v20023_v15  ;;  %v13052_v33 = vmax.f32 %v13040_v24, 0.0  ;;  %v13740_v36 = vsel %vm13732_vm4, 0.125, %v23071_v27  ;;  %v21820_v46 = vld [vmem:[%s25446_s9 + $0x80] sm:$0xff]   ;;  %vm13653_vm4 = vcmp.eq.s32.totalorder %v24096_v1, %v24870_v41 }
0x136a   :  { %v13045_v60 = vadd.f32 %v13018_v52, %v13001_v38  ;;  %20028 = vmatpush1.bf16.msk.msra.mxu1 %vm23721_vm12, %v25041_v47 }
0x136b   :  { %v13046_v54 = vadd.f32 %v13022_v3, %v13002_v22  ;;  %v12982_v40 = vpop.f32.mrb[190].mxu1  ;;  %v13609_v22 = vsel %vm13601_vm1, 0.125, %v23071_v27  ;;  %vm13710_vm1 = vcmp.eq.s32.totalorder %v24099_v11, %v24891_v12 }
0x136c   :  { %v13057_v37 = vmax.f32 %v13045_v60, 0.0  ;;  %v12997_v18 = vadd.f32 %v12982_v40, %v12728_v21  ;;  %v12984_v63 = vpop.f32.mrb[191].mxu1  ;;  %v13688_v21 = vsel %vm13680_vm11, 0.125, %v23071_v27  ;;  %vm13606_vm11 = vcmp.eq.s32.totalorder %v24099_v11, %v24858_v49  ;;  %v21824_v40 = vld [vmem:[%s25446_s9 + $0x88] sm:$0xff]  }
0x136d   :  { %v13058_v44 = vmax.f32 %v13046_v54, 0.0  ;;  %v12998_v51 = vadd.f32 %v12984_v63, %v12730_v19  ;;  %18957 = vmatmul.mubr.msk.f32.vlgmr.msra.gmra.mrb[194].mxu1 %vm3321_vm13, %v13061_v50  ;;  %v13696_v28 = vadd.f32 %v13688_v21, %v13670_v42  ;;  %v13635_v60 = vsel %vm13627_vm6, 0.125, %v23071_v27  ;;  %v21828_v63 = vld [vmem:[%s25446_s9 + $0x90] sm:$0xff]   ;;  %v21832_v42 = vld [vmem:[%s25446_s9 + $0x98] sm:$0xff]   ;;  %v21834_v21 = vld [vmem:[%s25446_s9 + $0xe0] sm:$0xff]  }
0x136e   :  { %v20032_v8 = vpack.c.bf16 %v13057_v37, %v13051_v25  ;;  %13218 = vmatprep.mubr.f32.mxu1 %v23071_v27  ;;  %v13041_v26 = vadd.f32 %v13026_v62, %v12997_v18  ;;  %v13614_v61 = vsel %vm13606_vm11, 0.125, %v23071_v27  ;;  %v13643_v54 = vadd.f32 %v13635_v60, %v13609_v22  ;;  %v21826_v25 = vld [vmem:[%s25446_s9 + $0xd0] sm:$0xff]   ;;  %v21857_v22 = vld [vmem:[%s25446_s9 + $0x1a0] sm:$0xff]   ;;  %v21858_v60 = vld [vmem:[%s25446_s9 + $0x1a8] sm:$0xff]  }
0x136f   :  { %v20029_v34 = vpack.c.bf16 %v13058_v44, %v13052_v33  ;;  %v12988_v9 = vpop.f32.mrb[192].mxu1  ;;  %v13042_v19 = vadd.f32 %v13030_v14, %v12998_v51  ;;  %v13722_v53 = vadd.f32 %v13714_v45, %v13696_v28  ;;  %v13648_v58 = vadd.f32 %v13640_v4, %v13614_v61  ;;  %v21830_v51 = vld [vmem:[%s25446_s9 + $0xd8] sm:$0xff]   ;;  %v21840_v45 = vld [vmem:[%s25446_s9 + $0xa8] sm:$0xff]  }
0x1370   :  { %v13003_v52 = vadd.f32 %v12988_v9, %v25024_v20  ;;  %v12990_v17 = vpop.f32.mrb[193].mxu1  ;;  %v13053_v55 = vmax.f32 %v13041_v26, 0.0  ;;  %v13687_v33 = vsel %vm13679_vm3, 0.125, %v23071_v27  ;;  %vm13731_vm6 = vcmp.eq.s32.totalorder %v24096_v1, %v24899_v43  ;;  %v21860_v61 = vld [vmem:[%s25446_s9 + $0x1b8] sm:$0xff]  }
0x1371   :  { %v13004_v57 = vadd.f32 %v12990_v17, %v25027_v30  ;;  %20031 = vmatprep.subr.msk.bf16.mxu1 %vm23721_vm12, %v20029_v34  ;;  %v13054_v59 = vmax.f32 %v13042_v19, 0.0  ;;  %v13748_v56 = vadd.f32 %v13740_v36, %v13722_v53  ;;  %v13718_v26 = vsel %vm13710_vm1, 0.125, %v23071_v27  ;;  %v21836_v17 = vld [vmem:[%s25446_s9 + $0xa0] sm:$0xff]   ;;  %v21844_v53 = vld [vmem:[%s25446_s9 + $0xb0] sm:$0xff]  }
0x1372   :  { %v13047_v6 = vadd.f32 %v13026_v62, %v13003_v52  ;;  %20034 = vmatpush1.bf16.msk.msra.mxu1 %vm23721_vm12, %v20032_v8  ;;  %v13661_v62 = vsel %vm13653_vm4, 0.125, %v23071_v27  ;;  %vm13736_vm11 = vcmp.eq.s32.totalorder %v24099_v11, %v24899_v43  ;;  %v13739_v19 = vsel %vm13731_vm6, 0.125, %v23071_v27 }
0x1373   :  { %v13048_v35 = vadd.f32 %v13030_v14, %v13004_v57  ;;  %v13774_v38 = vadd.f32 %v13766_v23, %v13748_v56  ;;  %v13669_v18 = vadd.f32 %v13661_v62, %v13643_v54  ;;  %v13744_v28 = vsel %vm13736_vm11, 0.125, %v23071_v27  ;;  %v21846_v56 = vld [vmem:[%s25446_s9 + $0xf8] sm:$0xff]   ;;  %v21861_v62 = vld [vmem:[%s25446_s9 + $0x1c0] sm:$0xff]  }
0x1374   :  { %v13059_v20 = vmax.f32 %v13047_v6, 0.0  ;;  %v21838_v6 = vld [vmem:[%s25446_s9 + $0xe8] sm:$0xff]   ;;  %vm13762_vm4 = vcmp.eq.s32.totalorder %v24099_v11, %v24909_v13  ;;  %vm13788_vm3 = vcmp.eq.s32.totalorder %v24099_v11, %v24917_v31  ;;  %vm13683_vm1 = vcmp.eq.s32.totalorder %v24190_v32, %v24880_v0 }
0x1375   :  { %v13060_v16 = vmax.f32 %v13048_v35, 0.0  ;;  %18960 = vmatmul.mubr.msk.f32.vlgmr.msra.gmra.mrb[196].mxu1 %vm3321_vm13, %v13061_v50  ;;  %v13796_v23 = vsel %vm13788_vm3, 0.125, %v23071_v27  ;;  %vm13709_vm6 = vcmp.eq.s32.totalorder %v24190_v32, %v24891_v12  ;;  %vm13735_vm11 = vcmp.eq.s32.totalorder %v24190_v32, %v24899_v43 }
0x1376   :  { %v20038_v30 = vpack.c.bf16 %v13059_v20, %v13053_v55  ;;  %13289 = vmatprep.mubr.f32.mxu1 %v23071_v27  ;;  %v13765_v55 = vsel %vm13757_vm14, 0.125, %v23071_v27  ;;  %vm13761_vm14 = vcmp.eq.s32.totalorder %v24190_v32, %v24909_v13 }
0x1377   :  { %v20035_v3 = vpack.c.bf16 %v13060_v16, %v13054_v59  ;;  %v21842_v59 = vld [vmem:[%s25446_s9 + $0xf0] sm:$0xff]   ;;  %v13770_v16 = vsel %vm13762_vm4, 0.125, %v23071_v27  ;;  %vm13787_vm4 = vcmp.eq.s32.totalorder %v24190_v32, %v24917_v31 }
0x1379   :  { %20037 = vmatprep.subr.msk.bf16.mxu1 %vm23721_vm12, %v20035_v3 }
0x137a   :  { %20040 = vmatpush1.bf16.msk.msra.mxu1 %vm23721_vm12, %v20038_v30 }
0x137b   :  { %20043 = vmatprep.subr.msk.bf16.mxu1 %vm23721_vm12, %v20023_v15  ;;  %v13792_v15 = vsel %vm13784_vm0, 0.125, %v23071_v27  ;;  %vm13684_vm0 = vcmp.eq.s32.totalorder %v24099_v11, %v24880_v0 }
0x137c   :  { %v13800_v39 = vadd.f32 %v13792_v15, %v13774_v38  ;;  %v13692_v14 = vsel %vm13684_vm0, 0.125, %v23071_v27  ;;  %v21851_v15 = vld [vmem:[%s25446_s9 + $0x180] sm:$0xff]   ;;  %vm13631_vm0 = vcmp.eq.s32.totalorder %v24190_v32, %v24860_v10 }
0x137d   :  { %18963 = vmatmul.mubr.msk.f32.vlgmr.msra.gmra.mrb[198].mxu1 %vm3321_vm13, %v13061_v50  ;;  %v21823_v50 = vld [vmem:[%s25446_s9 + $0xc8] sm:$0xff]   ;;  %v13639_v54 = vsel %vm13631_vm0, 0.125, %v23071_v27 }
0x137e   :  { %20046 = vmatpush1.bf16.msk.msra.mxu1 %vm23721_vm12, %v25041_v47  ;;  %13364 = vmatprep.mubr.f32.mxu1 %v23071_v27  ;;  %v21819_v47 = vld [vmem:[%s25446_s9 + $0xc0] sm:$0xff]   ;;  %v13808_v24 = vpack.c.bf16 %v13800_v39, %v13800_v39 }
0x137f   :  { %20049 = vmatprep.subr.msk.bf16.mxu1 %vm23721_vm12, %v20029_v34 }
0x1381   :  { %18966 = vmatmul.mubr.msk.f32.vlgmr.msra.gmra.mrb[200].mxu1 %vm3321_vm13, %v13296_v48 }
0x1382   :  { %20052 = vmatpush1.bf16.msk.msra.mxu1 %vm23721_vm12, %v20032_v8  ;;  %13435 = vmatprep.mubr.f32.mxu1 %v23071_v27  ;;  %v13695_v8 = vadd.f32 %v13687_v33, %v13669_v18  ;;  %v13717_v18 = vsel %vm13709_vm6, 0.125, %v23071_v27  ;;  %v13743_v33 = vsel %vm13735_vm11, 0.125, %v23071_v27 }
0x1383   :  { %20055 = vmatprep.subr.msk.bf16.mxu1 %vm23721_vm12, %v20035_v3 }
0x1385   :  { %18969 = vmatmul.mubr.msk.f32.vlgmr.msra.gmra.mrb[202].mxu1 %vm3321_vm13, %v13296_v48 }
0x1386   :  { %20058 = vmatpush1.bf16.msk.msra.mxu1 %vm23721_vm12, %v20038_v30  ;;  %13506 = vmatprep.mubr.f32.mxu1 %v23071_v27  ;;  %vm13658_vm12 = vcmp.eq.s32.totalorder %v24099_v11, %v24870_v41 }
0x1387   :  { %19571 = vmatprep.subr.bf16.mxu1 %v21819_v47  ;;  %v13666_v37 = vsel %vm13658_vm12, 0.125, %v23071_v27  ;;  %vm13783_vm12 = vcmp.eq.s32.totalorder %v24096_v1, %v24917_v31  ;;  %v21854_v47 = vld [vmem:[%s25446_s9 + $0x188] sm:$0xff]  }
0x1388   :  { %v13674_v44 = vadd.f32 %v13666_v37, %v13648_v58  ;;  %v13791_v3 = vsel %vm13783_vm12, 0.125, %v23071_v27  ;;  %v21862_v58 = vld [vmem:[%s25446_s9 + $0x1c8] sm:$0xff]   ;;  %v21863_v37 = vld [vmem:[%s25446_s9 + $0x1d0] sm:$0xff]  }
0x1389   :  { %18972 = vmatmul.mubr.msk.f32.vlgmr.msra.gmra.mrb[204].mxu1 %vm3321_vm13, %v13296_v48  ;;  %vm13705_vm13 = vcmp.eq.s32.totalorder %v24096_v1, %v24891_v12  ;;  %v21848_v1 = vld [vmem:[%s25446_s9 + $0xb8] sm:$0xff]  }
0x138a   :  { %19572 = vmatpush3.bf16.msra.mxu1 %v21820_v46  ;;  %14391 = vmatprep.mubr.bf16.mxu1 %v13808_v24  ;;  %v13713_v34 = vsel %vm13705_vm13, 0.125, %v23071_v27  ;;  %v13700_v9 = vadd.f32 %v13692_v14, %v13674_v44  ;;  %v21855_v46 = vld [vmem:[%s25446_s9 + $0x190] sm:$0xff]   ;;  %v21856_v24 = vld [vmem:[%s25446_s9 + $0x198] sm:$0xff]   ;;  %vm13657_vm13 = vcmp.eq.s32.totalorder %v24190_v32, %v24870_v41  ;;  %v21865_v44 = vld [vmem:[%s25446_s9 + $0x1e0] sm:$0xff]  }
0x138b   :  { %19573 = vmatprep.subr.bf16.mxu1 %v21823_v50  ;;  %v13721_v52 = vadd.f32 %v13713_v34, %v13695_v8  ;;  %v21859_v50 = vld [vmem:[%s25446_s9 + $0x1b0] sm:$0xff]   ;;  %v21866_v14 = vld [vmem:[%s25446_s9 + $0x1e8] sm:$0xff]   ;;  %v13795_v8 = vsel %vm13787_vm4, 0.125, %v23071_v27 }
0x138c   :  { %v13726_v57 = vadd.f32 %v13718_v26, %v13700_v9 }
0x138d   :  { %v13747_v35 = vadd.f32 %v13739_v19, %v13721_v52  ;;  %v21869_v19 = vld [vmem:[#allocation34 + $0x8] sm:$0xff]  }
0x138e   :  { %19574 = vmatpush3.bf16.msra.mxu1 %v21824_v40  ;;  %v13752_v20 = vadd.f32 %v13744_v28, %v13726_v57  ;;  %v21870_v57 = vld [vmem:[#allocation34 + $0x10] sm:$0xff]  }
0x138f   :  { %19575 = vmatprep.subr.bf16.mxu1 %v21826_v25  ;;  %v13773_v30 = vadd.f32 %v13765_v55, %v13747_v35  ;;  %v13691_v25 = vsel %vm13683_vm1, 0.125, %v23071_v27 }
0x1390   :  { %v13778_v36 = vadd.f32 %v13770_v16, %v13752_v20  ;;  %v21871_v20 = vld [vmem:[#allocation34 + $0x18] sm:$0xff]  }
0x1391   :  { %v13799_v48 = vadd.f32 %v13791_v3, %v13773_v30 }
0x1392   :  { %19576 = vmatpush3.bf16.msra.mxu1 %v21828_v63  ;;  %v13804_v38 = vadd.f32 %v13796_v23, %v13778_v36  ;;  %v21864_v63 = vld [vmem:[%s25446_s9 + $0x1d8] sm:$0xff]  }
0x1393   :  { %19577 = vmatprep.subr.bf16.mxu1 %v21830_v51  ;;  %v13807_v11 = vpack.c.bf16 %v13799_v48, %v13799_v48  ;;  %v13769_v51 = vsel %vm13761_vm14, 0.125, %v23071_v27 }
0x1394   :  { %v13812_v39 = vpack.c.bf16 %v13804_v38, %v13804_v38 }
0x1396   :  { %19578 = vmatpush3.bf16.msra.mxu1 %v21832_v42  ;;  %v21867_v42 = vld [vmem:[%s25446_s9 + $0x1f0] ss:$0 sps:$4 sm:$0xff]  }
0x1397   :  { %19579 = vmatprep.subr.bf16.mxu1 %v21834_v21  ;;  %v14317_v13 = vsel %vm848_vm2, %v21867_v42, 0  ;;  %v19565_v21 = vpop.f32.mrb[192].mxu0  ;;  %vm25495_vm2 = vcmask 916480  }
0x1398   :  { %v19566_v26 = vpop.f32.mrb[193].mxu0 }
0x1399   :  { %v19568_v31 = vpop.f32.mrb[194].mxu0 }
0x139a   :  { %19580 = vmatpush3.bf16.msra.mxu1 %v21836_v17  ;;  %v19569_v52 = vpop.f32.mrb[195].mxu0  ;;  %v21868_v17 = vld [vmem:[#allocation34] sm:$0xff]   ;;  %v21902_v31 = vld [vmem:[#allocation30 + $0xa0] ss:$8 sps:$4 sm:$0xff]  }
0x139b   :  { %19581 = vmatprep.subr.bf16.mxu1 %v21838_v6  ;;  %19712 = vmatpush3.bf16.msra.mxu0 %v21868_v17  ;;  %v21907_v52 = vld [vmem:[#allocation30 + $0xb4] ss:$8 sps:$4 sm:$0xff]   ;;  %v21905_v17 = vld [vmem:[#allocation30 + $0xb0] ss:$8 sps:$4 sm:$0xff]  }
0x139c   :  { %19713 = vmatprep.subr.bf16.mxu0 %v23071_v27 }
0x139e   :  { %19582 = vmatpush3.bf16.msra.mxu1 %v21840_v45 }
0x139f   :  { %19583 = vmatprep.subr.bf16.mxu1 %v21842_v59  ;;  %19714 = vmatpush3.bf16.msra.mxu0 %v21869_v19  ;;  %v21910_v19 = vld [vmem:[#allocation30 + $0xc4] ss:$8 sps:$4 sm:$0xff]  }
0x13a0   :  { %19715 = vmatprep.subr.bf16.mxu0 %v23071_v27 }
0x13a2   :  { %19584 = vmatpush3.bf16.msra.mxu1 %v21844_v53 }
0x13a3   :  { %19585 = vmatprep.subr.bf16.mxu1 %v21846_v56  ;;  %19716 = vmatpush3.bf16.msra.mxu0 %v21870_v57 }
0x13a4   :  { %19717 = vmatprep.subr.bf16.mxu0 %v23071_v27 }
0x13a6   :  { %19586 = vmatpush3.bf16.msra.mxu1 %v21848_v1 }
0x13a7   :  { %14439 = vmatprep.subr.bf16.mxu1 %v23070_v2  ;;  %19718 = vmatpush3.bf16.msra.mxu0 %v21871_v20  ;;  %v21913_v20 = vld [vmem:[#allocation30 + $0xd4] ss:$8 sps:$4 sm:$0xff]  }
0x13a9   :  { %14392 = vmatmul.mubr.bf16.vlgmr.msra.gmra.mrb[208].mxu1 %v13807_v11 }
0x13aa   :  { %14440 = vmatpush1.bf16.msra.mxu1 %v21851_v15  ;;  %19044 = vmatprep.mubr.msk.bf16.mxu1 %vm5703_vm15, %v13812_v39  ;;  %vm13605_vm15 = vcmp.eq.s32.totalorder %v24190_v32, %v24858_v49  ;;  %v13665_v49 = vsel %vm13657_vm13, 0.125, %v23071_v27  ;;  %v25226_v32 = vadd.f32 %v19566_v26, %v19565_v21  ;;  %v21899_v21 = vld [vmem:[#allocation30 + $0x90] ss:$8 sps:$4 sm:$0xff]   ;;  %v21904_v26 = vld [vmem:[#allocation30 + $0xa4] ss:$8 sps:$4 sm:$0xff]  }
0x13ab   :  { %14441 = vmatprep.subr.bf16.mxu1 %v23070_v2  ;;  %v13613_v4 = vsel %vm13605_vm15, 0.125, %v23071_v27 }
0x13ac   :  { %v13647_v40 = vadd.f32 %v13639_v54, %v13613_v4  ;;  %v21877_v4 = vld [vmem:[#allocation30 + $0x14] ss:$8 sps:$4 sm:$0xff]   ;;  %v21875_v54 = vld [vmem:[#allocation30 + $0x10] ss:$8 sps:$4 sm:$0xff]  }
0x13ae   :  { %14442 = vmatpush1.bf16.msra.mxu1 %v21854_v47  ;;  %v13673_v10 = vadd.f32 %v13665_v49, %v13647_v40  ;;  %v21880_v40 = vld [vmem:[#allocation30 + $0x24] ss:$8 sps:$4 sm:$0xff]   ;;  %v21883_v49 = vld [vmem:[#allocation30 + $0x34] ss:$8 sps:$4 sm:$0xff]  }
0x13af   :  { %14443 = vmatprep.subr.bf16.mxu1 %v23070_v2 }
0x13b0   :  { %v13699_v41 = vadd.f32 %v13691_v25, %v13673_v10  ;;  %v21881_v10 = vld [vmem:[#allocation30 + $0x30] ss:$8 sps:$4 sm:$0xff]   ;;  %v21884_v25 = vld [vmem:[#allocation30 + $0x40] ss:$8 sps:$4 sm:$0xff]  }
0x13b2   :  { %14444 = vmatpush1.bf16.msra.mxu1 %v21855_v46  ;;  %v13725_v0 = vadd.f32 %v13717_v18, %v13699_v41  ;;  %v21889_v41 = vld [vmem:[#allocation30 + $0x54] ss:$8 sps:$4 sm:$0xff]   ;;  %v21892_v18 = vld [vmem:[#allocation30 + $0x64] ss:$8 sps:$4 sm:$0xff]  }
0x13b3   :  { %14445 = vmatprep.subr.bf16.mxu1 %v23070_v2 }
0x13b4   :  { %v13751_v12 = vadd.f32 %v13743_v33, %v13725_v0  ;;  %v21890_v0 = vld [vmem:[#allocation30 + $0x60] ss:$8 sps:$4 sm:$0xff]  }
0x13b6   :  { %14446 = vmatpush1.bf16.msra.mxu1 %v21856_v24  ;;  %v13777_v43 = vadd.f32 %v13769_v51, %v13751_v12 }
0x13b7   :  { %14447 = vmatprep.subr.bf16.mxu1 %v23070_v2 }
0x13b8   :  { %v13803_v34 = vadd.f32 %v13795_v8, %v13777_v43 }
0x13ba   :  { %14448 = vmatpush1.bf16.msra.mxu1 %v21857_v22  ;;  %v13811_v9 = vpack.c.bf16 %v13803_v34, %v13803_v34  ;;  %v21896_v34 = vld [vmem:[#allocation30 + $0x80] ss:$8 sps:$4 sm:$0xff]  }
0x13bb   :  { %14449 = vmatprep.subr.bf16.mxu1 %v23070_v2 }
0x13be   :  { %14450 = vmatpush1.bf16.msra.mxu1 %v21858_v60 }
0x13bf   :  { %14451 = vmatprep.subr.bf16.mxu1 %v23070_v2 }
0x13c2   :  { %14452 = vmatpush1.bf16.msra.mxu1 %v21859_v50  ;;  %v21872_v50 = vld [vmem:[#allocation30] ss:$8 sps:$4 sm:$0xff]  }
0x13c3   :  { %14453 = vmatprep.subr.bf16.mxu1 %v23070_v2 }
0x13c6   :  { %14454 = vmatpush1.bf16.msra.mxu1 %v21860_v61  ;;  %v21874_v61 = vld [vmem:[#allocation30 + $0x4] ss:$8 sps:$4 sm:$0xff]  }
0x13c7   :  { %14455 = vmatprep.subr.bf16.mxu1 %v23070_v2 }
0x13ca   :  { %14456 = vmatpush1.bf16.msra.mxu1 %v21861_v62  ;;  %v21878_v62 = vld [vmem:[#allocation30 + $0x20] ss:$8 sps:$4 sm:$0xff]  }
0x13cb   :  { %14457 = vmatprep.subr.bf16.mxu1 %v23070_v2 }
0x13ce   :  { %14458 = vmatpush1.bf16.msra.mxu1 %v21862_v58  ;;  %v21886_v58 = vld [vmem:[#allocation30 + $0x44] ss:$8 sps:$4 sm:$0xff]  }
0x13cf   :  { %14459 = vmatprep.subr.bf16.mxu1 %v23070_v2 }
0x13d2   :  { %14460 = vmatpush1.bf16.msra.mxu1 %v21863_v37  ;;  %v21887_v37 = vld [vmem:[#allocation30 + $0x50] ss:$8 sps:$4 sm:$0xff]  }
0x13d3   :  { %14461 = vmatprep.subr.bf16.mxu1 %v23070_v2 }
0x13d6   :  { %14462 = vmatpush1.bf16.msra.mxu1 %v21864_v63  ;;  %v21895_v63 = vld [vmem:[#allocation30 + $0x74] ss:$8 sps:$4 sm:$0xff]  }
0x13d7   :  { %14463 = vmatprep.subr.bf16.mxu1 %v23070_v2 }
0x13da   :  { %14464 = vmatpush1.bf16.msra.mxu1 %v21865_v44  ;;  %v21893_v44 = vld [vmem:[#allocation30 + $0x70] ss:$8 sps:$4 sm:$0xff]  }
0x13db   :  { %14465 = vmatprep.subr.bf16.mxu1 %v23070_v2 }
0x13de   :  { %14466 = vmatpush1.bf16.msra.mxu1 %v21866_v14  ;;  %v21898_v14 = vld [vmem:[#allocation30 + $0x84] ss:$8 sps:$4 sm:$0xff]  }
0x13df   :  { %14467 = vmatprep.subr.bf16.mxu1 %v23070_v2 }
0x13e2   :  { %14468 = vmatpush1.bf16.msra.mxu1 %v14317_v13 }
0x13e3   :  { %14970 = vmatprep.subr.bf16.mxu1 %v21874_v61 }
0x13e5   :  { %14472 = vmatmul.mubr.bf16.vlgmr.msra.gmra.mrb[212].mxu1 %v13811_v9  ;;  %v21901_v9 = vld [vmem:[#allocation30 + $0x94] ss:$8 sps:$4 sm:$0xff]  }
0x13e6   :  { %14971 = vmatpush1.bf16.msra.mxu1 %v21872_v50 }
0x13e7   :  { %14972 = vmatprep.subr.bf16.mxu1 %v21877_v4 }
0x13ea   :  { %14973 = vmatpush1.bf16.msra.mxu1 %v21875_v54 }
0x13eb   :  { %14974 = vmatprep.subr.bf16.mxu1 %v21880_v40 }
0x13ee   :  { %14975 = vmatpush1.bf16.msra.mxu1 %v21878_v62 }
0x13ef   :  { %14976 = vmatprep.subr.bf16.mxu1 %v21883_v49 }
0x13f2   :  { %14977 = vmatpush1.bf16.msra.mxu1 %v21881_v10 }
0x13f3   :  { %14978 = vmatprep.subr.bf16.mxu1 %v21886_v58  ;;  %v21949_v58 = vld [vmem:[#allocation31 + $0x4] ss:$8 sps:$4 sm:$0xff]  }
0x13f4   :  { %14655 = vmatprep.subr.bf16.mxu0 %v21949_v58  ;;  %v21964_v58 = vld [vmem:[#allocation30 + $0x304] ss:$8 sps:$4 sm:$0xff]  }
0x13f6   :  { %14979 = vmatpush1.bf16.msra.mxu1 %v21884_v25  ;;  %v21953_v25 = vld [vmem:[#allocation31 + $0x10] ss:$8 sps:$4 sm:$0xff]  }
0x13f7   :  { %14980 = vmatprep.subr.bf16.mxu1 %v21889_v41  ;;  %v21955_v41 = vld [vmem:[#allocation31 + $0x14] ss:$8 sps:$4 sm:$0xff]  }
0x13fa   :  { %14981 = vmatpush1.bf16.msra.mxu1 %v21887_v37  ;;  %v21959_v37 = vld [vmem:[#allocation31 + $0x20] ss:$8 sps:$4 sm:$0xff]  }
0x13fb   :  { %14982 = vmatprep.subr.bf16.mxu1 %v21892_v18  ;;  %v21965_v18 = vld [vmem:[#allocation31 + $0x30] ss:$8 sps:$4 sm:$0xff]  }
0x13fe   :  { %14983 = vmatpush1.bf16.msra.mxu1 %v21890_v0  ;;  %v21967_v0 = vld [vmem:[#allocation31 + $0x34] ss:$8 sps:$4 sm:$0xff]  }
0x13ff   :  { %14984 = vmatprep.subr.bf16.mxu1 %v21895_v63  ;;  %v21971_v63 = vld [vmem:[#allocation31 + $0x40] ss:$8 sps:$4 sm:$0xff]  }
0x1402   :  { %v19609_v6 = vpop.f32.mrb[196].mxu0  ;;  %14985 = vmatpush1.bf16.msra.mxu1 %v21893_v44  ;;  %v21983_v44 = vld [vmem:[#allocation31 + $0x60] ss:$8 sps:$4 sm:$0xff]  }
0x1403   :  { %v19610_v28 = vpop.f32.mrb[197].mxu0  ;;  %14986 = vmatprep.subr.bf16.mxu1 %v21898_v14  ;;  %v21989_v14 = vld [vmem:[#allocation31 + $0x70] ss:$8 sps:$4 sm:$0xff]  }
0x1404   :  { %v25231_v35 = vadd.f32 %v19610_v28, %v19609_v6  ;;  %v19612_v45 = vpop.f32.mrb[198].mxu0 }
0x1405   :  { %v19613_v55 = vpop.f32.mrb[199].mxu0 }
0x1406   :  { %14987 = vmatpush1.bf16.msra.mxu1 %v21896_v34 }
0x1407   :  { %14988 = vmatprep.subr.bf16.mxu1 %v21901_v9 }
0x140a   :  { %14989 = vmatpush1.bf16.msra.mxu1 %v21899_v21 }
0x140b   :  { %14990 = vmatprep.subr.bf16.mxu1 %v21904_v26 }
0x140e   :  { %14991 = vmatpush1.bf16.msra.mxu1 %v21902_v31 }
0x140f   :  { %14992 = vmatprep.subr.bf16.mxu1 %v21907_v52 }
0x1412   :  { %14993 = vmatpush1.bf16.msra.mxu1 %v21905_v17 }
0x1413   :  { %14994 = vmatprep.subr.bf16.mxu1 %v21910_v19 }
0x1440   :  { %v13149_v59 = vpop.f32.mrb[194].mxu1 }
0x1441   :  { %v13151_v16 = vpop.f32.mrb[195].mxu1 }
0x1448   :  { %v13220_v30 = vpop.f32.mrb[196].mxu1 }
0x1449   :  { %v13222_v53 = vpop.f32.mrb[197].mxu1 }
0x1450   :  { %v13291_v3 = vpop.f32.mrb[198].mxu1 }
0x1451   :  { %v13293_v36 = vpop.f32.mrb[199].mxu1 }
0x1454   :  { %v13366_v56 = vpop.f32.mrb[200].mxu1 }
0x1455   :  { %v25233_v23 = vmax.f32 %v13149_v59, %v13366_v56  ;;  %v13368_v48 = vpop.f32.mrb[201].mxu1  ;;  %v21911_v59 = vld [vmem:[#allocation30 + $0xd0] ss:$8 sps:$4 sm:$0xff]   ;;  %v21919_v56 = vld [vmem:[#allocation30 + $0xf4] ss:$8 sps:$4 sm:$0xff]  }
0x1456   :  { %v25235_v1 = vmax.f32 %v13151_v16, %v13368_v48  ;;  %v21916_v16 = vld [vmem:[#allocation30 + $0xe4] ss:$8 sps:$4 sm:$0xff]   ;;  %v21917_v48 = vld [vmem:[#allocation30 + $0xf0] ss:$8 sps:$4 sm:$0xff]  }
0x1458   :  { %v13437_v27 = vpop.f32.mrb[202].mxu1 }
0x1459   :  { %v25237_v38 = vmax.f32 %v13220_v30, %v13437_v27  ;;  %v13439_v11 = vpop.f32.mrb[203].mxu1  ;;  %v21914_v30 = vld [vmem:[#allocation30 + $0xe0] ss:$8 sps:$4 sm:$0xff]  }
0x145a   :  { %v25239_v15 = vmax.f32 %v13222_v53, %v13439_v11 }
0x145b   :  { %v20398_v39 = vpack.i.bf16 %v25237_v38, %v25235_v1 }
0x145c   :  { %v13508_v47 = vpop.f32.mrb[204].mxu1 }
0x145d   :  { %v25243_v46 = vmax.f32 %v13291_v3, %v13508_v47  ;;  %20399 = vrot.lane.b32.xlu1 %v20398_v39, %s23075_s16  ;;  %v13510_v24 = vpop.f32.mrb[205].mxu1 }
0x145e   :  { %v13518_v22 = vmax.f32 %v13293_v36, %v13510_v24 }
0x145f   :  { %v20403_v60 = vpack.i.bf16 %v25243_v46, %v25239_v15 }
0x1461   :  { %20404 = vrot.lane.b32.xlu0 %v20403_v60, %s23075_s16  ;;  %13550 = vrot.lane.b32.xlu1 %v13518_v22, %s23075_s16  ;;  %v21922_v22 = vld [vmem:[#allocation30 + $0x104] ss:$8 sps:$4 sm:$0xff]  }
0x147c   :  { %v19587_v33 = vpop.f32.mrb[208].mxu1 }
0x147d   :  { %v19588_v12 = vpop.f32.mrb[209].mxu1 }
0x147e   :  { %v19589_v51 = vadd.f32 %v19588_v12, %v19587_v33  ;;  %v19590_v43 = vpop.f32.mrb[210].mxu1  ;;  %v21977_v33 = vld [vmem:[#allocation31 + $0x50] ss:$8 sps:$4 sm:$0xff]   ;;  %v21979_v12 = vld [vmem:[#allocation31 + $0x54] ss:$8 sps:$4 sm:$0xff]  }
0x147f   :  { %v19591_v8 = vpop.f32.mrb[211].mxu1  ;;  %v21991_v43 = vld [vmem:[#allocation31 + $0x74] ss:$8 sps:$4 sm:$0xff]  }
0x1480   :  { %v14394_v42 = vadd.f32 %v19589_v51, %v25226_v32  ;;  %v21908_v32 = vld [vmem:[#allocation30 + $0xc0] ss:$8 sps:$4 sm:$0xff]   ;;  %v21985_v51 = vld [vmem:[#allocation31 + $0x64] ss:$8 sps:$4 sm:$0xff]  }
0x1481   :  { %14995 = vmatpush1.bf16.msra.mxu1 %v21908_v32  ;;  %v21997_v8 = vld [vmem:[#allocation30 + $0x154] ss:$8 sps:$4 sm:$0xff]  }
0x1482   :  { %v14434_v13 = vadd.f32 %v25231_v35, %v14394_v42  ;;  %14996 = vmatprep.subr.bf16.mxu1 %v21913_v20  ;;  %v21925_v20 = vld [vmem:[#allocation30 + $0x114] ss:$8 sps:$4 sm:$0xff]  }
0x1485   :  { %14997 = vmatpush1.bf16.msra.mxu1 %v21911_v59  ;;  %v21923_v59 = vld [vmem:[#allocation30 + $0x110] ss:$8 sps:$4 sm:$0xff]  }
0x1486   :  { %14998 = vmatprep.subr.bf16.mxu1 %v21916_v16  ;;  %v21928_v16 = vld [vmem:[#allocation30 + $0x124] ss:$8 sps:$4 sm:$0xff]  }
0x1489   :  { %14999 = vmatpush1.bf16.msra.mxu1 %v21914_v30  ;;  %v21926_v30 = vld [vmem:[#allocation30 + $0x120] ss:$8 sps:$4 sm:$0xff]  }
0x148a   :  { %15000 = vmatprep.subr.bf16.mxu1 %v21919_v56  ;;  %v21934_v56 = vld [vmem:[#allocation30 + $0x144] ss:$8 sps:$4 sm:$0xff]  }
0x148d   :  { %15001 = vmatpush1.bf16.msra.mxu1 %v21917_v48 }
0x148e   :  { %15011 = vmatprep.subr.bf16.mxu1 %v21922_v22 }
0x14b8   :  { %v14473_v57 = vpop.f32.mrb[212].mxu1 }
0x14b9   :  { %v14474_v6 = vadd.f32 %v14473_v57, %v14434_v13  ;;  %v14475_v28 = vpop.f32.mrb[213].mxu1 }
0x14ba   :  { %v14476_v35 = vpop.f32.mrb[214].mxu1 }
0x14bb   :  { %v14479_v45 = vpack.c.bf16 %v14474_v6, %v14474_v6  ;;  %v14477_v55 = vpop.f32.mrb[215].mxu1 }
0x14bc   :  { %v21920_v55 = vld [vmem:[#allocation30 + $0x100] ss:$8 sps:$4 sm:$0xff]  }
0x14bd   :  { %19720 = vmatmul.mubr.msk.bf16.vlgmr.msra.gmra.mrb[200].mxu0 %vm1942_vm8, %v14479_v45 }
0x14be   :  { %14687 = vmatprep.mubr.bf16.mxu0 %v23070_v2 }
0x14cf   :  { %v20400_v53 = vpop.permute.xlu1 %20399 }
0x14d0   :  { %v20402_v3 = vunpack.i.h.bf16 %v20400_v53  ;;  %v20401_v36 = vunpack.i.l.bf16 %v20400_v53  ;;  %v21931_v53 = vld [vmem:[#allocation30 + $0x134] ss:$8 sps:$4 sm:$0xff]  }
0x14d2   :  { %v13529_v27 = vmax.f32 %v25235_v1, %v20401_v36  ;;  %v13528_v11 = vmax.f32 %v25233_v23, %v20401_v36  ;;  %v13533_v47 = vsel %vm1945_vm9, %v20401_v36, %v20402_v3  ;;  %v13537_v61 = vmax.f32 %v25237_v38, %v20402_v3  ;;  %v21947_v38 = vld [vmem:[#allocation31] ss:$8 sps:$4 sm:$0xff]  }
0x14d3   :  { %v20405_v39 = vpop.permute.xlu0 %20404  ;;  %v13535_v50 = vmax.f32 %v25235_v1, %v13533_v47  ;;  %v13551_v54 = vpop.permute.xlu1 %13550  ;;  %14656 = vmatpush1.bf16.msra.mxu0 %v21947_v38  ;;  %v21929_v36 = vld [vmem:[#allocation30 + $0x130] ss:$8 sps:$4 sm:$0xff]  }
0x14d4   :  { %13559 = vrot.lane.b32.xlu1 %v13529_v27, %s23075_s16  ;;  %v20408_v24 = vpack.i.bf16 %v13528_v11, %v25233_v23  ;;  %v20407_v60 = vunpack.i.h.bf16 %v20405_v39  ;;  %v20406_v4 = vunpack.i.l.bf16 %v20405_v39  ;;  %14657 = vmatprep.subr.bf16.mxu0 %v21955_v41  ;;  %v21932_v27 = vld [vmem:[#allocation30 + $0x140] ss:$8 sps:$4 sm:$0xff]   ;;  %v21937_v39 = vld [vmem:[#allocation30 + $0x2a4] ss:$8 sps:$4 sm:$0xff]   ;;  %v21956_v38 = vld [vmem:[#allocation30 + $0x2f0] ss:$8 sps:$4 sm:$0xff]  }
0x14d5   :  { %v21970_v41 = vld [vmem:[#allocation30 + $0x314] ss:$8 sps:$4 sm:$0xff]  }
0x14d6   :  { %20409 = vrot.lane.b32.xlu0 %v20408_v24, %s23075_s16  ;;  %v13547_v40 = vmax.f32 %v25239_v15, %v20407_v60  ;;  %v13552_v62 = vsel %vm1945_vm9, %v20407_v60, %v13551_v54  ;;  %v13542_v49 = vmax.f32 %v25239_v15, %v20406_v4  ;;  %v13548_v1 = vmax.f32 %v25243_v46, %v20407_v60  ;;  %v21961_v15 = vld [vmem:[#allocation31 + $0x24] ss:$8 sps:$4 sm:$0xff]   ;;  %v21935_v24 = vld [vmem:[#allocation30 + $0x2a0] ss:$8 sps:$4 sm:$0xff]   ;;  %v21943_v4 = vld [vmem:[#allocation30 + $0x2c4] ss:$8 sps:$4 sm:$0xff]  }
0x14d7   :  { %v13554_v10 = vmax.f32 %v25243_v46, %v13552_v62  ;;  %14658 = vmatpush1.bf16.msra.mxu0 %v21953_v25  ;;  %v21973_v46 = vld [vmem:[#allocation31 + $0x44] ss:$8 sps:$4 sm:$0xff]   ;;  %v21941_v54 = vld [vmem:[#allocation30 + $0x2c0] ss:$8 sps:$4 sm:$0xff]   ;;  %v21944_v62 = vld [vmem:[#allocation30 + $0x2d0] ss:$8 sps:$4 sm:$0xff]  }
0x14d8   :  { %13564 = vrot.lane.b32.xlu1 %v13535_v50, %s23077_s8  ;;  %14659 = vmatprep.subr.bf16.mxu0 %v21961_v15  ;;  %v21940_v60 = vld [vmem:[#allocation30 + $0x2b4] ss:$8 sps:$4 sm:$0xff]   ;;  %v21962_v25 = vld [vmem:[#allocation30 + $0x300] ss:$8 sps:$4 sm:$0xff]   ;;  %v21976_v15 = vld [vmem:[#allocation30 + $0x324] ss:$8 sps:$4 sm:$0xff]  }
0x14da   :  { %13568 = vrot.lane.b32.xlu0 %v13537_v61, %s23073_s30  ;;  %v21938_v61 = vld [vmem:[#allocation30 + $0x2b0] ss:$8 sps:$4 sm:$0xff]  }
0x14db   :  { %14660 = vmatpush1.bf16.msra.mxu0 %v21959_v37  ;;  %v21968_v37 = vld [vmem:[#allocation30 + $0x310] ss:$8 sps:$4 sm:$0xff]  }
0x14dc   :  { %13577 = vrot.lane.b32.xlu1 %v13547_v40, %s23038_s28  ;;  %14661 = vmatprep.subr.bf16.mxu0 %v21967_v0  ;;  %v21946_v40 = vld [vmem:[#allocation30 + $0x2d4] ss:$8 sps:$4 sm:$0xff]  }
0x14dd   :  { %v21982_v0 = vld [vmem:[#allocation30 + $0x334] ss:$8 sps:$4 sm:$0xff]  }
0x14de   :  { %13572 = vrot.lane.b32.xlu0 %v13542_v49, %s23051_s22  ;;  %v21952_v49 = vld [vmem:[#allocation30 + $0x2e4] ss:$8 sps:$4 sm:$0xff]  }
0x14df   :  { %14662 = vmatpush1.bf16.msra.mxu0 %v21965_v18  ;;  %v21974_v18 = vld [vmem:[#allocation30 + $0x320] ss:$8 sps:$4 sm:$0xff]  }
0x14e0   :  { %13585 = vrot.lane.b32.xlu1 %v13554_v10, %s23074_s15  ;;  %14663 = vmatprep.subr.bf16.mxu0 %v21973_v46  ;;  %v21950_v10 = vld [vmem:[#allocation30 + $0x2e0] ss:$8 sps:$4 sm:$0xff]   ;;  %v21988_v46 = vld [vmem:[#allocation30 + $0x344] ss:$8 sps:$4 sm:$0xff]  }
0x14e2   :  { %13579 = vrot.lane.b32.xlu0 %v13548_v1, %s23038_s28  ;;  %v21958_v1 = vld [vmem:[#allocation30 + $0x2f4] ss:$8 sps:$4 sm:$0xff]  }
0x14e3   :  { %14664 = vmatpush1.bf16.msra.mxu0 %v21971_v63  ;;  %v21980_v63 = vld [vmem:[#allocation30 + $0x330] ss:$8 sps:$4 sm:$0xff]  }
0x14e4   :  { %14665 = vmatprep.subr.bf16.mxu0 %v21979_v12  ;;  %v21986_v12 = vld [vmem:[#allocation30 + $0x340] ss:$8 sps:$4 sm:$0xff]  }
0x14e7   :  { %14666 = vmatpush1.bf16.msra.mxu0 %v21977_v33  ;;  %v14488_v33 = vld [vmem:[#allocation36] sm:$0x1] }
0x14e8   :  { %14667 = vmatprep.subr.bf16.mxu0 %v21985_v51  ;;  %v21994_v51 = vld [vmem:[#allocation30 + $0x354] ss:$8 sps:$4 sm:$0xff]  }
0x14eb   :  { %14668 = vmatpush1.bf16.msra.mxu0 %v21983_v44 }
0x14ec   :  { %14669 = vmatprep.subr.bf16.mxu0 %v21991_v43 }
0x14ef   :  { %14670 = vmatpush1.bf16.msra.mxu0 %v21989_v14 }
0x14f0   :  { %15336 = vmatprep.subr.bf16.mxu0 %v21997_v8 }
0x1546   :  { %v13560_v42 = vpop.permute.xlu1 %13559 }
0x1548   :  { %v20410_v34 = vpop.permute.xlu0 %20409 }
0x1549   :  { %v20412_v13 = vunpack.i.h.bf16 %v20410_v34  ;;  %v20411_v9 = vunpack.i.l.bf16 %v20410_v34 }
0x154a   :  { %v13565_v31 = vpop.permute.xlu1 %13564 }
0x154b   :  { %v13523_v21 = vmax.f32 %v25233_v23, %v20411_v9  ;;  %v13561_v26 = vsel %vm1945_vm9, %v20412_v13, %v13560_v42  ;;  %v21992_v13 = vld [vmem:[#allocation30 + $0x350] ss:$8 sps:$4 sm:$0xff]  }
0x154c   :  { %v13569_v52 = vpop.permute.xlu0 %13568  ;;  %v21995_v9 = vld [vmem:[#allocation30 + $0x150] ss:$8 sps:$4 sm:$0xff]  }
0x154d   :  { %v13588_v17 = vsel %vm1939_vm7, %v13523_v21, %v13561_v26  ;;  %v13590_v19 = vsel %vm1933_vm5, %v13565_v31, %v13569_v52  ;;  %vm25496_vm7 = vcmask 261120   ;;  %v22000_v26 = vld [vmem:[#allocation30 + $0x364] ss:$8 sps:$4 sm:$0xff]  }
0x154e   :  { %v13589_v57 = vsel %vm1948_vm10, %v13588_v17, %v13565_v31  ;;  %v13578_v6 = vpop.permute.xlu1 %13577  ;;  %v22003_v31 = vld [vmem:[#allocation30 + $0x164] ss:$8 sps:$4 sm:$0xff]   ;;  %v21998_v17 = vld [vmem:[#allocation30 + $0x360] ss:$8 sps:$4 sm:$0xff]  }
0x154f   :  { %v25282_v23 = vpack.c.bf16 %v13589_v57, %v13589_v57  ;;  %v22009_v57 = vld [vmem:[#allocation30 + $0x174] ss:$8 sps:$4 sm:$0xff]  }
0x1550   :  { %v13573_v32 = vpop.permute.xlu0 %13572 }
0x1551   :  { %v13591_v28 = vsel %vm1942_vm8, %v13590_v19, %v13573_v32  ;;  %v22001_v19 = vld [vmem:[#allocation30 + $0x160] ss:$8 sps:$4 sm:$0xff]   ;;  %v22006_v32 = vld [vmem:[#allocation30 + $0x374] ss:$8 sps:$4 sm:$0xff]   ;;  %vm25497_vm8 = vcmask 73728  }
0x1552   :  { %v13592_v35 = vsel %vm25495_vm2, %v13591_v28, %v13578_v6  ;;  %v13586_v11 = vpop.permute.xlu1 %13585  ;;  %v22007_v28 = vld [vmem:[#allocation30 + $0x170] ss:$8 sps:$4 sm:$0xff]  }
0x1553   :  { %v25280_v45 = vpack.c.bf16 %v13592_v35, %v13592_v35  ;;  %v22012_v35 = vld [vmem:[#allocation30 + $0x384] ss:$8 sps:$4 sm:$0xff]  }
0x1554   :  { %v13580_v3 = vpop.permute.xlu0 %13579 }
0x1555   :  { %15002 = vmatprep.mubr.bf16.mxu1 %v25280_v45  ;;  %v13581_v48 = vsel %vm1933_vm5, %v13578_v6, %v13580_v3  ;;  %v15483_v50 = vrot.slane %v25280_v45, 1  ;;  %v25295_v52 = vshrl.u32 %v25280_v45, 16  ;;  %v22004_v6 = vld [vmem:[#allocation30 + $0x370] ss:$8 sps:$4 sm:$0xff]  }
0x1556   :  { %15003 = vmatmul.mubr.bf16.vlgmr.msra.gmra.mrb[216].mxu1 %v25282_v23  ;;  %v13593_v47 = vsel %vm25496_vm7, %v13581_v48, %v13586_v11  ;;  %v22019_v3 = vld [vmem:[#allocation30 + $0x190] ss:$8 sps:$4 sm:$0xff]   ;;  %v22022_v48 = vld [vmem:[#allocation30 + $0x3a0] ss:$8 sps:$4 sm:$0xff]  }
0x1557   :  { %15012 = vmatpush1.bf16.msra.mxu1 %v21920_v55  ;;  %15043 = vmatprep.mubr.bf16.mxu1 %v23070_v2  ;;  %v25289_v22 = vpack.c.bf16 %v13593_v47, %v13593_v47  ;;  %v22015_v55 = vld [vmem:[#allocation30 + $0x184] ss:$8 sps:$4 sm:$0xff]   ;;  %v22025_v11 = vld [vmem:[#allocation30 + $0x1a0] ss:$8 sps:$4 sm:$0xff]   ;;  %v22033_v47 = vld [vmem:[#allocation30 + $0x1b4] ss:$8 sps:$4 sm:$0xff]  }
0x1558   :  { %15013 = vmatprep.subr.bf16.mxu1 %v21925_v20  ;;  %v22010_v20 = vld [vmem:[#allocation30 + $0x380] ss:$8 sps:$4 sm:$0xff]  }
0x155b   :  { %15014 = vmatpush1.bf16.msra.mxu1 %v21923_v59  ;;  %v22013_v59 = vld [vmem:[#allocation30 + $0x180] ss:$8 sps:$4 sm:$0xff]  }
0x155c   :  { %15015 = vmatprep.subr.bf16.mxu1 %v21928_v16  ;;  %v22018_v16 = vld [vmem:[#allocation30 + $0x394] ss:$8 sps:$4 sm:$0xff]  }
0x155f   :  { %15016 = vmatpush1.bf16.msra.mxu1 %v21926_v30  ;;  %v22021_v30 = vld [vmem:[#allocation30 + $0x194] ss:$8 sps:$4 sm:$0xff]  }
0x1560   :  { %15017 = vmatprep.subr.bf16.mxu1 %v21931_v53  ;;  %v22016_v53 = vld [vmem:[#allocation30 + $0x390] ss:$8 sps:$4 sm:$0xff]  }
0x1563   :  { %15018 = vmatpush1.bf16.msra.mxu1 %v21929_v36  ;;  %v22024_v36 = vld [vmem:[#allocation30 + $0x3a4] ss:$8 sps:$4 sm:$0xff]  }
0x1564   :  { %15019 = vmatprep.subr.bf16.mxu1 %v21934_v56  ;;  %v22027_v56 = vld [vmem:[#allocation30 + $0x1a4] ss:$8 sps:$4 sm:$0xff]  }
0x1567   :  { %15020 = vmatpush1.bf16.msra.mxu1 %v21932_v27  ;;  %v15482_v27 = vrot.slane %v25282_v23, 1 }
0x1568   :  { %15700 = vmatprep.subr.bf16.mxu1 %v21937_v39  ;;  %v22030_v39 = vld [vmem:[#allocation30 + $0x3b4] ss:$8 sps:$4 sm:$0xff]  }
0x156a   :  { %19108 = vmatmul.mubr.msk.bf16.vlgmr.msra.gmra.mrb[216].mxu1 %vm1945_vm9, %v25289_v22 }
0x156b   :  { %15701 = vmatpush1.bf16.msra.mxu1 %v21935_v24  ;;  %15732 = vmatprep.mubr.bf16.mxu1 %v15483_v50  ;;  %v22028_v24 = vld [vmem:[#allocation30 + $0x3b0] ss:$8 sps:$4 sm:$0xff]   ;;  %v22036_v50 = vld [vmem:[#allocation30 + $0x3c4] ss:$8 sps:$4 sm:$0xff]  }
0x156c   :  { %15702 = vmatprep.subr.bf16.mxu1 %v21940_v60  ;;  %v22031_v60 = vld [vmem:[#allocation30 + $0x1b0] ss:$8 sps:$4 sm:$0xff]  }
0x156f   :  { %15703 = vmatpush1.bf16.msra.mxu1 %v21938_v61  ;;  %v22039_v61 = vld [vmem:[#allocation30 + $0x1c4] ss:$8 sps:$4 sm:$0xff]  }
0x1570   :  { %15704 = vmatprep.subr.bf16.mxu1 %v21943_v4  ;;  %v22034_v4 = vld [vmem:[#allocation30 + $0x3c0] ss:$8 sps:$4 sm:$0xff]  }
0x1573   :  { %15705 = vmatpush1.bf16.msra.mxu1 %v21941_v54  ;;  %v22037_v54 = vld [vmem:[#allocation30 + $0x1c0] ss:$8 sps:$4 sm:$0xff]  }
0x1574   :  { %15706 = vmatprep.subr.bf16.mxu1 %v21946_v40  ;;  %v22042_v40 = vld [vmem:[#allocation30 + $0x3d4] ss:$8 sps:$4 sm:$0xff]  }
0x1577   :  { %15707 = vmatpush1.bf16.msra.mxu1 %v21944_v62  ;;  %v22045_v62 = vld [vmem:[#allocation30 + $0x1d4] ss:$8 sps:$4 sm:$0xff]  }
0x1578   :  { %15708 = vmatprep.subr.bf16.mxu1 %v21952_v49  ;;  %v22040_v49 = vld [vmem:[#allocation30 + $0x3d0] ss:$8 sps:$4 sm:$0xff]  }
0x157b   :  { %15709 = vmatpush1.bf16.msra.mxu1 %v21950_v10  ;;  %v22043_v10 = vld [vmem:[#allocation30 + $0x1d0] ss:$8 sps:$4 sm:$0xff]  }
0x157c   :  { %15710 = vmatprep.subr.bf16.mxu1 %v21958_v1  ;;  %v22048_v1 = vld [vmem:[#allocation30 + $0x3e4] ss:$8 sps:$4 sm:$0xff]  }
0x157f   :  { %15711 = vmatpush1.bf16.msra.mxu1 %v21956_v38  ;;  %v22051_v38 = vld [vmem:[#allocation30 + $0x1e4] ss:$8 sps:$4 sm:$0xff]  }
0x1580   :  { %15712 = vmatprep.subr.bf16.mxu1 %v21964_v58  ;;  %v22046_v58 = vld [vmem:[#allocation30 + $0x3e0] ss:$8 sps:$4 sm:$0xff]  }
0x1583   :  { %15713 = vmatpush1.bf16.msra.mxu1 %v21962_v25  ;;  %v22049_v25 = vld [vmem:[#allocation30 + $0x1e0] ss:$8 sps:$4 sm:$0xff]  }
0x1584   :  { %15714 = vmatprep.subr.bf16.mxu1 %v21970_v41  ;;  %v22054_v41 = vld [vmem:[#allocation30 + $0x544] ss:$8 sps:$4 sm:$0xff]  }
0x1587   :  { %15715 = vmatpush1.bf16.msra.mxu1 %v21968_v37  ;;  %v22057_v37 = vld [vmem:[#allocation30 + $0x1f4] ss:$8 sps:$4 sm:$0xff]  }
0x1588   :  { %15716 = vmatprep.subr.bf16.mxu1 %v21976_v15  ;;  %v22052_v15 = vld [vmem:[#allocation30 + $0x540] ss:$8 sps:$4 sm:$0xff]  }
0x158b   :  { %15717 = vmatpush1.bf16.msra.mxu1 %v21974_v18  ;;  %v15484_v18 = vrot.slane %v25289_v22, 1 }
0x158c   :  { %15718 = vmatprep.subr.bf16.mxu1 %v21982_v0  ;;  %v22055_v0 = vld [vmem:[#allocation30 + $0x1f0] ss:$8 sps:$4 sm:$0xff]  }
0x158f   :  { %15719 = vmatpush1.bf16.msra.mxu1 %v21980_v63  ;;  %v22060_v63 = vld [vmem:[#allocation30 + $0x554] ss:$8 sps:$4 sm:$0xff]  }
0x1590   :  { %v14550_v44 = vpop.f32.mrb[200].mxu0  ;;  %15720 = vmatprep.subr.bf16.mxu1 %v21988_v46  ;;  %v16205_v46 = vrot.slane %v25280_v45, 2 }
0x1591   :  { %v14551_v43 = vadd.f32 %v14550_v44, %v14488_v33  ;;  %v19721_v14 = vpop.f32.mrb[201].mxu0  ;;  %v22063_v33 = vld [vmem:[#allocation30 + $0x204] ss:$8 sps:$4 sm:$0xff]   ;;  %v22061_v44 = vld [vmem:[#allocation30 + $0x200] ss:$8 sps:$4 sm:$0xff]  }
0x1592   :  { %v14553_v8 = vpop.f32.mrb[202].mxu0  ;;  %v22064_v14 = vld [vmem:[#allocation30 + $0x560] ss:$8 sps:$4 sm:$0xff]  }
0x1593   :  { %v14556_v42 = vmax.f32 %v14551_v43, 0.0  ;;  %15721 = vmatpush1.bf16.msra.mxu1 %v21986_v12  ;;  %v19722_v34 = vpop.f32.mrb[203].mxu0  ;;  %v22058_v12 = vld [vmem:[#allocation30 + $0x550] ss:$8 sps:$4 sm:$0xff]   ;;  %v22069_v43 = vld [vmem:[#allocation30 + $0x214] ss:$8 sps:$4 sm:$0xff]  }
0x1594   :  { %15722 = vmatprep.subr.bf16.mxu1 %v21994_v51  ;;  %v22066_v51 = vld [vmem:[#allocation30 + $0x564] ss:$8 sps:$4 sm:$0xff]   ;;  %v22067_v8 = vld [vmem:[#allocation30 + $0x210] ss:$8 sps:$4 sm:$0xff]  }
0x1595   :  { %v14558_v21 = vpack.c.bf16 %v14556_v42, %v14556_v42  ;;  %v22072_v42 = vld [vmem:[#allocation30 + $0x574] ss:$8 sps:$4 sm:$0xff]   ;;  %v22075_v34 = vld [vmem:[#allocation30 + $0x224] ss:$8 sps:$4 sm:$0xff]  }
0x1597   :  { %15723 = vmatpush1.bf16.msra.mxu1 %v21992_v13  ;;  %14688 = vmatmul.mubr.bf16.vlgmr.msra.gmra.mrb[204].mxu0 %v14558_v21  ;;  %v22070_v13 = vld [vmem:[#allocation30 + $0x570] ss:$8 sps:$4 sm:$0xff]   ;;  %v22078_v21 = vld [vmem:[#allocation30 + $0x584] ss:$8 sps:$4 sm:$0xff]  }
0x1598   :  { %15337 = vmatpush1.bf16.msra.mxu0 %v21995_v9  ;;  %15368 = vmatprep.mubr.bf16.mxu0 %v25295_v52  ;;  %v22073_v9 = vld [vmem:[#allocation30 + $0x220] ss:$8 sps:$4 sm:$0xff]  }
0x1599   :  { %15724 = vmatprep.subr.bf16.mxu1 %v22000_v26  ;;  %15338 = vmatprep.subr.bf16.mxu0 %v22003_v31  ;;  %v22081_v26 = vld [vmem:[#allocation30 + $0x234] ss:$8 sps:$4 sm:$0xff]   ;;  %v22076_v31 = vld [vmem:[#allocation30 + $0x580] ss:$8 sps:$4 sm:$0xff]  }
0x159b   :  { %15725 = vmatpush1.bf16.msra.mxu1 %v21998_v17  ;;  %v22079_v17 = vld [vmem:[#allocation30 + $0x230] ss:$8 sps:$4 sm:$0xff]  }
0x159c   :  { %15339 = vmatpush1.bf16.msra.mxu0 %v22001_v19  ;;  %15726 = vmatprep.subr.bf16.mxu1 %v22006_v32  ;;  %v22084_v19 = vld [vmem:[#allocation30 + $0x594] ss:$8 sps:$4 sm:$0xff]   ;;  %v22087_v32 = vld [vmem:[#allocation30 + $0x244] ss:$8 sps:$4 sm:$0xff]  }
0x159d   :  { %15340 = vmatprep.subr.bf16.mxu0 %v22009_v57  ;;  %v22082_v57 = vld [vmem:[#allocation30 + $0x590] ss:$8 sps:$4 sm:$0xff]  }
0x159f   :  { %15727 = vmatpush1.bf16.msra.mxu1 %v22004_v6  ;;  %v22085_v6 = vld [vmem:[#allocation30 + $0x240] ss:$8 sps:$4 sm:$0xff]  }
0x15a0   :  { %15341 = vmatpush1.bf16.msra.mxu0 %v22007_v28  ;;  %15728 = vmatprep.subr.bf16.mxu1 %v22012_v35  ;;  %v22090_v28 = vld [vmem:[#allocation30 + $0x5a4] ss:$8 sps:$4 sm:$0xff]   ;;  %v22093_v35 = vld [vmem:[#allocation30 + $0x254] ss:$8 sps:$4 sm:$0xff]  }
0x15a1   :  { %15342 = vmatprep.subr.bf16.mxu0 %v22015_v55  ;;  %v22088_v55 = vld [vmem:[#allocation30 + $0x5a0] ss:$8 sps:$4 sm:$0xff]  }
0x15a3   :  { %15729 = vmatpush1.bf16.msra.mxu1 %v22010_v20  ;;  %v22091_v20 = vld [vmem:[#allocation30 + $0x250] ss:$8 sps:$4 sm:$0xff]  }
0x15a4   :  { %15343 = vmatpush1.bf16.msra.mxu0 %v22013_v59  ;;  %15730 = vmatprep.subr.bf16.mxu1 %v22018_v16  ;;  %v22096_v59 = vld [vmem:[#allocation30 + $0x5b4] ss:$8 sps:$4 sm:$0xff]   ;;  %v25304_v16 = vshrl.u32 %v25282_v23, 16 }
0x15a5   :  { %15344 = vmatprep.subr.bf16.mxu0 %v22021_v30  ;;  %v22099_v30 = vld [vmem:[#allocation30 + $0x264] ss:$8 sps:$4 sm:$0xff]  }
0x15a7   :  { %15731 = vmatpush1.bf16.msra.mxu1 %v22016_v53  ;;  %v22094_v53 = vld [vmem:[#allocation30 + $0x5b0] ss:$8 sps:$4 sm:$0xff]  }
0x15a8   :  { %15345 = vmatpush1.bf16.msra.mxu0 %v22019_v3  ;;  %15741 = vmatprep.subr.bf16.mxu1 %v22024_v36  ;;  %v22097_v3 = vld [vmem:[#allocation30 + $0x260] ss:$8 sps:$4 sm:$0xff]   ;;  %v22102_v36 = vld [vmem:[#allocation30 + $0x5c4] ss:$8 sps:$4 sm:$0xff]  }
0x15a9   :  { %15346 = vmatprep.subr.bf16.mxu0 %v22027_v56  ;;  %v22105_v56 = vld [vmem:[#allocation30 + $0x274] ss:$8 sps:$4 sm:$0xff]  }
0x15aa   :  { %15733 = vmatmul.mubr.bf16.vlgmr.msra.gmra.mrb[220].mxu1 %v15482_v27  ;;  %v22103_v27 = vld [vmem:[#allocation30 + $0x270] ss:$8 sps:$4 sm:$0xff]  }
0x15ab   :  { %15742 = vmatpush1.bf16.msra.mxu1 %v22022_v48  ;;  %15773 = vmatprep.mubr.bf16.mxu1 %v23070_v2  ;;  %v22100_v48 = vld [vmem:[#allocation30 + $0x5c0] ss:$8 sps:$4 sm:$0xff]  }
0x15ac   :  { %15347 = vmatpush1.bf16.msra.mxu0 %v22025_v11  ;;  %15743 = vmatprep.subr.bf16.mxu1 %v22030_v39  ;;  %v22108_v11 = vld [vmem:[#allocation30 + $0x5d4] ss:$8 sps:$4 sm:$0xff]   ;;  %v22111_v39 = vld [vmem:[#allocation30 + $0x284] ss:$8 sps:$4 sm:$0xff]  }
0x15ad   :  { %15348 = vmatprep.subr.bf16.mxu0 %v22033_v47  ;;  %v22106_v47 = vld [vmem:[#allocation30 + $0x5d0] ss:$8 sps:$4 sm:$0xff]  }
0x15af   :  { %15744 = vmatpush1.bf16.msra.mxu1 %v22028_v24  ;;  %v22109_v24 = vld [vmem:[#allocation30 + $0x280] ss:$8 sps:$4 sm:$0xff]  }
0x15b0   :  { %15349 = vmatpush1.bf16.msra.mxu0 %v22031_v60  ;;  %15745 = vmatprep.subr.bf16.mxu1 %v22036_v50  ;;  %v22114_v60 = vld [vmem:[#allocation30 + $0x5e4] ss:$8 sps:$4 sm:$0xff]   ;;  %v22117_v50 = vld [vmem:[#allocation30 + $0x294] ss:$8 sps:$4 sm:$0xff]  }
0x15b1   :  { %15350 = vmatprep.subr.bf16.mxu0 %v22039_v61  ;;  %v22112_v61 = vld [vmem:[#allocation30 + $0x5e0] ss:$8 sps:$4 sm:$0xff]  }
0x15b3   :  { %15746 = vmatpush1.bf16.msra.mxu1 %v22034_v4  ;;  %v22115_v4 = vld [vmem:[#allocation30 + $0x290] ss:$8 sps:$4 sm:$0xff]  }
0x15b4   :  { %15351 = vmatpush1.bf16.msra.mxu0 %v22037_v54  ;;  %15747 = vmatprep.subr.bf16.mxu1 %v22042_v40  ;;  %v22120_v54 = vld [vmem:[#allocation30 + $0x5f4] ss:$8 sps:$4 sm:$0xff]  }
0x15b5   :  { %15352 = vmatprep.subr.bf16.mxu0 %v22045_v62  ;;  %v22123_v40 = vld [vmem:[#allocation30 + $0x3f4] ss:$8 sps:$4 sm:$0xff]   ;;  %v22118_v62 = vld [vmem:[#allocation30 + $0x5f0] ss:$8 sps:$4 sm:$0xff]  }
0x15b7   :  { %15748 = vmatpush1.bf16.msra.mxu1 %v22040_v49  ;;  %v22121_v49 = vld [vmem:[#allocation30 + $0x3f0] ss:$8 sps:$4 sm:$0xff]  }
0x15b8   :  { %15353 = vmatpush1.bf16.msra.mxu0 %v22043_v10  ;;  %15749 = vmatprep.subr.bf16.mxu1 %v22048_v1  ;;  %v25309_v10 = vshrl.u32 %v25289_v22, 16  ;;  %v22126_v1 = vld [vmem:[#allocation30 + $0x604] ss:$8 sps:$4 sm:$0xff]  }
0x15b9   :  { %15354 = vmatprep.subr.bf16.mxu0 %v22051_v38  ;;  %v22129_v38 = vld [vmem:[#allocation30 + $0x404] ss:$8 sps:$4 sm:$0xff]  }
0x15bb   :  { %15750 = vmatpush1.bf16.msra.mxu1 %v22046_v58  ;;  %v15844_v58 = vrot.slane %v25295_v52, 1 }
0x15bc   :  { %15355 = vmatpush1.bf16.msra.mxu0 %v22049_v25  ;;  %16422 = vmatprep.subr.bf16.mxu1 %v22054_v41  ;;  %v22124_v25 = vld [vmem:[#allocation30 + $0x600] ss:$8 sps:$4 sm:$0xff]  }
0x15bd   :  { %15356 = vmatprep.subr.bf16.mxu0 %v22057_v37  ;;  %v22127_v41 = vld [vmem:[#allocation30 + $0x400] ss:$8 sps:$4 sm:$0xff]   ;;  %v22132_v37 = vld [vmem:[#allocation30 + $0x614] ss:$8 sps:$4 sm:$0xff]  }
0x15be   :  { %19194 = vmatmul.mubr.msk.bf16.vlgmr.msra.gmra.mrb[220].mxu1 %vm1945_vm9, %v15484_v18  ;;  %v22130_v18 = vld [vmem:[#allocation30 + $0x610] ss:$8 sps:$4 sm:$0xff]  }
0x15bf   :  { %16423 = vmatpush1.bf16.msra.mxu1 %v22052_v15  ;;  %16454 = vmatprep.mubr.bf16.mxu1 %v16205_v46  ;;  %v22135_v15 = vld [vmem:[#allocation30 + $0x414] ss:$8 sps:$4 sm:$0xff]   ;;  %v22141_v46 = vld [vmem:[#allocation30 + $0x424] ss:$8 sps:$4 sm:$0xff]  }
0x15c0   :  { %15357 = vmatpush1.bf16.msra.mxu0 %v22055_v0  ;;  %16424 = vmatprep.subr.bf16.mxu1 %v22060_v63  ;;  %v22133_v0 = vld [vmem:[#allocation30 + $0x410] ss:$8 sps:$4 sm:$0xff]   ;;  %v22138_v63 = vld [vmem:[#allocation30 + $0x624] ss:$8 sps:$4 sm:$0xff]  }
0x15c1   :  { %15358 = vmatprep.subr.bf16.mxu0 %v22063_v33  ;;  %v22136_v33 = vld [vmem:[#allocation30 + $0x620] ss:$8 sps:$4 sm:$0xff]  }
0x15c3   :  { %16425 = vmatpush1.bf16.msra.mxu1 %v22058_v12  ;;  %v22139_v12 = vld [vmem:[#allocation30 + $0x420] ss:$8 sps:$4 sm:$0xff]  }
0x15c4   :  { %15359 = vmatpush1.bf16.msra.mxu0 %v22061_v44  ;;  %16426 = vmatprep.subr.bf16.mxu1 %v22066_v51  ;;  %v22144_v44 = vld [vmem:[#allocation30 + $0x634] ss:$8 sps:$4 sm:$0xff]  }
0x15c5   :  { %15360 = vmatprep.subr.bf16.mxu0 %v22069_v43  ;;  %v22147_v51 = vld [vmem:[#allocation30 + $0x434] ss:$8 sps:$4 sm:$0xff]   ;;  %v22142_v43 = vld [vmem:[#allocation30 + $0x630] ss:$8 sps:$4 sm:$0xff]  }
0x15c7   :  { %16427 = vmatpush1.bf16.msra.mxu1 %v22064_v14  ;;  %v22145_v14 = vld [vmem:[#allocation30 + $0x430] ss:$8 sps:$4 sm:$0xff]  }
0x15c8   :  { %15361 = vmatpush1.bf16.msra.mxu0 %v22067_v8  ;;  %16428 = vmatprep.subr.bf16.mxu1 %v22072_v42  ;;  %v22150_v8 = vld [vmem:[#allocation30 + $0x644] ss:$8 sps:$4 sm:$0xff]  }
0x15c9   :  { %15362 = vmatprep.subr.bf16.mxu0 %v22075_v34  ;;  %v22153_v42 = vld [vmem:[#allocation30 + $0x444] ss:$8 sps:$4 sm:$0xff]   ;;  %v22148_v34 = vld [vmem:[#allocation30 + $0x640] ss:$8 sps:$4 sm:$0xff]  }
0x15cb   :  { %16429 = vmatpush1.bf16.msra.mxu1 %v22070_v13  ;;  %v16204_v13 = vrot.slane %v25282_v23, 2 }
0x15cc   :  { %15363 = vmatpush1.bf16.msra.mxu0 %v22073_v9  ;;  %16430 = vmatprep.subr.bf16.mxu1 %v22078_v21  ;;  %v22151_v9 = vld [vmem:[#allocation30 + $0x440] ss:$8 sps:$4 sm:$0xff]   ;;  %v22156_v21 = vld [vmem:[#allocation30 + $0x654] ss:$8 sps:$4 sm:$0xff]  }
0x15cd   :  { %15364 = vmatprep.subr.bf16.mxu0 %v22081_v26  ;;  %v22159_v26 = vld [vmem:[#allocation30 + $0x454] ss:$8 sps:$4 sm:$0xff]  }
0x15cf   :  { %16431 = vmatpush1.bf16.msra.mxu1 %v22076_v31  ;;  %v22154_v31 = vld [vmem:[#allocation30 + $0x650] ss:$8 sps:$4 sm:$0xff]  }
0x15d0   :  { %15365 = vmatpush1.bf16.msra.mxu0 %v22079_v17  ;;  %16432 = vmatprep.subr.bf16.mxu1 %v22084_v19  ;;  %v22157_v17 = vld [vmem:[#allocation30 + $0x450] ss:$8 sps:$4 sm:$0xff]   ;;  %v22162_v19 = vld [vmem:[#allocation30 + $0x664] ss:$8 sps:$4 sm:$0xff]  }
0x15d1   :  { %15366 = vmatprep.subr.bf16.mxu0 %v22087_v32  ;;  %v22165_v32 = vld [vmem:[#allocation30 + $0x464] ss:$8 sps:$4 sm:$0xff]  }
0x15d3   :  { %16433 = vmatpush1.bf16.msra.mxu1 %v22082_v57  ;;  %v22160_v57 = vld [vmem:[#allocation30 + $0x660] ss:$8 sps:$4 sm:$0xff]  }
0x15d4   :  { %15367 = vmatpush1.bf16.msra.mxu0 %v22085_v6  ;;  %16434 = vmatprep.subr.bf16.mxu1 %v22090_v28  ;;  %v22163_v6 = vld [vmem:[#allocation30 + $0x460] ss:$8 sps:$4 sm:$0xff]   ;;  %v22168_v28 = vld [vmem:[#allocation30 + $0x674] ss:$8 sps:$4 sm:$0xff]  }
0x15d5   :  { %15377 = vmatprep.subr.bf16.mxu0 %v22093_v35  ;;  %v22171_v35 = vld [vmem:[#allocation30 + $0x474] ss:$8 sps:$4 sm:$0xff]  }
0x15d7   :  { %15369 = vmatmul.mubr.bf16.vlgmr.msra.gmra.mrb[208].mxu0 %v25304_v16  ;;  %16435 = vmatpush1.bf16.msra.mxu1 %v22088_v55  ;;  %v22166_v55 = vld [vmem:[#allocation30 + $0x670] ss:$8 sps:$4 sm:$0xff]  }
0x15d8   :  { %15378 = vmatpush1.bf16.msra.mxu0 %v22091_v20  ;;  %16436 = vmatprep.subr.bf16.mxu1 %v22096_v59  ;;  %v22169_v20 = vld [vmem:[#allocation30 + $0x470] ss:$8 sps:$4 sm:$0xff]   ;;  %v22174_v59 = vld [vmem:[#allocation30 + $0x684] ss:$8 sps:$4 sm:$0xff]  }
0x15d9   :  { %15379 = vmatprep.subr.bf16.mxu0 %v22099_v30  ;;  %15409 = vmatprep.mubr.bf16.mxu0 %v23070_v2  ;;  %v22177_v30 = vld [vmem:[#allocation30 + $0x484] ss:$8 sps:$4 sm:$0xff]  }
0x15db   :  { %16437 = vmatpush1.bf16.msra.mxu1 %v22094_v53  ;;  %v22172_v53 = vld [vmem:[#allocation30 + $0x680] ss:$8 sps:$4 sm:$0xff]  }
0x15dc   :  { %15380 = vmatpush1.bf16.msra.mxu0 %v22097_v3  ;;  %16438 = vmatprep.subr.bf16.mxu1 %v22102_v36  ;;  %v22175_v3 = vld [vmem:[#allocation30 + $0x480] ss:$8 sps:$4 sm:$0xff]   ;;  %v22180_v36 = vld [vmem:[#allocation30 + $0x7e4] ss:$8 sps:$4 sm:$0xff]  }
0x15dd   :  { %15381 = vmatprep.subr.bf16.mxu0 %v22105_v56  ;;  %v22183_v56 = vld [vmem:[#allocation30 + $0x494] ss:$8 sps:$4 sm:$0xff]  }
0x15df   :  { %16439 = vmatpush1.bf16.msra.mxu1 %v22100_v48  ;;  %v22178_v48 = vld [vmem:[#allocation30 + $0x7e0] ss:$8 sps:$4 sm:$0xff]  }
0x15e0   :  { %15382 = vmatpush1.bf16.msra.mxu0 %v22103_v27  ;;  %16440 = vmatprep.subr.bf16.mxu1 %v22108_v11  ;;  %v16206_v27 = vrot.slane %v25289_v22, 2  ;;  %v22181_v11 = vld [vmem:[#allocation30 + $0x490] ss:$8 sps:$4 sm:$0xff]  }
0x15e1   :  { %15383 = vmatprep.subr.bf16.mxu0 %v22111_v39  ;;  %v22186_v39 = vld [vmem:[#allocation30 + $0x7f4] ss:$8 sps:$4 sm:$0xff]  }
0x15e3   :  { %16441 = vmatpush1.bf16.msra.mxu1 %v22106_v47  ;;  %v16927_v47 = vrot.slane %v25280_v45, 3  ;;  %v22201_v45 = vld [vmem:[#allocation30 + $0x4c4] ss:$8 sps:$4 sm:$0xff]  }
0x15e4   :  { %15384 = vmatpush1.bf16.msra.mxu0 %v22109_v24  ;;  %16442 = vmatprep.subr.bf16.mxu1 %v22114_v60  ;;  %v22189_v24 = vld [vmem:[#allocation30 + $0x4a4] ss:$8 sps:$4 sm:$0xff]   ;;  %v22184_v60 = vld [vmem:[#allocation30 + $0x7f0] ss:$8 sps:$4 sm:$0xff]  }
0x15e5   :  { %15385 = vmatprep.subr.bf16.mxu0 %v22117_v50  ;;  %v22187_v50 = vld [vmem:[#allocation30 + $0x4a0] ss:$8 sps:$4 sm:$0xff]  }
0x15e7   :  { %16443 = vmatpush1.bf16.msra.mxu1 %v22112_v61  ;;  %v22192_v61 = vld [vmem:[#allocation30 + $0x804] ss:$8 sps:$4 sm:$0xff]  }
0x15e8   :  { %15386 = vmatpush1.bf16.msra.mxu0 %v22115_v4  ;;  %16444 = vmatprep.subr.bf16.mxu1 %v22120_v54  ;;  %v22195_v4 = vld [vmem:[#allocation30 + $0x4b4] ss:$8 sps:$4 sm:$0xff]   ;;  %v22190_v54 = vld [vmem:[#allocation30 + $0x800] ss:$8 sps:$4 sm:$0xff]  }
0x15e9   :  { %16061 = vmatprep.subr.bf16.mxu0 %v22123_v40  ;;  %v22193_v40 = vld [vmem:[#allocation30 + $0x4b0] ss:$8 sps:$4 sm:$0xff]  }
0x15eb   :  { %19151 = vmatmul.mubr.msk.bf16.vlgmr.msra.gmra.mrb[208].mxu0 %vm1945_vm9, %v25309_v10  ;;  %16445 = vmatpush1.bf16.msra.mxu1 %v22118_v62  ;;  %v22198_v62 = vld [vmem:[#allocation30 + $0x814] ss:$8 sps:$4 sm:$0xff]  }
0x15ec   :  { %16062 = vmatpush1.bf16.msra.mxu0 %v22121_v49  ;;  %16093 = vmatprep.mubr.bf16.mxu0 %v15844_v58  ;;  %v22196_v49 = vld [vmem:[#allocation30 + $0x810] ss:$8 sps:$4 sm:$0xff]   ;;  %v22207_v58 = vld [vmem:[#allocation30 + $0x4d4] ss:$8 sps:$4 sm:$0xff]  }
0x15ed   :  { %16446 = vmatprep.subr.bf16.mxu1 %v22126_v1  ;;  %16063 = vmatprep.subr.bf16.mxu0 %v22129_v38  ;;  %v22199_v1 = vld [vmem:[#allocation30 + $0x4c0] ss:$8 sps:$4 sm:$0xff]   ;;  %v22204_v38 = vld [vmem:[#allocation30 + $0x824] ss:$8 sps:$4 sm:$0xff]  }
0x15ef   :  { %16447 = vmatpush1.bf16.msra.mxu1 %v22124_v25  ;;  %v22202_v25 = vld [vmem:[#allocation30 + $0x820] ss:$8 sps:$4 sm:$0xff]  }
0x15f0   :  { %16064 = vmatpush1.bf16.msra.mxu0 %v22127_v41  ;;  %16448 = vmatprep.subr.bf16.mxu1 %v22132_v37  ;;  %v22205_v41 = vld [vmem:[#allocation30 + $0x4d0] ss:$8 sps:$4 sm:$0xff]   ;;  %v22210_v37 = vld [vmem:[#allocation30 + $0x834] ss:$8 sps:$4 sm:$0xff]  }
0x15f1   :  { %16065 = vmatprep.subr.bf16.mxu0 %v22135_v15  ;;  %v22213_v15 = vld [vmem:[#allocation30 + $0x4e4] ss:$8 sps:$4 sm:$0xff]  }
0x15f3   :  { %16449 = vmatpush1.bf16.msra.mxu1 %v22130_v18  ;;  %v22208_v18 = vld [vmem:[#allocation30 + $0x830] ss:$8 sps:$4 sm:$0xff]  }
0x15f4   :  { %16066 = vmatpush1.bf16.msra.mxu0 %v22133_v0  ;;  %16450 = vmatprep.subr.bf16.mxu1 %v22138_v63  ;;  %v22211_v0 = vld [vmem:[#allocation30 + $0x4e0] ss:$8 sps:$4 sm:$0xff]   ;;  %v22216_v63 = vld [vmem:[#allocation30 + $0x844] ss:$8 sps:$4 sm:$0xff]  }
0x15f5   :  { %16067 = vmatprep.subr.bf16.mxu0 %v22141_v46  ;;  %v22219_v46 = vld [vmem:[#allocation30 + $0x4f4] ss:$8 sps:$4 sm:$0xff]  }
0x15f7   :  { %16451 = vmatpush1.bf16.msra.mxu1 %v22136_v33  ;;  %v22214_v33 = vld [vmem:[#allocation30 + $0x840] ss:$8 sps:$4 sm:$0xff]  }
0x15f8   :  { %16068 = vmatpush1.bf16.msra.mxu0 %v22139_v12  ;;  %16452 = vmatprep.subr.bf16.mxu1 %v22144_v44  ;;  %v22217_v12 = vld [vmem:[#allocation30 + $0x4f0] ss:$8 sps:$4 sm:$0xff]   ;;  %v22222_v44 = vld [vmem:[#allocation30 + $0x854] ss:$8 sps:$4 sm:$0xff]  }
0x15f9   :  { %16069 = vmatprep.subr.bf16.mxu0 %v22147_v51  ;;  %v15843_v51 = vrot.slane %v25304_v16, 1 }
0x15fb   :  { %16453 = vmatpush1.bf16.msra.mxu1 %v22142_v43  ;;  %v22225_v43 = vld [vmem:[#allocation30 + $0x504] ss:$8 sps:$4 sm:$0xff]  }
0x15fc   :  { %16070 = vmatpush1.bf16.msra.mxu0 %v22145_v14  ;;  %16463 = vmatprep.subr.bf16.mxu1 %v22150_v8  ;;  %v22220_v14 = vld [vmem:[#allocation30 + $0x850] ss:$8 sps:$4 sm:$0xff]   ;;  %v22223_v8 = vld [vmem:[#allocation30 + $0x500] ss:$8 sps:$4 sm:$0xff]  }
0x15fd   :  { %16071 = vmatprep.subr.bf16.mxu0 %v22153_v42  ;;  %v22228_v42 = vld [vmem:[#allocation30 + $0x864] ss:$8 sps:$4 sm:$0xff]  }
0x15fe   :  { %16455 = vmatmul.mubr.bf16.vlgmr.msra.gmra.mrb[224].mxu1 %v16204_v13  ;;  %v22226_v13 = vld [vmem:[#allocation30 + $0x860] ss:$8 sps:$4 sm:$0xff]  }
0x15ff   :  { %16464 = vmatpush1.bf16.msra.mxu1 %v22148_v34  ;;  %16495 = vmatprep.mubr.bf16.mxu1 %v23070_v2  ;;  %v22231_v34 = vld [vmem:[#allocation30 + $0x514] ss:$8 sps:$4 sm:$0xff]  }
0x1600   :  { %16072 = vmatpush1.bf16.msra.mxu0 %v22151_v9  ;;  %16465 = vmatprep.subr.bf16.mxu1 %v22156_v21  ;;  %v22229_v9 = vld [vmem:[#allocation30 + $0x510] ss:$8 sps:$4 sm:$0xff]   ;;  %v22234_v21 = vld [vmem:[#allocation30 + $0x874] ss:$8 sps:$4 sm:$0xff]  }
0x1601   :  { %16073 = vmatprep.subr.bf16.mxu0 %v22159_v26  ;;  %v22237_v26 = vld [vmem:[#allocation30 + $0x524] ss:$8 sps:$4 sm:$0xff]  }
0x1603   :  { %16466 = vmatpush1.bf16.msra.mxu1 %v22154_v31  ;;  %v22232_v31 = vld [vmem:[#allocation30 + $0x870] ss:$8 sps:$4 sm:$0xff]  }
0x1604   :  { %16074 = vmatpush1.bf16.msra.mxu0 %v22157_v17  ;;  %16467 = vmatprep.subr.bf16.mxu1 %v22162_v19  ;;  %v22235_v17 = vld [vmem:[#allocation30 + $0x520] ss:$8 sps:$4 sm:$0xff]   ;;  %v22240_v19 = vld [vmem:[#allocation30 + $0x884] ss:$8 sps:$4 sm:$0xff]  }
0x1605   :  { %16075 = vmatprep.subr.bf16.mxu0 %v22165_v32  ;;  %v22243_v32 = vld [vmem:[#allocation30 + $0x534] ss:$8 sps:$4 sm:$0xff]  }
0x1607   :  { %16468 = vmatpush1.bf16.msra.mxu1 %v22160_v57  ;;  %v22238_v57 = vld [vmem:[#allocation30 + $0x880] ss:$8 sps:$4 sm:$0xff]  }
0x1608   :  { %16076 = vmatpush1.bf16.msra.mxu0 %v22163_v6  ;;  %16469 = vmatprep.subr.bf16.mxu1 %v22168_v28  ;;  %v22241_v6 = vld [vmem:[#allocation30 + $0x530] ss:$8 sps:$4 sm:$0xff]   ;;  %v22246_v28 = vld [vmem:[#allocation30 + $0x894] ss:$8 sps:$4 sm:$0xff]  }
0x1609   :  { %16077 = vmatprep.subr.bf16.mxu0 %v22171_v35  ;;  %v22249_v35 = vld [vmem:[#allocation30 + $0x694] ss:$8 sps:$4 sm:$0xff]  }
0x160b   :  { %16470 = vmatpush1.bf16.msra.mxu1 %v22166_v55  ;;  %v22244_v55 = vld [vmem:[#allocation30 + $0x890] ss:$8 sps:$4 sm:$0xff]  }
0x160c   :  { %16078 = vmatpush1.bf16.msra.mxu0 %v22169_v20  ;;  %16471 = vmatprep.subr.bf16.mxu1 %v22174_v59  ;;  %v22247_v20 = vld [vmem:[#allocation30 + $0x690] ss:$8 sps:$4 sm:$0xff]  }
0x160d   :  { %16079 = vmatprep.subr.bf16.mxu0 %v22177_v30  ;;  %v15845_v30 = vrot.slane %v25309_v10, 1 }
0x160f   :  { %16472 = vmatpush1.bf16.msra.mxu1 %v22172_v53  ;;  %v22252_v53 = vld [vmem:[#allocation30 + $0x8a4] ss:$8 sps:$4 sm:$0xff]  }
0x1610   :  { %16080 = vmatpush1.bf16.msra.mxu0 %v22175_v3  ;;  %17144 = vmatprep.subr.bf16.mxu1 %v22180_v36  ;;  %v22255_v3 = vld [vmem:[#allocation30 + $0x6a4] ss:$8 sps:$4 sm:$0xff]  }
0x1611   :  { %16081 = vmatprep.subr.bf16.mxu0 %v22183_v56  ;;  %v16566_v56 = vrot.slane %v25295_v52, 2  ;;  %v22259_v52 = vld [vmem:[#allocation30 + $0x6b0] ss:$8 sps:$4 sm:$0xff]  }
0x1612   :  { %19280 = vmatmul.mubr.msk.bf16.vlgmr.msra.gmra.mrb[224].mxu1 %vm1945_vm9, %v16206_v27 }
0x1613   :  { %17145 = vmatpush1.bf16.msra.mxu1 %v22178_v48  ;;  %17176 = vmatprep.mubr.bf16.mxu1 %v16927_v47  ;;  %v22253_v47 = vld [vmem:[#allocation30 + $0x6a0] ss:$8 sps:$4 sm:$0xff]  }
0x1614   :  { %16082 = vmatpush1.bf16.msra.mxu0 %v22181_v11  ;;  %17146 = vmatprep.subr.bf16.mxu1 %v22186_v39  ;;  %v22250_v11 = vld [vmem:[#allocation30 + $0x8a0] ss:$8 sps:$4 sm:$0xff]  }
0x1615   :  { %16083 = vmatprep.subr.bf16.mxu0 %v22189_v24  ;;  %v22258_v24 = vld [vmem:[#allocation30 + $0x8b4] ss:$8 sps:$4 sm:$0xff]  }
0x1617   :  { %17147 = vmatpush1.bf16.msra.mxu1 %v22184_v60  ;;  %v22261_v60 = vld [vmem:[#allocation30 + $0x6b4] ss:$8 sps:$4 sm:$0xff]  }
0x1618   :  { %16084 = vmatpush1.bf16.msra.mxu0 %v22187_v50  ;;  %17148 = vmatprep.subr.bf16.mxu1 %v22192_v61  ;;  %v22256_v50 = vld [vmem:[#allocation30 + $0x8b0] ss:$8 sps:$4 sm:$0xff]   ;;  %v22264_v61 = vld [vmem:[#allocation30 + $0x8c4] ss:$8 sps:$4 sm:$0xff]  }
0x1619   :  { %16085 = vmatprep.subr.bf16.mxu0 %v22195_v4  ;;  %v22267_v4 = vld [vmem:[#allocation30 + $0x6c4] ss:$8 sps:$4 sm:$0xff]  }
0x161b   :  { %17149 = vmatpush1.bf16.msra.mxu1 %v22190_v54  ;;  %v22262_v54 = vld [vmem:[#allocation30 + $0x8c0] ss:$8 sps:$4 sm:$0xff]  }
0x161c   :  { %16086 = vmatpush1.bf16.msra.mxu0 %v22193_v40  ;;  %17150 = vmatprep.subr.bf16.mxu1 %v22198_v62  ;;  %v22265_v40 = vld [vmem:[#allocation30 + $0x6c0] ss:$8 sps:$4 sm:$0xff]   ;;  %v22270_v62 = vld [vmem:[#allocation30 + $0x8d4] ss:$8 sps:$4 sm:$0xff]  }
0x161d   :  { %16087 = vmatprep.subr.bf16.mxu0 %v22201_v45  ;;  %v22273_v45 = vld [vmem:[#allocation30 + $0x6d4] ss:$8 sps:$4 sm:$0xff]  }
0x161f   :  { %17151 = vmatpush1.bf16.msra.mxu1 %v22196_v49  ;;  %v22268_v49 = vld [vmem:[#allocation30 + $0x8d0] ss:$8 sps:$4 sm:$0xff]  }
0x1620   :  { %16088 = vmatpush1.bf16.msra.mxu0 %v22199_v1  ;;  %17152 = vmatprep.subr.bf16.mxu1 %v22204_v38  ;;  %v22271_v1 = vld [vmem:[#allocation30 + $0x6d0] ss:$8 sps:$4 sm:$0xff]   ;;  %v22276_v38 = vld [vmem:[#allocation30 + $0x8e4] ss:$8 sps:$4 sm:$0xff]  }
0x1621   :  { %16089 = vmatprep.subr.bf16.mxu0 %v22207_v58  ;;  %v22279_v58 = vld [vmem:[#allocation30 + $0x6e4] ss:$8 sps:$4 sm:$0xff]  }
0x1623   :  { %17153 = vmatpush1.bf16.msra.mxu1 %v22202_v25  ;;  %v22274_v25 = vld [vmem:[#allocation30 + $0x8e0] ss:$8 sps:$4 sm:$0xff]  }
0x1624   :  { %16090 = vmatpush1.bf16.msra.mxu0 %v22205_v41  ;;  %17154 = vmatprep.subr.bf16.mxu1 %v22210_v37  ;;  %v16926_v41 = vrot.slane %v25282_v23, 3  ;;  %v22277_v37 = vld [vmem:[#allocation30 + $0x6e0] ss:$8 sps:$4 sm:$0xff]  }
0x1625   :  { %16091 = vmatprep.subr.bf16.mxu0 %v22213_v15  ;;  %v22282_v15 = vld [vmem:[#allocation30 + $0x8f4] ss:$8 sps:$4 sm:$0xff]   ;;  %v22289_v23 = vld [vmem:[#allocation30 + $0x700] ss:$8 sps:$4 sm:$0xff]  }
0x1627   :  { %17155 = vmatpush1.bf16.msra.mxu1 %v22208_v18  ;;  %v22285_v18 = vld [vmem:[#allocation30 + $0x6f4] ss:$8 sps:$4 sm:$0xff]  }
0x1628   :  { %16092 = vmatpush1.bf16.msra.mxu0 %v22211_v0  ;;  %17156 = vmatprep.subr.bf16.mxu1 %v22216_v63  ;;  %v22280_v0 = vld [vmem:[#allocation30 + $0x8f0] ss:$8 sps:$4 sm:$0xff]  }
0x1629   :  { %16102 = vmatprep.subr.bf16.mxu0 %v22219_v46  ;;  %v22283_v63 = vld [vmem:[#allocation30 + $0x6f0] ss:$8 sps:$4 sm:$0xff]   ;;  %v22288_v46 = vld [vmem:[#allocation30 + $0x904] ss:$8 sps:$4 sm:$0xff]  }
0x162b   :  { %16094 = vmatmul.mubr.bf16.vlgmr.msra.gmra.mrb[212].mxu0 %v15843_v51  ;;  %17157 = vmatpush1.bf16.msra.mxu1 %v22214_v33  ;;  %v22291_v33 = vld [vmem:[#allocation30 + $0x704] ss:$8 sps:$4 sm:$0xff]   ;;  %v22297_v51 = vld [vmem:[#allocation30 + $0x714] ss:$8 sps:$4 sm:$0xff]  }
0x162c   :  { %16103 = vmatpush1.bf16.msra.mxu0 %v22217_v12  ;;  %17158 = vmatprep.subr.bf16.mxu1 %v22222_v44  ;;  %v22286_v12 = vld [vmem:[#allocation30 + $0x900] ss:$8 sps:$4 sm:$0xff]   ;;  %v22294_v44 = vld [vmem:[#allocation30 + $0x914] ss:$8 sps:$4 sm:$0xff]  }
0x162d   :  { %16104 = vmatprep.subr.bf16.mxu0 %v22225_v43  ;;  %16134 = vmatprep.mubr.bf16.mxu0 %v23070_v2  ;;  %v22292_v43 = vld [vmem:[#allocation30 + $0x910] ss:$8 sps:$4 sm:$0xff]  }
0x162f   :  { %17159 = vmatpush1.bf16.msra.mxu1 %v22220_v14  ;;  %v22295_v14 = vld [vmem:[#allocation30 + $0x710] ss:$8 sps:$4 sm:$0xff]  }
0x1630   :  { %16105 = vmatpush1.bf16.msra.mxu0 %v22223_v8  ;;  %17160 = vmatprep.subr.bf16.mxu1 %v22228_v42  ;;  %v22300_v8 = vld [vmem:[#allocation30 + $0x924] ss:$8 sps:$4 sm:$0xff]  }
0x1631   :  { %16106 = vmatprep.subr.bf16.mxu0 %v22231_v34  ;;  %v22303_v42 = vld [vmem:[#allocation30 + $0x724] ss:$8 sps:$4 sm:$0xff]   ;;  %v22298_v34 = vld [vmem:[#allocation30 + $0x920] ss:$8 sps:$4 sm:$0xff]  }
0x1633   :  { %17161 = vmatpush1.bf16.msra.mxu1 %v22226_v13  ;;  %v22301_v13 = vld [vmem:[#allocation30 + $0x720] ss:$8 sps:$4 sm:$0xff]  }
0x1634   :  { %16107 = vmatpush1.bf16.msra.mxu0 %v22229_v9  ;;  %17162 = vmatprep.subr.bf16.mxu1 %v22234_v21  ;;  %v22306_v9 = vld [vmem:[#allocation30 + $0x734] ss:$8 sps:$4 sm:$0xff]   ;;  %v16928_v21 = vrot.slane %v25289_v22, 3 }
0x1635   :  { %16108 = vmatprep.subr.bf16.mxu0 %v22237_v26  ;;  %v22304_v26 = vld [vmem:[#allocation30 + $0x730] ss:$8 sps:$4 sm:$0xff]  }
0x1637   :  { %17163 = vmatpush1.bf16.msra.mxu1 %v22232_v31  ;;  %v22309_v31 = vld [vmem:[#allocation30 + $0x744] ss:$8 sps:$4 sm:$0xff]  }
0x1638   :  { %16109 = vmatpush1.bf16.msra.mxu0 %v22235_v17  ;;  %17164 = vmatprep.subr.bf16.mxu1 %v22240_v19  ;;  %v22307_v17 = vld [vmem:[#allocation30 + $0x740] ss:$8 sps:$4 sm:$0xff]   ;;  %v22312_v19 = vld [vmem:[#allocation30 + $0x754] ss:$8 sps:$4 sm:$0xff]  }
0x1639   :  { %16110 = vmatprep.subr.bf16.mxu0 %v22243_v32 }
0x163b   :  { %17165 = vmatpush1.bf16.msra.mxu1 %v22238_v57 }
0x163c   :  { %16111 = vmatpush1.bf16.msra.mxu0 %v22241_v6  ;;  %17166 = vmatprep.subr.bf16.mxu1 %v22246_v28 }
0x163d   :  { %v25321_v59 = vpop.f32.mrb[216].mxu1  ;;  %16783 = vmatprep.subr.bf16.mxu0 %v22249_v35  ;;  %v22310_v35 = vld [vmem:[#allocation30 + $0x750] ss:$8 sps:$4 sm:$0xff]  }
0x163e   :  { %v25324_v36 = vpop.f32.mrb[217].mxu1 }
0x163f   :  { %v15054_v48 = vcombine.low %v25321_v59, %v25324_v36  ;;  %v15049_v27 = vpop.f32.mrb[218].mxu1  ;;  %19237 = vmatmul.mubr.msk.bf16.vlgmr.msra.gmra.mrb[212].mxu0 %vm1945_vm9, %v15845_v30  ;;  %17167 = vmatpush1.bf16.msra.mxu1 %v22244_v55  ;;  %v22319_v59 = vld [vmem:[#allocation30 + $0x780] ss:$8 sps:$4 sm:$0xff]   ;;  %v22324_v36 = vld [vmem:[#allocation30 + $0x794] ss:$8 sps:$4 sm:$0xff]  }
0x1640   :  { %v15050_v39 = vpop.f32.mrb[219].mxu1  ;;  %16784 = vmatpush1.bf16.msra.mxu0 %v22247_v20  ;;  %16815 = vmatprep.mubr.bf16.mxu0 %v16566_v56  ;;  %v22315_v20 = vld [vmem:[#allocation30 + $0x764] ss:$8 sps:$4 sm:$0xff]   ;;  %v22313_v56 = vld [vmem:[#allocation30 + $0x760] ss:$8 sps:$4 sm:$0xff]  }
0x1641   :  { %17168 = vmatprep.subr.bf16.mxu1 %v22252_v53  ;;  %16785 = vmatprep.subr.bf16.mxu0 %v22255_v3  ;;  %v15061_v22 = vrot.slane %v15054_v48, %v24347_v29  ;;  %v14557_v53 = vld [vmem:[#allocation33] sm:$0x3]  ;;  %v22318_v27 = vld [vmem:[#allocation30 + $0x774] ss:$8 sps:$4 sm:$0xff]  }
0x1642   :  { %v22322_v48 = vld [vmem:[#allocation30 + $0x790] ss:$8 sps:$4 sm:$0xff]  }
0x1643   :  { %17169 = vmatpush1.bf16.msra.mxu1 %v22250_v11  ;;  %v15068_v11 = vrot.slane %v15061_v22, %v24347_v29  ;;  %v22353_v22 = vld [vmem:[#allocation40 + $0x40] sm:$0xff]  }
0x1644   :  { %16786 = vmatpush1.bf16.msra.mxu0 %v22253_v47  ;;  %17170 = vmatprep.subr.bf16.mxu1 %v22258_v24  ;;  %v22316_v47 = vld [vmem:[#allocation30 + $0x770] ss:$8 sps:$4 sm:$0xff]  }
0x1645   :  { %16787 = vmatprep.subr.bf16.mxu0 %v22261_v60  ;;  %v22321_v60 = vld [vmem:[#allocation30 + $0x784] ss:$8 sps:$4 sm:$0xff]  }
0x1647   :  { %17171 = vmatpush1.bf16.msra.mxu1 %v22256_v50  ;;  %v16565_v50 = vrot.slane %v25304_v16, 2 }
0x1648   :  { %16788 = vmatpush1.bf16.msra.mxu0 %v22259_v52  ;;  %17172 = vmatprep.subr.bf16.mxu1 %v22264_v61  ;;  %v22327_v52 = vld [vmem:[#allocation30 + $0x7a4] ss:$8 sps:$4 sm:$0xff]   ;;  %v22325_v61 = vld [vmem:[#allocation30 + $0x7a0] ss:$8 sps:$4 sm:$0xff]  }
0x1649   :  { %16789 = vmatprep.subr.bf16.mxu0 %v22267_v4  ;;  %v22330_v4 = vld [vmem:[#allocation30 + $0x7b4] ss:$8 sps:$4 sm:$0xff]  }
0x164b   :  { %17173 = vmatpush1.bf16.msra.mxu1 %v22262_v54  ;;  %v22328_v54 = vld [vmem:[#allocation30 + $0x7b0] ss:$8 sps:$4 sm:$0xff]  }
0x164c   :  { %16790 = vmatpush1.bf16.msra.mxu0 %v22265_v40  ;;  %17174 = vmatprep.subr.bf16.mxu1 %v22270_v62  ;;  %v22333_v40 = vld [vmem:[#allocation30 + $0x7c4] ss:$8 sps:$4 sm:$0xff]   ;;  %v22331_v62 = vld [vmem:[#allocation30 + $0x7c0] ss:$8 sps:$4 sm:$0xff]  }
0x164d   :  { %16791 = vmatprep.subr.bf16.mxu0 %v22273_v45  ;;  %v22336_v45 = vld [vmem:[#allocation30 + $0x7d4] ss:$8 sps:$4 sm:$0xff]  }
0x164f   :  { %17175 = vmatpush1.bf16.msra.mxu1 %v22268_v49  ;;  %v22334_v49 = vld [vmem:[#allocation30 + $0x7d0] ss:$8 sps:$4 sm:$0xff]  }
0x1650   :  { %16792 = vmatpush1.bf16.msra.mxu0 %v22271_v1  ;;  %17185 = vmatprep.subr.bf16.mxu1 %v22276_v38  ;;  %v16567_v1 = vrot.slane %v25309_v10, 2  ;;  %v22340_v10 = vld [vmem:[#allocation37 + $0x8] sm:$0xff]  }
0x1651   :  { %16793 = vmatprep.subr.bf16.mxu0 %v22279_v58 }
0x1652   :  { %17177 = vmatmul.mubr.bf16.vlgmr.msra.gmra.mrb[228].mxu1 %v16926_v41 }
0x1653   :  { %17186 = vmatpush1.bf16.msra.mxu1 %v22274_v25  ;;  %17217 = vmatprep.mubr.bf16.mxu1 %v23070_v2 }
0x1654   :  { %16794 = vmatpush1.bf16.msra.mxu0 %v22277_v37  ;;  %17187 = vmatprep.subr.bf16.mxu1 %v22282_v15  ;;  %v22337_v15 = vld [vmem:[#allocation37 + $0x40] sm:$0xff]  }
0x1655   :  { %16795 = vmatprep.subr.bf16.mxu0 %v22285_v18  ;;  %v22338_v18 = vld [vmem:[#allocation37] sm:$0xff]  }
0x1657   :  { %17188 = vmatpush1.bf16.msra.mxu1 %v22280_v0  ;;  %v22339_v0 = vld [vmem:[#allocation37 + $0x48] sm:$0xff]  }
0x1658   :  { %16796 = vmatpush1.bf16.msra.mxu0 %v22283_v63  ;;  %17189 = vmatprep.subr.bf16.mxu1 %v22288_v46 }
0x1659   :  { %16797 = vmatprep.subr.bf16.mxu0 %v22291_v33 }
0x165b   :  { %17190 = vmatpush1.bf16.msra.mxu1 %v22286_v12 }
0x165c   :  { %16798 = vmatpush1.bf16.msra.mxu0 %v22289_v23  ;;  %17191 = vmatprep.subr.bf16.mxu1 %v22294_v44  ;;  %v22341_v44 = vld [vmem:[#allocation37 + $0x50] sm:$0xff]  }
0x165d   :  { %16799 = vmatprep.subr.bf16.mxu0 %v22297_v51 }
0x165f   :  { %17192 = vmatpush1.bf16.msra.mxu1 %v22292_v43 }
0x1660   :  { %16800 = vmatpush1.bf16.msra.mxu0 %v22295_v14  ;;  %17193 = vmatprep.subr.bf16.mxu1 %v22300_v8  ;;  %v22342_v8 = vld [vmem:[#allocation37 + $0x10] sm:$0xff]  }
0x1661   :  { %16801 = vmatprep.subr.bf16.mxu0 %v22303_v42 }
0x1663   :  { %17194 = vmatpush1.bf16.msra.mxu1 %v22298_v34 }
0x1664   :  { %16802 = vmatpush1.bf16.msra.mxu0 %v22301_v13 }
0x1665   :  { %16803 = vmatprep.subr.bf16.mxu0 %v22306_v9  ;;  %v22343_v9 = vld [vmem:[#allocation37 + $0x58] sm:$0xff]  }
0x1666   :  { %19366 = vmatmul.mubr.msk.bf16.vlgmr.msra.gmra.mrb[228].mxu1 %vm1945_vm9, %v16928_v21 }
0x1668   :  { %16804 = vmatpush1.bf16.msra.mxu0 %v22304_v26 }
0x1669   :  { %16805 = vmatprep.subr.bf16.mxu0 %v22309_v31  ;;  %v22344_v31 = vld [vmem:[#allocation37 + $0x18] sm:$0xff]  }
0x166a   :  { %v14689_v32 = vpop.f32.mrb[204].mxu0 }
0x166b   :  { %v14691_v57 = vpop.f32.mrb[205].mxu0 }
0x166c   :  { %v14698_v6 = vcombine.low %v14689_v32, %v14691_v57  ;;  %16806 = vmatpush1.bf16.msra.mxu0 %v22307_v17  ;;  %v14693_v28 = vpop.f32.mrb[206].mxu0  ;;  %v22346_v32 = vld [vmem:[#allocation37 + $0x20] sm:$0xff]   ;;  %v22347_v57 = vld [vmem:[#allocation37 + $0x68] sm:$0xff]  }
0x166d   :  { %v14694_v55 = vpop.f32.mrb[207].mxu0  ;;  %16807 = vmatprep.subr.bf16.mxu0 %v22312_v19  ;;  %v22345_v19 = vld [vmem:[#allocation37 + $0x60] sm:$0xff]   ;;  %v22349_v28 = vld [vmem:[#allocation37 + $0x70] sm:$0xff]  }
0x166e   :  { %v14705_v30 = vrot.slane %v14698_v6, %v24347_v29  ;;  %v22348_v6 = vld [vmem:[#allocation37 + $0x28] sm:$0xff]   ;;  %v22351_v55 = vld [vmem:[#allocation37 + $0x78] sm:$0xff]  }
0x1670   :  { %v14712_v3 = vrot.slane %v14705_v30, %v24347_v29  ;;  %16808 = vmatpush1.bf16.msra.mxu0 %v22310_v35  ;;  %v22350_v35 = vld [vmem:[#allocation37 + $0x30] sm:$0xff]  }
0x1671   :  { %16809 = vmatprep.subr.bf16.mxu0 %v22315_v20  ;;  %v22352_v20 = vld [vmem:[#allocation37 + $0x38] sm:$0xff]  }
0x1672   :  { %v14714_v39 = vadd.f32 %v14712_v3, %v14557_v53 }
0x1674   :  { %16810 = vmatpush1.bf16.msra.mxu0 %v22313_v56  ;;  %v15070_v24 = vadd.f32 %v15068_v11, %v14714_v39 }
0x1675   :  { %16811 = vmatprep.subr.bf16.mxu0 %v22318_v27 }
0x1678   :  { %16812 = vmatpush1.bf16.msra.mxu0 %v22316_v47 }
0x1679   :  { %16813 = vmatprep.subr.bf16.mxu0 %v22321_v60 }
0x167c   :  { %16814 = vmatpush1.bf16.msra.mxu0 %v22319_v59 }
0x167d   :  { %16824 = vmatprep.subr.bf16.mxu0 %v22324_v36 }
0x167f   :  { %16816 = vmatmul.mubr.bf16.vlgmr.msra.gmra.mrb[216].mxu0 %v16565_v50 }
0x1680   :  { %16825 = vmatpush1.bf16.msra.mxu0 %v22322_v48  ;;  %16856 = vmatprep.mubr.bf16.mxu0 %v23070_v2 }
0x1681   :  { %16826 = vmatprep.subr.bf16.mxu0 %v22327_v52 }
0x1684   :  { %16827 = vmatpush1.bf16.msra.mxu0 %v22325_v61 }
0x1685   :  { %16828 = vmatprep.subr.bf16.mxu0 %v22330_v4 }
0x1688   :  { %16829 = vmatpush1.bf16.msra.mxu0 %v22328_v54 }
0x1689   :  { %16830 = vmatprep.subr.bf16.mxu0 %v22333_v40 }
0x168c   :  { %16831 = vmatpush1.bf16.msra.mxu0 %v22331_v62 }
0x168d   :  { %16832 = vmatprep.subr.bf16.mxu0 %v22336_v45 }
0x1690   :  { %16833 = vmatpush1.bf16.msra.mxu0 %v22334_v49 }
0x1691   :  { %v15775_v16 = vpop.f32.mrb[220].mxu1  ;;  %19620 = vmatprep.subr.bf16.mxu0 %v22337_v15 }
0x1692   :  { %v15777_v38 = vpop.f32.mrb[221].mxu1 }
0x1693   :  { %v15784_v58 = vcombine.low %v15775_v16, %v15777_v38  ;;  %v15779_v2 = vpop.f32.mrb[222].mxu1  ;;  %19323 = vmatmul.mubr.msk.bf16.vlgmr.msra.gmra.mrb[216].mxu0 %vm1945_vm9, %v16567_v1 }
0x1694   :  { %v15780_v25 = vpop.f32.mrb[223].mxu1  ;;  %19621 = vmatpush3.bf16.msra.mxu0 %v22338_v18 }
0x1695   :  { %v15791_v12 = vrot.slane %v15784_v58, %v24347_v29  ;;  %19622 = vmatprep.subr.bf16.mxu0 %v22339_v0 }
0x1697   :  { %v15798_v43 = vrot.slane %v15791_v12, %v24347_v29  ;;  %v22355_v12 = vld [vmem:[#allocation40 + $0x48] sm:$0xff]  }
0x1698   :  { %19623 = vmatpush3.bf16.msra.mxu0 %v22340_v10  ;;  %v22357_v10 = vld [vmem:[#allocation40 + $0x50] sm:$0xff]  }
0x1699   :  { %19624 = vmatprep.subr.bf16.mxu0 %v22341_v44  ;;  %v22358_v44 = vld [vmem:[#allocation40 + $0x10] sm:$0xff]  }
0x169c   :  { %19625 = vmatpush3.bf16.msra.mxu0 %v22342_v8  ;;  %v22363_v8 = vld [vmem:[#allocation40 + $0x68] sm:$0xff]  }
0x169d   :  { %19626 = vmatprep.subr.bf16.mxu0 %v22343_v9  ;;  %v22367_v9 = vld [vmem:[#allocation40 + $0x78] sm:$0xff]  }
0x16a0   :  { %19627 = vmatpush3.bf16.msra.mxu0 %v22344_v31 }
0x16a1   :  { %19628 = vmatprep.subr.bf16.mxu0 %v22345_v19  ;;  %v17632_v19 = vld [vmem:[%s23229_s29 + $0x88] sm:$0xff] }
0x16a4   :  { %19629 = vmatpush3.bf16.msra.mxu0 %v22346_v32  ;;  %v17615_v32 = vld [vmem:[%s23229_s29] sm:$0xff] }
0x16a5   :  { %19630 = vmatprep.subr.bf16.mxu0 %v22347_v57 }
0x16a8   :  { %19631 = vmatpush3.bf16.msra.mxu0 %v22348_v6  ;;  %v17616_v6 = vld [vmem:[%s23229_s29 + $0x8] sm:$0xff] }
0x16a9   :  { %19632 = vmatprep.subr.bf16.mxu0 %v22349_v28  ;;  %v17633_v28 = vld [vmem:[%s23229_s29 + $0x90] sm:$0xff] }
0x16ac   :  { %19633 = vmatpush3.bf16.msra.mxu0 %v22350_v35  ;;  %v17634_v35 = vld [vmem:[%s23229_s29 + $0x98] sm:$0xff] }
0x16ad   :  { %19634 = vmatprep.subr.bf16.mxu0 %v22351_v55  ;;  %v20061_v55 = vpack.c.bf16 %v17616_v6, %v17615_v32 }
0x16b0   :  { %19635 = vmatpush3.bf16.msra.mxu0 %v22352_v20  ;;  %v20063_v20 = vpack.c.bf16 %v17634_v35, %v17633_v28 }
0x16b1   :  { %19642 = vmatprep.subr.bf16.mxu0 %v22353_v22  ;;  %v17617_v22 = vld [vmem:[%s23229_s29 + $0x10] sm:$0xff] }
0x16be   :  { %v15411_v41 = vpop.f32.mrb[208].mxu0 }
0x16bf   :  { %v15413_v37 = vpop.f32.mrb[209].mxu0 }
0x16c0   :  { %v15420_v63 = vcombine.low %v15411_v41, %v15413_v37  ;;  %v15415_v46 = vpop.f32.mrb[210].mxu0 }
0x16c1   :  { %v15416_v33 = vpop.f32.mrb[211].mxu0 }
0x16c2   :  { %v15427_v23 = vrot.slane %v15420_v63, %v24347_v29  ;;  %v22354_v33 = vld [vmem:[#allocation40] sm:$0xff]  }
0x16c4   :  { %v15434_v51 = vrot.slane %v15427_v23, %v24347_v29 }
0x16c6   :  { %v15436_v14 = vadd.f32 %v15434_v51, %v15070_v24  ;;  %v22359_v51 = vld [vmem:[#allocation40 + $0x58] sm:$0xff]  }
0x16c8   :  { %v15800_v42 = vadd.f32 %v15798_v43, %v15436_v14  ;;  %v22360_v43 = vld [vmem:[#allocation40 + $0x18] sm:$0xff]   ;;  %v22362_v14 = vld [vmem:[#allocation40 + $0x20] sm:$0xff]  }
0x16e5   :  { %v16497_v34 = vpop.f32.mrb[224].mxu1 }
0x16e6   :  { %v16499_v13 = vpop.f32.mrb[225].mxu1 }
0x16e7   :  { %v16506_v21 = vcombine.low %v16497_v34, %v16499_v13  ;;  %v16501_v26 = vpop.f32.mrb[226].mxu1  ;;  %v22365_v34 = vld [vmem:[#allocation40 + $0x70] sm:$0xff]  }
0x16e8   :  { %v16502_v17 = vpop.f32.mrb[227].mxu1  ;;  %v22366_v13 = vld [vmem:[#allocation40 + $0x30] sm:$0xff]  }
0x16e9   :  { %v16513_v11 = vrot.slane %v16506_v21, %v24347_v29  ;;  %v22368_v21 = vld [vmem:[#allocation40 + $0x38] sm:$0xff]   ;;  %v17631_v17 = vld [vmem:[%s23229_s29 + $0x80] sm:$0xff] }
0x16ea   :  { %v20059_v57 = vpack.c.bf16 %v17632_v19, %v17631_v17  ;;  %v17647_v19 = vld [vmem:[#allocation43] sm:$0x1] }
0x16eb   :  { %v16520_v24 = vrot.slane %v16513_v11, %v24347_v29  ;;  %v17620_v11 = vld [vmem:[%s23229_s29 + $0x28] sm:$0xff] }
0x1712   :  { %v16136_v30 = vpop.f32.mrb[212].mxu0 }
0x1713   :  { %v16138_v53 = vpop.f32.mrb[213].mxu0 }
0x1714   :  { %v16145_v3 = vcombine.low %v16136_v30, %v16138_v53  ;;  %v16140_v56 = vpop.f32.mrb[214].mxu0  ;;  %v17618_v30 = vld [vmem:[%s23229_s29 + $0x18] sm:$0xff]  ;;  %v17636_v53 = vld [vmem:[%s23229_s29 + $0xa8] sm:$0xff] }
0x1715   :  { %v16141_v27 = vpop.f32.mrb[215].mxu0 }
0x1716   :  { %v16152_v39 = vrot.slane %v16145_v3, %v24347_v29  ;;  %v20065_v3 = vpack.c.bf16 %v17618_v30, %v17617_v22  ;;  %v17619_v27 = vld [vmem:[%s23229_s29 + $0x20] sm:$0xff] }
0x1718   :  { %v16159_v47 = vrot.slane %v16152_v39, %v24347_v29  ;;  %v17637_v39 = vld [vmem:[%s23229_s29 + $0xb0] sm:$0xff] }
0x171a   :  { %v16161_v60 = vadd.f32 %v16159_v47, %v15800_v42  ;;  %v22364_v42 = vld [vmem:[#allocation40 + $0x28] sm:$0xff]  }
0x171b   :  { %v17638_v47 = vld [vmem:[%s23229_s29 + $0xb8] sm:$0xff] }
0x171c   :  { %v16522_v59 = vadd.f32 %v16520_v24, %v16161_v60  ;;  %v20069_v24 = vpack.c.bf16 %v17620_v11, %v17619_v27  ;;  %v20071_v60 = vpack.c.bf16 %v17638_v47, %v17637_v39 }
0x1739   :  { %v17219_v36 = vpop.f32.mrb[228].mxu1 }
0x173a   :  { %v17221_v48 = vpop.f32.mrb[229].mxu1 }
0x173b   :  { %v17228_v50 = vcombine.low %v17219_v36, %v17221_v48  ;;  %v17223_v52 = vpop.f32.mrb[230].mxu1  ;;  %v17622_v36 = vld [vmem:[%s23229_s29 + $0x38] sm:$0xff]  ;;  %v17639_v48 = vld [vmem:[%s23229_s29 + $0xc0] sm:$0xff] }
0x173c   :  { %v17224_v61 = vpop.f32.mrb[231].mxu1 }
0x173d   :  { %v17235_v49 = vrot.slane %v17228_v50, %v24347_v29  ;;  %v17640_v50 = vld [vmem:[%s23229_s29 + $0xc8] sm:$0xff] }
0x173e   :  { %v20075_v61 = vpack.c.bf16 %v17640_v50, %v17639_v48 }
0x173f   :  { %v17242_v38 = vrot.slane %v17235_v49, %v24347_v29 }
0x1766   :  { %v16858_v4 = vpop.f32.mrb[216].mxu0 }
0x1767   :  { %v16860_v54 = vpop.f32.mrb[217].mxu0 }
0x1768   :  { %v16867_v40 = vcombine.low %v16858_v4, %v16860_v54  ;;  %v16862_v62 = vpop.f32.mrb[218].mxu0  ;;  %v17623_v4 = vld [vmem:[%s23229_s29 + $0x40] sm:$0xff]  ;;  %v17624_v54 = vld [vmem:[%s23229_s29 + $0x48] sm:$0xff] }
0x1769   :  { %v16863_v45 = vpop.f32.mrb[219].mxu0  ;;  %v17642_v62 = vld [vmem:[%s23229_s29 + $0xd8] sm:$0xff] }
0x176a   :  { %v16874_v16 = vrot.slane %v16867_v40, %v24347_v29  ;;  %v17641_v40 = vld [vmem:[%s23229_s29 + $0xd0] sm:$0xff]  ;;  %v20077_v45 = vpack.c.bf16 %v17624_v54, %v17623_v4 }
0x176b   :  { %v20079_v49 = vpack.c.bf16 %v17642_v62, %v17641_v40 }
0x176c   :  { %v16881_v1 = vrot.slane %v16874_v16, %v24347_v29  ;;  %v22356_v29 = vld [vmem:[#allocation40 + $0x8] sm:$0xff]   ;;  %v17625_v16 = vld [vmem:[%s23229_s29 + $0x50] sm:$0xff] }
0x176e   :  { %v16883_v58 = vadd.f32 %v16881_v1, %v16522_v59  ;;  %v17621_v59 = vld [vmem:[%s23229_s29 + $0x30] sm:$0xff]  ;;  %v17626_v1 = vld [vmem:[%s23229_s29 + $0x58] sm:$0xff] }
0x176f   :  { %v20073_v52 = vpack.c.bf16 %v17622_v36, %v17621_v59 }
0x1770   :  { %v17244_v2 = vadd.f32 %v17242_v38, %v16883_v58  ;;  %v20081_v38 = vpack.c.bf16 %v17626_v1, %v17625_v16  ;;  %v17643_v58 = vld [vmem:[%s23229_s29 + $0xe0] sm:$0xff] }
0x1772   :  { %v17245_v25 = vmax.f32 %v17244_v2, 0.0  ;;  %v17644_v2 = vld [vmem:[%s23229_s29 + $0xe8] sm:$0xff] }
0x1774   :  { %v17246_v41 = vand.u32 2147483647, %v17245_v25  ;;  %v17440_v0 = vrot.slane %v17245_v25, %v23561_v7  ;;  %v17436_v26 = vrot.slane %v17245_v25, %v23558_v5 }
0x1776   :  { %vm17247_vm5 = vcmp.gt.f32.partialorder %v17246_v41, 0.05  ;;  %v17444_v23 = vpack.c.bf16 %v17440_v0, %v17440_v0  ;;  %v17443_v31 = vpack.c.bf16 %v17436_v26, %v17436_v26  ;;  %v17627_v41 = vld [vmem:[%s23229_s29 + $0x60] sm:$0xff]  ;;  %v17646_v0 = vld [vmem:[%s23229_s29 + $0xf8] sm:$0xff] }
0x1777   :  { %v17248_v37 = vsel %vm17247_vm5, %v17245_v25, 0.0  ;;  %v20083_v25 = vpack.c.bf16 %v17644_v2, %v17643_v58 }
0x1778   :  { %v17253_v15 = vrot.slane %v17248_v37, %v23558_v5  ;;  %v17257_v18 = vrot.slane %v17248_v37, %v23561_v7  ;;  %v22361_v7 = vld [vmem:[#allocation40 + $0x60] sm:$0xff]   ;;  %v17635_v5 = vld [vmem:[%s23229_s29 + $0xa0] sm:$0xff]  ;;  %v17628_v37 = vld [vmem:[%s23229_s29 + $0x68] sm:$0xff] }
0x1779   :  { %v20067_v56 = vpack.c.bf16 %v17636_v53, %v17635_v5 }
0x177a   :  { %v17260_v63 = vpack.c.bf16 %v17253_v15, %v17253_v15  ;;  %v17261_v46 = vpack.c.bf16 %v17257_v18, %v17257_v18  ;;  %v20085_v15 = vpack.c.bf16 %v17628_v37, %v17627_v41  ;;  %v17645_v18 = vld [vmem:[%s23229_s29 + $0xf0] sm:$0xff] }
0x177c   :  { %17423 = vmatprep.mubr.bf16.mxu0 %v17261_v46  ;;  %v17629_v46 = vld [vmem:[%s23229_s29 + $0x70] sm:$0xff] }
0x177d   :  { %17424 = vmatmul.mubr.bf16.vlgmr.msra.gmra.mrb[220].mxu0 %v17260_v63  ;;  %v20087_v63 = vpack.c.bf16 %v17646_v0, %v17645_v18 }
0x177e   :  { %19643 = vmatpush3.bf16.msra.mxu0 %v22354_v33  ;;  %17606 = vmatprep.mubr.bf16.mxu0 %v17444_v23  ;;  %v17630_v33 = vld [vmem:[%s23229_s29 + $0x78] sm:$0xff]  ;;  %s23080_s29 = smov [#allocation45]  }
0x177f   :  { %19644 = vmatprep.subr.bf16.mxu0 %v22355_v12  ;;  %v20089_v12 = vpack.c.bf16 %v17630_v33, %v17629_v46  ;;  %s17725_s28 = sshll.u32 %s23080_s29, 4  ;;  %s17726_s28 = int_to_ptr.vmem [resolvable:$true] %s17725_s28 }
0x1780   :  { %s22951_s22 = scalar_lea.vmem %s17726_s28, 32  ;;  %p22956_p2 = scmp.lt.s32.totalorder %s17726_s28, %s17726_s28 }
0x1781   :  { %p22952_p1 = scmp.ne.s32.totalorder %s17726_s28, %s22951_s22  ;;  %p22957_p3 = scmp.lt.s32.totalorder %s22951_s22, %s22951_s22 }
0x1782   :  { %19645 = vmatpush3.bf16.msra.mxu0 %v22356_v29 }
0x1783   :  { %19646 = vmatprep.subr.bf16.mxu0 %v22357_v10  ;;  %p22958_p4 = por %p22957_p3, %p22956_p2 }
0x1785   :  { %p22959_p5 = pnand %p22958_p4, %p22952_p1 }
0x1786   :  { %19647 = vmatpush3.bf16.msra.mxu0 %v22358_v44 }
0x1787   :  { %19648 = vmatprep.subr.bf16.mxu0 %v22359_v51 }
0x178a   :  { %19649 = vmatpush3.bf16.msra.mxu0 %v22360_v43  ;;  %v17294_v43 = vld [vmem:[#allocation39] sm:$0x1] }
0x178b   :  { %19650 = vmatprep.subr.bf16.mxu0 %v22361_v7 }
0x178e   :  { %19651 = vmatpush3.bf16.msra.mxu0 %v22362_v14  ;;  %v17477_v14 = vld [vmem:[#allocation42] sm:$0x1] }
0x178f   :  { %19652 = vmatprep.subr.bf16.mxu0 %v22363_v8 }
0x1792   :  { %19653 = vmatpush3.bf16.msra.mxu0 %v22364_v42 }
0x1793   :  { %19654 = vmatprep.subr.bf16.mxu0 %v22365_v34 }
0x1796   :  { %19655 = vmatpush3.bf16.msra.mxu0 %v22366_v13 }
0x1797   :  { %19656 = vmatprep.subr.bf16.mxu0 %v22367_v9 }
0x179a   :  { %19657 = vmatpush3.bf16.msra.mxu0 %v22368_v21 }
0x179b   :  { %20060 = vmatprep.subr.bf16.mxu0 %v20059_v57 }
0x179d   :  { %17607 = vmatmul.mubr.bf16.vlgmr.msra.gmra.mrb[224].mxu0 %v17443_v31 }
0x179e   :  { %20062 = vmatpush3.bf16.msra.mxu0 %v20061_v55 }
0x179f   :  { %20064 = vmatprep.subr.bf16.mxu0 %v20063_v20 }
0x17a2   :  { %20066 = vmatpush3.bf16.msra.mxu0 %v20065_v3 }
0x17a3   :  { %20068 = vmatprep.subr.bf16.mxu0 %v20067_v56 }
0x17a6   :  { %20070 = vmatpush3.bf16.msra.mxu0 %v20069_v24 }
0x17a7   :  { %20072 = vmatprep.subr.bf16.mxu0 %v20071_v60 }
0x17aa   :  { %20074 = vmatpush3.bf16.msra.mxu0 %v20073_v52 }
0x17ab   :  { %20076 = vmatprep.subr.bf16.mxu0 %v20075_v61 }
0x17ae   :  { %20078 = vmatpush3.bf16.msra.mxu0 %v20077_v45 }
0x17af   :  { %20080 = vmatprep.subr.bf16.mxu0 %v20079_v49 }
0x17b2   :  { %20082 = vmatpush3.bf16.msra.mxu0 %v20081_v38 }
0x17b3   :  { %20084 = vmatprep.subr.bf16.mxu0 %v20083_v25 }
0x17b6   :  { %20086 = vmatpush3.bf16.msra.mxu0 %v20085_v15 }
0x17b7   :  { %20088 = vmatprep.subr.bf16.mxu0 %v20087_v63 }
0x17ba   :  { %20090 = vmatpush3.bf16.msra.mxu0 %v20089_v12 }
0x1850   :  { %v19636_v23 = vpop.f32.mrb[220].mxu0 }
0x1851   :  { %v19637_v29 = vpop.f32.mrb[221].mxu0 }
0x1852   :  { %v19638_v10 = vadd.f32 %v19637_v29, %v19636_v23  ;;  %v19639_v44 = vpop.f32.mrb[222].mxu0 }
0x1853   :  { %v19640_v51 = vpop.f32.mrb[223].mxu0 }
0x1854   :  { %v17426_v13 = vadd.f32 %v19638_v10, %v17294_v43 }
0x1856   :  { %v17431_v31 = vmax.f32 %v17426_v13, 0.0 }
0x1870   :  { %v19658_v7 = vpop.f32.mrb[224].mxu0 }
0x1871   :  { %v19659_v8 = vpop.f32.mrb[225].mxu0 }
0x1872   :  { %v19660_v42 = vadd.f32 %v19659_v8, %v19658_v7  ;;  %v19661_v34 = vpop.f32.mrb[226].mxu0 }
0x1873   :  { %v19662_v9 = vpop.f32.mrb[227].mxu0 }
0x1874   :  { %v17609_v21 = vadd.f32 %v19660_v42, %v17477_v14 }
0x1876   :  { %v17614_v26 = vmax.f32 %v17609_v21, 0.0 }
0x1878   :  { %17712 = vmatprep.mubr.f32.mxu0 %v17614_v26 }
0x1879   :  { %17713 = vmatmul.mubr.f32.vlgmr.msra.gmra.mrb[228].mxu0 %v17431_v31 }
0x194c   :  { %v19696_v17 = vpop.f32.mrb[228].mxu0 }
0x194d   :  { %v19697_v32 = vpop.f32.mrb[229].mxu0 }
0x194e   :  { %v19698_v57 = vadd.f32 %v19697_v32, %v19696_v17 }
0x1950   :  { %v17715_v6 = vadd.f32 %v19698_v57, %v17647_v19 }
0x1952   :  { %17718 = vst.msk [vmem:[#allocation45 + $0x1] sm:$0x1] %vm25497_vm8, %v17715_v6 }
0x1953   :  { %22962 = shalt.err (!%p22959_p5)
}
0x1954   :  { %s22963_s27 = scalar_lea.hbm %s23239_s21, 32 }
0x1955   :  { %p22964_p6 = scmp.ne.s32.totalorder %s23239_s21, %s22963_s27  ;;  %p22967_p7 = scmp.lt.u32.totalorder %s22963_s27, %s23239_s21 }
0x1957   :  { %p22969_p8 = pnand %p22967_p7, %p22964_p6 }
0x1959   :  { %22972 = shalt.err (!%p22969_p8)
}
0x195a   :  { %17728 = dma.vmem_to_hbm [thread:$0]  %s17726_s28, 32, %s23239_s21, [#allocation4]  }
0x195b   :  { %23003 = dma.done.wait [#allocation4], 32  }
0x195c   :  { %23004 = vsyncadd [#allocation4], 4294967264 }
0x195d   :  { %17732 = vsyncpa [#allocation3], 1 }
0x195e   :  { %17733 = vsyncpa [#allocation8], 1 }
0x195f   :  { %17734 = vsyncpa [#allocation11], 1 }
0x1960   :  { %17735 = vsyncpa [#allocation14], 1 }
0x1961   :  { %17736 = vsyncpa [#allocation17], 1 }
0x1962   :  { %17737 = vsyncpa [#allocation20], 1 }
0x1963   :  { %17738 = vsyncpa [#allocation23], 1 }
0x1964   :  { %17739 = vsyncpa [#allocation26], 1 }
0x1965   :  { %17740 = vsyncpa [#allocation29], 1 }
0x1966   :  { %17741 = vsyncpa [#allocation32], 1 }
0x1967   :  { %17742 = vsyncpa [#allocation35], 1 }
0x1968   :  { %17743 = vsyncpa [#allocation38], 1 }
0x1969   :  { %17744 = vsyncpa [#allocation41], 1 }
0x196a   :  { %17745 = vsyncpa [#allocation44], 1 }
0x196b   :  { %17746 = vsyncpa [#allocation4], 1 }
0x196c   :  { %17747 = vsyncpa [#allocation5], 1 }

</bundles_post_ra>
